<compile_context>
chip_gen: v6e
topology: v6e:2x2x1
jax: 0.10.0
libtpu: 0.0.40
codegen_flags: <defaults>
</compile_context>

<pallas_src>
from functools import partial

import numpy as np
import jax
import jax.numpy as jnp
from jax.experimental import pallas as pl
from jax.experimental.pallas import tpu as pltpu


# ------------------------- chip-aware configuration --------------------------

def _device_kind():
    try:
        return jax.devices()[0].device_kind.lower()
    except Exception:
        return ""


def _vmem_capacity_bytes():
    try:
        return int(pltpu.get_tpu_info().vmem_capacity_bytes)
    except Exception:
        return 64 << 20        # conservative default (v7x per-core size)


_KIND = _device_kind()
_IS_V5E = ("v5 lite" in _KIND) or ("v5e" in _KIND) or ("v5litepod" in _KIND)
_VMEM_CAP = _vmem_capacity_bytes()
_VMEM_LIMIT = int(min(_VMEM_CAP * 3 // 4, 100 << 20))
_ATTN_VMEM_BUDGET = max(1 << 20, min(_VMEM_LIMIT // 2, 24 << 20))

_SINGLE_K_MAX = 1536      # full-K single block (LN-fusable) path
_SINGLE_N_MAX = 1024      # above this, the single-K path tiles N


# ----------------------------- helpers (static) -------------------------------

def _round_up(x, m):
    return (x + m - 1) // m * m


def _compute_pad_size_3d(size_dhw, patch_size):
    return tuple((patch_size[i] - size_dhw[i] % patch_size[i]) % patch_size[i]
                 for i in range(3))


def _get_window_and_shift_size(shift_size, size_dhw, window_size):
    window_size = list(window_size)
    shift_size = list(shift_size)
    for i in range(3):
        if size_dhw[i] <= window_size[i]:
            window_size[i] = size_dhw[i]
            shift_size[i] = 0
    return window_size, shift_size


def _relative_position_index(window_size):
    w0, w1, w2 = window_size
    coords = np.stack(np.meshgrid(np.arange(w0), np.arange(w1), np.arange(w2),
                                  indexing="ij"))
    coords_flatten = coords.reshape(3, -1)
    rel = coords_flatten[:, :, None] - coords_flatten[:, None, :]
    rel = rel.transpose(1, 2, 0).astype(np.int64)
    rel[:, :, 0] += w0 - 1
    rel[:, :, 1] += w1 - 1
    rel[:, :, 2] += w2 - 1
    rel[:, :, 0] *= (2 * w1 - 1) * (2 * w2 - 1)
    rel[:, :, 1] *= 2 * w2 - 1
    return rel.sum(-1)  # (vol, vol) numpy int


def _compute_attention_mask_3d(size_dhw, window_size, shift_size):
    attn_mask = np.zeros(size_dhw, dtype=np.float32)
    nT = size_dhw[0] // window_size[0]
    nH = size_dhw[1] // window_size[1]
    nW = size_dhw[2] // window_size[2]
    num_windows = nT * nH * nW
    slices = [((0, -window_size[i]),
               (-window_size[i], -shift_size[i]),
               (-shift_size[i], None)) for i in range(3)]
    count = 0
    for d in slices[0]:
        for h in slices[1]:
            for w in slices[2]:
                attn_mask[d[0]:d[1], h[0]:h[1], w[0]:w[1]] = count
                count += 1
    attn_mask = attn_mask.reshape(nT, window_size[0], nH, window_size[1],
                                  nW, window_size[2])
    attn_mask = attn_mask.transpose(0, 2, 4, 1, 3, 5).reshape(
        num_windows, window_size[0] * window_size[1] * window_size[2])
    diff = attn_mask[:, None, :] - attn_mask[:, :, None]
    return np.where(diff != 0, -100.0, 0.0).astype(np.float32)  # (nW, vol, vol)


def _gelu_erf(x):
    """Exact (erf) GELU via the Abramowitz & Stegun 7.1.26 polynomial
    (|err| < 1.5e-7).  Uses the approximate EUP reciprocal so the fused fc1
    epilogue stays off the VALU critical path."""
    a1, a2, a3, a4, a5 = (0.254829592, -0.284496736, 1.421413741,
                          -1.453152027, 1.061405429)
    pcoef = 0.3275911
    z = x * np.float32(1.0 / np.sqrt(2.0))
    sgn = jnp.where(z >= 0, 1.0, -1.0)
    az = jnp.abs(z)
    t = pl.reciprocal(1.0 + pcoef * az, approx=True)
    poly = ((((a5 * t + a4) * t + a3) * t + a2) * t + a1) * t
    erf = sgn * (1.0 - poly * jnp.exp(-az * az))
    return 0.5 * x * (1.0 + erf)


# ------------------------------ Pallas kernels --------------------------------
#
# Linear path A ("single K block"): full K per block, grid over (M tiles,
# N tiles).  Supports fused pre-LayerNorm (recomputed per N tile), fused GELU,
# fused residual add, and a fused post-LayerNorm (used by patch embedding).
# Linear path B ("tiled"): classic (M, N, K) grid with an f32 VMEM accumulator
# for large K (fc2 / patch merging at big C), with fused GELU / residual.

def _single_linear_kernel(*refs, eps, do_ln, do_post_ln, do_gelu, has_res):
    it = iter(refs)
    x_ref = next(it)
    w_ref = next(it)
    b_ref = next(it)
    g_ref = bb_ref = pg_ref = pb_ref = r_ref = None
    if do_ln:
        g_ref = next(it)
        bb_ref = next(it)
    if do_post_ln:
        pg_ref = next(it)
        pb_ref = next(it)
    if has_res:
        r_ref = next(it)
    o_ref = next(it)

    x = x_ref[...]
    if do_ln:                                    # LayerNorm stats in f32
        xf = x.astype(jnp.float32)
        mu = jnp.mean(xf, axis=-1, keepdims=True)
        var = jnp.mean(jnp.square(xf - mu), axis=-1, keepdims=True)
        xf = (xf - mu) * jax.lax.rsqrt(var + eps)
        xf = xf * g_ref[...] + bb_ref[...]
        xb = xf.astype(jnp.bfloat16)
    else:
        xb = x.astype(jnp.bfloat16)
    y = jnp.dot(xb, w_ref[...], preferred_element_type=jnp.float32) + b_ref[...]
    if do_gelu:
        y = _gelu_erf(y)
    if has_res:
        y = y + r_ref[...].astype(jnp.float32)
    if do_post_ln:                               # full N in this block
        mu = jnp.mean(y, axis=-1, keepdims=True)
        var = jnp.mean(jnp.square(y - mu), axis=-1, keepdims=True)
        y = (y - mu) * jax.lax.rsqrt(var + eps)
        y = y * pg_ref[...] + pb_ref[...]
    o_ref[...] = y.astype(o_ref.dtype)


def _linear_single(x, w, b, *, ln, post_ln, gelu, residual, eps, out_dtype,
                   tm, tn):
    orig = x.shape
    K, N = w.shape
    x2 = x.reshape(-1, K)
    M = x2.shape[0]
    res2 = residual.reshape(-1, N) if residual is not None else None

    tm_e = min(tm, _round_up(M, 8))
    tn_e = N if N <= _SINGLE_N_MAX else tn
    Mp = _round_up(M, tm_e)
    Np = _round_up(N, tn_e)
    # keep >= 2 parallel grid steps when possible (v7x has 2 TensorCores)
    if Mp // tm_e == 1 and Np // tn_e == 1 and M > 8:
        tm_e = _round_up(-(-M // 2), 8)
        Mp = _round_up(M, tm_e)

    if Mp != M:
        x2 = jnp.pad(x2, ((0, Mp - M), (0, 0)))
        if res2 is not None:
            res2 = jnp.pad(res2, ((0, Mp - M), (0, 0)))
    wp, bp = w, b
    if Np != N:
        wp = jnp.pad(w, ((0, 0), (0, Np - N)))
        bp = jnp.pad(b, ((0, 0), (0, Np - N)))
        if res2 is not None:
            res2 = jnp.pad(res2, ((0, 0), (0, Np - N)))

    in_specs = [
        pl.BlockSpec((tm_e, K), lambda i, j: (i, 0)),
        pl.BlockSpec((K, tn_e), lambda i, j: (0, j)),
        pl.BlockSpec((1, tn_e), lambda i, j: (0, j)),
    ]
    args = [x2, wp, bp]
    if ln is not None:
        in_specs += [pl.BlockSpec((1, K), lambda i, j: (0, 0)),
                     pl.BlockSpec((1, K), lambda i, j: (0, 0))]
        args += [ln[0], ln[1]]
    if post_ln is not None:
        in_specs += [pl.BlockSpec((1, N), lambda i, j: (0, 0)),
                     pl.BlockSpec((1, N), lambda i, j: (0, 0))]
        args += [post_ln[0], post_ln[1]]
    if res2 is not None:
        in_specs.append(pl.BlockSpec((tm_e, tn_e), lambda i, j: (i, j)))
        args.append(res2)

    out = pl.pallas_call(
        partial(_single_linear_kernel, eps=eps, do_ln=ln is not None,
                do_post_ln=post_ln is not None, do_gelu=gelu,
                has_res=res2 is not None),
        out_shape=jax.ShapeDtypeStruct((Mp, Np), out_dtype),
        grid=(Mp // tm_e, Np // tn_e),
        in_specs=in_specs,
        out_specs=pl.BlockSpec((tm_e, tn_e), lambda i, j: (i, j)),
        compiler_params=pltpu.CompilerParams(
            dimension_semantics=("parallel", "parallel"),
            vmem_limit_bytes=_VMEM_LIMIT),
    )(*args)
    return out[:M, :N].reshape(orig[:-1] + (N,))


def _tiled_linear_kernel(*refs, do_gelu, has_res):
    if has_res:
        x_ref, w_ref, b_ref, r_ref, o_ref, acc_ref = refs
    else:
        x_ref, w_ref, b_ref, o_ref, acc_ref = refs
    k = pl.program_id(2)

    @pl.when(k == 0)
    def _():
        acc_ref[...] = jnp.zeros_like(acc_ref)

    acc_ref[...] += jnp.dot(x_ref[...].astype(jnp.bfloat16), w_ref[...],
                            preferred_element_type=jnp.float32)

    @pl.when(k == pl.num_programs(2) - 1)
    def _():
        y = acc_ref[...] + b_ref[...]
        if do_gelu:
            y = _gelu_erf(y)
        if has_res:
            y = y + r_ref[...].astype(jnp.float32)
        o_ref[...] = y.astype(o_ref.dtype)


def pallas_linear_tiled(x, w, b, *, gelu=False, residual=None,
                        out_dtype=jnp.bfloat16, tm=None, tn=None, tk=512):
    """General K-tiled matmul.  128x128 output tiles on v5e (4x128^2 MXU),
    256x256 on v6e/v7x; deep tk.  Activations arrive bf16 from their producer
    so the re-fetched x blocks are 2 bytes/elem."""
    if tm is None:
        tm = 128 if _IS_V5E else 256
    if tn is None:
        tn = 128 if _IS_V5E else 256
    orig = x.shape
    K, N = w.shape
    x2 = x.reshape(-1, K)
    M = x2.shape[0]
    res2 = residual.reshape(-1, N) if residual is not None else None
    tm_e = min(tm, _round_up(M, 8))
    tk_e = min(tk, _round_up(K, 128))
    tn_e = min(tn, _round_up(N, 128))
    Mp, Kp, Np = _round_up(M, tm_e), _round_up(K, tk_e), _round_up(N, tn_e)
    x2 = jnp.pad(x2, ((0, Mp - M), (0, Kp - K)))
    wp = jnp.pad(w, ((0, Kp - K), (0, Np - N)))
    bp = jnp.pad(b, ((0, 0), (0, Np - N)))
    if res2 is not None:
        res2 = jnp.pad(res2, ((0, Mp - M), (0, Np - N)))

    in_specs = [
        pl.BlockSpec((tm_e, tk_e), lambda i, j, k: (i, k)),
        pl.BlockSpec((tk_e, tn_e), lambda i, j, k: (k, j)),
        pl.BlockSpec((1, tn_e), lambda i, j, k: (0, j)),
    ]
    args = [x2, wp, bp]
    if res2 is not None:
        in_specs.append(pl.BlockSpec((tm_e, tn_e), lambda i, j, k: (i, j)))
        args.append(res2)

    out = pl.pallas_call(
        partial(_tiled_linear_kernel, do_gelu=gelu, has_res=res2 is not None),
        out_shape=jax.ShapeDtypeStruct((Mp, Np), out_dtype),
        grid_spec=pltpu.PrefetchScalarGridSpec(
            num_scalar_prefetch=0,
            grid=(Mp // tm_e, Np // tn_e, Kp // tk_e),
            in_specs=in_specs,
            out_specs=pl.BlockSpec((tm_e, tn_e), lambda i, j, k: (i, j)),
            scratch_shapes=[pltpu.VMEM((tm_e, tn_e), jnp.float32)],
        ),
        compiler_params=pltpu.CompilerParams(
            dimension_semantics=("parallel", "parallel", "arbitrary"),
            vmem_limit_bytes=_VMEM_LIMIT),
    )(*args)
    return out[:M, :N].reshape(orig[:-1] + (N,))


def pallas_linear(x, w, b, *, ln=None, post_ln=None, gelu=False, residual=None,
                  eps=1e-5, out_dtype=jnp.bfloat16, tm=512, tn=512):
    """y = post_LN?(LN?(x) @ w + b (+GELU) (+residual)).
    x: (..., K) bf16/f32; w: (K, N) bf16 prepared; b: (1, N) f32;
    ln / post_ln = (gamma, beta) each (1, dim) f32."""
    K, N = w.shape
    if K <= _SINGLE_K_MAX and not (post_ln is not None and N > _SINGLE_N_MAX):
        return _linear_single(x, w, b, ln=ln, post_ln=post_ln, gelu=gelu,
                              residual=residual, eps=eps, out_dtype=out_dtype,
                              tm=tm, tn=tn)
    if ln is not None:            # LN fusion requires the full K in one block
        x = pallas_layernorm(x, ln[0], ln[1], eps=eps)
    y = pallas_linear_tiled(x, w, b, gelu=gelu, residual=residual,
                            out_dtype=out_dtype)
    if post_ln is not None:
        y = pallas_layernorm(y, post_ln[0], post_ln[1], eps=eps,
                             out_dtype=out_dtype)
    return y


def _layernorm_kernel(x_ref, g_ref, b_ref, o_ref, *, eps):
    x = x_ref[...].astype(jnp.float32)
    mu = jnp.mean(x, axis=-1, keepdims=True)
    var = jnp.mean(jnp.square(x - mu), axis=-1, keepdims=True)
    y = (x - mu) * jax.lax.rsqrt(var + eps)
    o_ref[...] = (y * g_ref[...] + b_ref[...]).astype(o_ref.dtype)


def pallas_layernorm(x, gamma, beta, eps=1e-5, *, tm=512,
                     out_dtype=jnp.bfloat16):
    orig = x.shape
    C = orig[-1]
    x2 = x.reshape(-1, C)
    M = x2.shape[0]
    tm_e = min(tm, _round_up(M, 8))
    Mp = _round_up(M, tm_e)
    if Mp != M:
        x2 = jnp.pad(x2, ((0, Mp - M), (0, 0)))
    g2 = gamma.reshape(1, C).astype(jnp.float32)
    b2 = beta.reshape(1, C).astype(jnp.float32)
    out = pl.pallas_call(
        partial(_layernorm_kernel, eps=eps),
        out_shape=jax.ShapeDtypeStruct((Mp, C), out_dtype),
        grid=(Mp // tm_e,),
        in_specs=[
            pl.BlockSpec((tm_e, C), lambda i: (i, 0)),
            pl.BlockSpec((1, C), lambda i: (0, 0)),
            pl.BlockSpec((1, C), lambda i: (0, 0)),
        ],
        out_specs=pl.BlockSpec((tm_e, C), lambda i: (i, 0)),
        compiler_params=pltpu.CompilerParams(
            dimension_semantics=("parallel",),
            vmem_limit_bytes=_VMEM_LIMIT),
    )(x2, g2, b2)
    return out[:M].reshape(orig)


def _window_attn_kernel(*refs, has_mask, num_heads):
    if has_mask:
        qkv_ref, bias_ref, mask_ref, o_ref = refs
    else:
        qkv_ref, bias_ref, o_ref = refs
    C3 = qkv_ref.shape[3]
    C = C3 // 3
    hd = C // num_heads
    qkv = qkv_ref[0]                               # (WB, vol, 3C) bf16
    mask = mask_ref[...] if has_mask else None     # (WB, vol, vol) f32
    outs = []
    for h in range(num_heads):                     # static head loop
        # q already carries the hd**-0.5 scale (folded into qkv weights).
        q = qkv[:, :, h * hd:(h + 1) * hd]
        k = qkv[:, :, C + h * hd:C + (h + 1) * hd]
        v = qkv[:, :, 2 * C + h * hd:2 * C + (h + 1) * hd]
        s = jnp.einsum("wqd,wkd->wqk", q, k,
                       preferred_element_type=jnp.float32)
        s = s + bias_ref[h]                        # per-head rel-pos bias
        if has_mask:
            s = s + mask                           # per-window shift mask
        s = jnp.exp(s - jnp.max(s, axis=-1, keepdims=True))
        s = s * pl.reciprocal(jnp.sum(s, axis=-1, keepdims=True), approx=True)
        o_h = jnp.einsum("wqk,wkd->wqd", s.astype(jnp.bfloat16), v,
                         preferred_element_type=jnp.float32)
        outs.append(o_h.astype(jnp.bfloat16))
    o = jnp.concatenate(outs, axis=-1)             # head merge: (WB, vol, C)
    o_ref[0] = o.astype(o_ref.dtype)


def pallas_window_attention(qkv, rel_bias, mask, num_heads,
                            out_dtype=jnp.bfloat16):
    """qkv: (B, nW, vol, 3C) bf16 (lane-dense fused projection);
    rel_bias: (H, vol, vol) f32; mask: (nW, vol, vol) f32 or None.
    Returns (B, nW, vol, C) -- head split/merge happen inside the kernel so the
    HBM-side layout stays lane-dense."""
    B, NW, vol, C3 = qkv.shape
    C = C3 // 3
    H = num_heads
    # Window batching sized from the full per-step VMEM working set:
    # ~4 f32 score-sized temporaries per head, double-buffered qkv/out blocks
    # (+ per-head slices), and the (double-buffered) shift mask.
    per_window = (16 * H * vol * vol
                  + 8 * vol * vol
                  + 24 * vol * C)
    WB = max(1, min(NW, _ATTN_VMEM_BUDGET // max(1, per_window)))
    if B == 1:                                     # keep both TCs busy on v7x
        WB = min(WB, max(1, -(-NW // 2)))
    NWp = _round_up(NW, WB)
    if NWp != NW:
        padw = NWp - NW
        qkv = jnp.pad(qkv, ((0, 0), (0, padw), (0, 0), (0, 0)))
        if mask is not None:
            mask = jnp.pad(mask, ((0, padw), (0, 0), (0, 0)))

    in_specs = [
        pl.BlockSpec((1, WB, vol, 3 * C), lambda b, w: (b, w, 0, 0)),
        pl.BlockSpec((H, vol, vol), lambda b, w: (0, 0, 0)),
    ]
    args = [qkv, rel_bias]
    if mask is not None:
        in_specs.append(pl.BlockSpec((WB, vol, vol), lambda b, w: (w, 0, 0)))
        args.append(mask)

    out = pl.pallas_call(
        partial(_window_attn_kernel, has_mask=mask is not None,
                num_heads=num_heads),
        out_shape=jax.ShapeDtypeStruct((B, NWp, vol, C), out_dtype),
        grid=(B, NWp // WB),
        in_specs=in_specs,
        out_specs=pl.BlockSpec((1, WB, vol, C), lambda b, w: (b, w, 0, 0)),
        compiler_params=pltpu.CompilerParams(
            dimension_semantics=("parallel", "parallel"),
            vmem_limit_bytes=_VMEM_LIMIT),
    )(*args)
    return out[:, :NW]


# --------------------------- model building blocks ----------------------------

def shifted_window_attention_3d(x, qkv_w, qkv_b, proj_w, proj_b,
                                rel_pos_bias, window_size, num_heads,
                                shift_size, ln1=None, fuse_residual=False):
    B, T, H, W, C = x.shape
    pad = _compute_pad_size_3d((T, H, W), tuple(window_size))
    x_p = jnp.pad(x, ((0, 0), (0, pad[0]), (0, pad[1]), (0, pad[2]), (0, 0)))
    _, Tp, Hp, Wp, _ = x_p.shape
    shifted = sum(shift_size) > 0
    if shifted:
        x_p = jnp.roll(x_p, (-shift_size[0], -shift_size[1], -shift_size[2]),
                       axis=(1, 2, 3))

    wt, wh, ww = window_size
    nT, nH, nW = Tp // wt, Hp // wh, Wp // ww
    num_windows = nT * nH * nW
    vol = wt * wh * ww
    xw = x_p.reshape(B, nT, wt, nH, wh, nW, ww, C)
    xw = xw.transpose(0, 1, 3, 5, 2, 4, 6, 7).reshape(B * num_windows, vol, C)

    # fused (norm1 +) qkv projection; q pre-scaled via folded weights; bf16 out
    qkv = pallas_linear(xw, qkv_w, qkv_b, ln=ln1)        # (B*nW, vol, 3C)
    qkv = qkv.reshape(B, num_windows, vol, 3 * C)

    mask = None
    if shifted:
        mask = jnp.asarray(_compute_attention_mask_3d(
            (Tp, Hp, Wp), tuple(window_size), tuple(shift_size)))

    o = pallas_window_attention(qkv, rel_pos_bias, mask, num_heads)
    o = o.reshape(B * num_windows, vol, C)

    # output projection; residual fused when the windowing is a pure permutation
    res = xw if fuse_residual else None
    o = pallas_linear(o, proj_w, proj_b, residual=res)

    o = o.reshape(B, nT, nH, nW, wt, wh, ww, C)
    o = o.transpose(0, 1, 4, 2, 5, 3, 6, 7).reshape(B, Tp, Hp, Wp, C)
    if shifted:
        o = jnp.roll(o, tuple(shift_size), axis=(1, 2, 3))
    return o[:, :T, :H, :W, :]


def get_relative_position_bias(table, window_size_orig, window_size, num_heads):
    rel_index = _relative_position_index(window_size_orig)
    vol = window_size[0] * window_size[1] * window_size[2]
    idx = rel_index[:vol, :vol].reshape(-1)
    bias = table[idx].reshape(vol, vol, num_heads).transpose(2, 0, 1)
    return bias.astype(jnp.float32)  # (heads, vol, vol)


def swin_block(x, p, window_size, shift_size, num_heads):
    B, T, H, W, C = x.shape
    ws, ss = _get_window_and_shift_size(list(shift_size), [T, H, W],
                                        list(window_size))
    rel_bias = get_relative_position_bias(p["rel_table"], window_size, ws,
                                          num_heads)
    pad = _compute_pad_size_3d((T, H, W), tuple(ws))
    if all(pp == 0 for pp in pad):
        # norm1 fused into qkv, residual fused into the proj epilogue
        x = shifted_window_attention_3d(
            x, p["qkv_w"], p["qkv_b"], p["proj_w"], p["proj_b"],
            rel_bias, ws, num_heads, ss,
            ln1=(p["norm1_g"], p["norm1_b"]), fuse_residual=True)
    else:
        # padded tokens must stay zero AFTER the norm (as in torch) -> no fusion
        y = shifted_window_attention_3d(
            pallas_layernorm(x, p["norm1_g"], p["norm1_b"]),
            p["qkv_w"], p["qkv_b"], p["proj_w"], p["proj_b"],
            rel_bias, ws, num_heads, ss, ln1=None, fuse_residual=False)
        x = x + y                   # stochastic depth == identity in eval
    # MLP branch: norm2 + fc1 + GELU fused; fc2 fused with the residual add.
    y = pallas_linear(x, p["fc1_w"], p["fc1_b"],
                      ln=(p["norm2_g"], p["norm2_b"]), gelu=True)
    x = pallas_linear(y, p["fc2_w"], p["fc2_b"], residual=x)
    return x


def patch_embed(x, p, patch_size, embed_dim):
    B, Cin, T, H, W = x.shape
    x = x.astype(jnp.bfloat16)
    pad = _compute_pad_size_3d((T, H, W), patch_size)
    x = jnp.pad(x, ((0, 0), (0, 0), (0, pad[0]), (0, pad[1]), (0, pad[2])))
    Tp, Hp, Wp = T + pad[0], H + pad[1], W + pad[2]
    pt, ph, pw = patch_size
    nT, nH, nW = Tp // pt, Hp // ph, Wp // pw
    # strided Conv3d(kernel=stride=patch) == patch flatten + matmul
    x = x.reshape(B, Cin, nT, pt, nH, ph, nW, pw)
    x = x.transpose(0, 2, 4, 6, 1, 3, 5, 7).reshape(B * nT * nH * nW,
                                                    Cin * pt * ph * pw)
    # small K -> single-block path, patch-embed LayerNorm fused as post-LN
    y = pallas_linear(x, p["conv_w"], p["conv_b"],
                      post_ln=(p["norm_g"], p["norm_b"]))
    return y.reshape(B, nT, nH, nW, embed_dim)


def patch_merging(x, p):
    B, T, H, W, C = x.shape
    x = jnp.pad(x, ((0, 0), (0, 0), (0, H % 2), (0, W % 2), (0, 0)))
    x0 = x[..., 0::2, 0::2, :]
    x1 = x[..., 1::2, 0::2, :]
    x2 = x[..., 0::2, 1::2, :]
    x3 = x[..., 1::2, 1::2, :]
    x = jnp.concatenate([x0, x1, x2, x3], axis=-1)   # (B, T, H/2, W/2, 4C)
    # LayerNorm fused into the 4C -> 2C reduction linear (bias-free).
    return pallas_linear(x, p["red_w"], p["red_b"],
                         ln=(p["norm_g"], p["norm_b"]))


def swin3d_forward(x, params, cfg):
    x = patch_embed(x, params["patch_embed"], cfg["patch_size"],
                    cfg["embed_dim"])
    # pos_drop: p=0 -> identity
    for i_stage, stage in enumerate(params["stages"]):
        for i_layer, bp in enumerate(stage["blocks"]):
            shift = [0 if i_layer % 2 == 0 else w // 2
                     for w in cfg["window_size"]]
            x = swin_block(x, bp, cfg["window_size"], shift,
                           cfg["num_heads"][i_stage])
        if stage["merge"] is not None:
            x = patch_merging(x, stage["merge"])
    x = pallas_layernorm(x, params["norm_g"], params["norm_b"])
    x = jnp.mean(x.astype(jnp.float32), axis=(1, 2, 3))   # AdaptiveAvgPool3d(1)
    return pallas_linear(x, params["head_w"], params["head_b"],
                         out_dtype=jnp.float32)


# ------------------------------- init params ---------------------------------

def init_params(key, cfg, in_channels=3):
    """PyTorch-layout (out, in) f32 parameters."""
    keys = iter(jax.random.split(key, 256))

    def nrm(shape, std=0.02):
        return jax.random.normal(next(keys), shape, jnp.float32) * std

    zeros = lambda s: jnp.zeros(s, jnp.float32)
    ones = lambda s: jnp.ones(s, jnp.float32)

    pt, ph, pw = cfg["patch_size"]
    ed = cfg["embed_dim"]
    params = {
        "patch_embed": {
            "conv_w": nrm((ed, in_channels, pt, ph, pw)),
            "conv_b": zeros((ed,)),
            "norm_g": ones((ed,)), "norm_b": zeros((ed,)),
        },
        "stages": [],
    }
    ws = cfg["window_size"]
    rel_table_rows = (2 * ws[0] - 1) * (2 * ws[1] - 1) * (2 * ws[2] - 1)
    n_stages = len(cfg["depths"])
    for i_stage in range(n_stages):
        dim = ed * (2 ** i_stage)
        heads = cfg["num_heads"][i_stage]
        hidden = int(dim * cfg["mlp_ratio"])
        blocks = []
        for _ in range(cfg["depths"][i_stage]):
            blocks.append({
                "norm1_g": ones((dim,)), "norm1_b": zeros((dim,)),
                "qkv_w": nrm((3 * dim, dim)), "qkv_b": zeros((3 * dim,)),
                "proj_w": nrm((dim, dim)), "proj_b": zeros((dim,)),
                "rel_table": nrm((rel_table_rows, heads)),
                "norm2_g": ones((dim,)), "norm2_b": zeros((dim,)),
                "fc1_w": nrm((hidden, dim)), "fc1_b": zeros((hidden,)),
                "fc2_w": nrm((dim, hidden)), "fc2_b": zeros((dim,)),
            })
        merge = None
        if i_stage < n_stages - 1:
            merge = {
                "norm_g": ones((4 * dim,)), "norm_b": zeros((4 * dim,)),
                "red_w": nrm((2 * dim, 4 * dim)),
            }
        params["stages"].append({"blocks": blocks, "merge": merge})
    nf = ed * (2 ** (n_stages - 1))
    params["norm_g"] = ones((nf,))
    params["norm_b"] = zeros((nf,))
    params["head_w"] = nrm((cfg["num_classes"], nf))
    params["head_b"] = zeros((cfg["num_classes"],))
    return params


def prepare_params(raw, cfg):
    """One-time conversion to the kernel-friendly layout: weights transposed to
    (K, N) bf16, biases to (1, N) f32, LN affine params to (1, C) f32, and the
    attention q-scale folded into the qkv weights/bias."""
    def t(w):
        return jnp.asarray(w).T.astype(jnp.bfloat16)

    def bias(b, n):
        if b is None:
            return jnp.zeros((1, n), jnp.float32)
        return jnp.asarray(b, jnp.float32).reshape(1, n)

    def lnp(g, b):
        return (jnp.asarray(g, jnp.float32).reshape(1, -1),
                jnp.asarray(b, jnp.float32).reshape(1, -1))

    ed = cfg["embed_dim"]
    pe = raw["patch_embed"]
    pg, pb = lnp(pe["norm_g"], pe["norm_b"])
    prep = {
        "patch_embed": {
            "conv_w": t(pe["conv_w"].reshape(ed, -1)),
            "conv_b": bias(pe["conv_b"], ed),
            "norm_g": pg, "norm_b": pb,
        },
        "stages": [],
    }
    for i_stage, stage in enumerate(raw["stages"]):
        heads = cfg["num_heads"][i_stage]
        blocks = []
        for bp in stage["blocks"]:
            dim = bp["qkv_w"].shape[1]
            hd = dim // heads
            scale = hd ** -0.5
            qkv_w = bp["qkv_w"].at[:dim].multiply(scale)   # fold q-scale
            qkv_b = bp["qkv_b"].at[:dim].multiply(scale)
            n1g, n1b = lnp(bp["norm1_g"], bp["norm1_b"])
            n2g, n2b = lnp(bp["norm2_g"], bp["norm2_b"])
            blocks.append({
                "norm1_g": n1g, "norm1_b": n1b,
                "qkv_w": t(qkv_w), "qkv_b": bias(qkv_b, 3 * dim),
                "proj_w": t(bp["proj_w"]), "proj_b": bias(bp["proj_b"], dim),
                "rel_table": jnp.asarray(bp["rel_table"], jnp.float32),
                "norm2_g": n2g, "norm2_b": n2b,
                "fc1_w": t(bp["fc1_w"]),
                "fc1_b": bias(bp["fc1_b"], bp["fc1_w"].shape[0]),
                "fc2_w": t(bp["fc2_w"]), "fc2_b": bias(bp["fc2_b"], dim),
            })
        merge = None
        if stage["merge"] is not None:
            m = stage["merge"]
            mg, mb = lnp(m["norm_g"], m["norm_b"])
            merge = {"norm_g": mg, "norm_b": mb,
                     "red_w": t(m["red_w"]),
                     "red_b": bias(None, m["red_w"].shape[0])}
        prep["stages"].append({"blocks": blocks, "merge": merge})
    ng, nb = lnp(raw["norm_g"], raw["norm_b"])
    prep["norm_g"], prep["norm_b"] = ng, nb
    prep["head_w"] = t(raw["head_w"])
    prep["head_b"] = bias(raw["head_b"], raw["head_w"].shape[0])
    return prep


# ----------------------------------- main -------------------------------------

if __name__ == "__main__":
    cfg = dict(
        patch_size=(2, 4, 4),
        embed_dim=16,
        depths=(2, 2),
        num_heads=(2, 4),
        window_size=(2, 2, 2),
        mlp_ratio=4.0,
        num_classes=10,
    )
    key = jax.random.PRNGKey(0)
    k_params, k_x = jax.random.split(key)
    raw_params = init_params(k_params, cfg, in_channels=3)
    params = prepare_params(raw_params, cfg)   # one-time weight prep
    x = jax.random.normal(k_x, (2, 3, 8, 16, 16), jnp.float32)  # (B, C, T, H, W)

    fwd = jax.jit(partial(swin3d_forward, cfg=cfg))
    logits = fwd(x, params)
    jax.block_until_ready(logits)
    assert logits.shape == (2, cfg["num_classes"]), logits.shape
    assert bool(jnp.all(jnp.isfinite(logits)))
    print("KERNEL_OK")
</pallas_src>

<mosaic_0001>
module attributes {stable_mosaic.version = 11 : i64} {
  func.func @_single_linear_kernel(%arg0: i32, %arg1: i32, %arg2: memref<64x96xbf16, #tpu.memory_space<vmem>>, %arg3: memref<96x16xbf16, #tpu.memory_space<vmem>>, %arg4: memref<1x16xf32, #tpu.memory_space<vmem>>, %arg5: memref<1x16xf32, #tpu.memory_space<vmem>>, %arg6: memref<1x16xf32, #tpu.memory_space<vmem>>, %arg7: memref<64x16xbf16, #tpu.memory_space<vmem>>) attributes {dimension_semantics = [#tpu.dimension_semantics<parallel>, #tpu.dimension_semantics<parallel>], iteration_bounds = array<i64: 2, 1>, scalar_prefetch = 0 : i64, scratch_operands = 0 : i64, tpu.core_type = #tpu.core_type<tc>, window_params = [{transform_indices = @transform_0, window_bounds = array<i64: 64, 96>}, {transform_indices = @transform_1, window_bounds = array<i64: 96, 16>}, {transform_indices = @transform_2, window_bounds = array<i64: 1, 16>}, {pipeline_mode = #tpu.pipeline_mode<synchronous>, transform_indices = @transform_3, window_bounds = array<i64: 1, 16>}, {pipeline_mode = #tpu.pipeline_mode<synchronous>, transform_indices = @transform_4, window_bounds = array<i64: 1, 16>}, {transform_indices = @transform_5, window_bounds = array<i64: 64, 16>}]} {
    %c0 = arith.constant 0 : index
    %c0_0 = arith.constant 0 : index
    %0 = vector.load %arg2[%c0, %c0_0] : memref<64x96xbf16, #tpu.memory_space<vmem>>, vector<64x96xbf16>
    %c0_1 = arith.constant 0 : index
    %c0_2 = arith.constant 0 : index
    %1 = vector.load %arg3[%c0_1, %c0_2] : memref<96x16xbf16, #tpu.memory_space<vmem>>, vector<96x16xbf16>
    %cst = arith.constant dense<0.000000e+00> : vector<64x16xf32>
    %2 = tpu.matmul %0, %1, %cst {dimension_numbers = #tpu.dot_dimension_numbers<[1], [0], [0], [1], [0, 0, 1, 1], [], []>} : vector<64x96xbf16>, vector<96x16xbf16>, vector<64x16xf32> -> vector<64x16xf32>
    %c0_3 = arith.constant 0 : index
    %c0_4 = arith.constant 0 : index
    %3 = vector.load %arg4[%c0_3, %c0_4] : memref<1x16xf32, #tpu.memory_space<vmem>>, vector<1x16xf32>
    %4 = vector.broadcast %3 : vector<1x16xf32> to vector<64x16xf32>
    %5 = arith.addf %2, %4 : vector<64x16xf32>
    %cst_5 = arith.constant dense<0.000000e+00> : vector<64xf32>
    %6 = vector.multi_reduction <add>, %5, %cst_5 [1] : vector<64x16xf32> to vector<64xf32>
    %7 = vector.shape_cast %6 : vector<64xf32> to vector<64x1xf32>
    %cst_6 = arith.constant 1.600000e+01 : f32
    %8 = vector.broadcast %cst_6 : f32 to vector<64x1xf32>
    %9 = arith.divf %7, %8 : vector<64x1xf32>
    %10 = vector.broadcast %9 : vector<64x1xf32> to vector<64x16xf32>
    %11 = arith.subf %5, %10 : vector<64x16xf32>
    %12 = arith.mulf %11, %11 : vector<64x16xf32>
    %cst_7 = arith.constant dense<0.000000e+00> : vector<64xf32>
    %13 = vector.multi_reduction <add>, %12, %cst_7 [1] : vector<64x16xf32> to vector<64xf32>
    %14 = vector.shape_cast %13 : vector<64xf32> to vector<64x1xf32>
    %cst_8 = arith.constant 1.600000e+01 : f32
    %15 = vector.broadcast %cst_8 : f32 to vector<64x1xf32>
    %16 = arith.divf %14, %15 : vector<64x1xf32>
    %17 = vector.broadcast %9 : vector<64x1xf32> to vector<64x16xf32>
    %18 = arith.subf %5, %17 : vector<64x16xf32>
    %cst_9 = arith.constant 9.99999974E-6 : f32
    %19 = vector.broadcast %cst_9 : f32 to vector<64x1xf32>
    %20 = arith.addf %16, %19 : vector<64x1xf32>
    %21 = math.rsqrt %20 : vector<64x1xf32>
    %22 = vector.broadcast %21 : vector<64x1xf32> to vector<64x16xf32>
    %23 = arith.mulf %18, %22 : vector<64x16xf32>
    %c0_10 = arith.constant 0 : index
    %c0_11 = arith.constant 0 : index
    %24 = vector.load %arg5[%c0_10, %c0_11] : memref<1x16xf32, #tpu.memory_space<vmem>>, vector<1x16xf32>
    %25 = vector.broadcast %24 : vector<1x16xf32> to vector<64x16xf32>
    %26 = arith.mulf %23, %25 : vector<64x16xf32>
    %c0_12 = arith.constant 0 : index
    %c0_13 = arith.constant 0 : index
    %27 = vector.load %arg6[%c0_12, %c0_13] : memref<1x16xf32, #tpu.memory_space<vmem>>, vector<1x16xf32>
    %28 = vector.broadcast %27 : vector<1x16xf32> to vector<64x16xf32>
    %29 = arith.addf %26, %28 : vector<64x16xf32>
    %30 = arith.truncf %29 : vector<64x16xf32> to vector<64x16xbf16>
    %c0_14 = arith.constant 0 : index
    %c0_15 = arith.constant 0 : index
    %31 = vector.load %arg7[%c0_14, %c0_15] : memref<64x16xbf16, #tpu.memory_space<vmem>>, vector<64x16xbf16>
    tpu.vector_store %arg7[%c0_14, %c0_15], %30 {strides = array<i32>} : memref<64x16xbf16, #tpu.memory_space<vmem>>, vector<64x16xbf16>,
    return
  }
  func.func @transform_0(%arg0: i32, %arg1: i32) -> (i32, i32) {
    %c0_i32 = arith.constant 0 : i32
    %c0_i32_0 = arith.constant 0 : i32
    return %arg0, %c0_i32 : i32, i32
  }
  func.func @transform_1(%arg0: i32, %arg1: i32) -> (i32, i32) {
    %c0_i32 = arith.constant 0 : i32
    %c0_i32_0 = arith.constant 0 : i32
    return %c0_i32, %arg1 : i32, i32
  }
  func.func @transform_2(%arg0: i32, %arg1: i32) -> (i32, i32) {
    %c0_i32 = arith.constant 0 : i32
    %c0_i32_0 = arith.constant 0 : i32
    return %c0_i32, %arg1 : i32, i32
  }
  func.func @transform_3(%arg0: i32, %arg1: i32) -> (i32, i32) {
    %c0_i32 = arith.constant 0 : i32
    %c0_i32_0 = arith.constant 0 : i32
    %c0_i32_1 = arith.constant 0 : i32
    return %c0_i32, %c0_i32_0 : i32, i32
  }
  func.func @transform_4(%arg0: i32, %arg1: i32) -> (i32, i32) {
    %c0_i32 = arith.constant 0 : i32
    %c0_i32_0 = arith.constant 0 : i32
    %c0_i32_1 = arith.constant 0 : i32
    return %c0_i32, %c0_i32_0 : i32, i32
  }
  func.func @transform_5(%arg0: i32, %arg1: i32) -> (i32, i32) {
    %c0_i32 = arith.constant 0 : i32
    return %arg0, %arg1 : i32, i32
  }
}

module attributes {stable_mosaic.version = 11 : i64} {
  func.func @_single_linear_kernel(%arg0: i32, %arg1: i32, %arg2: memref<64x16xbf16, #tpu.memory_space<vmem>>, %arg3: memref<16x48xbf16, #tpu.memory_space<vmem>>, %arg4: memref<1x48xf32, #tpu.memory_space<vmem>>, %arg5: memref<1x16xf32, #tpu.memory_space<vmem>>, %arg6: memref<1x16xf32, #tpu.memory_space<vmem>>, %arg7: memref<64x48xbf16, #tpu.memory_space<vmem>>) attributes {dimension_semantics = [#tpu.dimension_semantics<parallel>, #tpu.dimension_semantics<parallel>], iteration_bounds = array<i64: 2, 1>, scalar_prefetch = 0 : i64, scratch_operands = 0 : i64, tpu.core_type = #tpu.core_type<tc>, window_params = [{transform_indices = @transform_0, window_bounds = array<i64: 64, 16>}, {transform_indices = @transform_1, window_bounds = array<i64: 16, 48>}, {transform_indices = @transform_2, window_bounds = array<i64: 1, 48>}, {pipeline_mode = #tpu.pipeline_mode<synchronous>, transform_indices = @transform_3, window_bounds = array<i64: 1, 16>}, {pipeline_mode = #tpu.pipeline_mode<synchronous>, transform_indices = @transform_4, window_bounds = array<i64: 1, 16>}, {transform_indices = @transform_5, window_bounds = array<i64: 64, 48>}]} {
    %c0 = arith.constant 0 : index
    %c0_0 = arith.constant 0 : index
    %0 = vector.load %arg2[%c0, %c0_0] : memref<64x16xbf16, #tpu.memory_space<vmem>>, vector<64x16xbf16>
    %1 = arith.extf %0 : vector<64x16xbf16> to vector<64x16xf32>
    %cst = arith.constant dense<0.000000e+00> : vector<64xf32>
    %2 = vector.multi_reduction <add>, %1, %cst [1] : vector<64x16xf32> to vector<64xf32>
    %3 = vector.shape_cast %2 : vector<64xf32> to vector<64x1xf32>
    %cst_1 = arith.constant 1.600000e+01 : f32
    %4 = vector.broadcast %cst_1 : f32 to vector<64x1xf32>
    %5 = arith.divf %3, %4 : vector<64x1xf32>
    %6 = vector.broadcast %5 : vector<64x1xf32> to vector<64x16xf32>
    %7 = arith.subf %1, %6 : vector<64x16xf32>
    %8 = arith.mulf %7, %7 : vector<64x16xf32>
    %cst_2 = arith.constant dense<0.000000e+00> : vector<64xf32>
    %9 = vector.multi_reduction <add>, %8, %cst_2 [1] : vector<64x16xf32> to vector<64xf32>
    %10 = vector.shape_cast %9 : vector<64xf32> to vector<64x1xf32>
    %cst_3 = arith.constant 1.600000e+01 : f32
    %11 = vector.broadcast %cst_3 : f32 to vector<64x1xf32>
    %12 = arith.divf %10, %11 : vector<64x1xf32>
    %13 = vector.broadcast %5 : vector<64x1xf32> to vector<64x16xf32>
    %14 = arith.subf %1, %13 : vector<64x16xf32>
    %cst_4 = arith.constant 9.99999974E-6 : f32
    %15 = vector.broadcast %cst_4 : f32 to vector<64x1xf32>
    %16 = arith.addf %12, %15 : vector<64x1xf32>
    %17 = math.rsqrt %16 : vector<64x1xf32>
    %18 = vector.broadcast %17 : vector<64x1xf32> to vector<64x16xf32>
    %19 = arith.mulf %14, %18 : vector<64x16xf32>
    %c0_5 = arith.constant 0 : index
    %c0_6 = arith.constant 0 : index
    %20 = vector.load %arg5[%c0_5, %c0_6] : memref<1x16xf32, #tpu.memory_space<vmem>>, vector<1x16xf32>
    %21 = vector.broadcast %20 : vector<1x16xf32> to vector<64x16xf32>
    %22 = arith.mulf %19, %21 : vector<64x16xf32>
    %c0_7 = arith.constant 0 : index
    %c0_8 = arith.constant 0 : index
    %23 = vector.load %arg6[%c0_7, %c0_8] : memref<1x16xf32, #tpu.memory_space<vmem>>, vector<1x16xf32>
    %24 = vector.broadcast %23 : vector<1x16xf32> to vector<64x16xf32>
    %25 = arith.addf %22, %24 : vector<64x16xf32>
    %26 = arith.truncf %25 : vector<64x16xf32> to vector<64x16xbf16>
    %c0_9 = arith.constant 0 : index
    %c0_10 = arith.constant 0 : index
    %27 = vector.load %arg3[%c0_9, %c0_10] : memref<16x48xbf16, #tpu.memory_space<vmem>>, vector<16x48xbf16>
    %cst_11 = arith.constant dense<0.000000e+00> : vector<64x48xf32>
    %28 = tpu.matmul %26, %27, %cst_11 {dimension_numbers = #tpu.dot_dimension_numbers<[1], [0], [0], [1], [0, 0, 1, 1], [], []>} : vector<64x16xbf16>, vector<16x48xbf16>, vector<64x48xf32> -> vector<64x48xf32>
    %c0_12 = arith.constant 0 : index
    %c0_13 = arith.constant 0 : index
    %29 = vector.load %arg4[%c0_12, %c0_13] : memref<1x48xf32, #tpu.memory_space<vmem>>, vector<1x48xf32>
    %30 = vector.broadcast %29 : vector<1x48xf32> to vector<64x48xf32>
    %31 = arith.addf %28, %30 : vector<64x48xf32>
    %32 = arith.truncf %31 : vector<64x48xf32> to vector<64x48xbf16>
    %c0_14 = arith.constant 0 : index
    %c0_15 = arith.constant 0 : index
    %33 = vector.load %arg7[%c0_14, %c0_15] : memref<64x48xbf16, #tpu.memory_space<vmem>>, vector<64x48xbf16>
    tpu.vector_store %arg7[%c0_14, %c0_15], %32 {strides = array<i32>} : memref<64x48xbf16, #tpu.memory_space<vmem>>, vector<64x48xbf16>,
    return
  }
  func.func @transform_0(%arg0: i32, %arg1: i32) -> (i32, i32) {
    %c0_i32 = arith.constant 0 : i32
    %c0_i32_0 = arith.constant 0 : i32
    return %arg0, %c0_i32 : i32, i32
  }
  func.func @transform_1(%arg0: i32, %arg1: i32) -> (i32, i32) {
    %c0_i32 = arith.constant 0 : i32
    %c0_i32_0 = arith.constant 0 : i32
    return %c0_i32, %arg1 : i32, i32
  }
  func.func @transform_2(%arg0: i32, %arg1: i32) -> (i32, i32) {
    %c0_i32 = arith.constant 0 : i32
    %c0_i32_0 = arith.constant 0 : i32
    return %c0_i32, %arg1 : i32, i32
  }
  func.func @transform_3(%arg0: i32, %arg1: i32) -> (i32, i32) {
    %c0_i32 = arith.constant 0 : i32
    %c0_i32_0 = arith.constant 0 : i32
    %c0_i32_1 = arith.constant 0 : i32
    return %c0_i32, %c0_i32_0 : i32, i32
  }
  func.func @transform_4(%arg0: i32, %arg1: i32) -> (i32, i32) {
    %c0_i32 = arith.constant 0 : i32
    %c0_i32_0 = arith.constant 0 : i32
    %c0_i32_1 = arith.constant 0 : i32
    return %c0_i32, %c0_i32_0 : i32, i32
  }
  func.func @transform_5(%arg0: i32, %arg1: i32) -> (i32, i32) {
    %c0_i32 = arith.constant 0 : i32
    return %arg0, %arg1 : i32, i32
  }
}

module attributes {stable_mosaic.version = 11 : i64} {
  func.func @_window_attn_kernel(%arg0: i32, %arg1: i32, %arg2: memref<1x8x8x48xbf16, #tpu.memory_space<vmem>>, %arg3: memref<2x8x8xf32, #tpu.memory_space<vmem>>, %arg4: memref<1x8x8x16xbf16, #tpu.memory_space<vmem>>) attributes {dimension_semantics = [#tpu.dimension_semantics<parallel>, #tpu.dimension_semantics<parallel>], iteration_bounds = array<i64: 2, 1>, scalar_prefetch = 0 : i64, scratch_operands = 0 : i64, tpu.core_type = #tpu.core_type<tc>, window_params = [{transform_indices = @transform_0, window_bounds = array<i64: 1, 8, 8, 48>}, {pipeline_mode = #tpu.pipeline_mode<synchronous>, transform_indices = @transform_1, window_bounds = array<i64: 2, 8, 8>}, {transform_indices = @transform_2, window_bounds = array<i64: 1, 8, 8, 16>}]} {
    %c0 = arith.constant 0 : index
    %c0_0 = arith.constant 0 : index
    %c0_1 = arith.constant 0 : index
    %c0_2 = arith.constant 0 : index
    %0 = vector.load %arg2[%c0, %c0_0, %c0_1, %c0_2] : memref<1x8x8x48xbf16, #tpu.memory_space<vmem>>, vector<1x8x8x48xbf16>
    %1 = vector.shape_cast %0 : vector<1x8x8x48xbf16> to vector<8x8x48xbf16>
    %2 = vector.extract_strided_slice %1 {offsets = [0, 0, 0], sizes = [8, 8, 8], strides = [1, 1, 1]} : vector<8x8x48xbf16> to vector<8x8x8xbf16>
    %3 = vector.extract_strided_slice %1 {offsets = [0, 0, 16], sizes = [8, 8, 8], strides = [1, 1, 1]} : vector<8x8x48xbf16> to vector<8x8x8xbf16>
    %4 = vector.extract_strided_slice %1 {offsets = [0, 0, 32], sizes = [8, 8, 8], strides = [1, 1, 1]} : vector<8x8x48xbf16> to vector<8x8x8xbf16>
    "tpu.trace_start"() <{level = 10 : i32, message = "wqd,wkd->wqk"}> : () -> ()
    %cst = arith.constant dense<0.000000e+00> : vector<8x8x8xf32>
    %5 = tpu.matmul %2, %3, %cst {dimension_numbers = #tpu.dot_dimension_numbers<[2], [2], [1], [1], [0, 0, 0, 1, 1, 1], [0], [0]>} : vector<8x8x8xbf16>, vector<8x8x8xbf16>, vector<8x8x8xf32> -> vector<8x8x8xf32>
    "tpu.trace_stop"() : () -> ()
    %c0_3 = arith.constant 0 : index
    %c0_4 = arith.constant 0 : index
    %c0_5 = arith.constant 0 : index
    %6 = vector.load %arg3[%c0_3, %c0_4, %c0_5] : memref<2x8x8xf32, #tpu.memory_space<vmem>>, vector<1x8x8xf32>
    %7 = vector.shape_cast %6 : vector<1x8x8xf32> to vector<8x8xf32>
    %8 = vector.shape_cast %7 : vector<8x8xf32> to vector<1x8x8xf32>
    %9 = vector.broadcast %8 : vector<1x8x8xf32> to vector<8x8x8xf32>
    %10 = arith.addf %5, %9 : vector<8x8x8xf32>
    %cst_6 = arith.constant dense<0xFF800000> : vector<8x8xf32>
    %11 = vector.multi_reduction <maximumf>, %10, %cst_6 [2] : vector<8x8x8xf32> to vector<8x8xf32>
    %12 = vector.shape_cast %11 : vector<8x8xf32> to vector<8x8x1xf32>
    %13 = vector.broadcast %12 : vector<8x8x1xf32> to vector<8x8x8xf32>
    %14 = arith.subf %10, %13 : vector<8x8x8xf32>
    %15 = math.exp %14 : vector<8x8x8xf32>
    %cst_7 = arith.constant dense<0.000000e+00> : vector<8x8xf32>
    %16 = vector.multi_reduction <add>, %15, %cst_7 [2] : vector<8x8x8xf32> to vector<8x8xf32>
    %17 = vector.shape_cast %16 : vector<8x8xf32> to vector<8x8x1xf32>
    %18 = tpu.reciprocal %17 {approx = true} : vector<8x8x1xf32> -> vector<8x8x1xf32>
    %19 = vector.broadcast %18 : vector<8x8x1xf32> to vector<8x8x8xf32>
    %20 = arith.mulf %15, %19 : vector<8x8x8xf32>
    %21 = arith.truncf %20 : vector<8x8x8xf32> to vector<8x8x8xbf16>
    "tpu.trace_start"() <{level = 10 : i32, message = "wqk,wkd->wqd"}> : () -> ()
    %cst_8 = arith.constant dense<0.000000e+00> : vector<8x8x8xf32>
    %22 = tpu.matmul %21, %4, %cst_8 {dimension_numbers = #tpu.dot_dimension_numbers<[2], [1], [1], [2], [0, 0, 0, 1, 1, 2], [0], [0]>} : vector<8x8x8xbf16>, vector<8x8x8xbf16>, vector<8x8x8xf32> -> vector<8x8x8xf32>
    "tpu.trace_stop"() : () -> ()
    %23 = arith.truncf %22 : vector<8x8x8xf32> to vector<8x8x8xbf16>
    %24 = vector.extract_strided_slice %1 {offsets = [0, 0, 8], sizes = [8, 8, 8], strides = [1, 1, 1]} : vector<8x8x48xbf16> to vector<8x8x8xbf16>
    %25 = vector.extract_strided_slice %1 {offsets = [0, 0, 24], sizes = [8, 8, 8], strides = [1, 1, 1]} : vector<8x8x48xbf16> to vector<8x8x8xbf16>
    %26 = vector.extract_strided_slice %1 {offsets = [0, 0, 40], sizes = [8, 8, 8], strides = [1, 1, 1]} : vector<8x8x48xbf16> to vector<8x8x8xbf16>
    "tpu.trace_start"() <{level = 10 : i32, message = "wqd,wkd->wqk"}> : () -> ()
    %cst_9 = arith.constant dense<0.000000e+00> : vector<8x8x8xf32>
    %27 = tpu.matmul %24, %25, %cst_9 {dimension_numbers = #tpu.dot_dimension_numbers<[2], [2], [1], [1], [0, 0, 0, 1, 1, 1], [0], [0]>} : vector<8x8x8xbf16>, vector<8x8x8xbf16>, vector<8x8x8xf32> -> vector<8x8x8xf32>
    "tpu.trace_stop"() : () -> ()
    %c1 = arith.constant 1 : index
    %c0_10 = arith.constant 0 : index
    %c0_11 = arith.constant 0 : index
    %28 = vector.load %arg3[%c1, %c0_10, %c0_11] : memref<2x8x8xf32, #tpu.memory_space<vmem>>, vector<1x8x8xf32>
    %29 = vector.shape_cast %28 : vector<1x8x8xf32> to vector<8x8xf32>
    %30 = vector.shape_cast %29 : vector<8x8xf32> to vector<1x8x8xf32>
    %31 = vector.broadcast %30 : vector<1x8x8xf32> to vector<8x8x8xf32>
    %32 = arith.addf %27, %31 : vector<8x8x8xf32>
    %cst_12 = arith.constant dense<0xFF800000> : vector<8x8xf32>
    %33 = vector.multi_reduction <maximumf>, %32, %cst_12 [2] : vector<8x8x8xf32> to vector<8x8xf32>
    %34 = vector.shape_cast %33 : vector<8x8xf32> to vector<8x8x1xf32>
    %35 = vector.broadcast %34 : vector<8x8x1xf32> to vector<8x8x8xf32>
    %36 = arith.subf %32, %35 : vector<8x8x8xf32>
    %37 = math.exp %36 : vector<8x8x8xf32>
    %cst_13 = arith.constant dense<0.000000e+00> : vector<8x8xf32>
    %38 = vector.multi_reduction <add>, %37, %cst_13 [2] : vector<8x8x8xf32> to vector<8x8xf32>
    %39 = vector.shape_cast %38 : vector<8x8xf32> to vector<8x8x1xf32>
    %40 = tpu.reciprocal %39 {approx = true} : vector<8x8x1xf32> -> vector<8x8x1xf32>
    %41 = vector.broadcast %40 : vector<8x8x1xf32> to vector<8x8x8xf32>
    %42 = arith.mulf %37, %41 : vector<8x8x8xf32>
    %43 = arith.truncf %42 : vector<8x8x8xf32> to vector<8x8x8xbf16>
    "tpu.trace_start"() <{level = 10 : i32, message = "wqk,wkd->wqd"}> : () -> ()
    %cst_14 = arith.constant dense<0.000000e+00> : vector<8x8x8xf32>
    %44 = tpu.matmul %43, %26, %cst_14 {dimension_numbers = #tpu.dot_dimension_numbers<[2], [1], [1], [2], [0, 0, 0, 1, 1, 2], [0], [0]>} : vector<8x8x8xbf16>, vector<8x8x8xbf16>, vector<8x8x8xf32> -> vector<8x8x8xf32>
    "tpu.trace_stop"() : () -> ()
    %45 = arith.truncf %44 : vector<8x8x8xf32> to vector<8x8x8xbf16>
    %46 = tpu.concatenate %23, %45 in 2 : vector<8x8x8xbf16>, vector<8x8x8xbf16> -> vector<8x8x16xbf16>
    %c0_15 = arith.constant 0 : index
    %c0_16 = arith.constant 0 : index
    %c0_17 = arith.constant 0 : index
    %c0_18 = arith.constant 0 : index
    %47 = vector.load %arg4[%c0_15, %c0_16, %c0_17, %c0_18] : memref<1x8x8x16xbf16, #tpu.memory_space<vmem>>, vector<1x8x8x16xbf16>
    %48 = vector.shape_cast %47 : vector<1x8x8x16xbf16> to vector<8x8x16xbf16>
    %49 = vector.shape_cast %46 : vector<8x8x16xbf16> to vector<1x8x8x16xbf16>
    tpu.vector_store %arg4[%c0_15, %c0_16, %c0_17, %c0_18], %49 {strides = array<i32>} : memref<1x8x8x16xbf16, #tpu.memory_space<vmem>>, vector<1x8x8x16xbf16>,
    return
  }
  func.func @transform_0(%arg0: i32, %arg1: i32) -> (i32, i32, i32, i32) {
    %c0_i32 = arith.constant 0 : i32
    %c0_i32_0 = arith.constant 0 : i32
    %c0_i32_1 = arith.constant 0 : i32
    return %arg0, %arg1, %c0_i32, %c0_i32_0 : i32, i32, i32, i32
  }
  func.func @transform_1(%arg0: i32, %arg1: i32) -> (i32, i32, i32) {
    %c0_i32 = arith.constant 0 : i32
    %c0_i32_0 = arith.constant 0 : i32
    %c0_i32_1 = arith.constant 0 : i32
    %c0_i32_2 = arith.constant 0 : i32
    return %c0_i32, %c0_i32_0, %c0_i32_1 : i32, i32, i32
  }
  func.func @transform_2(%arg0: i32, %arg1: i32) -> (i32, i32, i32, i32) {
    %c0_i32 = arith.constant 0 : i32
    %c0_i32_0 = arith.constant 0 : i32
    %c0_i32_1 = arith.constant 0 : i32
    return %arg0, %arg1, %c0_i32, %c0_i32_0 : i32, i32, i32, i32
  }
}

module attributes {stable_mosaic.version = 11 : i64} {
  func.func @_single_linear_kernel(%arg0: i32, %arg1: i32, %arg2: memref<64x16xbf16, #tpu.memory_space<vmem>>, %arg3: memref<16x16xbf16, #tpu.memory_space<vmem>>, %arg4: memref<1x16xf32, #tpu.memory_space<vmem>>, %arg5: memref<64x16xbf16, #tpu.memory_space<vmem>>, %arg6: memref<64x16xbf16, #tpu.memory_space<vmem>>) attributes {dimension_semantics = [#tpu.dimension_semantics<parallel>, #tpu.dimension_semantics<parallel>], iteration_bounds = array<i64: 2, 1>, scalar_prefetch = 0 : i64, scratch_operands = 0 : i64, tpu.core_type = #tpu.core_type<tc>, window_params = [{transform_indices = @transform_0, window_bounds = array<i64: 64, 16>}, {transform_indices = @transform_1, window_bounds = array<i64: 16, 16>}, {transform_indices = @transform_2, window_bounds = array<i64: 1, 16>}, {transform_indices = @transform_3, window_bounds = array<i64: 64, 16>}, {transform_indices = @transform_4, window_bounds = array<i64: 64, 16>}]} {
    %c0 = arith.constant 0 : index
    %c0_0 = arith.constant 0 : index
    %0 = vector.load %arg2[%c0, %c0_0] : memref<64x16xbf16, #tpu.memory_space<vmem>>, vector<64x16xbf16>
    %c0_1 = arith.constant 0 : index
    %c0_2 = arith.constant 0 : index
    %1 = vector.load %arg3[%c0_1, %c0_2] : memref<16x16xbf16, #tpu.memory_space<vmem>>, vector<16x16xbf16>
    %cst = arith.constant dense<0.000000e+00> : vector<64x16xf32>
    %2 = tpu.matmul %0, %1, %cst {dimension_numbers = #tpu.dot_dimension_numbers<[1], [0], [0], [1], [0, 0, 1, 1], [], []>} : vector<64x16xbf16>, vector<16x16xbf16>, vector<64x16xf32> -> vector<64x16xf32>
    %c0_3 = arith.constant 0 : index
    %c0_4 = arith.constant 0 : index
    %3 = vector.load %arg4[%c0_3, %c0_4] : memref<1x16xf32, #tpu.memory_space<vmem>>, vector<1x16xf32>
    %4 = vector.broadcast %3 : vector<1x16xf32> to vector<64x16xf32>
    %5 = arith.addf %2, %4 : vector<64x16xf32>
    %c0_5 = arith.constant 0 : index
    %c0_6 = arith.constant 0 : index
    %6 = vector.load %arg5[%c0_5, %c0_6] : memref<64x16xbf16, #tpu.memory_space<vmem>>, vector<64x16xbf16>
    %7 = arith.extf %6 : vector<64x16xbf16> to vector<64x16xf32>
    %8 = arith.addf %5, %7 : vector<64x16xf32>
    %9 = arith.truncf %8 : vector<64x16xf32> to vector<64x16xbf16>
    %c0_7 = arith.constant 0 : index
    %c0_8 = arith.constant 0 : index
    %10 = vector.load %arg6[%c0_7, %c0_8] : memref<64x16xbf16, #tpu.memory_space<vmem>>, vector<64x16xbf16>
    tpu.vector_store %arg6[%c0_7, %c0_8], %9 {strides = array<i32>} : memref<64x16xbf16, #tpu.memory_space<vmem>>, vector<64x16xbf16>,
    return
  }
  func.func @transform_0(%arg0: i32, %arg1: i32) -> (i32, i32) {
    %c0_i32 = arith.constant 0 : i32
    %c0_i32_0 = arith.constant 0 : i32
    return %arg0, %c0_i32 : i32, i32
  }
  func.func @transform_1(%arg0: i32, %arg1: i32) -> (i32, i32) {
    %c0_i32 = arith.constant 0 : i32
    %c0_i32_0 = arith.constant 0 : i32
    return %c0_i32, %arg1 : i32, i32
  }
  func.func @transform_2(%arg0: i32, %arg1: i32) -> (i32, i32) {
    %c0_i32 = arith.constant 0 : i32
    %c0_i32_0 = arith.constant 0 : i32
    return %c0_i32, %arg1 : i32, i32
  }
  func.func @transform_3(%arg0: i32, %arg1: i32) -> (i32, i32) {
    %c0_i32 = arith.constant 0 : i32
    return %arg0, %arg1 : i32, i32
  }
  func.func @transform_4(%arg0: i32, %arg1: i32) -> (i32, i32) {
    %c0_i32 = arith.constant 0 : i32
    return %arg0, %arg1 : i32, i32
  }
}

module attributes {stable_mosaic.version = 11 : i64} {
  func.func @_single_linear_kernel(%arg0: i32, %arg1: i32, %arg2: memref<64x16xbf16, #tpu.memory_space<vmem>>, %arg3: memref<16x64xbf16, #tpu.memory_space<vmem>>, %arg4: memref<1x64xf32, #tpu.memory_space<vmem>>, %arg5: memref<1x16xf32, #tpu.memory_space<vmem>>, %arg6: memref<1x16xf32, #tpu.memory_space<vmem>>, %arg7: memref<64x64xbf16, #tpu.memory_space<vmem>>) attributes {dimension_semantics = [#tpu.dimension_semantics<parallel>, #tpu.dimension_semantics<parallel>], iteration_bounds = array<i64: 2, 1>, scalar_prefetch = 0 : i64, scratch_operands = 0 : i64, tpu.core_type = #tpu.core_type<tc>, window_params = [{transform_indices = @transform_0, window_bounds = array<i64: 64, 16>}, {transform_indices = @transform_1, window_bounds = array<i64: 16, 64>}, {transform_indices = @transform_2, window_bounds = array<i64: 1, 64>}, {pipeline_mode = #tpu.pipeline_mode<synchronous>, transform_indices = @transform_3, window_bounds = array<i64: 1, 16>}, {pipeline_mode = #tpu.pipeline_mode<synchronous>, transform_indices = @transform_4, window_bounds = array<i64: 1, 16>}, {transform_indices = @transform_5, window_bounds = array<i64: 64, 64>}]} {
    %c0 = arith.constant 0 : index
    %c0_0 = arith.constant 0 : index
    %0 = vector.load %arg2[%c0, %c0_0] : memref<64x16xbf16, #tpu.memory_space<vmem>>, vector<64x16xbf16>
    %1 = arith.extf %0 : vector<64x16xbf16> to vector<64x16xf32>
    %cst = arith.constant dense<0.000000e+00> : vector<64xf32>
    %2 = vector.multi_reduction <add>, %1, %cst [1] : vector<64x16xf32> to vector<64xf32>
    %3 = vector.shape_cast %2 : vector<64xf32> to vector<64x1xf32>
    %cst_1 = arith.constant 1.600000e+01 : f32
    %4 = vector.broadcast %cst_1 : f32 to vector<64x1xf32>
    %5 = arith.divf %3, %4 : vector<64x1xf32>
    %6 = vector.broadcast %5 : vector<64x1xf32> to vector<64x16xf32>
    %7 = arith.subf %1, %6 : vector<64x16xf32>
    %8 = arith.mulf %7, %7 : vector<64x16xf32>
    %cst_2 = arith.constant dense<0.000000e+00> : vector<64xf32>
    %9 = vector.multi_reduction <add>, %8, %cst_2 [1] : vector<64x16xf32> to vector<64xf32>
    %10 = vector.shape_cast %9 : vector<64xf32> to vector<64x1xf32>
    %cst_3 = arith.constant 1.600000e+01 : f32
    %11 = vector.broadcast %cst_3 : f32 to vector<64x1xf32>
    %12 = arith.divf %10, %11 : vector<64x1xf32>
    %13 = vector.broadcast %5 : vector<64x1xf32> to vector<64x16xf32>
    %14 = arith.subf %1, %13 : vector<64x16xf32>
    %cst_4 = arith.constant 9.99999974E-6 : f32
    %15 = vector.broadcast %cst_4 : f32 to vector<64x1xf32>
    %16 = arith.addf %12, %15 : vector<64x1xf32>
    %17 = math.rsqrt %16 : vector<64x1xf32>
    %18 = vector.broadcast %17 : vector<64x1xf32> to vector<64x16xf32>
    %19 = arith.mulf %14, %18 : vector<64x16xf32>
    %c0_5 = arith.constant 0 : index
    %c0_6 = arith.constant 0 : index
    %20 = vector.load %arg5[%c0_5, %c0_6] : memref<1x16xf32, #tpu.memory_space<vmem>>, vector<1x16xf32>
    %21 = vector.broadcast %20 : vector<1x16xf32> to vector<64x16xf32>
    %22 = arith.mulf %19, %21 : vector<64x16xf32>
    %c0_7 = arith.constant 0 : index
    %c0_8 = arith.constant 0 : index
    %23 = vector.load %arg6[%c0_7, %c0_8] : memref<1x16xf32, #tpu.memory_space<vmem>>, vector<1x16xf32>
    %24 = vector.broadcast %23 : vector<1x16xf32> to vector<64x16xf32>
    %25 = arith.addf %22, %24 : vector<64x16xf32>
    %26 = arith.truncf %25 : vector<64x16xf32> to vector<64x16xbf16>
    %c0_9 = arith.constant 0 : index
    %c0_10 = arith.constant 0 : index
    %27 = vector.load %arg3[%c0_9, %c0_10] : memref<16x64xbf16, #tpu.memory_space<vmem>>, vector<16x64xbf16>
    %cst_11 = arith.constant dense<0.000000e+00> : vector<64x64xf32>
    %28 = tpu.matmul %26, %27, %cst_11 {dimension_numbers = #tpu.dot_dimension_numbers<[1], [0], [0], [1], [0, 0, 1, 1], [], []>} : vector<64x16xbf16>, vector<16x64xbf16>, vector<64x64xf32> -> vector<64x64xf32>
    %c0_12 = arith.constant 0 : index
    %c0_13 = arith.constant 0 : index
    %29 = vector.load %arg4[%c0_12, %c0_13] : memref<1x64xf32, #tpu.memory_space<vmem>>, vector<1x64xf32>
    %30 = vector.broadcast %29 : vector<1x64xf32> to vector<64x64xf32>
    %31 = arith.addf %28, %30 : vector<64x64xf32>
    %cst_14 = arith.constant 0.707106769 : f32
    %32 = vector.broadcast %cst_14 : f32 to vector<64x64xf32>
    %33 = arith.mulf %31, %32 : vector<64x64xf32>
    %cst_15 = arith.constant 0.000000e+00 : f32
    %34 = vector.broadcast %cst_15 : f32 to vector<64x64xf32>
    %35 = arith.cmpf oge, %33, %34 : vector<64x64xf32>
    %cst_16 = arith.constant 1.000000e+00 : f32
    %cst_17 = arith.constant -1.000000e+00 : f32
    %36 = vector.broadcast %cst_16 : f32 to vector<64x64xf32>
    %37 = vector.broadcast %cst_17 : f32 to vector<64x64xf32>
    %38 = arith.select %35, %36, %37 : vector<64x64xi1>, vector<64x64xf32>
    %39 = math.absf %33 : vector<64x64xf32>
    %cst_18 = arith.constant 0.327591091 : f32
    %40 = vector.broadcast %cst_18 : f32 to vector<64x64xf32>
    %41 = arith.mulf %40, %39 : vector<64x64xf32>
    %cst_19 = arith.constant 1.000000e+00 : f32
    %42 = vector.broadcast %cst_19 : f32 to vector<64x64xf32>
    %43 = arith.addf %42, %41 : vector<64x64xf32>
    %44 = tpu.reciprocal %43 {approx = true} : vector<64x64xf32> -> vector<64x64xf32>
    %cst_20 = arith.constant 1.06140542 : f32
    %45 = vector.broadcast %cst_20 : f32 to vector<64x64xf32>
    %46 = arith.mulf %45, %44 : vector<64x64xf32>
    %cst_21 = arith.constant -1.45315206 : f32
    %47 = vector.broadcast %cst_21 : f32 to vector<64x64xf32>
    %48 = arith.addf %46, %47 : vector<64x64xf32>
    %49 = arith.mulf %48, %44 : vector<64x64xf32>
    %cst_22 = arith.constant 1.42141378 : f32
    %50 = vector.broadcast %cst_22 : f32 to vector<64x64xf32>
    %51 = arith.addf %49, %50 : vector<64x64xf32>
    %52 = arith.mulf %51, %44 : vector<64x64xf32>
    %cst_23 = arith.constant -0.284496725 : f32
    %53 = vector.broadcast %cst_23 : f32 to vector<64x64xf32>
    %54 = arith.addf %52, %53 : vector<64x64xf32>
    %55 = arith.mulf %54, %44 : vector<64x64xf32>
    %cst_24 = arith.constant 0.254829586 : f32
    %56 = vector.broadcast %cst_24 : f32 to vector<64x64xf32>
    %57 = arith.addf %55, %56 : vector<64x64xf32>
    %58 = arith.mulf %57, %44 : vector<64x64xf32>
    %cst_25 = arith.constant 0.000000e+00 : f32
    %59 = vector.broadcast %cst_25 : f32 to vector<64x64xf32>
    %60 = arith.subf %59, %39 : vector<64x64xf32>
    %61 = arith.mulf %60, %39 : vector<64x64xf32>
    %62 = math.exp %61 : vector<64x64xf32>
    %63 = arith.mulf %58, %62 : vector<64x64xf32>
    %cst_26 = arith.constant 1.000000e+00 : f32
    %64 = vector.broadcast %cst_26 : f32 to vector<64x64xf32>
    %65 = arith.subf %64, %63 : vector<64x64xf32>
    %66 = arith.mulf %38, %65 : vector<64x64xf32>
    %cst_27 = arith.constant 5.000000e-01 : f32
    %67 = vector.broadcast %cst_27 : f32 to vector<64x64xf32>
    %68 = arith.mulf %67, %31 : vector<64x64xf32>
    %cst_28 = arith.constant 1.000000e+00 : f32
    %69 = vector.broadcast %cst_28 : f32 to vector<64x64xf32>
    %70 = arith.addf %69, %66 : vector<64x64xf32>
    %71 = arith.mulf %68, %70 : vector<64x64xf32>
    %72 = arith.truncf %71 : vector<64x64xf32> to vector<64x64xbf16>
    %c0_29 = arith.constant 0 : index
    %c0_30 = arith.constant 0 : index
    %73 = vector.load %arg7[%c0_29, %c0_30] : memref<64x64xbf16, #tpu.memory_space<vmem>>, vector<64x64xbf16>
    tpu.vector_store %arg7[%c0_29, %c0_30], %72 {strides = array<i32>} : memref<64x64xbf16, #tpu.memory_space<vmem>>, vector<64x64xbf16>,
    return
  }
  func.func @transform_0(%arg0: i32, %arg1: i32) -> (i32, i32) {
    %c0_i32 = arith.constant 0 : i32
    %c0_i32_0 = arith.constant 0 : i32
    return %arg0, %c0_i32 : i32, i32
  }
  func.func @transform_1(%arg0: i32, %arg1: i32) -> (i32, i32) {
    %c0_i32 = arith.constant 0 : i32
    %c0_i32_0 = arith.constant 0 : i32
    return %c0_i32, %arg1 : i32, i32
  }
  func.func @transform_2(%arg0: i32, %arg1: i32) -> (i32, i32) {
    %c0_i32 = arith.constant 0 : i32
    %c0_i32_0 = arith.constant 0 : i32
    return %c0_i32, %arg1 : i32, i32
  }
  func.func @transform_3(%arg0: i32, %arg1: i32) -> (i32, i32) {
    %c0_i32 = arith.constant 0 : i32
    %c0_i32_0 = arith.constant 0 : i32
    %c0_i32_1 = arith.constant 0 : i32
    return %c0_i32, %c0_i32_0 : i32, i32
  }
  func.func @transform_4(%arg0: i32, %arg1: i32) -> (i32, i32) {
    %c0_i32 = arith.constant 0 : i32
    %c0_i32_0 = arith.constant 0 : i32
    %c0_i32_1 = arith.constant 0 : i32
    return %c0_i32, %c0_i32_0 : i32, i32
  }
  func.func @transform_5(%arg0: i32, %arg1: i32) -> (i32, i32) {
    %c0_i32 = arith.constant 0 : i32
    return %arg0, %arg1 : i32, i32
  }
}

module attributes {stable_mosaic.version = 11 : i64} {
  func.func @_single_linear_kernel(%arg0: i32, %arg1: i32, %arg2: memref<64x64xbf16, #tpu.memory_space<vmem>>, %arg3: memref<64x16xbf16, #tpu.memory_space<vmem>>, %arg4: memref<1x16xf32, #tpu.memory_space<vmem>>, %arg5: memref<64x16xbf16, #tpu.memory_space<vmem>>, %arg6: memref<64x16xbf16, #tpu.memory_space<vmem>>) attributes {dimension_semantics = [#tpu.dimension_semantics<parallel>, #tpu.dimension_semantics<parallel>], iteration_bounds = array<i64: 2, 1>, scalar_prefetch = 0 : i64, scratch_operands = 0 : i64, tpu.core_type = #tpu.core_type<tc>, window_params = [{transform_indices = @transform_0, window_bounds = array<i64: 64, 64>}, {transform_indices = @transform_1, window_bounds = array<i64: 64, 16>}, {transform_indices = @transform_2, window_bounds = array<i64: 1, 16>}, {transform_indices = @transform_3, window_bounds = array<i64: 64, 16>}, {transform_indices = @transform_4, window_bounds = array<i64: 64, 16>}]} {
    %c0 = arith.constant 0 : index
    %c0_0 = arith.constant 0 : index
    %0 = vector.load %arg2[%c0, %c0_0] : memref<64x64xbf16, #tpu.memory_space<vmem>>, vector<64x64xbf16>
    %c0_1 = arith.constant 0 : index
    %c0_2 = arith.constant 0 : index
    %1 = vector.load %arg3[%c0_1, %c0_2] : memref<64x16xbf16, #tpu.memory_space<vmem>>, vector<64x16xbf16>
    %cst = arith.constant dense<0.000000e+00> : vector<64x16xf32>
    %2 = tpu.matmul %0, %1, %cst {dimension_numbers = #tpu.dot_dimension_numbers<[1], [0], [0], [1], [0, 0, 1, 1], [], []>} : vector<64x64xbf16>, vector<64x16xbf16>, vector<64x16xf32> -> vector<64x16xf32>
    %c0_3 = arith.constant 0 : index
    %c0_4 = arith.constant 0 : index
    %3 = vector.load %arg4[%c0_3, %c0_4] : memref<1x16xf32, #tpu.memory_space<vmem>>, vector<1x16xf32>
    %4 = vector.broadcast %3 : vector<1x16xf32> to vector<64x16xf32>
    %5 = arith.addf %2, %4 : vector<64x16xf32>
    %c0_5 = arith.constant 0 : index
    %c0_6 = arith.constant 0 : index
    %6 = vector.load %arg5[%c0_5, %c0_6] : memref<64x16xbf16, #tpu.memory_space<vmem>>, vector<64x16xbf16>
    %7 = arith.extf %6 : vector<64x16xbf16> to vector<64x16xf32>
    %8 = arith.addf %5, %7 : vector<64x16xf32>
    %9 = arith.truncf %8 : vector<64x16xf32> to vector<64x16xbf16>
    %c0_7 = arith.constant 0 : index
    %c0_8 = arith.constant 0 : index
    %10 = vector.load %arg6[%c0_7, %c0_8] : memref<64x16xbf16, #tpu.memory_space<vmem>>, vector<64x16xbf16>
    tpu.vector_store %arg6[%c0_7, %c0_8], %9 {strides = array<i32>} : memref<64x16xbf16, #tpu.memory_space<vmem>>, vector<64x16xbf16>,
    return
  }
  func.func @transform_0(%arg0: i32, %arg1: i32) -> (i32, i32) {
    %c0_i32 = arith.constant 0 : i32
    %c0_i32_0 = arith.constant 0 : i32
    return %arg0, %c0_i32 : i32, i32
  }
  func.func @transform_1(%arg0: i32, %arg1: i32) -> (i32, i32) {
    %c0_i32 = arith.constant 0 : i32
    %c0_i32_0 = arith.constant 0 : i32
    return %c0_i32, %arg1 : i32, i32
  }
  func.func @transform_2(%arg0: i32, %arg1: i32) -> (i32, i32) {
    %c0_i32 = arith.constant 0 : i32
    %c0_i32_0 = arith.constant 0 : i32
    return %c0_i32, %arg1 : i32, i32
  }
  func.func @transform_3(%arg0: i32, %arg1: i32) -> (i32, i32) {
    %c0_i32 = arith.constant 0 : i32
    return %arg0, %arg1 : i32, i32
  }
  func.func @transform_4(%arg0: i32, %arg1: i32) -> (i32, i32) {
    %c0_i32 = arith.constant 0 : i32
    return %arg0, %arg1 : i32, i32
  }
}

module attributes {stable_mosaic.version = 11 : i64} {
  func.func @_window_attn_kernel(%arg0: i32, %arg1: i32, %arg2: memref<1x8x8x48xbf16, #tpu.memory_space<vmem>>, %arg3: memref<2x8x8xf32, #tpu.memory_space<vmem>>, %arg4: memref<8x8x8xf32, #tpu.memory_space<vmem>>, %arg5: memref<1x8x8x16xbf16, #tpu.memory_space<vmem>>) attributes {dimension_semantics = [#tpu.dimension_semantics<parallel>, #tpu.dimension_semantics<parallel>], iteration_bounds = array<i64: 2, 1>, scalar_prefetch = 0 : i64, scratch_operands = 0 : i64, tpu.core_type = #tpu.core_type<tc>, window_params = [{transform_indices = @transform_0, window_bounds = array<i64: 1, 8, 8, 48>}, {pipeline_mode = #tpu.pipeline_mode<synchronous>, transform_indices = @transform_1, window_bounds = array<i64: 2, 8, 8>}, {transform_indices = @transform_2, window_bounds = array<i64: 8, 8, 8>}, {transform_indices = @transform_3, window_bounds = array<i64: 1, 8, 8, 16>}]} {
    %c0 = arith.constant 0 : index
    %c0_0 = arith.constant 0 : index
    %c0_1 = arith.constant 0 : index
    %c0_2 = arith.constant 0 : index
    %0 = vector.load %arg2[%c0, %c0_0, %c0_1, %c0_2] : memref<1x8x8x48xbf16, #tpu.memory_space<vmem>>, vector<1x8x8x48xbf16>
    %1 = vector.shape_cast %0 : vector<1x8x8x48xbf16> to vector<8x8x48xbf16>
    %c0_3 = arith.constant 0 : index
    %c0_4 = arith.constant 0 : index
    %c0_5 = arith.constant 0 : index
    %2 = vector.load %arg4[%c0_3, %c0_4, %c0_5] : memref<8x8x8xf32, #tpu.memory_space<vmem>>, vector<8x8x8xf32>
    %3 = vector.extract_strided_slice %1 {offsets = [0, 0, 0], sizes = [8, 8, 8], strides = [1, 1, 1]} : vector<8x8x48xbf16> to vector<8x8x8xbf16>
    %4 = vector.extract_strided_slice %1 {offsets = [0, 0, 16], sizes = [8, 8, 8], strides = [1, 1, 1]} : vector<8x8x48xbf16> to vector<8x8x8xbf16>
    %5 = vector.extract_strided_slice %1 {offsets = [0, 0, 32], sizes = [8, 8, 8], strides = [1, 1, 1]} : vector<8x8x48xbf16> to vector<8x8x8xbf16>
    "tpu.trace_start"() <{level = 10 : i32, message = "wqd,wkd->wqk"}> : () -> ()
    %cst = arith.constant dense<0.000000e+00> : vector<8x8x8xf32>
    %6 = tpu.matmul %3, %4, %cst {dimension_numbers = #tpu.dot_dimension_numbers<[2], [2], [1], [1], [0, 0, 0, 1, 1, 1], [0], [0]>} : vector<8x8x8xbf16>, vector<8x8x8xbf16>, vector<8x8x8xf32> -> vector<8x8x8xf32>
    "tpu.trace_stop"() : () -> ()
    %c0_6 = arith.constant 0 : index
    %c0_7 = arith.constant 0 : index
    %c0_8 = arith.constant 0 : index
    %7 = vector.load %arg3[%c0_6, %c0_7, %c0_8] : memref<2x8x8xf32, #tpu.memory_space<vmem>>, vector<1x8x8xf32>
    %8 = vector.shape_cast %7 : vector<1x8x8xf32> to vector<8x8xf32>
    %9 = vector.shape_cast %8 : vector<8x8xf32> to vector<1x8x8xf32>
    %10 = vector.broadcast %9 : vector<1x8x8xf32> to vector<8x8x8xf32>
    %11 = arith.addf %6, %10 : vector<8x8x8xf32>
    %12 = arith.addf %11, %2 : vector<8x8x8xf32>
    %cst_9 = arith.constant dense<0xFF800000> : vector<8x8xf32>
    %13 = vector.multi_reduction <maximumf>, %12, %cst_9 [2] : vector<8x8x8xf32> to vector<8x8xf32>
    %14 = vector.shape_cast %13 : vector<8x8xf32> to vector<8x8x1xf32>
    %15 = vector.broadcast %14 : vector<8x8x1xf32> to vector<8x8x8xf32>
    %16 = arith.subf %12, %15 : vector<8x8x8xf32>
    %17 = math.exp %16 : vector<8x8x8xf32>
    %cst_10 = arith.constant dense<0.000000e+00> : vector<8x8xf32>
    %18 = vector.multi_reduction <add>, %17, %cst_10 [2] : vector<8x8x8xf32> to vector<8x8xf32>
    %19 = vector.shape_cast %18 : vector<8x8xf32> to vector<8x8x1xf32>
    %20 = tpu.reciprocal %19 {approx = true} : vector<8x8x1xf32> -> vector<8x8x1xf32>
    %21 = vector.broadcast %20 : vector<8x8x1xf32> to vector<8x8x8xf32>
    %22 = arith.mulf %17, %21 : vector<8x8x8xf32>
    %23 = arith.truncf %22 : vector<8x8x8xf32> to vector<8x8x8xbf16>
    "tpu.trace_start"() <{level = 10 : i32, message = "wqk,wkd->wqd"}> : () -> ()
    %cst_11 = arith.constant dense<0.000000e+00> : vector<8x8x8xf32>
    %24 = tpu.matmul %23, %5, %cst_11 {dimension_numbers = #tpu.dot_dimension_numbers<[2], [1], [1], [2], [0, 0, 0, 1, 1, 2], [0], [0]>} : vector<8x8x8xbf16>, vector<8x8x8xbf16>, vector<8x8x8xf32> -> vector<8x8x8xf32>
    "tpu.trace_stop"() : () -> ()
    %25 = arith.truncf %24 : vector<8x8x8xf32> to vector<8x8x8xbf16>
    %26 = vector.extract_strided_slice %1 {offsets = [0, 0, 8], sizes = [8, 8, 8], strides = [1, 1, 1]} : vector<8x8x48xbf16> to vector<8x8x8xbf16>
    %27 = vector.extract_strided_slice %1 {offsets = [0, 0, 24], sizes = [8, 8, 8], strides = [1, 1, 1]} : vector<8x8x48xbf16> to vector<8x8x8xbf16>
    %28 = vector.extract_strided_slice %1 {offsets = [0, 0, 40], sizes = [8, 8, 8], strides = [1, 1, 1]} : vector<8x8x48xbf16> to vector<8x8x8xbf16>
    "tpu.trace_start"() <{level = 10 : i32, message = "wqd,wkd->wqk"}> : () -> ()
    %cst_12 = arith.constant dense<0.000000e+00> : vector<8x8x8xf32>
    %29 = tpu.matmul %26, %27, %cst_12 {dimension_numbers = #tpu.dot_dimension_numbers<[2], [2], [1], [1], [0, 0, 0, 1, 1, 1], [0], [0]>} : vector<8x8x8xbf16>, vector<8x8x8xbf16>, vector<8x8x8xf32> -> vector<8x8x8xf32>
    "tpu.trace_stop"() : () -> ()
    %c1 = arith.constant 1 : index
    %c0_13 = arith.constant 0 : index
    %c0_14 = arith.constant 0 : index
    %30 = vector.load %arg3[%c1, %c0_13, %c0_14] : memref<2x8x8xf32, #tpu.memory_space<vmem>>, vector<1x8x8xf32>
    %31 = vector.shape_cast %30 : vector<1x8x8xf32> to vector<8x8xf32>
    %32 = vector.shape_cast %31 : vector<8x8xf32> to vector<1x8x8xf32>
    %33 = vector.broadcast %32 : vector<1x8x8xf32> to vector<8x8x8xf32>
    %34 = arith.addf %29, %33 : vector<8x8x8xf32>
    %35 = arith.addf %34, %2 : vector<8x8x8xf32>
    %cst_15 = arith.constant dense<0xFF800000> : vector<8x8xf32>
    %36 = vector.multi_reduction <maximumf>, %35, %cst_15 [2] : vector<8x8x8xf32> to vector<8x8xf32>
    %37 = vector.shape_cast %36 : vector<8x8xf32> to vector<8x8x1xf32>
    %38 = vector.broadcast %37 : vector<8x8x1xf32> to vector<8x8x8xf32>
    %39 = arith.subf %35, %38 : vector<8x8x8xf32>
    %40 = math.exp %39 : vector<8x8x8xf32>
    %cst_16 = arith.constant dense<0.000000e+00> : vector<8x8xf32>
    %41 = vector.multi_reduction <add>, %40, %cst_16 [2] : vector<8x8x8xf32> to vector<8x8xf32>
    %42 = vector.shape_cast %41 : vector<8x8xf32> to vector<8x8x1xf32>
    %43 = tpu.reciprocal %42 {approx = true} : vector<8x8x1xf32> -> vector<8x8x1xf32>
    %44 = vector.broadcast %43 : vector<8x8x1xf32> to vector<8x8x8xf32>
    %45 = arith.mulf %40, %44 : vector<8x8x8xf32>
    %46 = arith.truncf %45 : vector<8x8x8xf32> to vector<8x8x8xbf16>
    "tpu.trace_start"() <{level = 10 : i32, message = "wqk,wkd->wqd"}> : () -> ()
    %cst_17 = arith.constant dense<0.000000e+00> : vector<8x8x8xf32>
    %47 = tpu.matmul %46, %28, %cst_17 {dimension_numbers = #tpu.dot_dimension_numbers<[2], [1], [1], [2], [0, 0, 0, 1, 1, 2], [0], [0]>} : vector<8x8x8xbf16>, vector<8x8x8xbf16>, vector<8x8x8xf32> -> vector<8x8x8xf32>
    "tpu.trace_stop"() : () -> ()
    %48 = arith.truncf %47 : vector<8x8x8xf32> to vector<8x8x8xbf16>
    %49 = tpu.concatenate %25, %48 in 2 : vector<8x8x8xbf16>, vector<8x8x8xbf16> -> vector<8x8x16xbf16>
    %c0_18 = arith.constant 0 : index
    %c0_19 = arith.constant 0 : index
    %c0_20 = arith.constant 0 : index
    %c0_21 = arith.constant 0 : index
    %50 = vector.load %arg5[%c0_18, %c0_19, %c0_20, %c0_21] : memref<1x8x8x16xbf16, #tpu.memory_space<vmem>>, vector<1x8x8x16xbf16>
    %51 = vector.shape_cast %50 : vector<1x8x8x16xbf16> to vector<8x8x16xbf16>
    %52 = vector.shape_cast %49 : vector<8x8x16xbf16> to vector<1x8x8x16xbf16>
    tpu.vector_store %arg5[%c0_18, %c0_19, %c0_20, %c0_21], %52 {strides = array<i32>} : memref<1x8x8x16xbf16, #tpu.memory_space<vmem>>, vector<1x8x8x16xbf16>,
    return
  }
  func.func @transform_0(%arg0: i32, %arg1: i32) -> (i32, i32, i32, i32) {
    %c0_i32 = arith.constant 0 : i32
    %c0_i32_0 = arith.constant 0 : i32
    %c0_i32_1 = arith.constant 0 : i32
    return %arg0, %arg1, %c0_i32, %c0_i32_0 : i32, i32, i32, i32
  }
  func.func @transform_1(%arg0: i32, %arg1: i32) -> (i32, i32, i32) {
    %c0_i32 = arith.constant 0 : i32
    %c0_i32_0 = arith.constant 0 : i32
    %c0_i32_1 = arith.constant 0 : i32
    %c0_i32_2 = arith.constant 0 : i32
    return %c0_i32, %c0_i32_0, %c0_i32_1 : i32, i32, i32
  }
  func.func @transform_2(%arg0: i32, %arg1: i32) -> (i32, i32, i32) {
    %c0_i32 = arith.constant 0 : i32
    %c0_i32_0 = arith.constant 0 : i32
    %c0_i32_1 = arith.constant 0 : i32
    return %arg1, %c0_i32, %c0_i32_0 : i32, i32, i32
  }
  func.func @transform_3(%arg0: i32, %arg1: i32) -> (i32, i32, i32, i32) {
    %c0_i32 = arith.constant 0 : i32
    %c0_i32_0 = arith.constant 0 : i32
    %c0_i32_1 = arith.constant 0 : i32
    return %arg0, %arg1, %c0_i32, %c0_i32_0 : i32, i32, i32, i32
  }
}

module attributes {stable_mosaic.version = 11 : i64} {
  func.func @_single_linear_kernel(%arg0: i32, %arg1: i32, %arg2: memref<16x32xbf16, #tpu.memory_space<vmem>>, %arg3: memref<32x96xbf16, #tpu.memory_space<vmem>>, %arg4: memref<1x96xf32, #tpu.memory_space<vmem>>, %arg5: memref<1x32xf32, #tpu.memory_space<vmem>>, %arg6: memref<1x32xf32, #tpu.memory_space<vmem>>, %arg7: memref<16x96xbf16, #tpu.memory_space<vmem>>) attributes {dimension_semantics = [#tpu.dimension_semantics<parallel>, #tpu.dimension_semantics<parallel>], iteration_bounds = array<i64: 2, 1>, scalar_prefetch = 0 : i64, scratch_operands = 0 : i64, tpu.core_type = #tpu.core_type<tc>, window_params = [{transform_indices = @transform_0, window_bounds = array<i64: 16, 32>}, {transform_indices = @transform_1, window_bounds = array<i64: 32, 96>}, {transform_indices = @transform_2, window_bounds = array<i64: 1, 96>}, {pipeline_mode = #tpu.pipeline_mode<synchronous>, transform_indices = @transform_3, window_bounds = array<i64: 1, 32>}, {pipeline_mode = #tpu.pipeline_mode<synchronous>, transform_indices = @transform_4, window_bounds = array<i64: 1, 32>}, {transform_indices = @transform_5, window_bounds = array<i64: 16, 96>}]} {
    %c0 = arith.constant 0 : index
    %c0_0 = arith.constant 0 : index
    %0 = vector.load %arg2[%c0, %c0_0] : memref<16x32xbf16, #tpu.memory_space<vmem>>, vector<16x32xbf16>
    %1 = arith.extf %0 : vector<16x32xbf16> to vector<16x32xf32>
    %cst = arith.constant dense<0.000000e+00> : vector<16xf32>
    %2 = vector.multi_reduction <add>, %1, %cst [1] : vector<16x32xf32> to vector<16xf32>
    %3 = vector.shape_cast %2 : vector<16xf32> to vector<16x1xf32>
    %cst_1 = arith.constant 3.200000e+01 : f32
    %4 = vector.broadcast %cst_1 : f32 to vector<16x1xf32>
    %5 = arith.divf %3, %4 : vector<16x1xf32>
    %6 = vector.broadcast %5 : vector<16x1xf32> to vector<16x32xf32>
    %7 = arith.subf %1, %6 : vector<16x32xf32>
    %8 = arith.mulf %7, %7 : vector<16x32xf32>
    %cst_2 = arith.constant dense<0.000000e+00> : vector<16xf32>
    %9 = vector.multi_reduction <add>, %8, %cst_2 [1] : vector<16x32xf32> to vector<16xf32>
    %10 = vector.shape_cast %9 : vector<16xf32> to vector<16x1xf32>
    %cst_3 = arith.constant 3.200000e+01 : f32
    %11 = vector.broadcast %cst_3 : f32 to vector<16x1xf32>
    %12 = arith.divf %10, %11 : vector<16x1xf32>
    %13 = vector.broadcast %5 : vector<16x1xf32> to vector<16x32xf32>
    %14 = arith.subf %1, %13 : vector<16x32xf32>
    %cst_4 = arith.constant 9.99999974E-6 : f32
    %15 = vector.broadcast %cst_4 : f32 to vector<16x1xf32>
    %16 = arith.addf %12, %15 : vector<16x1xf32>
    %17 = math.rsqrt %16 : vector<16x1xf32>
    %18 = vector.broadcast %17 : vector<16x1xf32> to vector<16x32xf32>
    %19 = arith.mulf %14, %18 : vector<16x32xf32>
    %c0_5 = arith.constant 0 : index
    %c0_6 = arith.constant 0 : index
    %20 = vector.load %arg5[%c0_5, %c0_6] : memref<1x32xf32, #tpu.memory_space<vmem>>, vector<1x32xf32>
    %21 = vector.broadcast %20 : vector<1x32xf32> to vector<16x32xf32>
    %22 = arith.mulf %19, %21 : vector<16x32xf32>
    %c0_7 = arith.constant 0 : index
    %c0_8 = arith.constant 0 : index
    %23 = vector.load %arg6[%c0_7, %c0_8] : memref<1x32xf32, #tpu.memory_space<vmem>>, vector<1x32xf32>
    %24 = vector.broadcast %23 : vector<1x32xf32> to vector<16x32xf32>
    %25 = arith.addf %22, %24 : vector<16x32xf32>
    %26 = arith.truncf %25 : vector<16x32xf32> to vector<16x32xbf16>
    %c0_9 = arith.constant 0 : index
    %c0_10 = arith.constant 0 : index
    %27 = vector.load %arg3[%c0_9, %c0_10] : memref<32x96xbf16, #tpu.memory_space<vmem>>, vector<32x96xbf16>
    %cst_11 = arith.constant dense<0.000000e+00> : vector<16x96xf32>
    %28 = tpu.matmul %26, %27, %cst_11 {dimension_numbers = #tpu.dot_dimension_numbers<[1], [0], [0], [1], [0, 0, 1, 1], [], []>} : vector<16x32xbf16>, vector<32x96xbf16>, vector<16x96xf32> -> vector<16x96xf32>
    %c0_12 = arith.constant 0 : index
    %c0_13 = arith.constant 0 : index
    %29 = vector.load %arg4[%c0_12, %c0_13] : memref<1x96xf32, #tpu.memory_space<vmem>>, vector<1x96xf32>
    %30 = vector.broadcast %29 : vector<1x96xf32> to vector<16x96xf32>
    %31 = arith.addf %28, %30 : vector<16x96xf32>
    %32 = arith.truncf %31 : vector<16x96xf32> to vector<16x96xbf16>
    %c0_14 = arith.constant 0 : index
    %c0_15 = arith.constant 0 : index
    %33 = vector.load %arg7[%c0_14, %c0_15] : memref<16x96xbf16, #tpu.memory_space<vmem>>, vector<16x96xbf16>
    tpu.vector_store %arg7[%c0_14, %c0_15], %32 {strides = array<i32>} : memref<16x96xbf16, #tpu.memory_space<vmem>>, vector<16x96xbf16>,
    return
  }
  func.func @transform_0(%arg0: i32, %arg1: i32) -> (i32, i32) {
    %c0_i32 = arith.constant 0 : i32
    %c0_i32_0 = arith.constant 0 : i32
    return %arg0, %c0_i32 : i32, i32
  }
  func.func @transform_1(%arg0: i32, %arg1: i32) -> (i32, i32) {
    %c0_i32 = arith.constant 0 : i32
    %c0_i32_0 = arith.constant 0 : i32
    return %c0_i32, %arg1 : i32, i32
  }
  func.func @transform_2(%arg0: i32, %arg1: i32) -> (i32, i32) {
    %c0_i32 = arith.constant 0 : i32
    %c0_i32_0 = arith.constant 0 : i32
    return %c0_i32, %arg1 : i32, i32
  }
  func.func @transform_3(%arg0: i32, %arg1: i32) -> (i32, i32) {
    %c0_i32 = arith.constant 0 : i32
    %c0_i32_0 = arith.constant 0 : i32
    %c0_i32_1 = arith.constant 0 : i32
    return %c0_i32, %c0_i32_0 : i32, i32
  }
  func.func @transform_4(%arg0: i32, %arg1: i32) -> (i32, i32) {
    %c0_i32 = arith.constant 0 : i32
    %c0_i32_0 = arith.constant 0 : i32
    %c0_i32_1 = arith.constant 0 : i32
    return %c0_i32, %c0_i32_0 : i32, i32
  }
  func.func @transform_5(%arg0: i32, %arg1: i32) -> (i32, i32) {
    %c0_i32 = arith.constant 0 : i32
    return %arg0, %arg1 : i32, i32
  }
}

module attributes {stable_mosaic.version = 11 : i64} {
  func.func @_single_linear_kernel(%arg0: i32, %arg1: i32, %arg2: memref<16x64xbf16, #tpu.memory_space<vmem>>, %arg3: memref<64x32xbf16, #tpu.memory_space<vmem>>, %arg4: memref<1x32xf32, #tpu.memory_space<vmem>>, %arg5: memref<1x64xf32, #tpu.memory_space<vmem>>, %arg6: memref<1x64xf32, #tpu.memory_space<vmem>>, %arg7: memref<16x32xbf16, #tpu.memory_space<vmem>>) attributes {dimension_semantics = [#tpu.dimension_semantics<parallel>, #tpu.dimension_semantics<parallel>], iteration_bounds = array<i64: 2, 1>, scalar_prefetch = 0 : i64, scratch_operands = 0 : i64, tpu.core_type = #tpu.core_type<tc>, window_params = [{transform_indices = @transform_0, window_bounds = array<i64: 16, 64>}, {transform_indices = @transform_1, window_bounds = array<i64: 64, 32>}, {transform_indices = @transform_2, window_bounds = array<i64: 1, 32>}, {pipeline_mode = #tpu.pipeline_mode<synchronous>, transform_indices = @transform_3, window_bounds = array<i64: 1, 64>}, {pipeline_mode = #tpu.pipeline_mode<synchronous>, transform_indices = @transform_4, window_bounds = array<i64: 1, 64>}, {transform_indices = @transform_5, window_bounds = array<i64: 16, 32>}]} {
    %c0 = arith.constant 0 : index
    %c0_0 = arith.constant 0 : index
    %0 = vector.load %arg2[%c0, %c0_0] : memref<16x64xbf16, #tpu.memory_space<vmem>>, vector<16x64xbf16>
    %1 = arith.extf %0 : vector<16x64xbf16> to vector<16x64xf32>
    %cst = arith.constant dense<0.000000e+00> : vector<16xf32>
    %2 = vector.multi_reduction <add>, %1, %cst [1] : vector<16x64xf32> to vector<16xf32>
    %3 = vector.shape_cast %2 : vector<16xf32> to vector<16x1xf32>
    %cst_1 = arith.constant 6.400000e+01 : f32
    %4 = vector.broadcast %cst_1 : f32 to vector<16x1xf32>
    %5 = arith.divf %3, %4 : vector<16x1xf32>
    %6 = vector.broadcast %5 : vector<16x1xf32> to vector<16x64xf32>
    %7 = arith.subf %1, %6 : vector<16x64xf32>
    %8 = arith.mulf %7, %7 : vector<16x64xf32>
    %cst_2 = arith.constant dense<0.000000e+00> : vector<16xf32>
    %9 = vector.multi_reduction <add>, %8, %cst_2 [1] : vector<16x64xf32> to vector<16xf32>
    %10 = vector.shape_cast %9 : vector<16xf32> to vector<16x1xf32>
    %cst_3 = arith.constant 6.400000e+01 : f32
    %11 = vector.broadcast %cst_3 : f32 to vector<16x1xf32>
    %12 = arith.divf %10, %11 : vector<16x1xf32>
    %13 = vector.broadcast %5 : vector<16x1xf32> to vector<16x64xf32>
    %14 = arith.subf %1, %13 : vector<16x64xf32>
    %cst_4 = arith.constant 9.99999974E-6 : f32
    %15 = vector.broadcast %cst_4 : f32 to vector<16x1xf32>
    %16 = arith.addf %12, %15 : vector<16x1xf32>
    %17 = math.rsqrt %16 : vector<16x1xf32>
    %18 = vector.broadcast %17 : vector<16x1xf32> to vector<16x64xf32>
    %19 = arith.mulf %14, %18 : vector<16x64xf32>
    %c0_5 = arith.constant 0 : index
    %c0_6 = arith.constant 0 : index
    %20 = vector.load %arg5[%c0_5, %c0_6] : memref<1x64xf32, #tpu.memory_space<vmem>>, vector<1x64xf32>
    %21 = vector.broadcast %20 : vector<1x64xf32> to vector<16x64xf32>
    %22 = arith.mulf %19, %21 : vector<16x64xf32>
    %c0_7 = arith.constant 0 : index
    %c0_8 = arith.constant 0 : index
    %23 = vector.load %arg6[%c0_7, %c0_8] : memref<1x64xf32, #tpu.memory_space<vmem>>, vector<1x64xf32>
    %24 = vector.broadcast %23 : vector<1x64xf32> to vector<16x64xf32>
    %25 = arith.addf %22, %24 : vector<16x64xf32>
    %26 = arith.truncf %25 : vector<16x64xf32> to vector<16x64xbf16>
    %c0_9 = arith.constant 0 : index
    %c0_10 = arith.constant 0 : index
    %27 = vector.load %arg3[%c0_9, %c0_10] : memref<64x32xbf16, #tpu.memory_space<vmem>>, vector<64x32xbf16>
    %cst_11 = arith.constant dense<0.000000e+00> : vector<16x32xf32>
    %28 = tpu.matmul %26, %27, %cst_11 {dimension_numbers = #tpu.dot_dimension_numbers<[1], [0], [0], [1], [0, 0, 1, 1], [], []>} : vector<16x64xbf16>, vector<64x32xbf16>, vector<16x32xf32> -> vector<16x32xf32>
    %c0_12 = arith.constant 0 : index
    %c0_13 = arith.constant 0 : index
    %29 = vector.load %arg4[%c0_12, %c0_13] : memref<1x32xf32, #tpu.memory_space<vmem>>, vector<1x32xf32>
    %30 = vector.broadcast %29 : vector<1x32xf32> to vector<16x32xf32>
    %31 = arith.addf %28, %30 : vector<16x32xf32>
    %32 = arith.truncf %31 : vector<16x32xf32> to vector<16x32xbf16>
    %c0_14 = arith.constant 0 : index
    %c0_15 = arith.constant 0 : index
    %33 = vector.load %arg7[%c0_14, %c0_15] : memref<16x32xbf16, #tpu.memory_space<vmem>>, vector<16x32xbf16>
    tpu.vector_store %arg7[%c0_14, %c0_15], %32 {strides = array<i32>} : memref<16x32xbf16, #tpu.memory_space<vmem>>, vector<16x32xbf16>,
    return
  }
  func.func @transform_0(%arg0: i32, %arg1: i32) -> (i32, i32) {
    %c0_i32 = arith.constant 0 : i32
    %c0_i32_0 = arith.constant 0 : i32
    return %arg0, %c0_i32 : i32, i32
  }
  func.func @transform_1(%arg0: i32, %arg1: i32) -> (i32, i32) {
    %c0_i32 = arith.constant 0 : i32
    %c0_i32_0 = arith.constant 0 : i32
    return %c0_i32, %arg1 : i32, i32
  }
  func.func @transform_2(%arg0: i32, %arg1: i32) -> (i32, i32) {
    %c0_i32 = arith.constant 0 : i32
    %c0_i32_0 = arith.constant 0 : i32
    return %c0_i32, %arg1 : i32, i32
  }
  func.func @transform_3(%arg0: i32, %arg1: i32) -> (i32, i32) {
    %c0_i32 = arith.constant 0 : i32
    %c0_i32_0 = arith.constant 0 : i32
    %c0_i32_1 = arith.constant 0 : i32
    return %c0_i32, %c0_i32_0 : i32, i32
  }
  func.func @transform_4(%arg0: i32, %arg1: i32) -> (i32, i32) {
    %c0_i32 = arith.constant 0 : i32
    %c0_i32_0 = arith.constant 0 : i32
    %c0_i32_1 = arith.constant 0 : i32
    return %c0_i32, %c0_i32_0 : i32, i32
  }
  func.func @transform_5(%arg0: i32, %arg1: i32) -> (i32, i32) {
    %c0_i32 = arith.constant 0 : i32
    return %arg0, %arg1 : i32, i32
  }
}

module attributes {stable_mosaic.version = 11 : i64} {
  func.func @_single_linear_kernel(%arg0: i32, %arg1: i32, %arg2: memref<16x32xbf16, #tpu.memory_space<vmem>>, %arg3: memref<32x32xbf16, #tpu.memory_space<vmem>>, %arg4: memref<1x32xf32, #tpu.memory_space<vmem>>, %arg5: memref<16x32xbf16, #tpu.memory_space<vmem>>, %arg6: memref<16x32xbf16, #tpu.memory_space<vmem>>) attributes {dimension_semantics = [#tpu.dimension_semantics<parallel>, #tpu.dimension_semantics<parallel>], iteration_bounds = array<i64: 2, 1>, scalar_prefetch = 0 : i64, scratch_operands = 0 : i64, tpu.core_type = #tpu.core_type<tc>, window_params = [{transform_indices = @transform_0, window_bounds = array<i64: 16, 32>}, {transform_indices = @transform_1, window_bounds = array<i64: 32, 32>}, {transform_indices = @transform_2, window_bounds = array<i64: 1, 32>}, {transform_indices = @transform_3, window_bounds = array<i64: 16, 32>}, {transform_indices = @transform_4, window_bounds = array<i64: 16, 32>}]} {
    %c0 = arith.constant 0 : index
    %c0_0 = arith.constant 0 : index
    %0 = vector.load %arg2[%c0, %c0_0] : memref<16x32xbf16, #tpu.memory_space<vmem>>, vector<16x32xbf16>
    %c0_1 = arith.constant 0 : index
    %c0_2 = arith.constant 0 : index
    %1 = vector.load %arg3[%c0_1, %c0_2] : memref<32x32xbf16, #tpu.memory_space<vmem>>, vector<32x32xbf16>
    %cst = arith.constant dense<0.000000e+00> : vector<16x32xf32>
    %2 = tpu.matmul %0, %1, %cst {dimension_numbers = #tpu.dot_dimension_numbers<[1], [0], [0], [1], [0, 0, 1, 1], [], []>} : vector<16x32xbf16>, vector<32x32xbf16>, vector<16x32xf32> -> vector<16x32xf32>
    %c0_3 = arith.constant 0 : index
    %c0_4 = arith.constant 0 : index
    %3 = vector.load %arg4[%c0_3, %c0_4] : memref<1x32xf32, #tpu.memory_space<vmem>>, vector<1x32xf32>
    %4 = vector.broadcast %3 : vector<1x32xf32> to vector<16x32xf32>
    %5 = arith.addf %2, %4 : vector<16x32xf32>
    %c0_5 = arith.constant 0 : index
    %c0_6 = arith.constant 0 : index
    %6 = vector.load %arg5[%c0_5, %c0_6] : memref<16x32xbf16, #tpu.memory_space<vmem>>, vector<16x32xbf16>
    %7 = arith.extf %6 : vector<16x32xbf16> to vector<16x32xf32>
    %8 = arith.addf %5, %7 : vector<16x32xf32>
    %9 = arith.truncf %8 : vector<16x32xf32> to vector<16x32xbf16>
    %c0_7 = arith.constant 0 : index
    %c0_8 = arith.constant 0 : index
    %10 = vector.load %arg6[%c0_7, %c0_8] : memref<16x32xbf16, #tpu.memory_space<vmem>>, vector<16x32xbf16>
    tpu.vector_store %arg6[%c0_7, %c0_8], %9 {strides = array<i32>} : memref<16x32xbf16, #tpu.memory_space<vmem>>, vector<16x32xbf16>,
    return
  }
  func.func @transform_0(%arg0: i32, %arg1: i32) -> (i32, i32) {
    %c0_i32 = arith.constant 0 : i32
    %c0_i32_0 = arith.constant 0 : i32
    return %arg0, %c0_i32 : i32, i32
  }
  func.func @transform_1(%arg0: i32, %arg1: i32) -> (i32, i32) {
    %c0_i32 = arith.constant 0 : i32
    %c0_i32_0 = arith.constant 0 : i32
    return %c0_i32, %arg1 : i32, i32
  }
  func.func @transform_2(%arg0: i32, %arg1: i32) -> (i32, i32) {
    %c0_i32 = arith.constant 0 : i32
    %c0_i32_0 = arith.constant 0 : i32
    return %c0_i32, %arg1 : i32, i32
  }
  func.func @transform_3(%arg0: i32, %arg1: i32) -> (i32, i32) {
    %c0_i32 = arith.constant 0 : i32
    return %arg0, %arg1 : i32, i32
  }
  func.func @transform_4(%arg0: i32, %arg1: i32) -> (i32, i32) {
    %c0_i32 = arith.constant 0 : i32
    return %arg0, %arg1 : i32, i32
  }
}

module attributes {stable_mosaic.version = 11 : i64} {
  func.func @_window_attn_kernel(%arg0: i32, %arg1: i32, %arg2: memref<1x2x8x96xbf16, #tpu.memory_space<vmem>>, %arg3: memref<4x8x8xf32, #tpu.memory_space<vmem>>, %arg4: memref<1x2x8x32xbf16, #tpu.memory_space<vmem>>) attributes {dimension_semantics = [#tpu.dimension_semantics<parallel>, #tpu.dimension_semantics<parallel>], iteration_bounds = array<i64: 2, 1>, scalar_prefetch = 0 : i64, scratch_operands = 0 : i64, tpu.core_type = #tpu.core_type<tc>, window_params = [{transform_indices = @transform_0, window_bounds = array<i64: 1, 2, 8, 96>}, {pipeline_mode = #tpu.pipeline_mode<synchronous>, transform_indices = @transform_1, window_bounds = array<i64: 4, 8, 8>}, {transform_indices = @transform_2, window_bounds = array<i64: 1, 2, 8, 32>}]} {
    %c0 = arith.constant 0 : index
    %c0_0 = arith.constant 0 : index
    %c0_1 = arith.constant 0 : index
    %c0_2 = arith.constant 0 : index
    %0 = vector.load %arg2[%c0, %c0_0, %c0_1, %c0_2] : memref<1x2x8x96xbf16, #tpu.memory_space<vmem>>, vector<1x2x8x96xbf16>
    %1 = vector.shape_cast %0 : vector<1x2x8x96xbf16> to vector<2x8x96xbf16>
    %2 = vector.extract_strided_slice %1 {offsets = [0, 0, 0], sizes = [2, 8, 8], strides = [1, 1, 1]} : vector<2x8x96xbf16> to vector<2x8x8xbf16>
    %3 = vector.extract_strided_slice %1 {offsets = [0, 0, 32], sizes = [2, 8, 8], strides = [1, 1, 1]} : vector<2x8x96xbf16> to vector<2x8x8xbf16>
    %4 = vector.extract_strided_slice %1 {offsets = [0, 0, 64], sizes = [2, 8, 8], strides = [1, 1, 1]} : vector<2x8x96xbf16> to vector<2x8x8xbf16>
    "tpu.trace_start"() <{level = 10 : i32, message = "wqd,wkd->wqk"}> : () -> ()
    %cst = arith.constant dense<0.000000e+00> : vector<2x8x8xf32>
    %5 = tpu.matmul %2, %3, %cst {dimension_numbers = #tpu.dot_dimension_numbers<[2], [2], [1], [1], [0, 0, 0, 1, 1, 1], [0], [0]>} : vector<2x8x8xbf16>, vector<2x8x8xbf16>, vector<2x8x8xf32> -> vector<2x8x8xf32>
    "tpu.trace_stop"() : () -> ()
    %c0_3 = arith.constant 0 : index
    %c0_4 = arith.constant 0 : index
    %c0_5 = arith.constant 0 : index
    %6 = vector.load %arg3[%c0_3, %c0_4, %c0_5] : memref<4x8x8xf32, #tpu.memory_space<vmem>>, vector<1x8x8xf32>
    %7 = vector.shape_cast %6 : vector<1x8x8xf32> to vector<8x8xf32>
    %8 = vector.shape_cast %7 : vector<8x8xf32> to vector<1x8x8xf32>
    %9 = vector.broadcast %8 : vector<1x8x8xf32> to vector<2x8x8xf32>
    %10 = arith.addf %5, %9 : vector<2x8x8xf32>
    %cst_6 = arith.constant dense<0xFF800000> : vector<2x8xf32>
    %11 = vector.multi_reduction <maximumf>, %10, %cst_6 [2] : vector<2x8x8xf32> to vector<2x8xf32>
    %12 = vector.shape_cast %11 : vector<2x8xf32> to vector<2x8x1xf32>
    %13 = vector.broadcast %12 : vector<2x8x1xf32> to vector<2x8x8xf32>
    %14 = arith.subf %10, %13 : vector<2x8x8xf32>
    %15 = math.exp %14 : vector<2x8x8xf32>
    %cst_7 = arith.constant dense<0.000000e+00> : vector<2x8xf32>
    %16 = vector.multi_reduction <add>, %15, %cst_7 [2] : vector<2x8x8xf32> to vector<2x8xf32>
    %17 = vector.shape_cast %16 : vector<2x8xf32> to vector<2x8x1xf32>
    %18 = tpu.reciprocal %17 {approx = true} : vector<2x8x1xf32> -> vector<2x8x1xf32>
    %19 = vector.broadcast %18 : vector<2x8x1xf32> to vector<2x8x8xf32>
    %20 = arith.mulf %15, %19 : vector<2x8x8xf32>
    %21 = arith.truncf %20 : vector<2x8x8xf32> to vector<2x8x8xbf16>
    "tpu.trace_start"() <{level = 10 : i32, message = "wqk,wkd->wqd"}> : () -> ()
    %cst_8 = arith.constant dense<0.000000e+00> : vector<2x8x8xf32>
    %22 = tpu.matmul %21, %4, %cst_8 {dimension_numbers = #tpu.dot_dimension_numbers<[2], [1], [1], [2], [0, 0, 0, 1, 1, 2], [0], [0]>} : vector<2x8x8xbf16>, vector<2x8x8xbf16>, vector<2x8x8xf32> -> vector<2x8x8xf32>
    "tpu.trace_stop"() : () -> ()
    %23 = arith.truncf %22 : vector<2x8x8xf32> to vector<2x8x8xbf16>
    %24 = vector.extract_strided_slice %1 {offsets = [0, 0, 8], sizes = [2, 8, 8], strides = [1, 1, 1]} : vector<2x8x96xbf16> to vector<2x8x8xbf16>
    %25 = vector.extract_strided_slice %1 {offsets = [0, 0, 40], sizes = [2, 8, 8], strides = [1, 1, 1]} : vector<2x8x96xbf16> to vector<2x8x8xbf16>
    %26 = vector.extract_strided_slice %1 {offsets = [0, 0, 72], sizes = [2, 8, 8], strides = [1, 1, 1]} : vector<2x8x96xbf16> to vector<2x8x8xbf16>
    "tpu.trace_start"() <{level = 10 : i32, message = "wqd,wkd->wqk"}> : () -> ()
    %cst_9 = arith.constant dense<0.000000e+00> : vector<2x8x8xf32>
    %27 = tpu.matmul %24, %25, %cst_9 {dimension_numbers = #tpu.dot_dimension_numbers<[2], [2], [1], [1], [0, 0, 0, 1, 1, 1], [0], [0]>} : vector<2x8x8xbf16>, vector<2x8x8xbf16>, vector<2x8x8xf32> -> vector<2x8x8xf32>
    "tpu.trace_stop"() : () -> ()
    %c1 = arith.constant 1 : index
    %c0_10 = arith.constant 0 : index
    %c0_11 = arith.constant 0 : index
    %28 = vector.load %arg3[%c1, %c0_10, %c0_11] : memref<4x8x8xf32, #tpu.memory_space<vmem>>, vector<1x8x8xf32>
    %29 = vector.shape_cast %28 : vector<1x8x8xf32> to vector<8x8xf32>
    %30 = vector.shape_cast %29 : vector<8x8xf32> to vector<1x8x8xf32>
    %31 = vector.broadcast %30 : vector<1x8x8xf32> to vector<2x8x8xf32>
    %32 = arith.addf %27, %31 : vector<2x8x8xf32>
    %cst_12 = arith.constant dense<0xFF800000> : vector<2x8xf32>
    %33 = vector.multi_reduction <maximumf>, %32, %cst_12 [2] : vector<2x8x8xf32> to vector<2x8xf32>
    %34 = vector.shape_cast %33 : vector<2x8xf32> to vector<2x8x1xf32>
    %35 = vector.broadcast %34 : vector<2x8x1xf32> to vector<2x8x8xf32>
    %36 = arith.subf %32, %35 : vector<2x8x8xf32>
    %37 = math.exp %36 : vector<2x8x8xf32>
    %cst_13 = arith.constant dense<0.000000e+00> : vector<2x8xf32>
    %38 = vector.multi_reduction <add>, %37, %cst_13 [2] : vector<2x8x8xf32> to vector<2x8xf32>
    %39 = vector.shape_cast %38 : vector<2x8xf32> to vector<2x8x1xf32>
    %40 = tpu.reciprocal %39 {approx = true} : vector<2x8x1xf32> -> vector<2x8x1xf32>
    %41 = vector.broadcast %40 : vector<2x8x1xf32> to vector<2x8x8xf32>
    %42 = arith.mulf %37, %41 : vector<2x8x8xf32>
    %43 = arith.truncf %42 : vector<2x8x8xf32> to vector<2x8x8xbf16>
    "tpu.trace_start"() <{level = 10 : i32, message = "wqk,wkd->wqd"}> : () -> ()
    %cst_14 = arith.constant dense<0.000000e+00> : vector<2x8x8xf32>
    %44 = tpu.matmul %43, %26, %cst_14 {dimension_numbers = #tpu.dot_dimension_numbers<[2], [1], [1], [2], [0, 0, 0, 1, 1, 2], [0], [0]>} : vector<2x8x8xbf16>, vector<2x8x8xbf16>, vector<2x8x8xf32> -> vector<2x8x8xf32>
    "tpu.trace_stop"() : () -> ()
    %45 = arith.truncf %44 : vector<2x8x8xf32> to vector<2x8x8xbf16>
    %46 = vector.extract_strided_slice %1 {offsets = [0, 0, 16], sizes = [2, 8, 8], strides = [1, 1, 1]} : vector<2x8x96xbf16> to vector<2x8x8xbf16>
    %47 = vector.extract_strided_slice %1 {offsets = [0, 0, 48], sizes = [2, 8, 8], strides = [1, 1, 1]} : vector<2x8x96xbf16> to vector<2x8x8xbf16>
    %48 = vector.extract_strided_slice %1 {offsets = [0, 0, 80], sizes = [2, 8, 8], strides = [1, 1, 1]} : vector<2x8x96xbf16> to vector<2x8x8xbf16>
    "tpu.trace_start"() <{level = 10 : i32, message = "wqd,wkd->wqk"}> : () -> ()
    %cst_15 = arith.constant dense<0.000000e+00> : vector<2x8x8xf32>
    %49 = tpu.matmul %46, %47, %cst_15 {dimension_numbers = #tpu.dot_dimension_numbers<[2], [2], [1], [1], [0, 0, 0, 1, 1, 1], [0], [0]>} : vector<2x8x8xbf16>, vector<2x8x8xbf16>, vector<2x8x8xf32> -> vector<2x8x8xf32>
    "tpu.trace_stop"() : () -> ()
    %c2 = arith.constant 2 : index
    %c0_16 = arith.constant 0 : index
    %c0_17 = arith.constant 0 : index
    %50 = vector.load %arg3[%c2, %c0_16, %c0_17] : memref<4x8x8xf32, #tpu.memory_space<vmem>>, vector<1x8x8xf32>
    %51 = vector.shape_cast %50 : vector<1x8x8xf32> to vector<8x8xf32>
    %52 = vector.shape_cast %51 : vector<8x8xf32> to vector<1x8x8xf32>
    %53 = vector.broadcast %52 : vector<1x8x8xf32> to vector<2x8x8xf32>
    %54 = arith.addf %49, %53 : vector<2x8x8xf32>
    %cst_18 = arith.constant dense<0xFF800000> : vector<2x8xf32>
    %55 = vector.multi_reduction <maximumf>, %54, %cst_18 [2] : vector<2x8x8xf32> to vector<2x8xf32>
    %56 = vector.shape_cast %55 : vector<2x8xf32> to vector<2x8x1xf32>
    %57 = vector.broadcast %56 : vector<2x8x1xf32> to vector<2x8x8xf32>
    %58 = arith.subf %54, %57 : vector<2x8x8xf32>
    %59 = math.exp %58 : vector<2x8x8xf32>
    %cst_19 = arith.constant dense<0.000000e+00> : vector<2x8xf32>
    %60 = vector.multi_reduction <add>, %59, %cst_19 [2] : vector<2x8x8xf32> to vector<2x8xf32>
    %61 = vector.shape_cast %60 : vector<2x8xf32> to vector<2x8x1xf32>
    %62 = tpu.reciprocal %61 {approx = true} : vector<2x8x1xf32> -> vector<2x8x1xf32>
    %63 = vector.broadcast %62 : vector<2x8x1xf32> to vector<2x8x8xf32>
    %64 = arith.mulf %59, %63 : vector<2x8x8xf32>
    %65 = arith.truncf %64 : vector<2x8x8xf32> to vector<2x8x8xbf16>
    "tpu.trace_start"() <{level = 10 : i32, message = "wqk,wkd->wqd"}> : () -> ()
    %cst_20 = arith.constant dense<0.000000e+00> : vector<2x8x8xf32>
    %66 = tpu.matmul %65, %48, %cst_20 {dimension_numbers = #tpu.dot_dimension_numbers<[2], [1], [1], [2], [0, 0, 0, 1, 1, 2], [0], [0]>} : vector<2x8x8xbf16>, vector<2x8x8xbf16>, vector<2x8x8xf32> -> vector<2x8x8xf32>
    "tpu.trace_stop"() : () -> ()
    %67 = arith.truncf %66 : vector<2x8x8xf32> to vector<2x8x8xbf16>
    %68 = vector.extract_strided_slice %1 {offsets = [0, 0, 24], sizes = [2, 8, 8], strides = [1, 1, 1]} : vector<2x8x96xbf16> to vector<2x8x8xbf16>
    %69 = vector.extract_strided_slice %1 {offsets = [0, 0, 56], sizes = [2, 8, 8], strides = [1, 1, 1]} : vector<2x8x96xbf16> to vector<2x8x8xbf16>
    %70 = vector.extract_strided_slice %1 {offsets = [0, 0, 88], sizes = [2, 8, 8], strides = [1, 1, 1]} : vector<2x8x96xbf16> to vector<2x8x8xbf16>
    "tpu.trace_start"() <{level = 10 : i32, message = "wqd,wkd->wqk"}> : () -> ()
    %cst_21 = arith.constant dense<0.000000e+00> : vector<2x8x8xf32>
    %71 = tpu.matmul %68, %69, %cst_21 {dimension_numbers = #tpu.dot_dimension_numbers<[2], [2], [1], [1], [0, 0, 0, 1, 1, 1], [0], [0]>} : vector<2x8x8xbf16>, vector<2x8x8xbf16>, vector<2x8x8xf32> -> vector<2x8x8xf32>
    "tpu.trace_stop"() : () -> ()
    %c3 = arith.constant 3 : index
    %c0_22 = arith.constant 0 : index
    %c0_23 = arith.constant 0 : index
    %72 = vector.load %arg3[%c3, %c0_22, %c0_23] : memref<4x8x8xf32, #tpu.memory_space<vmem>>, vector<1x8x8xf32>
    %73 = vector.shape_cast %72 : vector<1x8x8xf32> to vector<8x8xf32>
    %74 = vector.shape_cast %73 : vector<8x8xf32> to vector<1x8x8xf32>
    %75 = vector.broadcast %74 : vector<1x8x8xf32> to vector<2x8x8xf32>
    %76 = arith.addf %71, %75 : vector<2x8x8xf32>
    %cst_24 = arith.constant dense<0xFF800000> : vector<2x8xf32>
    %77 = vector.multi_reduction <maximumf>, %76, %cst_24 [2] : vector<2x8x8xf32> to vector<2x8xf32>
    %78 = vector.shape_cast %77 : vector<2x8xf32> to vector<2x8x1xf32>
    %79 = vector.broadcast %78 : vector<2x8x1xf32> to vector<2x8x8xf32>
    %80 = arith.subf %76, %79 : vector<2x8x8xf32>
    %81 = math.exp %80 : vector<2x8x8xf32>
    %cst_25 = arith.constant dense<0.000000e+00> : vector<2x8xf32>
    %82 = vector.multi_reduction <add>, %81, %cst_25 [2] : vector<2x8x8xf32> to vector<2x8xf32>
    %83 = vector.shape_cast %82 : vector<2x8xf32> to vector<2x8x1xf32>
    %84 = tpu.reciprocal %83 {approx = true} : vector<2x8x1xf32> -> vector<2x8x1xf32>
    %85 = vector.broadcast %84 : vector<2x8x1xf32> to vector<2x8x8xf32>
    %86 = arith.mulf %81, %85 : vector<2x8x8xf32>
    %87 = arith.truncf %86 : vector<2x8x8xf32> to vector<2x8x8xbf16>
    "tpu.trace_start"() <{level = 10 : i32, message = "wqk,wkd->wqd"}> : () -> ()
    %cst_26 = arith.constant dense<0.000000e+00> : vector<2x8x8xf32>
    %88 = tpu.matmul %87, %70, %cst_26 {dimension_numbers = #tpu.dot_dimension_numbers<[2], [1], [1], [2], [0, 0, 0, 1, 1, 2], [0], [0]>} : vector<2x8x8xbf16>, vector<2x8x8xbf16>, vector<2x8x8xf32> -> vector<2x8x8xf32>
    "tpu.trace_stop"() : () -> ()
    %89 = arith.truncf %88 : vector<2x8x8xf32> to vector<2x8x8xbf16>
    %90 = tpu.concatenate %23, %45, %67, %89 in 2 : vector<2x8x8xbf16>, vector<2x8x8xbf16>, vector<2x8x8xbf16>, vector<2x8x8xbf16> -> vector<2x8x32xbf16>
    %c0_27 = arith.constant 0 : index
    %c0_28 = arith.constant 0 : index
    %c0_29 = arith.constant 0 : index
    %c0_30 = arith.constant 0 : index
    %91 = vector.load %arg4[%c0_27, %c0_28, %c0_29, %c0_30] : memref<1x2x8x32xbf16, #tpu.memory_space<vmem>>, vector<1x2x8x32xbf16>
    %92 = vector.shape_cast %91 : vector<1x2x8x32xbf16> to vector<2x8x32xbf16>
    %93 = vector.shape_cast %90 : vector<2x8x32xbf16> to vector<1x2x8x32xbf16>
    tpu.vector_store %arg4[%c0_27, %c0_28, %c0_29, %c0_30], %93 {strides = array<i32>} : memref<1x2x8x32xbf16, #tpu.memory_space<vmem>>, vector<1x2x8x32xbf16>,
    return
  }
  func.func @transform_0(%arg0: i32, %arg1: i32) -> (i32, i32, i32, i32) {
    %c0_i32 = arith.constant 0 : i32
    %c0_i32_0 = arith.constant 0 : i32
    %c0_i32_1 = arith.constant 0 : i32
    return %arg0, %arg1, %c0_i32, %c0_i32_0 : i32, i32, i32, i32
  }
  func.func @transform_1(%arg0: i32, %arg1: i32) -> (i32, i32, i32) {
    %c0_i32 = arith.constant 0 : i32
    %c0_i32_0 = arith.constant 0 : i32
    %c0_i32_1 = arith.constant 0 : i32
    %c0_i32_2 = arith.constant 0 : i32
    return %c0_i32, %c0_i32_0, %c0_i32_1 : i32, i32, i32
  }
  func.func @transform_2(%arg0: i32, %arg1: i32) -> (i32, i32, i32, i32) {
    %c0_i32 = arith.constant 0 : i32
    %c0_i32_0 = arith.constant 0 : i32
    %c0_i32_1 = arith.constant 0 : i32
    return %arg0, %arg1, %c0_i32, %c0_i32_0 : i32, i32, i32, i32
  }
}

module attributes {stable_mosaic.version = 11 : i64} {
  func.func @_single_linear_kernel(%arg0: i32, %arg1: i32, %arg2: memref<16x32xbf16, #tpu.memory_space<vmem>>, %arg3: memref<32x128xbf16, #tpu.memory_space<vmem>>, %arg4: memref<1x128xf32, #tpu.memory_space<vmem>>, %arg5: memref<1x32xf32, #tpu.memory_space<vmem>>, %arg6: memref<1x32xf32, #tpu.memory_space<vmem>>, %arg7: memref<16x128xbf16, #tpu.memory_space<vmem>>) attributes {dimension_semantics = [#tpu.dimension_semantics<parallel>, #tpu.dimension_semantics<parallel>], iteration_bounds = array<i64: 2, 1>, scalar_prefetch = 0 : i64, scratch_operands = 0 : i64, tpu.core_type = #tpu.core_type<tc>, window_params = [{transform_indices = @transform_0, window_bounds = array<i64: 16, 32>}, {transform_indices = @transform_1, window_bounds = array<i64: 32, 128>}, {transform_indices = @transform_2, window_bounds = array<i64: 1, 128>}, {pipeline_mode = #tpu.pipeline_mode<synchronous>, transform_indices = @transform_3, window_bounds = array<i64: 1, 32>}, {pipeline_mode = #tpu.pipeline_mode<synchronous>, transform_indices = @transform_4, window_bounds = array<i64: 1, 32>}, {transform_indices = @transform_5, window_bounds = array<i64: 16, 128>}]} {
    %c0 = arith.constant 0 : index
    %c0_0 = arith.constant 0 : index
    %0 = vector.load %arg2[%c0, %c0_0] : memref<16x32xbf16, #tpu.memory_space<vmem>>, vector<16x32xbf16>
    %1 = arith.extf %0 : vector<16x32xbf16> to vector<16x32xf32>
    %cst = arith.constant dense<0.000000e+00> : vector<16xf32>
    %2 = vector.multi_reduction <add>, %1, %cst [1] : vector<16x32xf32> to vector<16xf32>
    %3 = vector.shape_cast %2 : vector<16xf32> to vector<16x1xf32>
    %cst_1 = arith.constant 3.200000e+01 : f32
    %4 = vector.broadcast %cst_1 : f32 to vector<16x1xf32>
    %5 = arith.divf %3, %4 : vector<16x1xf32>
    %6 = vector.broadcast %5 : vector<16x1xf32> to vector<16x32xf32>
    %7 = arith.subf %1, %6 : vector<16x32xf32>
    %8 = arith.mulf %7, %7 : vector<16x32xf32>
    %cst_2 = arith.constant dense<0.000000e+00> : vector<16xf32>
    %9 = vector.multi_reduction <add>, %8, %cst_2 [1] : vector<16x32xf32> to vector<16xf32>
    %10 = vector.shape_cast %9 : vector<16xf32> to vector<16x1xf32>
    %cst_3 = arith.constant 3.200000e+01 : f32
    %11 = vector.broadcast %cst_3 : f32 to vector<16x1xf32>
    %12 = arith.divf %10, %11 : vector<16x1xf32>
    %13 = vector.broadcast %5 : vector<16x1xf32> to vector<16x32xf32>
    %14 = arith.subf %1, %13 : vector<16x32xf32>
    %cst_4 = arith.constant 9.99999974E-6 : f32
    %15 = vector.broadcast %cst_4 : f32 to vector<16x1xf32>
    %16 = arith.addf %12, %15 : vector<16x1xf32>
    %17 = math.rsqrt %16 : vector<16x1xf32>
    %18 = vector.broadcast %17 : vector<16x1xf32> to vector<16x32xf32>
    %19 = arith.mulf %14, %18 : vector<16x32xf32>
    %c0_5 = arith.constant 0 : index
    %c0_6 = arith.constant 0 : index
    %20 = vector.load %arg5[%c0_5, %c0_6] : memref<1x32xf32, #tpu.memory_space<vmem>>, vector<1x32xf32>
    %21 = vector.broadcast %20 : vector<1x32xf32> to vector<16x32xf32>
    %22 = arith.mulf %19, %21 : vector<16x32xf32>
    %c0_7 = arith.constant 0 : index
    %c0_8 = arith.constant 0 : index
    %23 = vector.load %arg6[%c0_7, %c0_8] : memref<1x32xf32, #tpu.memory_space<vmem>>, vector<1x32xf32>
    %24 = vector.broadcast %23 : vector<1x32xf32> to vector<16x32xf32>
    %25 = arith.addf %22, %24 : vector<16x32xf32>
    %26 = arith.truncf %25 : vector<16x32xf32> to vector<16x32xbf16>
    %c0_9 = arith.constant 0 : index
    %c0_10 = arith.constant 0 : index
    %27 = vector.load %arg3[%c0_9, %c0_10] : memref<32x128xbf16, #tpu.memory_space<vmem>>, vector<32x128xbf16>
    %cst_11 = arith.constant dense<0.000000e+00> : vector<16x128xf32>
    %28 = tpu.matmul %26, %27, %cst_11 {dimension_numbers = #tpu.dot_dimension_numbers<[1], [0], [0], [1], [0, 0, 1, 1], [], []>} : vector<16x32xbf16>, vector<32x128xbf16>, vector<16x128xf32> -> vector<16x128xf32>
    %c0_12 = arith.constant 0 : index
    %c0_13 = arith.constant 0 : index
    %29 = vector.load %arg4[%c0_12, %c0_13] : memref<1x128xf32, #tpu.memory_space<vmem>>, vector<1x128xf32>
    %30 = vector.broadcast %29 : vector<1x128xf32> to vector<16x128xf32>
    %31 = arith.addf %28, %30 : vector<16x128xf32>
    %cst_14 = arith.constant 0.707106769 : f32
    %32 = vector.broadcast %cst_14 : f32 to vector<16x128xf32>
    %33 = arith.mulf %31, %32 : vector<16x128xf32>
    %cst_15 = arith.constant 0.000000e+00 : f32
    %34 = vector.broadcast %cst_15 : f32 to vector<16x128xf32>
    %35 = arith.cmpf oge, %33, %34 : vector<16x128xf32>
    %cst_16 = arith.constant 1.000000e+00 : f32
    %cst_17 = arith.constant -1.000000e+00 : f32
    %36 = vector.broadcast %cst_16 : f32 to vector<16x128xf32>
    %37 = vector.broadcast %cst_17 : f32 to vector<16x128xf32>
    %38 = arith.select %35, %36, %37 : vector<16x128xi1>, vector<16x128xf32>
    %39 = math.absf %33 : vector<16x128xf32>
    %cst_18 = arith.constant 0.327591091 : f32
    %40 = vector.broadcast %cst_18 : f32 to vector<16x128xf32>
    %41 = arith.mulf %40, %39 : vector<16x128xf32>
    %cst_19 = arith.constant 1.000000e+00 : f32
    %42 = vector.broadcast %cst_19 : f32 to vector<16x128xf32>
    %43 = arith.addf %42, %41 : vector<16x128xf32>
    %44 = tpu.reciprocal %43 {approx = true} : vector<16x128xf32> -> vector<16x128xf32>
    %cst_20 = arith.constant 1.06140542 : f32
    %45 = vector.broadcast %cst_20 : f32 to vector<16x128xf32>
    %46 = arith.mulf %45, %44 : vector<16x128xf32>
    %cst_21 = arith.constant -1.45315206 : f32
    %47 = vector.broadcast %cst_21 : f32 to vector<16x128xf32>
    %48 = arith.addf %46, %47 : vector<16x128xf32>
    %49 = arith.mulf %48, %44 : vector<16x128xf32>
    %cst_22 = arith.constant 1.42141378 : f32
    %50 = vector.broadcast %cst_22 : f32 to vector<16x128xf32>
    %51 = arith.addf %49, %50 : vector<16x128xf32>
    %52 = arith.mulf %51, %44 : vector<16x128xf32>
    %cst_23 = arith.constant -0.284496725 : f32
    %53 = vector.broadcast %cst_23 : f32 to vector<16x128xf32>
    %54 = arith.addf %52, %53 : vector<16x128xf32>
    %55 = arith.mulf %54, %44 : vector<16x128xf32>
    %cst_24 = arith.constant 0.254829586 : f32
    %56 = vector.broadcast %cst_24 : f32 to vector<16x128xf32>
    %57 = arith.addf %55, %56 : vector<16x128xf32>
    %58 = arith.mulf %57, %44 : vector<16x128xf32>
    %cst_25 = arith.constant 0.000000e+00 : f32
    %59 = vector.broadcast %cst_25 : f32 to vector<16x128xf32>
    %60 = arith.subf %59, %39 : vector<16x128xf32>
    %61 = arith.mulf %60, %39 : vector<16x128xf32>
    %62 = math.exp %61 : vector<16x128xf32>
    %63 = arith.mulf %58, %62 : vector<16x128xf32>
    %cst_26 = arith.constant 1.000000e+00 : f32
    %64 = vector.broadcast %cst_26 : f32 to vector<16x128xf32>
    %65 = arith.subf %64, %63 : vector<16x128xf32>
    %66 = arith.mulf %38, %65 : vector<16x128xf32>
    %cst_27 = arith.constant 5.000000e-01 : f32
    %67 = vector.broadcast %cst_27 : f32 to vector<16x128xf32>
    %68 = arith.mulf %67, %31 : vector<16x128xf32>
    %cst_28 = arith.constant 1.000000e+00 : f32
    %69 = vector.broadcast %cst_28 : f32 to vector<16x128xf32>
    %70 = arith.addf %69, %66 : vector<16x128xf32>
    %71 = arith.mulf %68, %70 : vector<16x128xf32>
    %72 = arith.truncf %71 : vector<16x128xf32> to vector<16x128xbf16>
    %c0_29 = arith.constant 0 : index
    %c0_30 = arith.constant 0 : index
    %73 = vector.load %arg7[%c0_29, %c0_30] : memref<16x128xbf16, #tpu.memory_space<vmem>>, vector<16x128xbf16>
    tpu.vector_store %arg7[%c0_29, %c0_30], %72 {strides = array<i32>} : memref<16x128xbf16, #tpu.memory_space<vmem>>, vector<16x128xbf16>,
    return
  }
  func.func @transform_0(%arg0: i32, %arg1: i32) -> (i32, i32) {
    %c0_i32 = arith.constant 0 : i32
    %c0_i32_0 = arith.constant 0 : i32
    return %arg0, %c0_i32 : i32, i32
  }
  func.func @transform_1(%arg0: i32, %arg1: i32) -> (i32, i32) {
    %c0_i32 = arith.constant 0 : i32
    %c0_i32_0 = arith.constant 0 : i32
    return %c0_i32, %arg1 : i32, i32
  }
  func.func @transform_2(%arg0: i32, %arg1: i32) -> (i32, i32) {
    %c0_i32 = arith.constant 0 : i32
    %c0_i32_0 = arith.constant 0 : i32
    return %c0_i32, %arg1 : i32, i32
  }
  func.func @transform_3(%arg0: i32, %arg1: i32) -> (i32, i32) {
    %c0_i32 = arith.constant 0 : i32
    %c0_i32_0 = arith.constant 0 : i32
    %c0_i32_1 = arith.constant 0 : i32
    return %c0_i32, %c0_i32_0 : i32, i32
  }
  func.func @transform_4(%arg0: i32, %arg1: i32) -> (i32, i32) {
    %c0_i32 = arith.constant 0 : i32
    %c0_i32_0 = arith.constant 0 : i32
    %c0_i32_1 = arith.constant 0 : i32
    return %c0_i32, %c0_i32_0 : i32, i32
  }
  func.func @transform_5(%arg0: i32, %arg1: i32) -> (i32, i32) {
    %c0_i32 = arith.constant 0 : i32
    return %arg0, %arg1 : i32, i32
  }
}

module attributes {stable_mosaic.version = 11 : i64} {
  func.func @_single_linear_kernel(%arg0: i32, %arg1: i32, %arg2: memref<16x128xbf16, #tpu.memory_space<vmem>>, %arg3: memref<128x32xbf16, #tpu.memory_space<vmem>>, %arg4: memref<1x32xf32, #tpu.memory_space<vmem>>, %arg5: memref<16x32xbf16, #tpu.memory_space<vmem>>, %arg6: memref<16x32xbf16, #tpu.memory_space<vmem>>) attributes {dimension_semantics = [#tpu.dimension_semantics<parallel>, #tpu.dimension_semantics<parallel>], iteration_bounds = array<i64: 2, 1>, scalar_prefetch = 0 : i64, scratch_operands = 0 : i64, tpu.core_type = #tpu.core_type<tc>, window_params = [{transform_indices = @transform_0, window_bounds = array<i64: 16, 128>}, {transform_indices = @transform_1, window_bounds = array<i64: 128, 32>}, {transform_indices = @transform_2, window_bounds = array<i64: 1, 32>}, {transform_indices = @transform_3, window_bounds = array<i64: 16, 32>}, {transform_indices = @transform_4, window_bounds = array<i64: 16, 32>}]} {
    %c0 = arith.constant 0 : index
    %c0_0 = arith.constant 0 : index
    %0 = vector.load %arg2[%c0, %c0_0] : memref<16x128xbf16, #tpu.memory_space<vmem>>, vector<16x128xbf16>
    %c0_1 = arith.constant 0 : index
    %c0_2 = arith.constant 0 : index
    %1 = vector.load %arg3[%c0_1, %c0_2] : memref<128x32xbf16, #tpu.memory_space<vmem>>, vector<128x32xbf16>
    %cst = arith.constant dense<0.000000e+00> : vector<16x32xf32>
    %2 = tpu.matmul %0, %1, %cst {dimension_numbers = #tpu.dot_dimension_numbers<[1], [0], [0], [1], [0, 0, 1, 1], [], []>} : vector<16x128xbf16>, vector<128x32xbf16>, vector<16x32xf32> -> vector<16x32xf32>
    %c0_3 = arith.constant 0 : index
    %c0_4 = arith.constant 0 : index
    %3 = vector.load %arg4[%c0_3, %c0_4] : memref<1x32xf32, #tpu.memory_space<vmem>>, vector<1x32xf32>
    %4 = vector.broadcast %3 : vector<1x32xf32> to vector<16x32xf32>
    %5 = arith.addf %2, %4 : vector<16x32xf32>
    %c0_5 = arith.constant 0 : index
    %c0_6 = arith.constant 0 : index
    %6 = vector.load %arg5[%c0_5, %c0_6] : memref<16x32xbf16, #tpu.memory_space<vmem>>, vector<16x32xbf16>
    %7 = arith.extf %6 : vector<16x32xbf16> to vector<16x32xf32>
    %8 = arith.addf %5, %7 : vector<16x32xf32>
    %9 = arith.truncf %8 : vector<16x32xf32> to vector<16x32xbf16>
    %c0_7 = arith.constant 0 : index
    %c0_8 = arith.constant 0 : index
    %10 = vector.load %arg6[%c0_7, %c0_8] : memref<16x32xbf16, #tpu.memory_space<vmem>>, vector<16x32xbf16>
    tpu.vector_store %arg6[%c0_7, %c0_8], %9 {strides = array<i32>} : memref<16x32xbf16, #tpu.memory_space<vmem>>, vector<16x32xbf16>,
    return
  }
  func.func @transform_0(%arg0: i32, %arg1: i32) -> (i32, i32) {
    %c0_i32 = arith.constant 0 : i32
    %c0_i32_0 = arith.constant 0 : i32
    return %arg0, %c0_i32 : i32, i32
  }
  func.func @transform_1(%arg0: i32, %arg1: i32) -> (i32, i32) {
    %c0_i32 = arith.constant 0 : i32
    %c0_i32_0 = arith.constant 0 : i32
    return %c0_i32, %arg1 : i32, i32
  }
  func.func @transform_2(%arg0: i32, %arg1: i32) -> (i32, i32) {
    %c0_i32 = arith.constant 0 : i32
    %c0_i32_0 = arith.constant 0 : i32
    return %c0_i32, %arg1 : i32, i32
  }
  func.func @transform_3(%arg0: i32, %arg1: i32) -> (i32, i32) {
    %c0_i32 = arith.constant 0 : i32
    return %arg0, %arg1 : i32, i32
  }
  func.func @transform_4(%arg0: i32, %arg1: i32) -> (i32, i32) {
    %c0_i32 = arith.constant 0 : i32
    return %arg0, %arg1 : i32, i32
  }
}

module attributes {stable_mosaic.version = 11 : i64} {
  func.func @_window_attn_kernel(%arg0: i32, %arg1: i32, %arg2: memref<1x2x8x96xbf16, #tpu.memory_space<vmem>>, %arg3: memref<4x8x8xf32, #tpu.memory_space<vmem>>, %arg4: memref<2x8x8xf32, #tpu.memory_space<vmem>>, %arg5: memref<1x2x8x32xbf16, #tpu.memory_space<vmem>>) attributes {dimension_semantics = [#tpu.dimension_semantics<parallel>, #tpu.dimension_semantics<parallel>], iteration_bounds = array<i64: 2, 1>, scalar_prefetch = 0 : i64, scratch_operands = 0 : i64, tpu.core_type = #tpu.core_type<tc>, window_params = [{transform_indices = @transform_0, window_bounds = array<i64: 1, 2, 8, 96>}, {pipeline_mode = #tpu.pipeline_mode<synchronous>, transform_indices = @transform_1, window_bounds = array<i64: 4, 8, 8>}, {transform_indices = @transform_2, window_bounds = array<i64: 2, 8, 8>}, {transform_indices = @transform_3, window_bounds = array<i64: 1, 2, 8, 32>}]} {
    %c0 = arith.constant 0 : index
    %c0_0 = arith.constant 0 : index
    %c0_1 = arith.constant 0 : index
    %c0_2 = arith.constant 0 : index
    %0 = vector.load %arg2[%c0, %c0_0, %c0_1, %c0_2] : memref<1x2x8x96xbf16, #tpu.memory_space<vmem>>, vector<1x2x8x96xbf16>
    %1 = vector.shape_cast %0 : vector<1x2x8x96xbf16> to vector<2x8x96xbf16>
    %c0_3 = arith.constant 0 : index
    %c0_4 = arith.constant 0 : index
    %c0_5 = arith.constant 0 : index
    %2 = vector.load %arg4[%c0_3, %c0_4, %c0_5] : memref<2x8x8xf32, #tpu.memory_space<vmem>>, vector<2x8x8xf32>
    %3 = vector.extract_strided_slice %1 {offsets = [0, 0, 0], sizes = [2, 8, 8], strides = [1, 1, 1]} : vector<2x8x96xbf16> to vector<2x8x8xbf16>
    %4 = vector.extract_strided_slice %1 {offsets = [0, 0, 32], sizes = [2, 8, 8], strides = [1, 1, 1]} : vector<2x8x96xbf16> to vector<2x8x8xbf16>
    %5 = vector.extract_strided_slice %1 {offsets = [0, 0, 64], sizes = [2, 8, 8], strides = [1, 1, 1]} : vector<2x8x96xbf16> to vector<2x8x8xbf16>
    "tpu.trace_start"() <{level = 10 : i32, message = "wqd,wkd->wqk"}> : () -> ()
    %cst = arith.constant dense<0.000000e+00> : vector<2x8x8xf32>
    %6 = tpu.matmul %3, %4, %cst {dimension_numbers = #tpu.dot_dimension_numbers<[2], [2], [1], [1], [0, 0, 0, 1, 1, 1], [0], [0]>} : vector<2x8x8xbf16>, vector<2x8x8xbf16>, vector<2x8x8xf32> -> vector<2x8x8xf32>
    "tpu.trace_stop"() : () -> ()
    %c0_6 = arith.constant 0 : index
    %c0_7 = arith.constant 0 : index
    %c0_8 = arith.constant 0 : index
    %7 = vector.load %arg3[%c0_6, %c0_7, %c0_8] : memref<4x8x8xf32, #tpu.memory_space<vmem>>, vector<1x8x8xf32>
    %8 = vector.shape_cast %7 : vector<1x8x8xf32> to vector<8x8xf32>
    %9 = vector.shape_cast %8 : vector<8x8xf32> to vector<1x8x8xf32>
    %10 = vector.broadcast %9 : vector<1x8x8xf32> to vector<2x8x8xf32>
    %11 = arith.addf %6, %10 : vector<2x8x8xf32>
    %12 = arith.addf %11, %2 : vector<2x8x8xf32>
    %cst_9 = arith.constant dense<0xFF800000> : vector<2x8xf32>
    %13 = vector.multi_reduction <maximumf>, %12, %cst_9 [2] : vector<2x8x8xf32> to vector<2x8xf32>
    %14 = vector.shape_cast %13 : vector<2x8xf32> to vector<2x8x1xf32>
    %15 = vector.broadcast %14 : vector<2x8x1xf32> to vector<2x8x8xf32>
    %16 = arith.subf %12, %15 : vector<2x8x8xf32>
    %17 = math.exp %16 : vector<2x8x8xf32>
    %cst_10 = arith.constant dense<0.000000e+00> : vector<2x8xf32>
    %18 = vector.multi_reduction <add>, %17, %cst_10 [2] : vector<2x8x8xf32> to vector<2x8xf32>
    %19 = vector.shape_cast %18 : vector<2x8xf32> to vector<2x8x1xf32>
    %20 = tpu.reciprocal %19 {approx = true} : vector<2x8x1xf32> -> vector<2x8x1xf32>
    %21 = vector.broadcast %20 : vector<2x8x1xf32> to vector<2x8x8xf32>
    %22 = arith.mulf %17, %21 : vector<2x8x8xf32>
    %23 = arith.truncf %22 : vector<2x8x8xf32> to vector<2x8x8xbf16>
    "tpu.trace_start"() <{level = 10 : i32, message = "wqk,wkd->wqd"}> : () -> ()
    %cst_11 = arith.constant dense<0.000000e+00> : vector<2x8x8xf32>
    %24 = tpu.matmul %23, %5, %cst_11 {dimension_numbers = #tpu.dot_dimension_numbers<[2], [1], [1], [2], [0, 0, 0, 1, 1, 2], [0], [0]>} : vector<2x8x8xbf16>, vector<2x8x8xbf16>, vector<2x8x8xf32> -> vector<2x8x8xf32>
    "tpu.trace_stop"() : () -> ()
    %25 = arith.truncf %24 : vector<2x8x8xf32> to vector<2x8x8xbf16>
    %26 = vector.extract_strided_slice %1 {offsets = [0, 0, 8], sizes = [2, 8, 8], strides = [1, 1, 1]} : vector<2x8x96xbf16> to vector<2x8x8xbf16>
    %27 = vector.extract_strided_slice %1 {offsets = [0, 0, 40], sizes = [2, 8, 8], strides = [1, 1, 1]} : vector<2x8x96xbf16> to vector<2x8x8xbf16>
    %28 = vector.extract_strided_slice %1 {offsets = [0, 0, 72], sizes = [2, 8, 8], strides = [1, 1, 1]} : vector<2x8x96xbf16> to vector<2x8x8xbf16>
    "tpu.trace_start"() <{level = 10 : i32, message = "wqd,wkd->wqk"}> : () -> ()
    %cst_12 = arith.constant dense<0.000000e+00> : vector<2x8x8xf32>
    %29 = tpu.matmul %26, %27, %cst_12 {dimension_numbers = #tpu.dot_dimension_numbers<[2], [2], [1], [1], [0, 0, 0, 1, 1, 1], [0], [0]>} : vector<2x8x8xbf16>, vector<2x8x8xbf16>, vector<2x8x8xf32> -> vector<2x8x8xf32>
    "tpu.trace_stop"() : () -> ()
    %c1 = arith.constant 1 : index
    %c0_13 = arith.constant 0 : index
    %c0_14 = arith.constant 0 : index
    %30 = vector.load %arg3[%c1, %c0_13, %c0_14] : memref<4x8x8xf32, #tpu.memory_space<vmem>>, vector<1x8x8xf32>
    %31 = vector.shape_cast %30 : vector<1x8x8xf32> to vector<8x8xf32>
    %32 = vector.shape_cast %31 : vector<8x8xf32> to vector<1x8x8xf32>
    %33 = vector.broadcast %32 : vector<1x8x8xf32> to vector<2x8x8xf32>
    %34 = arith.addf %29, %33 : vector<2x8x8xf32>
    %35 = arith.addf %34, %2 : vector<2x8x8xf32>
    %cst_15 = arith.constant dense<0xFF800000> : vector<2x8xf32>
    %36 = vector.multi_reduction <maximumf>, %35, %cst_15 [2] : vector<2x8x8xf32> to vector<2x8xf32>
    %37 = vector.shape_cast %36 : vector<2x8xf32> to vector<2x8x1xf32>
    %38 = vector.broadcast %37 : vector<2x8x1xf32> to vector<2x8x8xf32>
    %39 = arith.subf %35, %38 : vector<2x8x8xf32>
    %40 = math.exp %39 : vector<2x8x8xf32>
    %cst_16 = arith.constant dense<0.000000e+00> : vector<2x8xf32>
    %41 = vector.multi_reduction <add>, %40, %cst_16 [2] : vector<2x8x8xf32> to vector<2x8xf32>
    %42 = vector.shape_cast %41 : vector<2x8xf32> to vector<2x8x1xf32>
    %43 = tpu.reciprocal %42 {approx = true} : vector<2x8x1xf32> -> vector<2x8x1xf32>
    %44 = vector.broadcast %43 : vector<2x8x1xf32> to vector<2x8x8xf32>
    %45 = arith.mulf %40, %44 : vector<2x8x8xf32>
    %46 = arith.truncf %45 : vector<2x8x8xf32> to vector<2x8x8xbf16>
    "tpu.trace_start"() <{level = 10 : i32, message = "wqk,wkd->wqd"}> : () -> ()
    %cst_17 = arith.constant dense<0.000000e+00> : vector<2x8x8xf32>
    %47 = tpu.matmul %46, %28, %cst_17 {dimension_numbers = #tpu.dot_dimension_numbers<[2], [1], [1], [2], [0, 0, 0, 1, 1, 2], [0], [0]>} : vector<2x8x8xbf16>, vector<2x8x8xbf16>, vector<2x8x8xf32> -> vector<2x8x8xf32>
    "tpu.trace_stop"() : () -> ()
    %48 = arith.truncf %47 : vector<2x8x8xf32> to vector<2x8x8xbf16>
    %49 = vector.extract_strided_slice %1 {offsets = [0, 0, 16], sizes = [2, 8, 8], strides = [1, 1, 1]} : vector<2x8x96xbf16> to vector<2x8x8xbf16>
    %50 = vector.extract_strided_slice %1 {offsets = [0, 0, 48], sizes = [2, 8, 8], strides = [1, 1, 1]} : vector<2x8x96xbf16> to vector<2x8x8xbf16>
    %51 = vector.extract_strided_slice %1 {offsets = [0, 0, 80], sizes = [2, 8, 8], strides = [1, 1, 1]} : vector<2x8x96xbf16> to vector<2x8x8xbf16>
    "tpu.trace_start"() <{level = 10 : i32, message = "wqd,wkd->wqk"}> : () -> ()
    %cst_18 = arith.constant dense<0.000000e+00> : vector<2x8x8xf32>
    %52 = tpu.matmul %49, %50, %cst_18 {dimension_numbers = #tpu.dot_dimension_numbers<[2], [2], [1], [1], [0, 0, 0, 1, 1, 1], [0], [0]>} : vector<2x8x8xbf16>, vector<2x8x8xbf16>, vector<2x8x8xf32> -> vector<2x8x8xf32>
    "tpu.trace_stop"() : () -> ()
    %c2 = arith.constant 2 : index
    %c0_19 = arith.constant 0 : index
    %c0_20 = arith.constant 0 : index
    %53 = vector.load %arg3[%c2, %c0_19, %c0_20] : memref<4x8x8xf32, #tpu.memory_space<vmem>>, vector<1x8x8xf32>
    %54 = vector.shape_cast %53 : vector<1x8x8xf32> to vector<8x8xf32>
    %55 = vector.shape_cast %54 : vector<8x8xf32> to vector<1x8x8xf32>
    %56 = vector.broadcast %55 : vector<1x8x8xf32> to vector<2x8x8xf32>
    %57 = arith.addf %52, %56 : vector<2x8x8xf32>
    %58 = arith.addf %57, %2 : vector<2x8x8xf32>
    %cst_21 = arith.constant dense<0xFF800000> : vector<2x8xf32>
    %59 = vector.multi_reduction <maximumf>, %58, %cst_21 [2] : vector<2x8x8xf32> to vector<2x8xf32>
    %60 = vector.shape_cast %59 : vector<2x8xf32> to vector<2x8x1xf32>
    %61 = vector.broadcast %60 : vector<2x8x1xf32> to vector<2x8x8xf32>
    %62 = arith.subf %58, %61 : vector<2x8x8xf32>
    %63 = math.exp %62 : vector<2x8x8xf32>
    %cst_22 = arith.constant dense<0.000000e+00> : vector<2x8xf32>
    %64 = vector.multi_reduction <add>, %63, %cst_22 [2] : vector<2x8x8xf32> to vector<2x8xf32>
    %65 = vector.shape_cast %64 : vector<2x8xf32> to vector<2x8x1xf32>
    %66 = tpu.reciprocal %65 {approx = true} : vector<2x8x1xf32> -> vector<2x8x1xf32>
    %67 = vector.broadcast %66 : vector<2x8x1xf32> to vector<2x8x8xf32>
    %68 = arith.mulf %63, %67 : vector<2x8x8xf32>
    %69 = arith.truncf %68 : vector<2x8x8xf32> to vector<2x8x8xbf16>
    "tpu.trace_start"() <{level = 10 : i32, message = "wqk,wkd->wqd"}> : () -> ()
    %cst_23 = arith.constant dense<0.000000e+00> : vector<2x8x8xf32>
    %70 = tpu.matmul %69, %51, %cst_23 {dimension_numbers = #tpu.dot_dimension_numbers<[2], [1], [1], [2], [0, 0, 0, 1, 1, 2], [0], [0]>} : vector<2x8x8xbf16>, vector<2x8x8xbf16>, vector<2x8x8xf32> -> vector<2x8x8xf32>
    "tpu.trace_stop"() : () -> ()
    %71 = arith.truncf %70 : vector<2x8x8xf32> to vector<2x8x8xbf16>
    %72 = vector.extract_strided_slice %1 {offsets = [0, 0, 24], sizes = [2, 8, 8], strides = [1, 1, 1]} : vector<2x8x96xbf16> to vector<2x8x8xbf16>
    %73 = vector.extract_strided_slice %1 {offsets = [0, 0, 56], sizes = [2, 8, 8], strides = [1, 1, 1]} : vector<2x8x96xbf16> to vector<2x8x8xbf16>
    %74 = vector.extract_strided_slice %1 {offsets = [0, 0, 88], sizes = [2, 8, 8], strides = [1, 1, 1]} : vector<2x8x96xbf16> to vector<2x8x8xbf16>
    "tpu.trace_start"() <{level = 10 : i32, message = "wqd,wkd->wqk"}> : () -> ()
    %cst_24 = arith.constant dense<0.000000e+00> : vector<2x8x8xf32>
    %75 = tpu.matmul %72, %73, %cst_24 {dimension_numbers = #tpu.dot_dimension_numbers<[2], [2], [1], [1], [0, 0, 0, 1, 1, 1], [0], [0]>} : vector<2x8x8xbf16>, vector<2x8x8xbf16>, vector<2x8x8xf32> -> vector<2x8x8xf32>
    "tpu.trace_stop"() : () -> ()
    %c3 = arith.constant 3 : index
    %c0_25 = arith.constant 0 : index
    %c0_26 = arith.constant 0 : index
    %76 = vector.load %arg3[%c3, %c0_25, %c0_26] : memref<4x8x8xf32, #tpu.memory_space<vmem>>, vector<1x8x8xf32>
    %77 = vector.shape_cast %76 : vector<1x8x8xf32> to vector<8x8xf32>
    %78 = vector.shape_cast %77 : vector<8x8xf32> to vector<1x8x8xf32>
    %79 = vector.broadcast %78 : vector<1x8x8xf32> to vector<2x8x8xf32>
    %80 = arith.addf %75, %79 : vector<2x8x8xf32>
    %81 = arith.addf %80, %2 : vector<2x8x8xf32>
    %cst_27 = arith.constant dense<0xFF800000> : vector<2x8xf32>
    %82 = vector.multi_reduction <maximumf>, %81, %cst_27 [2] : vector<2x8x8xf32> to vector<2x8xf32>
    %83 = vector.shape_cast %82 : vector<2x8xf32> to vector<2x8x1xf32>
    %84 = vector.broadcast %83 : vector<2x8x1xf32> to vector<2x8x8xf32>
    %85 = arith.subf %81, %84 : vector<2x8x8xf32>
    %86 = math.exp %85 : vector<2x8x8xf32>
    %cst_28 = arith.constant dense<0.000000e+00> : vector<2x8xf32>
    %87 = vector.multi_reduction <add>, %86, %cst_28 [2] : vector<2x8x8xf32> to vector<2x8xf32>
    %88 = vector.shape_cast %87 : vector<2x8xf32> to vector<2x8x1xf32>
    %89 = tpu.reciprocal %88 {approx = true} : vector<2x8x1xf32> -> vector<2x8x1xf32>
    %90 = vector.broadcast %89 : vector<2x8x1xf32> to vector<2x8x8xf32>
    %91 = arith.mulf %86, %90 : vector<2x8x8xf32>
    %92 = arith.truncf %91 : vector<2x8x8xf32> to vector<2x8x8xbf16>
    "tpu.trace_start"() <{level = 10 : i32, message = "wqk,wkd->wqd"}> : () -> ()
    %cst_29 = arith.constant dense<0.000000e+00> : vector<2x8x8xf32>
    %93 = tpu.matmul %92, %74, %cst_29 {dimension_numbers = #tpu.dot_dimension_numbers<[2], [1], [1], [2], [0, 0, 0, 1, 1, 2], [0], [0]>} : vector<2x8x8xbf16>, vector<2x8x8xbf16>, vector<2x8x8xf32> -> vector<2x8x8xf32>
    "tpu.trace_stop"() : () -> ()
    %94 = arith.truncf %93 : vector<2x8x8xf32> to vector<2x8x8xbf16>
    %95 = tpu.concatenate %25, %48, %71, %94 in 2 : vector<2x8x8xbf16>, vector<2x8x8xbf16>, vector<2x8x8xbf16>, vector<2x8x8xbf16> -> vector<2x8x32xbf16>
    %c0_30 = arith.constant 0 : index
    %c0_31 = arith.constant 0 : index
    %c0_32 = arith.constant 0 : index
    %c0_33 = arith.constant 0 : index
    %96 = vector.load %arg5[%c0_30, %c0_31, %c0_32, %c0_33] : memref<1x2x8x32xbf16, #tpu.memory_space<vmem>>, vector<1x2x8x32xbf16>
    %97 = vector.shape_cast %96 : vector<1x2x8x32xbf16> to vector<2x8x32xbf16>
    %98 = vector.shape_cast %95 : vector<2x8x32xbf16> to vector<1x2x8x32xbf16>
    tpu.vector_store %arg5[%c0_30, %c0_31, %c0_32, %c0_33], %98 {strides = array<i32>} : memref<1x2x8x32xbf16, #tpu.memory_space<vmem>>, vector<1x2x8x32xbf16>,
    return
  }
  func.func @transform_0(%arg0: i32, %arg1: i32) -> (i32, i32, i32, i32) {
    %c0_i32 = arith.constant 0 : i32
    %c0_i32_0 = arith.constant 0 : i32
    %c0_i32_1 = arith.constant 0 : i32
    return %arg0, %arg1, %c0_i32, %c0_i32_0 : i32, i32, i32, i32
  }
  func.func @transform_1(%arg0: i32, %arg1: i32) -> (i32, i32, i32) {
    %c0_i32 = arith.constant 0 : i32
    %c0_i32_0 = arith.constant 0 : i32
    %c0_i32_1 = arith.constant 0 : i32
    %c0_i32_2 = arith.constant 0 : i32
    return %c0_i32, %c0_i32_0, %c0_i32_1 : i32, i32, i32
  }
  func.func @transform_2(%arg0: i32, %arg1: i32) -> (i32, i32, i32) {
    %c0_i32 = arith.constant 0 : i32
    %c0_i32_0 = arith.constant 0 : i32
    %c0_i32_1 = arith.constant 0 : i32
    return %arg1, %c0_i32, %c0_i32_0 : i32, i32, i32
  }
  func.func @transform_3(%arg0: i32, %arg1: i32) -> (i32, i32, i32, i32) {
    %c0_i32 = arith.constant 0 : i32
    %c0_i32_0 = arith.constant 0 : i32
    %c0_i32_1 = arith.constant 0 : i32
    return %arg0, %arg1, %c0_i32, %c0_i32_0 : i32, i32, i32, i32
  }
}

module attributes {stable_mosaic.version = 11 : i64} {
  func.func @_layernorm_kernel(%arg0: i32, %arg1: memref<32x32xbf16, #tpu.memory_space<vmem>>, %arg2: memref<1x32xf32, #tpu.memory_space<vmem>>, %arg3: memref<1x32xf32, #tpu.memory_space<vmem>>, %arg4: memref<32x32xbf16, #tpu.memory_space<vmem>>) attributes {dimension_semantics = [#tpu.dimension_semantics<parallel>], iteration_bounds = array<i64: 1>, scalar_prefetch = 0 : i64, scratch_operands = 0 : i64, tpu.core_type = #tpu.core_type<tc>, window_params = [{transform_indices = @transform_0, window_bounds = array<i64: 32, 32>}, {pipeline_mode = #tpu.pipeline_mode<synchronous>, transform_indices = @transform_1, window_bounds = array<i64: 1, 32>}, {pipeline_mode = #tpu.pipeline_mode<synchronous>, transform_indices = @transform_2, window_bounds = array<i64: 1, 32>}, {transform_indices = @transform_3, window_bounds = array<i64: 32, 32>}]} {
    %c0 = arith.constant 0 : index
    %c0_0 = arith.constant 0 : index
    %0 = vector.load %arg1[%c0, %c0_0] : memref<32x32xbf16, #tpu.memory_space<vmem>>, vector<32x32xbf16>
    %1 = arith.extf %0 : vector<32x32xbf16> to vector<32x32xf32>
    %cst = arith.constant dense<0.000000e+00> : vector<32xf32>
    %2 = vector.multi_reduction <add>, %1, %cst [1] : vector<32x32xf32> to vector<32xf32>
    %3 = vector.shape_cast %2 : vector<32xf32> to vector<32x1xf32>
    %cst_1 = arith.constant 3.200000e+01 : f32
    %4 = vector.broadcast %cst_1 : f32 to vector<32x1xf32>
    %5 = arith.divf %3, %4 : vector<32x1xf32>
    %6 = vector.broadcast %5 : vector<32x1xf32> to vector<32x32xf32>
    %7 = arith.subf %1, %6 : vector<32x32xf32>
    %8 = arith.mulf %7, %7 : vector<32x32xf32>
    %cst_2 = arith.constant dense<0.000000e+00> : vector<32xf32>
    %9 = vector.multi_reduction <add>, %8, %cst_2 [1] : vector<32x32xf32> to vector<32xf32>
    %10 = vector.shape_cast %9 : vector<32xf32> to vector<32x1xf32>
    %cst_3 = arith.constant 3.200000e+01 : f32
    %11 = vector.broadcast %cst_3 : f32 to vector<32x1xf32>
    %12 = arith.divf %10, %11 : vector<32x1xf32>
    %13 = vector.broadcast %5 : vector<32x1xf32> to vector<32x32xf32>
    %14 = arith.subf %1, %13 : vector<32x32xf32>
    %cst_4 = arith.constant 9.99999974E-6 : f32
    %15 = vector.broadcast %cst_4 : f32 to vector<32x1xf32>
    %16 = arith.addf %12, %15 : vector<32x1xf32>
    %17 = math.rsqrt %16 : vector<32x1xf32>
    %18 = vector.broadcast %17 : vector<32x1xf32> to vector<32x32xf32>
    %19 = arith.mulf %14, %18 : vector<32x32xf32>
    %c0_5 = arith.constant 0 : index
    %c0_6 = arith.constant 0 : index
    %20 = vector.load %arg2[%c0_5, %c0_6] : memref<1x32xf32, #tpu.memory_space<vmem>>, vector<1x32xf32>
    %21 = vector.broadcast %20 : vector<1x32xf32> to vector<32x32xf32>
    %22 = arith.mulf %19, %21 : vector<32x32xf32>
    %c0_7 = arith.constant 0 : index
    %c0_8 = arith.constant 0 : index
    %23 = vector.load %arg3[%c0_7, %c0_8] : memref<1x32xf32, #tpu.memory_space<vmem>>, vector<1x32xf32>
    %24 = vector.broadcast %23 : vector<1x32xf32> to vector<32x32xf32>
    %25 = arith.addf %22, %24 : vector<32x32xf32>
    %26 = arith.truncf %25 : vector<32x32xf32> to vector<32x32xbf16>
    %c0_9 = arith.constant 0 : index
    %c0_10 = arith.constant 0 : index
    %27 = vector.load %arg4[%c0_9, %c0_10] : memref<32x32xbf16, #tpu.memory_space<vmem>>, vector<32x32xbf16>
    tpu.vector_store %arg4[%c0_9, %c0_10], %26 {strides = array<i32>} : memref<32x32xbf16, #tpu.memory_space<vmem>>, vector<32x32xbf16>,
    return
  }
  func.func @transform_0(%arg0: i32) -> (i32, i32) {
    %c0_i32 = arith.constant 0 : i32
    %c0_i32_0 = arith.constant 0 : i32
    return %arg0, %c0_i32 : i32, i32
  }
  func.func @transform_1(%arg0: i32) -> (i32, i32) {
    %c0_i32 = arith.constant 0 : i32
    %c0_i32_0 = arith.constant 0 : i32
    %c0_i32_1 = arith.constant 0 : i32
    return %c0_i32, %c0_i32_0 : i32, i32
  }
  func.func @transform_2(%arg0: i32) -> (i32, i32) {
    %c0_i32 = arith.constant 0 : i32
    %c0_i32_0 = arith.constant 0 : i32
    %c0_i32_1 = arith.constant 0 : i32
    return %c0_i32, %c0_i32_0 : i32, i32
  }
  func.func @transform_3(%arg0: i32) -> (i32, i32) {
    %c0_i32 = arith.constant 0 : i32
    %c0_i32_0 = arith.constant 0 : i32
    return %arg0, %c0_i32 : i32, i32
  }
}

module attributes {stable_mosaic.version = 11 : i64} {
  func.func @_single_linear_kernel(%arg0: i32, %arg1: i32, %arg2: memref<8x32xf32, #tpu.memory_space<vmem>>, %arg3: memref<32x10xbf16, #tpu.memory_space<vmem>>, %arg4: memref<1x10xf32, #tpu.memory_space<vmem>>, %arg5: memref<8x10xf32, #tpu.memory_space<vmem>>) attributes {dimension_semantics = [#tpu.dimension_semantics<parallel>, #tpu.dimension_semantics<parallel>], iteration_bounds = array<i64: 1, 1>, scalar_prefetch = 0 : i64, scratch_operands = 0 : i64, tpu.core_type = #tpu.core_type<tc>, window_params = [{transform_indices = @transform_0, window_bounds = array<i64: 8, 32>}, {transform_indices = @transform_1, window_bounds = array<i64: 32, 10>}, {transform_indices = @transform_2, window_bounds = array<i64: 1, 10>}, {transform_indices = @transform_3, window_bounds = array<i64: 8, 10>}]} {
    %c0 = arith.constant 0 : index
    %c0_0 = arith.constant 0 : index
    %0 = vector.load %arg2[%c0, %c0_0] : memref<8x32xf32, #tpu.memory_space<vmem>>, vector<8x32xf32>
    %1 = arith.truncf %0 : vector<8x32xf32> to vector<8x32xbf16>
    %c0_1 = arith.constant 0 : index
    %c0_2 = arith.constant 0 : index
    %2 = vector.load %arg3[%c0_1, %c0_2] : memref<32x10xbf16, #tpu.memory_space<vmem>>, vector<32x10xbf16>
    %cst = arith.constant dense<0.000000e+00> : vector<8x10xf32>
    %3 = tpu.matmul %1, %2, %cst {dimension_numbers = #tpu.dot_dimension_numbers<[1], [0], [0], [1], [0, 0, 1, 1], [], []>} : vector<8x32xbf16>, vector<32x10xbf16>, vector<8x10xf32> -> vector<8x10xf32>
    %c0_3 = arith.constant 0 : index
    %c0_4 = arith.constant 0 : index
    %4 = vector.load %arg4[%c0_3, %c0_4] : memref<1x10xf32, #tpu.memory_space<vmem>>, vector<1x10xf32>
    %5 = vector.broadcast %4 : vector<1x10xf32> to vector<8x10xf32>
    %6 = arith.addf %3, %5 : vector<8x10xf32>
    %c0_5 = arith.constant 0 : index
    %c0_6 = arith.constant 0 : index
    %7 = vector.load %arg5[%c0_5, %c0_6] : memref<8x10xf32, #tpu.memory_space<vmem>>, vector<8x10xf32>
    tpu.vector_store %arg5[%c0_5, %c0_6], %6 {strides = array<i32>} : memref<8x10xf32, #tpu.memory_space<vmem>>, vector<8x10xf32>,
    return
  }
  func.func @transform_0(%arg0: i32, %arg1: i32) -> (i32, i32) {
    %c0_i32 = arith.constant 0 : i32
    %c0_i32_0 = arith.constant 0 : i32
    return %arg0, %c0_i32 : i32, i32
  }
  func.func @transform_1(%arg0: i32, %arg1: i32) -> (i32, i32) {
    %c0_i32 = arith.constant 0 : i32
    %c0_i32_0 = arith.constant 0 : i32
    return %c0_i32, %arg1 : i32, i32
  }
  func.func @transform_2(%arg0: i32, %arg1: i32) -> (i32, i32) {
    %c0_i32 = arith.constant 0 : i32
    %c0_i32_0 = arith.constant 0 : i32
    return %c0_i32, %arg1 : i32, i32
  }
  func.func @transform_3(%arg0: i32, %arg1: i32) -> (i32, i32) {
    %c0_i32 = arith.constant 0 : i32
    return %arg0, %arg1 : i32, i32
  }
}

</mosaic_0001>

<bundles_post_ra>
// kernel: swin3d_forward.24
= control target key start
LH: loop header
LB: loop body
LE: loop exit
PB: predicated region body
PF: predicated region fallthrough
CT: control target
= control target key end

     0   :  { %s912_s18 = smov 0   ;;  %s914_s19 = smov 0   ;;  %s1057_s0 = inlined_call_operand.vmem [shape: bf16[128,96], index: 0, kind: input, shape index: {}]   ;;  %s1058_s1 = inlined_call_operand.vmem [shape: bf16[96,16], index: 1, kind: input, shape index: {}]   ;;  %s1059_s2 = inlined_call_operand.vmem [shape: f32[1,16], index: 2, kind: input, shape index: {}]   ;;  %s1060_s3 = inlined_call_operand.vmem [shape: f32[1,16], index: 3, kind: input, shape index: {}]   ;;  %s1061_s4 = inlined_call_operand.vmem [shape: f32[1,16], index: 4, kind: input, shape index: {}]   ;;  %s1062_s5 = inlined_call_operand.vmem [shape: bf16[128,16], index: 5, kind: output, shape index: {}]  }
   0x1   :  { %s916_s20 = smov 0  }
   0x2 LB: > { %s27_s21 = sadd.s32 1, %s876_s19  ;;  %p726_p0 = scmp.ge.s32.totalorder %s880_s20, 1  ;;  %s880_s20 = sphi %s916_s20, %s15_s20   ;;  %s876_s19 = sphi %s914_s19, %s1064_s19   ;;  %s872_s18 = sphi %s912_s18, %s1063_s18  }
   0x3   : > { %p29_p1 = scmp.ge.s32.totalorder %s27_s21, 2  ;;  %p219_p2 = scmp.lt.s32.totalorder %s880_s20, 3 }
   0x5   : > { %s1066_s21 = smov (%p29_p1, %s27_s21), 0  ;;  %p220_p3 = pnand %p726_p0, %p219_p2 }
   0x6   : > { %s727_s24 = sshll.u32 (!%p220_p3), %s872_s18, 3 }
   0x7   : > { %223 = sbr.rel (%p220_p3) target bundleno = 561 (0x231), region = 40  ;;  %p258_p4 = scmp.lt.s32.totalorder (!%p220_p3), %s727_s24, 15 }
   0xc   : > { %v832_v0 = vld [vmem:[%s1058_s1 + $0x28] sm:$0xff]   ;;  %v833_v1 = vld [vmem:[%s1058_s1 + $0x20] sm:$0xff]   ;;  %s1068_s24 = smov (!%p258_p4, %s727_s24), 15  ;;  %v834_v2 = vld [vmem:[%s1058_s1 + $0x18] sm:$0xff]   ;;  %vm363_vm0 = vcmask 785408   ;;  %vm441_vm1 = vcmask 130048  }
   0xd   : > { %776 = vmatprep.subr.bf16.mxu0 %v832_v0  ;;  %796 = vmatprep.subr.bf16.mxu1 %v832_v0  ;;  %s728_s29 = sshll.u32 %s1068_s24, 2  ;;  %v835_v3 = vld [vmem:[%s1058_s1 + $0x10] sm:$0xff]   ;;  %v836_v6 = vld [vmem:[%s1058_s1 + $0x8] sm:$0xff]   ;;  %v837_v7 = vld [vmem:[%s1058_s1] sm:$0xff]   ;;  %vm609_vm2 = vcmask 125952  }
   0xe   : > { %777 = vmatpush3.bf16.msra.mxu0 %v832_v0  ;;  %802 = vmatpush3.bf16.msra.mxu1 %v832_v0  ;;  %s261_s9 = scalar_lea.vmem %s1057_s0, %s728_s29  ;;  %v731_v10 = vld [vmem:[%s1059_s2] ss:$0 sm:$0xff]  ;;  %s1024_s26 = scalar_lea.vmem %s1062_s5, %s728_s29 }
   0xf   : > { %778 = vmatprep.subr.bf16.mxu0 %v833_v1  ;;  %797 = vmatprep.subr.bf16.mxu1 %v833_v1  ;;  %v838_v4 = vld [vmem:[%s261_s9] sm:$0xff]   ;;  %v839_v5 = vld [vmem:[%s261_s9 + $0x10] sm:$0xff]   ;;  %v840_v8 = vld [vmem:[%s261_s9 + $0x8] sm:$0xff]  }
  0x10   : > { %788 = vmatprep.mubr.msk.bf16.mxu0 %vm363_vm0, %v838_v4  ;;  %792 = vmatprep.mubr.msk.bf16.mxu1 %vm363_vm0, %v839_v5  ;;  %v841_v9 = vld [vmem:[%s261_s9 + $0x18] sm:$0xff]  }
  0x12   : > { %779 = vmatpush3.bf16.msra.mxu0 %v833_v1  ;;  %803 = vmatpush3.bf16.msra.mxu1 %v833_v1 }
  0x13   : > { %780 = vmatprep.subr.bf16.mxu0 %v834_v2  ;;  %798 = vmatprep.subr.bf16.mxu1 %v834_v2 }
  0x16   : > { %781 = vmatpush3.bf16.msra.mxu0 %v834_v2  ;;  %804 = vmatpush3.bf16.msra.mxu1 %v834_v2 }
  0x17   : > { %782 = vmatprep.subr.bf16.mxu0 %v835_v3  ;;  %799 = vmatprep.subr.bf16.mxu1 %v835_v3 }
  0x1a   : > { %783 = vmatpush3.bf16.msra.mxu0 %v835_v3  ;;  %805 = vmatpush3.bf16.msra.mxu1 %v835_v3 }
  0x1b   : > { %784 = vmatprep.subr.bf16.mxu0 %v836_v6  ;;  %800 = vmatprep.subr.bf16.mxu1 %v836_v6 }
  0x1e   : > { %785 = vmatpush3.bf16.msra.mxu0 %v836_v6  ;;  %806 = vmatpush3.bf16.msra.mxu1 %v836_v6 }
  0x1f   : > { %786 = vmatprep.subr.bf16.mxu0 %v837_v7  ;;  %801 = vmatprep.subr.bf16.mxu1 %v837_v7 }
  0x22   : > { %787 = vmatpush3.bf16.msra.mxu0 %v837_v7  ;;  %807 = vmatpush3.bf16.msra.mxu1 %v837_v7 }
  0x25   : > { %789 = vmatmul.mubr.msk.bf16.vlgmr.msra.gmra.mxu0 %vm363_vm0, %v840_v8  ;;  %793 = vmatmul.mubr.msk.bf16.vlgmr.msra.gmra.mxu1 %vm363_vm0, %v841_v9 }
  0xe5   : > { %v790_v11 = vpop.f32.mrf.mxu0  ;;  %v794_v12 = vpop.f32.mrf.mxu1 }
  0xe6   : > { %v419_v13 = vadd.f32 %v790_v11, %v731_v10  ;;  %v435_v31 = vadd.f32 %v794_v12, %v731_v10 }
  0xe7   : > { %v410_v14 = vpop.f32.mrf.mxu0  ;;  %v426_v15 = vpop.f32.mrf.mxu1 }
  0xe8   : > { %v411_v16 = vadd.f32 %v731_v10, %v410_v14  ;;  %v448_v17 = vsel %vm441_vm1, %v419_v13, 0.0  ;;  %v427_v20 = vadd.f32 %v731_v10, %v426_v15  ;;  %v460_v34 = vsel %vm441_vm1, %v435_v31, 0.0 }
  0xe9   : > { %v795_v18 = vpop.f32.mrf.mxu1  ;;  %449 = vadd.xlane.f32.xlu1 %v448_v17  ;;  %v791_v19 = vpop.f32.mrf.mxu0 }
  0xea   : > { %v422_v21 = vadd.f32 %v791_v19, %v731_v10  ;;  %v442_v22 = vsel %vm441_vm1, %v411_v16, 0.0  ;;  %v454_v28 = vsel %vm441_vm1, %v427_v20, 0.0  ;;  %v438_v29 = vadd.f32 %v795_v18, %v731_v10 }
  0xeb   : > { %v413_v23 = vpop.f32.mrf.mxu0  ;;  %v429_v24 = vpop.f32.mrf.mxu1  ;;  %443 = vadd.xlane.f32.xlu0 %v442_v22 }
  0xec   : > { %v430_v25 = vadd.f32 %v731_v10, %v429_v24  ;;  %v451_v26 = vsel %vm441_vm1, %v422_v21, 0.0  ;;  %v414_v27 = vadd.f32 %v731_v10, %v413_v23  ;;  %v463_v33 = vsel %vm441_vm1, %v438_v29, 0.0 }
  0xed   : > { %452 = vadd.xlane.f32.xlu1 %v451_v26 }
  0xee   : > { %v457_v30 = vsel %vm441_vm1, %v430_v25, 0.0  ;;  %v445_v32 = vsel %vm441_vm1, %v414_v27, 0.0 }
  0xef   : > { %455 = vadd.xlane.f32.xlu0 %v454_v28 }
  0xf1   : > { %458 = vadd.xlane.f32.xlu1 %v457_v30 }
  0xf3   : > { %446 = vadd.xlane.f32.xlu0 %v445_v32 }
  0xf5   : > { %464 = vadd.xlane.f32.xlu1 %v463_v33  ;;  %v746_v33 = vld [vmem:[%s1060_s3] ss:$0 sm:$0xff] }
  0xf7   : > { %461 = vadd.xlane.f32.xlu0 %v460_v34 }
 0x172   : > { %v450_v35 = vpop.xlane.xlu1 %449 }
 0x173   : > { %v469_v36 = vmul.f32 0.0625, %v450_v35 }
 0x174   : > { %v444_v37 = vpop.xlane.xlu0 %443 }
 0x175   : > { %v971_v38 = vsub.f32 %v419_v13, %v469_v36  ;;  %v467_v39 = vmul.f32 0.0625, %v444_v37  ;;  %v747_v37 = vld [vmem:[%s1061_s4] ss:$0 sm:$0xff] }
 0x176   : > { %v453_v40 = vpop.xlane.xlu1 %452 }
 0x177   : > { %v973_v41 = vsub.f32 %v411_v16, %v467_v39  ;;  %v470_v42 = vmul.f32 0.0625, %v453_v40  ;;  %v485_v43 = vmul.f32 %v971_v38, %v971_v38 }
 0x178   : > { %v456_v44 = vpop.xlane.xlu0 %455 }
 0x179   : > { %v977_v45 = vsub.f32 %v422_v21, %v470_v42  ;;  %v471_v46 = vmul.f32 0.0625, %v456_v44  ;;  %v497_v47 = vsel %vm441_vm1, %v485_v43, 0.0  ;;  %v483_v48 = vmul.f32 %v973_v41, %v973_v41 }
 0x17a   : > { %v459_v49 = vpop.xlane.xlu1 %458  ;;  %498 = vadd.xlane.f32.xlu0 %v497_v47 }
 0x17b   : > { %v982_v50 = vsub.f32 %v427_v20, %v471_v46  ;;  %v472_v51 = vmul.f32 0.0625, %v459_v49  ;;  %v486_v52 = vmul.f32 %v977_v45, %v977_v45  ;;  %v491_v56 = vsel %vm441_vm1, %v483_v48, 0.0 }
 0x17c   : > { %v447_v53 = vpop.xlane.xlu0 %446 }
 0x17d   : > { %v468_v54 = vmul.f32 0.0625, %v447_v53  ;;  %v500_v55 = vsel %vm441_vm1, %v486_v52, 0.0  ;;  %v487_v57 = vmul.f32 %v982_v50, %v982_v50  ;;  %v990_v59 = vsub.f32 %v430_v25, %v472_v51 }
 0x17e   : > { %501 = vadd.xlane.f32.xlu1 %v500_v55  ;;  %v465_v58 = vpop.xlane.xlu1 %464  ;;  %492 = vadd.xlane.f32.xlu0 %v491_v56 }
 0x17f   : > { %v992_v60 = vsub.f32 %v414_v27, %v468_v54  ;;  %v474_v61 = vmul.f32 0.0625, %v465_v58  ;;  %v503_v0 = vsel %vm441_vm1, %v487_v57, 0.0  ;;  %v488_v5 = vmul.f32 %v990_v59, %v990_v59 }
 0x180   : > { %v462_v62 = vpop.xlane.xlu0 %461 }
 0x181   : > { %v473_v63 = vmul.f32 0.0625, %v462_v62  ;;  %v484_v1 = vmul.f32 %v992_v60, %v992_v60  ;;  %v997_v2 = vsub.f32 %v438_v29, %v474_v61  ;;  %v506_v7 = vsel %vm441_vm1, %v488_v5, 0.0 }
 0x182   : > { %504 = vadd.xlane.f32.xlu0 %v503_v0 }
 0x183   : > { %v999_v3 = vsub.f32 %v435_v31, %v473_v63  ;;  %v494_v4 = vsel %vm441_vm1, %v484_v1, 0.0  ;;  %v490_v9 = vmul.f32 %v997_v2, %v997_v2 }
 0x184   : > { %495 = vadd.xlane.f32.xlu1 %v494_v4 }
 0x185   : > { %v489_v6 = vmul.f32 %v999_v3, %v999_v3  ;;  %v512_v10 = vsel %vm441_vm1, %v490_v9, 0.0 }
 0x187   : > { %v509_v8 = vsel %vm441_vm1, %v489_v6, 0.0 }
 0x188   : > { %507 = vadd.xlane.f32.xlu1 %v506_v7  ;;  %510 = vadd.xlane.f32.xlu0 %v509_v8 }
 0x18c   : > { %513 = vadd.xlane.f32.xlu1 %v512_v10 }
 0x203   : > { %v499_v11 = vpop.xlane.xlu0 %498 }
 0x204   : > { %v517_v12 = vmul.f32 0.0625, %v499_v11 }
 0x206   : > { %v525_v13 = vadd.f32 1e-05, %v517_v12 }
 0x207   : > { %v502_v14 = vpop.xlane.xlu1 %501  ;;  %v493_v15 = vpop.xlane.xlu0 %492 }
 0x208   : > { %842 = vrsqrt.f32 %v525_v13  ;;  %v518_v16 = vmul.f32 0.0625, %v502_v14  ;;  %v515_v17 = vmul.f32 0.0625, %v493_v15 }
 0x20a   : > { %v526_v18 = vadd.f32 1e-05, %v518_v16  ;;  %v523_v19 = vadd.f32 1e-05, %v515_v17 }
 0x20b   : > { %v505_v20 = vpop.xlane.xlu0 %504 }
 0x20c   : > { %844 = vrsqrt.f32 %v526_v18  ;;  %v519_v21 = vmul.f32 0.0625, %v505_v20 }
 0x20d   : > { %846 = vrsqrt.f32 %v523_v19  ;;  %v496_v22 = vpop.xlane.xlu1 %495 }
 0x20e   : > { %v527_v23 = vadd.f32 1e-05, %v519_v21  ;;  %v516_v24 = vmul.f32 0.0625, %v496_v22 }
 0x210   : > { %848 = vrsqrt.f32 %v527_v23  ;;  %v524_v25 = vadd.f32 1e-05, %v516_v24 }
 0x211   : > { %v508_v26 = vpop.xlane.xlu1 %507  ;;  %v511_v27 = vpop.xlane.xlu0 %510 }
 0x212   : > { %850 = vrsqrt.f32 %v524_v25  ;;  %v520_v28 = vmul.f32 0.0625, %v508_v26  ;;  %v521_v29 = vmul.f32 0.0625, %v511_v27 }
 0x214   : > { %v528_v30 = vadd.f32 1e-05, %v520_v28  ;;  %v529_v31 = vadd.f32 1e-05, %v521_v29 }
 0x215   : > { %v843_v32 = vpop.eup %842  ;;  %v514_v34 = vpop.xlane.xlu1 %513 }
 0x216   : > { %v541_v35 = vmul.f32 %v843_v32, %v971_v38  ;;  %852 = vrsqrt.f32 %v528_v30  ;;  %v522_v36 = vmul.f32 0.0625, %v514_v34 }
 0x217   : > { %854 = vrsqrt.f32 %v529_v31 }
 0x218   : > { %v556_v39 = vmul.f32 %v746_v33, %v541_v35  ;;  %v530_v40 = vadd.f32 1e-05, %v522_v36 }
 0x219   : > { %v845_v42 = vpop.eup %844 }
 0x21a   : > { %v847_v43 = vpop.eup %846  ;;  %v571_v44 = vadd.f32 %v747_v37, %v556_v39  ;;  %v542_v46 = vmul.f32 %v845_v42, %v977_v45  ;;  %856 = vrsqrt.f32 %v530_v40 }
 0x21b   : > { %v539_v38 = vmul.f32 %v847_v43, %v973_v41 }
 0x21c   : > { %v760_v47 = vpack.c.bf16 %v571_v44, %v571_v44  ;;  %v557_v48 = vmul.f32 %v746_v33, %v542_v46 }
 0x21d   : > { %v849_v49 = vpop.eup %848  ;;  %v554_v51 = vmul.f32 %v746_v33, %v539_v38 }
 0x21e   : > { %612 = vst.msk [vmem:[%s1024_s26 + $0x8] sm:$0xf] %vm609_vm2, %v760_v47  ;;  %v572_v45 = vadd.f32 %v747_v37, %v557_v48  ;;  %v543_v52 = vmul.f32 %v849_v49, %v982_v50 }
 0x21f   : > { %v851_v53 = vpop.eup %850  ;;  %v569_v54 = vadd.f32 %v747_v37, %v554_v51 }
 0x220   : > { %v761_v55 = vpack.c.bf16 %v572_v45, %v572_v45  ;;  %v558_v56 = vmul.f32 %v746_v33, %v543_v52  ;;  %v540_v57 = vmul.f32 %v851_v53, %v992_v60 }
 0x221   : > { %v758_v58 = vpack.c.bf16 %v569_v54, %v569_v54 }
 0x222   : > { %613 = vst.msk [vmem:[%s1024_s26 + $0xc] sm:$0xf] %vm609_vm2, %v761_v55  ;;  %v573_v41 = vadd.f32 %v747_v37, %v558_v56  ;;  %v555_v61 = vmul.f32 %v746_v33, %v540_v57 }
 0x223   : > { %v853_v62 = vpop.eup %852  ;;  %610 = vst.msk [vmem:[%s1024_s26] sm:$0xf] %vm609_vm2, %v758_v58 }
 0x224   : > { %v855_v63 = vpop.eup %854  ;;  %v762_v0 = vpack.c.bf16 %v573_v41, %v573_v41  ;;  %v570_v50 = vadd.f32 %v747_v37, %v555_v61  ;;  %v544_v1 = vmul.f32 %v853_v62, %v990_v59 }
 0x225   : > { %v545_v4 = vmul.f32 %v855_v63, %v999_v3 }
 0x226   : > { %614 = vst.msk [vmem:[%s1024_s26 + $0x10] sm:$0xf] %vm609_vm2, %v762_v0  ;;  %v759_v60 = vpack.c.bf16 %v570_v50, %v570_v50  ;;  %v559_v5 = vmul.f32 %v746_v33, %v544_v1 }
 0x227   : > { %v857_v6 = vpop.eup %856  ;;  %v560_v7 = vmul.f32 %v746_v33, %v545_v4 }
 0x228   : > { %611 = vst.msk [vmem:[%s1024_s26 + $0x4] sm:$0xf] %vm609_vm2, %v759_v60  ;;  %v574_v8 = vadd.f32 %v747_v37, %v559_v5  ;;  %v546_v9 = vmul.f32 %v857_v6, %v997_v2 }
 0x229   : > { %v575_v10 = vadd.f32 %v747_v37, %v560_v7 }
 0x22a   : > { %v763_v11 = vpack.c.bf16 %v574_v8, %v574_v8  ;;  %v561_v12 = vmul.f32 %v746_v33, %v546_v9 }
 0x22b   : > { %v764_v13 = vpack.c.bf16 %v575_v10, %v575_v10 }
 0x22c   : > { %615 = vst.msk [vmem:[%s1024_s26 + $0x14] sm:$0xf] %vm609_vm2, %v763_v11  ;;  %v576_v59 = vadd.f32 %v747_v37, %v561_v12 }
 0x22d   : > { %616 = vst.msk [vmem:[%s1024_s26 + $0x18] sm:$0xf] %vm609_vm2, %v764_v13 }
 0x22e   : > { %v765_v3 = vpack.c.bf16 %v576_v59, %v576_v59 }
 0x230   : > { %617 = vst.msk [vmem:[%s1024_s26 + $0x1c] sm:$0xf] %vm609_vm2, %v765_v3 }
 0x231 PF: > { %s15_s20 = sadd.s32 1, %s880_s20   ;;  %s1063_s18 = smov %s876_s19 }
 0x232   : > { %p12_p5 = scmp.ge.s32.totalorder %s15_s20, 4   ;;  %s1064_s19 = smov %s1066_s21 }
 0x234   :  { %14 = sbr.rel (!%p12_p5) target bundleno = 2 (0x2), region = 76 }

// kernel: swin3d_forward.25
= control target key start
LH: loop header
LB: loop body
LE: loop exit
PB: predicated region body
PF: predicated region fallthrough
CT: control target
= control target key end

     0   :  { %s839_s18 = smov 0   ;;  %s841_s19 = smov 0   ;;  %s969_s0 = inlined_call_operand.vmem [shape: bf16[128,16], index: 0, kind: input, shape index: {}]   ;;  %s970_s1 = inlined_call_operand.vmem [shape: bf16[16,48], index: 1, kind: input, shape index: {}]   ;;  %s971_s2 = inlined_call_operand.vmem [shape: f32[1,48], index: 2, kind: input, shape index: {}]   ;;  %s972_s3 = inlined_call_operand.vmem [shape: f32[1,16], index: 3, kind: input, shape index: {}]   ;;  %s973_s4 = inlined_call_operand.vmem [shape: f32[1,16], index: 4, kind: input, shape index: {}]   ;;  %s974_s5 = inlined_call_operand.vmem [shape: bf16[128,48], index: 5, kind: output, shape index: {}]  }
   0x1   :  { %s843_s20 = smov 0  }
   0x2 LB: > { %s27_s21 = sadd.s32 1, %s803_s19  ;;  %p677_p0 = scmp.ge.s32.totalorder %s807_s20, 1  ;;  %s807_s20 = sphi %s843_s20, %s15_s20   ;;  %s803_s19 = sphi %s841_s19, %s976_s19   ;;  %s799_s18 = sphi %s839_s18, %s975_s18  }
   0x3   : > { %p29_p1 = scmp.ge.s32.totalorder %s27_s21, 2  ;;  %p219_p2 = scmp.lt.s32.totalorder %s807_s20, 3 }
   0x5   : > { %s978_s21 = smov (%p29_p1, %s27_s21), 0  ;;  %p220_p3 = pnand %p677_p0, %p219_p2 }
   0x6   : > { %s678_s22 = sshll.u32 (!%p220_p3), %s799_s18, 3 }
   0x7   : > { %223 = sbr.rel (%p220_p3) target bundleno = 548 (0x224), region = 40  ;;  %p258_p4 = scmp.lt.s32.totalorder (!%p220_p3), %s678_s22, 15 }
   0xc   : > { %s980_s22 = smov (!%p258_p4, %s678_s22), 15  ;;  %vm296_vm0 = vcmask 130048   ;;  %v768_v60 = vld [vmem:[%s970_s1] sm:$0xff]   ;;  %vm560_vm1 = vcmask 388096  }
   0xd   : > { %s679_s23 = sshll.u32 %s980_s22, 2  ;;  %732 = vmatprep.subr.bf16.mxu0 %v768_v60  ;;  %742 = vmatprep.subr.bf16.mxu1 %v768_v60 }
   0xe   : > { %s261_s26 = scalar_lea.vmem %s969_s0, %s679_s23  ;;  %733 = vmatpush3.bf16.msra.mxu0 %v768_v60  ;;  %743 = vmatpush3.bf16.msra.mxu1 %v768_v60  ;;  %s942_s12 = scalar_lea.vmem %s974_s5, %s679_s23 }
   0xf   : > { %v709_v0 = vld [vmem:[%s261_s26] sm:$0xff]   ;;  %v725_v1 = vld [vmem:[%s261_s26 + $0x10] sm:$0xff]   ;;  %v724_v6 = vld [vmem:[%s261_s26 + $0x8] sm:$0xff]  }
  0x10   : > { %v710_v2 = vunpack.c.l.bf16 %v709_v0  ;;  %v718_v3 = vunpack.c.l.bf16 %v725_v1  ;;  %v711_v4 = vunpack.c.h.bf16 %v709_v0  ;;  %v719_v5 = vunpack.c.h.bf16 %v725_v1  ;;  %v726_v13 = vld [vmem:[%s261_s26 + $0x18] sm:$0xff]  }
  0x11   : > { %v714_v11 = vunpack.c.l.bf16 %v724_v6  ;;  %v715_v12 = vunpack.c.h.bf16 %v724_v6  ;;  %v722_v16 = vunpack.c.l.bf16 %v726_v13  ;;  %v723_v17 = vunpack.c.h.bf16 %v726_v13 }
  0x12   : > { %v297_v7 = vsel %vm296_vm0, %v710_v2, 0.0  ;;  %v309_v8 = vsel %vm296_vm0, %v718_v3, 0.0  ;;  %v300_v9 = vsel %vm296_vm0, %v711_v4, 0.0  ;;  %v312_v10 = vsel %vm296_vm0, %v719_v5, 0.0 }
  0x13   : > { %298 = vadd.xlane.f32.xlu0 %v297_v7  ;;  %310 = vadd.xlane.f32.xlu1 %v309_v8  ;;  %v303_v14 = vsel %vm296_vm0, %v714_v11, 0.0  ;;  %v306_v15 = vsel %vm296_vm0, %v715_v12, 0.0  ;;  %v315_v18 = vsel %vm296_vm0, %v722_v16, 0.0  ;;  %v318_v19 = vsel %vm296_vm0, %v723_v17, 0.0 }
  0x17   : > { %301 = vadd.xlane.f32.xlu0 %v300_v9  ;;  %313 = vadd.xlane.f32.xlu1 %v312_v10 }
  0x1b   : > { %304 = vadd.xlane.f32.xlu0 %v303_v14  ;;  %307 = vadd.xlane.f32.xlu1 %v306_v15 }
  0x1f   : > { %316 = vadd.xlane.f32.xlu0 %v315_v18  ;;  %319 = vadd.xlane.f32.xlu1 %v318_v19 }
  0x9c   : > { %v299_v20 = vpop.xlane.xlu0 %298  ;;  %v311_v21 = vpop.xlane.xlu1 %310 }
  0x9d   : > { %v322_v22 = vmul.f32 0.0625, %v299_v20  ;;  %v326_v23 = vmul.f32 0.0625, %v311_v21 }
  0x9f   : > { %v873_v24 = vsub.f32 %v710_v2, %v322_v22  ;;  %v875_v25 = vsub.f32 %v718_v3, %v326_v23  ;;  %v682_v23 = vld [vmem:[%s972_s3] ss:$0 sm:$0xff] }
  0xa0   : > { %v302_v26 = vpop.xlane.xlu0 %301  ;;  %v314_v27 = vpop.xlane.xlu1 %313 }
  0xa1   : > { %v323_v28 = vmul.f32 0.0625, %v302_v26  ;;  %v327_v29 = vmul.f32 0.0625, %v314_v27  ;;  %v338_v30 = vmul.f32 %v873_v24, %v873_v24  ;;  %v342_v31 = vmul.f32 %v875_v25, %v875_v25 }
  0xa3   : > { %v881_v32 = vsub.f32 %v711_v4, %v323_v28  ;;  %v883_v33 = vsub.f32 %v719_v5, %v327_v29  ;;  %v346_v34 = vsel %vm296_vm0, %v338_v30, 0.0  ;;  %v358_v37 = vsel %vm296_vm0, %v342_v31, 0.0  ;;  %v683_v30 = vld [vmem:[%s973_s4] ss:$0 sm:$0xff] }
  0xa4   : > { %347 = vadd.xlane.f32.xlu0 %v346_v34  ;;  %v305_v35 = vpop.xlane.xlu0 %304  ;;  %v308_v36 = vpop.xlane.xlu1 %307 }
  0xa5   : > { %v324_v38 = vmul.f32 0.0625, %v305_v35  ;;  %v325_v39 = vmul.f32 0.0625, %v308_v36  ;;  %v339_v40 = vmul.f32 %v881_v32, %v881_v32  ;;  %v343_v41 = vmul.f32 %v883_v33, %v883_v33 }
  0xa7   : > { %v891_v42 = vsub.f32 %v714_v11, %v324_v38  ;;  %v893_v43 = vsub.f32 %v715_v12, %v325_v39  ;;  %v349_v44 = vsel %vm296_vm0, %v339_v40, 0.0  ;;  %v361_v47 = vsel %vm296_vm0, %v343_v41, 0.0 }
  0xa8   : > { %359 = vadd.xlane.f32.xlu0 %v358_v37  ;;  %350 = vadd.xlane.f32.xlu1 %v349_v44  ;;  %v317_v45 = vpop.xlane.xlu0 %316  ;;  %v320_v46 = vpop.xlane.xlu1 %319 }
  0xa9   : > { %v328_v48 = vmul.f32 0.0625, %v317_v45  ;;  %v329_v49 = vmul.f32 0.0625, %v320_v46  ;;  %v340_v50 = vmul.f32 %v891_v42, %v891_v42  ;;  %v341_v51 = vmul.f32 %v893_v43, %v893_v43 }
  0xab   : > { %v901_v52 = vsub.f32 %v722_v16, %v328_v48  ;;  %v903_v53 = vsub.f32 %v723_v17, %v329_v49  ;;  %v352_v54 = vsel %vm296_vm0, %v340_v50, 0.0  ;;  %v355_v55 = vsel %vm296_vm0, %v341_v51, 0.0 }
  0xac   : > { %362 = vadd.xlane.f32.xlu1 %v361_v47  ;;  %353 = vadd.xlane.f32.xlu0 %v352_v54 }
  0xad   : > { %v344_v56 = vmul.f32 %v901_v52, %v901_v52  ;;  %v345_v57 = vmul.f32 %v903_v53, %v903_v53 }
  0xaf   : > { %v364_v58 = vsel %vm296_vm0, %v344_v56, 0.0  ;;  %v367_v59 = vsel %vm296_vm0, %v345_v57, 0.0 }
  0xb0   : > { %356 = vadd.xlane.f32.xlu1 %v355_v55  ;;  %365 = vadd.xlane.f32.xlu0 %v364_v58 }
  0xb4   : > { %368 = vadd.xlane.f32.xlu1 %v367_v59 }
 0x12d   : > { %v348_v61 = vpop.xlane.xlu0 %347 }
 0x12e   : > { %v370_v62 = vmul.f32 0.0625, %v348_v61 }
 0x130   : > { %v378_v63 = vadd.f32 1e-05, %v370_v62 }
 0x131   : > { %v351_v0 = vpop.xlane.xlu1 %350  ;;  %v360_v1 = vpop.xlane.xlu0 %359 }
 0x132   : > { %769 = vrsqrt.f32 %v378_v63  ;;  %v371_v2 = vmul.f32 0.0625, %v351_v0  ;;  %v374_v3 = vmul.f32 0.0625, %v360_v1 }
 0x134   : > { %v379_v4 = vadd.f32 1e-05, %v371_v2  ;;  %v382_v5 = vadd.f32 1e-05, %v374_v3 }
 0x135   : > { %v363_v6 = vpop.xlane.xlu1 %362  ;;  %v354_v7 = vpop.xlane.xlu0 %353 }
 0x136   : > { %771 = vrsqrt.f32 %v379_v4  ;;  %v375_v8 = vmul.f32 0.0625, %v363_v6  ;;  %v372_v9 = vmul.f32 0.0625, %v354_v7 }
 0x137   : > { %773 = vrsqrt.f32 %v382_v5 }
 0x138   : > { %v383_v10 = vadd.f32 1e-05, %v375_v8  ;;  %v380_v11 = vadd.f32 1e-05, %v372_v9 }
 0x139   : > { %v357_v12 = vpop.xlane.xlu1 %356  ;;  %v366_v13 = vpop.xlane.xlu0 %365 }
 0x13a   : > { %775 = vrsqrt.f32 %v383_v10  ;;  %v373_v14 = vmul.f32 0.0625, %v357_v12  ;;  %v376_v15 = vmul.f32 0.0625, %v366_v13 }
 0x13b   : > { %777 = vrsqrt.f32 %v380_v11 }
 0x13c   : > { %v381_v16 = vadd.f32 1e-05, %v373_v14  ;;  %v384_v17 = vadd.f32 1e-05, %v376_v15 }
 0x13d   : > { %v369_v18 = vpop.xlane.xlu1 %368 }
 0x13e   : > { %779 = vrsqrt.f32 %v381_v16  ;;  %v377_v19 = vmul.f32 0.0625, %v369_v18 }
 0x13f   : > { %v770_v20 = vpop.eup %769  ;;  %781 = vrsqrt.f32 %v384_v17 }
 0x140   : > { %v385_v21 = vadd.f32 1e-05, %v377_v19  ;;  %v394_v22 = vmul.f32 %v770_v20, %v873_v24 }
 0x142   : > { %783 = vrsqrt.f32 %v385_v21  ;;  %v409_v29 = vmul.f32 %v682_v23, %v394_v22 }
 0x143   : > { %v772_v26 = vpop.eup %771 }
 0x144   : > { %v774_v27 = vpop.eup %773  ;;  %v395_v28 = vmul.f32 %v772_v26, %v881_v32  ;;  %v424_v24 = vadd.f32 %v683_v30, %v409_v29 }
 0x145   : > { %v398_v31 = vmul.f32 %v774_v27, %v875_v25 }
 0x146   : > { %v410_v34 = vmul.f32 %v682_v23, %v395_v28 }
 0x147   : > { %v776_v35 = vpop.eup %775  ;;  %v413_v39 = vmul.f32 %v682_v23, %v398_v31 }
 0x148   : > { %v778_v36 = vpop.eup %777  ;;  %v425_v37 = vadd.f32 %v683_v30, %v410_v34  ;;  %v399_v38 = vmul.f32 %v776_v35, %v883_v33 }
 0x149   : > { %v396_v40 = vmul.f32 %v778_v36, %v891_v42  ;;  %v428_v46 = vadd.f32 %v683_v30, %v413_v39 }
 0x14a   : > { %v432_v41 = vpack.c.bf16 %v425_v37, %v424_v24  ;;  %v414_v44 = vmul.f32 %v682_v23, %v399_v38 }
 0x14b   : > { %v780_v32 = vpop.eup %779  ;;  %v411_v48 = vmul.f32 %v682_v23, %v396_v40 }
 0x14c   : > { %v782_v45 = vpop.eup %781  ;;  %734 = vmatprep.mubr.msk.bf16.mxu0 %vm296_vm0, %v432_v41  ;;  %v429_v47 = vadd.f32 %v683_v30, %v414_v44  ;;  %v397_v25 = vmul.f32 %v780_v32, %v893_v43 }
 0x14d   : > { %v400_v49 = vmul.f32 %v782_v45, %v901_v52  ;;  %v426_v33 = vadd.f32 %v683_v30, %v411_v48  ;;  %v684_v52 = vld [vmem:[%s971_s2] ss:$0 sm:$0xff] }
 0x14e   : > { %v434_v50 = vpack.c.bf16 %v429_v47, %v428_v46  ;;  %v412_v51 = vmul.f32 %v682_v23, %v397_v25 }
 0x14f   : > { %v784_v54 = vpop.eup %783  ;;  %v415_v56 = vmul.f32 %v682_v23, %v400_v49 }
 0x150   : > { %738 = vmatprep.mubr.msk.bf16.mxu1 %vm296_vm0, %v434_v50  ;;  %v427_v42 = vadd.f32 %v683_v30, %v412_v51  ;;  %v401_v55 = vmul.f32 %v784_v54, %v903_v53 }
 0x151   : > { %v430_v59 = vadd.f32 %v683_v30, %v415_v56 }
 0x152   : > { %v433_v57 = vpack.c.bf16 %v427_v42, %v426_v33  ;;  %v416_v58 = vmul.f32 %v682_v23, %v401_v55 }
 0x154   : > { %735 = vmatmul.mubr.msk.bf16.vlgmr.msra.gmra.mxu0 %vm296_vm0, %v433_v57  ;;  %v431_v43 = vadd.f32 %v683_v30, %v416_v58 }
 0x156   : > { %v435_v60 = vpack.c.bf16 %v431_v43, %v430_v59 }
 0x158   : > { %739 = vmatmul.mubr.msk.bf16.vlgmr.msra.gmra.mxu1 %vm296_vm0, %v435_v60 }
 0x214   : > { %v736_v61 = vpop.f32.mrf.mxu0 }
 0x215   : > { %v506_v62 = vadd.f32 %v736_v61, %v684_v52 }
 0x216   : > { %v497_v53 = vpop.f32.mrf.mxu0 }
 0x217   : > { %v702_v63 = vpack.c.bf16 %v506_v62, %v506_v62  ;;  %v498_v0 = vadd.f32 %v684_v52, %v497_v53 }
 0x218   : > { %v737_v1 = vpop.f32.mrf.mxu0  ;;  %v740_v2 = vpop.f32.mrf.mxu1 }
 0x219   : > { %563 = vst.msk [vmem:[%s942_s12 + $0x8] sm:$0xf] %vm560_vm1, %v702_v63  ;;  %v700_v3 = vpack.c.bf16 %v498_v0, %v498_v0  ;;  %v509_v4 = vadd.f32 %v737_v1, %v684_v52  ;;  %v522_v5 = vadd.f32 %v740_v2, %v684_v52 }
 0x21a   : > { %v500_v6 = vpop.f32.mrf.mxu0  ;;  %v513_v7 = vpop.f32.mrf.mxu1 }
 0x21b   : > { %561 = vst.msk [vmem:[%s942_s12] sm:$0xf] %vm560_vm1, %v700_v3  ;;  %v703_v8 = vpack.c.bf16 %v509_v4, %v509_v4  ;;  %v706_v9 = vpack.c.bf16 %v522_v5, %v522_v5  ;;  %v501_v10 = vadd.f32 %v684_v52, %v500_v6  ;;  %v514_v11 = vadd.f32 %v684_v52, %v513_v7 }
 0x21c   : > { %v741_v12 = vpop.f32.mrf.mxu1 }
 0x21d   : > { %564 = vst.msk [vmem:[%s942_s12 + $0xc] sm:$0xf] %vm560_vm1, %v703_v8  ;;  %567 = vst.msk [vmem:[%s942_s12 + $0x18] sm:$0xf] %vm560_vm1, %v706_v9  ;;  %v701_v13 = vpack.c.bf16 %v501_v10, %v501_v10  ;;  %v704_v14 = vpack.c.bf16 %v514_v11, %v514_v11  ;;  %v525_v15 = vadd.f32 %v741_v12, %v684_v52 }
 0x21e   : > { %v516_v16 = vpop.f32.mrf.mxu1 }
 0x21f   : > { %562 = vst.msk [vmem:[%s942_s12 + $0x4] sm:$0xf] %vm560_vm1, %v701_v13  ;;  %565 = vst.msk [vmem:[%s942_s12 + $0x10] sm:$0xf] %vm560_vm1, %v704_v14  ;;  %v707_v17 = vpack.c.bf16 %v525_v15, %v525_v15  ;;  %v517_v18 = vadd.f32 %v684_v52, %v516_v16 }
 0x221   : > { %568 = vst.msk [vmem:[%s942_s12 + $0x1c] sm:$0xf] %vm560_vm1, %v707_v17  ;;  %v705_v19 = vpack.c.bf16 %v517_v18, %v517_v18 }
 0x223   : > { %566 = vst.msk [vmem:[%s942_s12 + $0x14] sm:$0xf] %vm560_vm1, %v705_v19 }
 0x224 PF: > { %s15_s20 = sadd.s32 1, %s807_s20   ;;  %s975_s18 = smov %s803_s19 }
 0x225   : > { %p12_p5 = scmp.ge.s32.totalorder %s15_s20, 4   ;;  %s976_s19 = smov %s978_s21 }
 0x227   :  { %14 = sbr.rel (!%p12_p5) target bundleno = 2 (0x2), region = 76 }

// kernel: swin3d_forward.27
= control target key start
LH: loop header
LB: loop body
LE: loop exit
PB: predicated region body
PF: predicated region fallthrough
CT: control target
= control target key end

     0   :  { %s744_s15 = smov 0   ;;  %s746_s16 = smov 0   ;;  %s809_s0 = inlined_call_operand.vmem [shape: bf16[128,16], index: 0, kind: input, shape index: {}]   ;;  %s810_s1 = inlined_call_operand.vmem [shape: bf16[16,16], index: 1, kind: input, shape index: {}]   ;;  %s811_s2 = inlined_call_operand.vmem [shape: f32[1,16], index: 2, kind: input, shape index: {}]   ;;  %s812_s3 = inlined_call_operand.vmem [shape: bf16[128,16], index: 3, kind: input, shape index: {}]   ;;  %s813_s4 = inlined_call_operand.vmem [shape: bf16[128,16], index: 4, kind: output, shape index: {}]  }
   0x1   :  { %s748_s17 = smov 0  }
   0x2 LB: > { %s26_s18 = sadd.s32 1, %s713_s16  ;;  %p595_p0 = scmp.ge.s32.totalorder %s717_s17, 1  ;;  %s717_s17 = sphi %s748_s17, %s14_s17   ;;  %s713_s16 = sphi %s746_s16, %s815_s16   ;;  %s709_s15 = sphi %s744_s15, %s814_s15  }
   0x3   : > { %p28_p1 = scmp.ge.s32.totalorder %s26_s18, 2  ;;  %p210_p2 = scmp.lt.s32.totalorder %s717_s17, 3 }
   0x5   : > { %s817_s18 = smov (%p28_p1, %s26_s18), 0  ;;  %p211_p3 = pnand %p595_p0, %p210_p2 }
   0x6   : > { %s596_s21 = sshll.u32 (!%p211_p3), %s709_s15, 3 }
   0x7   : > { %214 = sbr.rel (%p211_p3) target bundleno = 224 (0xe0), region = 36  ;;  %p255_p4 = scmp.lt.s32.totalorder (!%p211_p3), %s596_s21, 15 }
   0xc   : > { %v690_v0 = vld [vmem:[%s810_s1] sm:$0xff]   ;;  %s819_s21 = smov (!%p255_p4, %s596_s21), 15  ;;  %vm329_vm0 = vcmask 130048   ;;  %vm463_vm1 = vcmask 125952  }
   0xd   : > { %654 = vmatprep.subr.bf16.mxu0 %v690_v0  ;;  %664 = vmatprep.subr.bf16.mxu1 %v690_v0  ;;  %s765_s22 = sshll.u32 %s819_s21, 2  ;;  %v602_v7 = vld [vmem:[%s811_s2] ss:$0 sm:$0xff] }
   0xe   : > { %655 = vmatpush3.bf16.msra.mxu0 %v690_v0  ;;  %665 = vmatpush3.bf16.msra.mxu1 %v690_v0  ;;  %s258_s25 = scalar_lea.vmem %s809_s0, %s765_s22  ;;  %s274_s28 = scalar_lea.vmem %s812_s3, %s765_s22 }
   0xf   : > { %v691_v1 = vld [vmem:[%s258_s25] sm:$0xff]   ;;  %v692_v2 = vld [vmem:[%s258_s25 + $0x10] sm:$0xff]   ;;  %v693_v3 = vld [vmem:[%s258_s25 + $0x8] sm:$0xff]   ;;  %s782_s7 = scalar_lea.vmem %s813_s4, %s765_s22 }
  0x10   : > { %656 = vmatprep.mubr.msk.bf16.mxu0 %vm329_vm0, %v691_v1  ;;  %660 = vmatprep.mubr.msk.bf16.mxu1 %vm329_vm0, %v692_v2  ;;  %v694_v4 = vld [vmem:[%s258_s25 + $0x18] sm:$0xff]   ;;  %v646_v5 = vld [vmem:[%s274_s28 + $0x8] sm:$0xff]   ;;  %v631_v8 = vld [vmem:[%s274_s28] sm:$0xff]  }
  0x11   : > { %657 = vmatmul.mubr.msk.bf16.vlgmr.msra.gmra.mxu0 %vm329_vm0, %v693_v3  ;;  %661 = vmatmul.mubr.msk.bf16.vlgmr.msra.gmra.mxu1 %vm329_vm0, %v694_v4  ;;  %v648_v6 = vld [vmem:[%s274_s28 + $0x18] sm:$0xff]   ;;  %v636_v9 = vunpack.c.l.bf16 %v646_v5  ;;  %v647_v10 = vld [vmem:[%s274_s28 + $0x10] sm:$0xff]   ;;  %v632_v15 = vunpack.c.l.bf16 %v631_v8  ;;  %v637_v22 = vunpack.c.h.bf16 %v646_v5  ;;  %v633_v31 = vunpack.c.h.bf16 %v631_v8 }
  0x12   : > { %v644_v12 = vunpack.c.l.bf16 %v648_v6  ;;  %v640_v18 = vunpack.c.l.bf16 %v647_v10  ;;  %v645_v26 = vunpack.c.h.bf16 %v648_v6  ;;  %v641_v36 = vunpack.c.h.bf16 %v647_v10 }
  0xd1   : > { %v658_v11 = vpop.f32.mrf.mxu0  ;;  %v662_v14 = vpop.f32.mrf.mxu1 }
  0xd2   : > { %v385_v13 = vadd.f32 %v658_v11, %v602_v7  ;;  %v401_v16 = vadd.f32 %v662_v14, %v602_v7 }
  0xd3   : > { %v376_v17 = vpop.f32.mrf.mxu0  ;;  %v392_v21 = vpop.f32.mrf.mxu1 }
  0xd4   : > { %v425_v19 = vadd.f32 %v636_v9, %v385_v13  ;;  %v377_v20 = vadd.f32 %v602_v7, %v376_v17  ;;  %v429_v23 = vadd.f32 %v644_v12, %v401_v16  ;;  %v393_v24 = vadd.f32 %v602_v7, %v392_v21 }
  0xd5   : > { %v659_v25 = vpop.f32.mrf.mxu0  ;;  %v663_v30 = vpop.f32.mrf.mxu1 }
  0xd6   : > { %v624_v27 = vpack.c.bf16 %v425_v19, %v425_v19  ;;  %v423_v28 = vadd.f32 %v632_v15, %v377_v20  ;;  %v388_v29 = vadd.f32 %v659_v25, %v602_v7  ;;  %v628_v32 = vpack.c.bf16 %v429_v23, %v429_v23 }
  0xd7   : > { %v427_v33 = vadd.f32 %v640_v18, %v393_v24  ;;  %v404_v34 = vadd.f32 %v663_v30, %v602_v7  ;;  %v379_v35 = vpop.f32.mrf.mxu0  ;;  %v395_v40 = vpop.f32.mrf.mxu1 }
  0xd8   : > { %466 = vst.msk [vmem:[%s782_s7 + $0x8] sm:$0xf] %vm463_vm1, %v624_v27  ;;  %v622_v37 = vpack.c.bf16 %v423_v28, %v423_v28  ;;  %v426_v38 = vadd.f32 %v637_v22, %v388_v29  ;;  %v380_v39 = vadd.f32 %v602_v7, %v379_v35  ;;  %470 = vst.msk [vmem:[%s782_s7 + $0x18] sm:$0xf] %vm463_vm1, %v628_v32 }
  0xd9   : > { %v626_v41 = vpack.c.bf16 %v427_v33, %v427_v33  ;;  %v430_v42 = vadd.f32 %v645_v26, %v404_v34  ;;  %v396_v43 = vadd.f32 %v602_v7, %v395_v40 }
  0xda   : > { %464 = vst.msk [vmem:[%s782_s7] sm:$0xf] %vm463_vm1, %v622_v37  ;;  %v625_v44 = vpack.c.bf16 %v426_v38, %v426_v38  ;;  %v424_v45 = vadd.f32 %v633_v31, %v380_v39 }
  0xdb   : > { %468 = vst.msk [vmem:[%s782_s7 + $0x10] sm:$0xf] %vm463_vm1, %v626_v41  ;;  %v629_v46 = vpack.c.bf16 %v430_v42, %v430_v42  ;;  %v428_v47 = vadd.f32 %v641_v36, %v396_v43 }
  0xdc   : > { %467 = vst.msk [vmem:[%s782_s7 + $0xc] sm:$0xf] %vm463_vm1, %v625_v44  ;;  %v623_v48 = vpack.c.bf16 %v424_v45, %v424_v45 }
  0xdd   : > { %471 = vst.msk [vmem:[%s782_s7 + $0x1c] sm:$0xf] %vm463_vm1, %v629_v46  ;;  %v627_v49 = vpack.c.bf16 %v428_v47, %v428_v47 }
  0xde   : > { %465 = vst.msk [vmem:[%s782_s7 + $0x4] sm:$0xf] %vm463_vm1, %v623_v48 }
  0xdf   : > { %469 = vst.msk [vmem:[%s782_s7 + $0x14] sm:$0xf] %vm463_vm1, %v627_v49 }
  0xe0 PF: > { %s14_s17 = sadd.s32 1, %s717_s17   ;;  %s814_s15 = smov %s713_s16 }
  0xe1   : > { %p11_p5 = scmp.ge.s32.totalorder %s14_s17, 4   ;;  %s815_s16 = smov %s817_s18 }
  0xe3   :  { %13 = sbr.rel (!%p11_p5) target bundleno = 2 (0x2), region = 75 }

// kernel: swin3d_forward.26
= control target key start
LH: loop header
LB: loop body
LE: loop exit
PB: predicated region body
PF: predicated region fallthrough
CT: control target
= control target key end

     0   :  { %s2594_s9 = smov 0   ;;  %s2596_s10 = smov 0   ;;  %s3044_s0 = inlined_call_operand.vmem [shape: bf16[2,8,8,48], index: 0, kind: input, shape index: {}]   ;;  %s3045_s1 = inlined_call_operand.vmem [shape: f32[2,8,8], index: 1, kind: input, shape index: {}]   ;;  %s3046_s2 = inlined_call_operand.vmem [shape: bf16[2,8,8,16], index: 2, kind: output, shape index: {}]  }
   0x1   :  { %s2598_s11 = smov 0  }
   0x2 LB: > { %s24_s12 = sadd.s32 1, %s2565_s10  ;;  %p2137_p0 = scmp.ge.s32.totalorder %s2569_s11, 1  ;;  %s2569_s11 = sphi %s2598_s11, %s12_s11   ;;  %s2565_s10 = sphi %s2596_s10, %s3048_s10   ;;  %s2561_s9 = sphi %s2594_s9, %s3047_s9  }
   0x3   : > { %p26_p1 = scmp.ge.s32.totalorder %s24_s12, 2  ;;  %p133_p2 = scmp.lt.s32.totalorder %s2569_s11, 3 }
   0x5   : > { %s3050_s12 = smov (%p26_p1, %s24_s12), 0  ;;  %p134_p3 = pnand %p2137_p0, %p133_p2 }
   0x6   : > { %p164_p4 = scmp.lt.s32.totalorder (!%p134_p3), %s2561_s9, 1  ;;  %s2573_s17 = smov (!%p134_p3), 112  }
   0x7   : > { %137 = sbr.rel (%p134_p3) target bundleno = 1622 (0x656), region = 28  ;;  %s2574_s18 = smov (!%p134_p3), 96  }
   0x8   : > { %s2575_s21 = smov (!%p134_p3), 104   ;;  %s2576_s22 = smov (!%p134_p3), 120  }
   0x9   : > { %s2577_s23 = smov (!%p134_p3), 88   ;;  %s2578_s26 = smov (!%p134_p3), 8  }
   0xc   : > { %v2571_v0 = vmov 0.0   ;;  %s3052_s9 = smov (!%p164_p4, %s2561_s9), 1  ;;  %vm2572_vm0 = vmmov 0   ;;  %vm198_vm1 = vcmask 64512   ;;  %vm703_vm2 = vcmask 1043456   ;;  %v192_v37 = vld [vmem:[%s3045_s1] sm:$0xff] }
   0xd   : > { %2251 = vmatprep.subr.bf16.mxu0 %v2571_v0  ;;  %2257 = vmatprep.subr.bf16.mxu1 %v2571_v0  ;;  %s2185_s13 = sshll.u32 %s3052_s9, 5  ;;  %vm2037_vm3 = vcmask 125952  }
   0xe   : > { %2253 = vmatprep.mubr.msk.bf16.mxu0 %vm2572_vm0, %v2571_v0  ;;  %2259 = vmatprep.mubr.msk.bf16.mxu1 %vm2572_vm0, %v2571_v0  ;;  %s171_s16 = scalar_lea.vmem %s3044_s0, %s2185_s13  ;;  %s2995_s29 = scalar_lea.vmem %s3046_s2, %s2185_s13 }
   0xf   : > { %v184_v1 = vld [vmem:[%s171_s16] sm:$0xf]  ;;  %v185_v2 = vld [vmem:[%s171_s16 + $0x4] sm:$0xf]  ;;  %v186_v3 = vld [vmem:[%s171_s16 + $0x8] sm:$0xf] }
  0x10   : > { %v2626_v4 = vcombine.low %v184_v1, %v184_v1  ;;  %v2628_v5 = vcombine.low %v186_v3, %v186_v3  ;;  %v187_v6 = vld [vmem:[%s171_s16 + $0xc] sm:$0xf]  ;;  %v2631_v7 = vcombine.low %v185_v2, %v185_v2  ;;  %v188_v9 = vld [vmem:[%s171_s16 + $0x10] sm:$0xf]  ;;  %v189_v10 = vld [vmem:[%s171_s16 + $0x14] sm:$0xf] }
  0x11   : > { %v2634_v8 = vcombine.low %v187_v6, %v187_v6  ;;  %v2638_v11 = vcombine.low %v188_v9, %v188_v9  ;;  %v2640_v12 = vcombine.low %v189_v10, %v189_v10  ;;  %v190_v13 = vld [vmem:[%s171_s16 + $0x18] sm:$0xf]  ;;  %v191_v14 = vld [vmem:[%s171_s16 + $0x1c] sm:$0xf] }
  0x12   : > { %196 = vrot.lane.b32.xlu0 %v2626_v4, %s2573_s17  ;;  %299 = vrot.lane.b32.xlu1 %v2628_v5, %s2573_s17  ;;  %v2644_v15 = vcombine.low %v190_v13, %v190_v13  ;;  %v2646_v16 = vcombine.low %v191_v14, %v191_v14 }
  0x16   : > { %248 = vrot.lane.b32.xlu0 %v2631_v7, %s2573_s17  ;;  %350 = vrot.lane.b32.xlu1 %v2634_v8, %s2573_s17 }
  0x1a   : > { %401 = vrot.lane.b32.xlu0 %v2638_v11, %s2573_s17  ;;  %452 = vrot.lane.b32.xlu1 %v2640_v12, %s2573_s17 }
  0x1e   : > { %503 = vrot.lane.b32.xlu0 %v2644_v15, %s2573_s17  ;;  %554 = vrot.lane.b32.xlu1 %v2646_v16, %s2573_s17 }
  0x22   : > { %698 = vrot.lane.b32.xlu1 %v2626_v4, %s2574_s18  ;;  %747 = vrot.lane.b32.xlu0 %v2631_v7, %s2574_s18 }
  0x26   : > { %795 = vrot.lane.b32.xlu1 %v2628_v5, %s2574_s18 }
  0x2a   : > { %843 = vrot.lane.b32.xlu1 %v2634_v8, %s2574_s18 }
  0x84   : > { %v197_v17 = vpop.permute.xlu0 %196  ;;  %v300_v19 = vpop.permute.xlu1 %299 }
  0x85   : > { %v203_v18 = vsel %vm198_vm1, %v197_v17, 0  ;;  %v305_v22 = vsel %vm198_vm1, %v300_v19, 0 }
  0x86   : > { %2252 = vmatpush3.bf16.xpose.msra.mxu0 %v203_v18 }
  0x87   : > { %2263 = vmatprep.subr.bf16.mxu0 %v2571_v0 }
  0x88   : > { %v249_v20 = vpop.permute.xlu0 %248  ;;  %v351_v23 = vpop.permute.xlu1 %350 }
  0x89   : > { %v254_v21 = vsel %vm198_vm1, %v249_v20, 0  ;;  %v356_v24 = vsel %vm198_vm1, %v351_v23, 0 }
  0x8a   : > { %2258 = vmatpush3.bf16.xpose.msra.mxu1 %v254_v21 }
  0x8b   : > { %2269 = vmatprep.subr.bf16.mxu1 %v2571_v0 }
  0x8c   : > { %v402_v25 = vpop.permute.xlu0 %401  ;;  %v453_v27 = vpop.permute.xlu1 %452 }
  0x8d   : > { %2254 = vmatmul.mubr.msk.bf16.vlgmr.msra.gmra.mxu0 %vm198_vm1, %v184_v1  ;;  %v407_v26 = vsel %vm198_vm1, %v402_v25, 0  ;;  %v458_v28 = vsel %vm198_vm1, %v453_v27, 0 }
  0x8e   : > { %2264 = vmatpush3.bf16.xpose.msra.mxu0 %v305_v22  ;;  %2265 = vmatprep.mubr.msk.bf16.mxu0 %vm2572_vm0, %v2571_v0 }
  0x8f   : > { %2275 = vmatprep.subr.bf16.mxu0 %v2571_v0 }
  0x90   : > { %v504_v29 = vpop.permute.xlu0 %503  ;;  %v555_v31 = vpop.permute.xlu1 %554 }
  0x91   : > { %2260 = vmatmul.mubr.msk.bf16.vlgmr.msra.gmra.mxu1 %vm198_vm1, %v185_v2  ;;  %v509_v30 = vsel %vm198_vm1, %v504_v29, 0  ;;  %v560_v32 = vsel %vm198_vm1, %v555_v31, 0 }
  0x92   : > { %2270 = vmatpush3.bf16.xpose.msra.mxu1 %v356_v24  ;;  %2271 = vmatprep.mubr.msk.bf16.mxu1 %vm2572_vm0, %v2571_v0 }
  0x93   : > { %2281 = vmatprep.subr.bf16.mxu1 %v2571_v0 }
  0x94   : > { %v699_v33 = vpop.permute.xlu1 %698  ;;  %v748_v34 = vpop.permute.xlu0 %747 }
  0x95   : > { %2266 = vmatmul.mubr.msk.bf16.vlgmr.msra.gmra.mxu0 %vm198_vm1, %v186_v3  ;;  %v705_v35 = vsel %vm703_vm2, %v699_v33, 0  ;;  %v753_v36 = vsel %vm703_vm2, %v748_v34, 0 }
  0x96   : > { %2276 = vmatpush3.bf16.xpose.msra.mxu0 %v407_v26  ;;  %2277 = vmatprep.mubr.msk.bf16.mxu0 %vm2572_vm0, %v2571_v0 }
  0x97   : > { %2287 = vmatprep.subr.bf16.mxu0 %v2571_v0 }
  0x98   : > { %v2720_v31 = vpop.permute.xlu1 %795 }
  0x99   : > { %2272 = vmatmul.mubr.msk.bf16.vlgmr.msra.gmra.mxu1 %vm198_vm1, %v187_v6 }
  0x9a   : > { %2282 = vmatpush3.bf16.xpose.msra.mxu1 %v458_v28  ;;  %2283 = vmatprep.mubr.msk.bf16.mxu1 %vm2572_vm0, %v2571_v0 }
  0x9b   : > { %2293 = vmatprep.subr.bf16.mxu1 %v2571_v0 }
  0x9d   : > { %2278 = vmatmul.mubr.msk.bf16.vlgmr.msra.gmra.mxu0 %vm198_vm1, %v188_v9 }
  0x9e   : > { %2288 = vmatpush3.bf16.xpose.msra.mxu0 %v509_v30  ;;  %2289 = vmatprep.mubr.msk.bf16.mxu0 %vm2572_vm0, %v2571_v0 }
  0x9f   : > { %2299 = vmatprep.subr.bf16.mxu0 %v2571_v0 }
  0xa1   : > { %2284 = vmatmul.mubr.msk.bf16.vlgmr.msra.gmra.mxu1 %vm198_vm1, %v189_v10 }
  0xa2   : > { %2294 = vmatpush3.bf16.xpose.msra.mxu1 %v560_v32  ;;  %2295 = vmatprep.mubr.msk.bf16.mxu1 %vm2572_vm0, %v2571_v0  ;;  %v2722_v32 = vpop.permute.xlu1 %843 }
  0xa3   : > { %2305 = vmatprep.subr.bf16.mxu1 %v2571_v0 }
  0xa5   : > { %2290 = vmatmul.mubr.msk.bf16.vlgmr.msra.gmra.mxu0 %vm198_vm1, %v190_v13 }
  0xa6   : > { %2301 = vmatprep.mubr.msk.bf16.mxu0 %vm2572_vm0, %v2571_v0  ;;  %2300 = vmatpush3.bf16.msra.mxu0 %v705_v35 }
  0xa7   : > { %2311 = vmatprep.subr.bf16.mxu0 %v2571_v0 }
  0xa9   : > { %2296 = vmatmul.mubr.msk.bf16.vlgmr.msra.gmra.mxu1 %vm198_vm1, %v191_v14 }
  0xaa   : > { %2307 = vmatprep.mubr.msk.bf16.mxu1 %vm2572_vm0, %v2571_v0  ;;  %2306 = vmatpush3.bf16.msra.mxu1 %v753_v36 }
  0xab   : > { %2317 = vmatprep.subr.bf16.mxu1 %v2571_v0 }
 0x14d   : > { %v239_v38 = vpop.f32.mrf.mxu0 }
 0x14e   : > { %v240_v39 = vadd.f32 %v239_v38, %v192_v37 }
 0x14f   : > { %v2255_v40 = vpop.f32.mrf.mxu0 }
 0x150   : > { %v602_v41 = vsel %vm198_vm1, %v240_v39, -inf }
 0x151   : > { %603 = vmax.xlane.f32.xlu0 %v602_v41  ;;  %v242_v42 = vpop.f32.mrf.mxu0  ;;  %v290_v43 = vpop.f32.mrf.mxu1 }
 0x152   : > { %v291_v44 = vadd.f32 %v290_v43, %v192_v37 }
 0x153   : > { %v2256_v45 = vpop.f32.mrf.mxu0  ;;  %v2261_v46 = vpop.f32.mrf.mxu1 }
 0x154   : > { %v605_v47 = vsel %vm198_vm1, %v291_v44, -inf }
 0x155   : > { %v341_v48 = vpop.f32.mrf.mxu0  ;;  %606 = vmax.xlane.f32.xlu1 %v605_v47  ;;  %v293_v49 = vpop.f32.mrf.mxu1 }
 0x156   : > { %v342_v50 = vadd.f32 %v341_v48, %v192_v37 }
 0x157   : > { %v2262_v51 = vpop.f32.mrf.mxu1  ;;  %v2267_v52 = vpop.f32.mrf.mxu0 }
 0x158   : > { %v608_v53 = vsel %vm198_vm1, %v342_v50, -inf }
 0x159   : > { %609 = vmax.xlane.f32.xlu0 %v608_v53  ;;  %v344_v54 = vpop.f32.mrf.mxu0  ;;  %v392_v55 = vpop.f32.mrf.mxu1 }
 0x15a   : > { %v393_v56 = vadd.f32 %v392_v55, %v192_v37 }
 0x15b   : > { %v2268_v57 = vpop.f32.mrf.mxu0  ;;  %v2273_v58 = vpop.f32.mrf.mxu1 }
 0x15c   : > { %v611_v59 = vsel %vm198_vm1, %v393_v56, -inf }
 0x15d   : > { %612 = vmax.xlane.f32.xlu0 %v611_v59  ;;  %v395_v60 = vpop.f32.mrf.mxu1  ;;  %v443_v61 = vpop.f32.mrf.mxu0 }
 0x15e   : > { %v444_v62 = vadd.f32 %v443_v61, %v192_v37 }
 0x15f   : > { %v2274_v63 = vpop.f32.mrf.mxu1  ;;  %v2279_v1 = vpop.f32.mrf.mxu0 }
 0x160   : > { %v614_v2 = vsel %vm198_vm1, %v444_v62, -inf }
 0x161   : > { %v494_v3 = vpop.f32.mrf.mxu1  ;;  %615 = vmax.xlane.f32.xlu1 %v614_v2  ;;  %v446_v6 = vpop.f32.mrf.mxu0 }
 0x162   : > { %v495_v9 = vadd.f32 %v494_v3, %v192_v37 }
 0x163   : > { %v2280_v10 = vpop.f32.mrf.mxu0  ;;  %v2285_v13 = vpop.f32.mrf.mxu1 }
 0x164   : > { %v617_v14 = vsel %vm198_vm1, %v495_v9, -inf }
 0x165   : > { %618 = vmax.xlane.f32.xlu0 %v617_v14  ;;  %v497_v17 = vpop.f32.mrf.mxu1  ;;  %v545_v18 = vpop.f32.mrf.mxu0 }
 0x166   : > { %v2711_v19 = vadd.f32 %v545_v18, %v192_v37 }
 0x167   : > { %v2286_v20 = vpop.f32.mrf.mxu1  ;;  %v2291_v21 = vpop.f32.mrf.mxu0 }
 0x168   : > { %v620_v22 = vsel %vm198_vm1, %v2711_v19, -inf }
 0x169   : > { %v596_v23 = vpop.f32.mrf.mxu1  ;;  %621 = vmax.xlane.f32.xlu1 %v620_v22  ;;  %v548_v24 = vpop.f32.mrf.mxu0 }
 0x16a   : > { %v597_v25 = vadd.f32 %v596_v23, %v192_v37 }
 0x16b   : > { %v2292_v26 = vpop.f32.mrf.mxu0  ;;  %v2297_v27 = vpop.f32.mrf.mxu1 }
 0x16c   : > { %v623_v28 = vsel %vm198_vm1, %v597_v25, -inf }
 0x16d   : > { %624 = vmax.xlane.f32.xlu0 %v623_v28  ;;  %v599_v29 = vpop.f32.mrf.mxu1 }
 0x16e   : > { %v801_v29 = vsel %vm703_vm2, %v2720_v31, 0 }
 0x16f   : > { %v2298_v30 = vpop.f32.mrf.mxu1 }
 0x17a   : > { %939 = vrot.lane.b32.xlu1 %v2640_v12, %s2574_s18 }
 0x183   : > { %891 = vrot.lane.b32.xlu0 %v2638_v11, %s2574_s18 }
 0x1da   : > { %v604_v33 = vpop.xlane.xlu0 %603 }
 0x1db   : > { %v626_v34 = vsub.f32 %v240_v39, %v604_v33 }
 0x1dd   : > { %v634_v35 = vmul.f32 1.442695, %v626_v34 }
 0x1de   : > { %v607_v36 = vpop.xlane.xlu1 %606 }
 0x1df   : > { %2483 = vpow2.f32 %v634_v35  ;;  %v627_v37 = vsub.f32 %v291_v44, %v607_v36  ;;  %v849_v36 = vsel %vm703_vm2, %v2722_v32, 0 }
 0x1e1   : > { %v636_v38 = vmul.f32 1.442695, %v627_v37 }
 0x1e2   : > { %v610_v40 = vpop.xlane.xlu0 %609 }
 0x1e3   : > { %2485 = vpow2.f32 %v636_v38  ;;  %v628_v41 = vsub.f32 %v342_v50, %v610_v40 }
 0x1e5   : > { %v638_v42 = vmul.f32 1.442695, %v628_v41 }
 0x1e6   : > { %v613_v43 = vpop.xlane.xlu0 %612 }
 0x1e7   : > { %2487 = vpow2.f32 %v638_v42  ;;  %v629_v45 = vsub.f32 %v393_v56, %v613_v43 }
 0x1e9   : > { %v640_v46 = vmul.f32 1.442695, %v629_v45 }
 0x1ea   : > { %v616_v47 = vpop.xlane.xlu1 %615 }
 0x1eb   : > { %2489 = vpow2.f32 %v640_v46  ;;  %v630_v48 = vsub.f32 %v444_v62, %v616_v47 }
 0x1ec   : > { %v2724_v49 = vpop.eup %2483 }
 0x1ed   : > { %v642_v51 = vmul.f32 1.442695, %v630_v48  ;;  %v650_v39 = vsel %vm198_vm1, %v2724_v49, 0.0 }
 0x1ee   : > { %651 = vadd.xlane.f32.xlu1 %v650_v39  ;;  %v619_v44 = vpop.xlane.xlu0 %618 }
 0x1ef   : > { %2491 = vpow2.f32 %v642_v51  ;;  %v631_v52 = vsub.f32 %v495_v9, %v619_v44 }
 0x1f0   : > { %v2728_v53 = vpop.eup %2485 }
 0x1f1   : > { %v644_v50 = vmul.f32 1.442695, %v631_v52  ;;  %v653_v54 = vsel %vm198_vm1, %v2728_v53, 0.0 }
 0x1f2   : > { %654 = vadd.xlane.f32.xlu0 %v653_v54  ;;  %v622_v63 = vpop.xlane.xlu1 %621 }
 0x1f3   : > { %2493 = vpow2.f32 %v644_v50  ;;  %v632_v1 = vsub.f32 %v2711_v19, %v622_v63 }
 0x1f4   : > { %v2732_v55 = vpop.eup %2487 }
 0x1f5   : > { %v656_v56 = vsel %vm198_vm1, %v2732_v55, 0.0  ;;  %v646_v3 = vmul.f32 1.442695, %v632_v1 }
 0x1f6   : > { %657 = vadd.xlane.f32.xlu1 %v656_v56  ;;  %v625_v2 = vpop.xlane.xlu0 %624  ;;  %v940_v18 = vpop.permute.xlu1 %939 }
 0x1f7   : > { %v633_v6 = vsub.f32 %v597_v25, %v625_v2  ;;  %2495 = vpow2.f32 %v646_v3  ;;  %v945_v43 = vsel %vm703_vm2, %v940_v18, 0 }
 0x1f8   : > { %v2736_v57 = vpop.eup %2489 }
 0x1f9   : > { %v659_v58 = vsel %vm198_vm1, %v2736_v57, 0.0  ;;  %v648_v9 = vmul.f32 1.442695, %v633_v6 }
 0x1fa   : > { %660 = vadd.xlane.f32.xlu0 %v659_v58  ;;  %v892_v19 = vpop.permute.xlu0 %891 }
 0x1fb   : > { %2497 = vpow2.f32 %v648_v9  ;;  %v897_v40 = vsel %vm703_vm2, %v892_v19, 0 }
 0x1fc   : > { %v2740_v59 = vpop.eup %2491 }
 0x1fd   : > { %v662_v60 = vsel %vm198_vm1, %v2740_v59, 0.0 }
 0x1fe   : > { %663 = vadd.xlane.f32.xlu1 %v662_v60 }
 0x200   : > { %v2744_v61 = vpop.eup %2493 }
 0x201   : > { %v665_v62 = vsel %vm198_vm1, %v2744_v61, 0.0 }
 0x202   : > { %666 = vadd.xlane.f32.xlu0 %v665_v62 }
 0x204   : > { %v2753_v10 = vpop.eup %2495 }
 0x205   : > { %v668_v13 = vsel %vm198_vm1, %v2753_v10, 0.0 }
 0x208   : > { %v2757_v14 = vpop.eup %2497 }
 0x209   : > { %v671_v17 = vsel %vm198_vm1, %v2757_v14, 0.0 }
 0x20f   : > { %1035 = vrot.lane.b32.xlu1 %v2646_v16, %s2574_s18 }
 0x218   : > { %987 = vrot.lane.b32.xlu0 %v2644_v15, %s2574_s18 }
 0x233   : > { %669 = vadd.xlane.f32.xlu1 %v668_v13 }
 0x237   : > { %672 = vadd.xlane.f32.xlu0 %v671_v17 }
 0x244   : > { %1145 = vrot.lane.b32.xlu1 %v2631_v7, %s2575_s21 }
 0x248   : > { %1143 = vrot.lane.b32.xlu1 %v2631_v7, %s2576_s22 }
 0x24c   : > { %1245 = vrot.lane.b32.xlu1 %v2634_v8, %s2575_s21 }
 0x24d   : > { %1095 = vrot.lane.b32.xlu0 %v2626_v4, %s2575_s21 }
 0x250   : > { %1243 = vrot.lane.b32.xlu1 %v2634_v8, %s2576_s22 }
 0x251   : > { %1093 = vrot.lane.b32.xlu0 %v2626_v4, %s2576_s22 }
 0x254   : > { %1345 = vrot.lane.b32.xlu1 %v2640_v12, %s2575_s21 }
 0x255   : > { %1195 = vrot.lane.b32.xlu0 %v2628_v5, %s2575_s21 }
 0x258   : > { %1343 = vrot.lane.b32.xlu1 %v2640_v12, %s2576_s22 }
 0x259   : > { %1193 = vrot.lane.b32.xlu0 %v2628_v5, %s2576_s22 }
 0x25c   : > { %1445 = vrot.lane.b32.xlu1 %v2646_v16, %s2575_s21 }
 0x25d   : > { %1295 = vrot.lane.b32.xlu0 %v2638_v11, %s2575_s21 }
 0x260   : > { %1443 = vrot.lane.b32.xlu1 %v2646_v16, %s2576_s22 }
 0x261   : > { %1293 = vrot.lane.b32.xlu0 %v2638_v11, %s2576_s22 }
 0x264   : > { %1589 = vrot.lane.b32.xlu1 %v2626_v4, %s2577_s23 }
 0x265   : > { %1395 = vrot.lane.b32.xlu0 %v2644_v15, %s2575_s21 }
 0x269   : > { %1393 = vrot.lane.b32.xlu0 %v2644_v15, %s2576_s22 }
 0x277   : > { %v652_v20 = vpop.xlane.xlu1 %651 }
 0x278   : > { %2499 = vrcp.f32 %v652_v20 }
 0x27b   : > { %v655_v21 = vpop.xlane.xlu0 %654 }
 0x27c   : > { %2501 = vrcp.f32 %v655_v21 }
 0x27f   : > { %v658_v22 = vpop.xlane.xlu1 %657 }
 0x280   : > { %2503 = vrcp.f32 %v658_v22 }
 0x283   : > { %v661_v23 = vpop.xlane.xlu0 %660 }
 0x284   : > { %2505 = vrcp.f32 %v661_v23 }
 0x285   : > { %v2500_v24 = vpop.eup %2499 }
 0x286   : > { %v682_v25 = vmul.f32 %v2500_v24, %v2724_v49 }
 0x287   : > { %v664_v26 = vpop.xlane.xlu1 %663 }
 0x288   : > { %2507 = vrcp.f32 %v664_v26  ;;  %v690_v27 = vpack.c.bf16 %v682_v25, %v682_v25 }
 0x289   : > { %v2502_v28 = vpop.eup %2501 }
 0x28a   : > { %2302 = vmatmul.mubr.msk.bf16.vlgmr.msra.gmra.mxu0 %vm198_vm1, %v690_v27  ;;  %v683_v30 = vmul.f32 %v2502_v28, %v2728_v53 }
 0x28b   : > { %2312 = vmatpush3.bf16.msra.mxu0 %v801_v29  ;;  %v667_v33 = vpop.xlane.xlu0 %666  ;;  %2313 = vmatprep.mubr.msk.bf16.mxu0 %vm2572_vm0, %v2571_v0  ;;  %v1036_v39 = vpop.permute.xlu1 %1035 }
 0x28c   : > { %2509 = vrcp.f32 %v667_v33  ;;  %v691_v34 = vpack.c.bf16 %v683_v30, %v683_v30  ;;  %2323 = vmatprep.subr.bf16.mxu0 %v2571_v0  ;;  %v1041_v52 = vsel %vm703_vm2, %v1036_v39, 0 }
 0x28d   : > { %v2504_v35 = vpop.eup %2503 }
 0x28e   : > { %2308 = vmatmul.mubr.msk.bf16.vlgmr.msra.gmra.mxu1 %vm198_vm1, %v691_v34  ;;  %v684_v31 = vmul.f32 %v2504_v35, %v2732_v55 }
 0x28f   : > { %2318 = vmatpush3.bf16.msra.mxu1 %v849_v36  ;;  %2319 = vmatprep.mubr.msk.bf16.mxu1 %vm2572_vm0, %v2571_v0  ;;  %v988_v46 = vpop.permute.xlu0 %987 }
 0x290   : > { %v692_v37 = vpack.c.bf16 %v684_v31, %v684_v31  ;;  %2329 = vmatprep.subr.bf16.mxu1 %v2571_v0  ;;  %v993_v49 = vsel %vm703_vm2, %v988_v46, 0 }
 0x291   : > { %v2506_v38 = vpop.eup %2505 }
 0x292   : > { %2314 = vmatmul.mubr.msk.bf16.vlgmr.msra.gmra.mxu0 %vm198_vm1, %v692_v37  ;;  %v685_v41 = vmul.f32 %v2506_v38, %v2736_v57 }
 0x293   : > { %2324 = vmatpush3.bf16.msra.mxu0 %v897_v40  ;;  %2325 = vmatprep.mubr.msk.bf16.mxu0 %vm2572_vm0, %v2571_v0 }
 0x294   : > { %v693_v32 = vpack.c.bf16 %v685_v41, %v685_v41  ;;  %2335 = vmatprep.subr.bf16.mxu0 %v2571_v0 }
 0x295   : > { %v2508_v42 = vpop.eup %2507 }
 0x296   : > { %2320 = vmatmul.mubr.msk.bf16.vlgmr.msra.gmra.mxu1 %vm198_vm1, %v693_v32  ;;  %v686_v45 = vmul.f32 %v2508_v42, %v2740_v59 }
 0x297   : > { %2330 = vmatpush3.bf16.msra.mxu1 %v945_v43  ;;  %2331 = vmatprep.mubr.msk.bf16.mxu1 %vm2572_vm0, %v2571_v0 }
 0x298   : > { %v694_v47 = vpack.c.bf16 %v686_v45, %v686_v45  ;;  %2341 = vmatprep.subr.bf16.mxu1 %v2571_v0 }
 0x299   : > { %v2510_v48 = vpop.eup %2509 }
 0x29a   : > { %2326 = vmatmul.mubr.msk.bf16.vlgmr.msra.gmra.mxu0 %vm198_vm1, %v694_v47  ;;  %v687_v51 = vmul.f32 %v2510_v48, %v2744_v61 }
 0x29b   : > { %2336 = vmatpush3.bf16.msra.mxu0 %v993_v49  ;;  %2337 = vmatprep.mubr.msk.bf16.mxu0 %vm2572_vm0, %v2571_v0 }
 0x29c   : > { %v695_v44 = vpack.c.bf16 %v687_v51, %v687_v51  ;;  %2347 = vmatprep.subr.bf16.mxu0 %v2571_v0 }
 0x29e   : > { %2332 = vmatmul.mubr.msk.bf16.vlgmr.msra.gmra.mxu1 %vm198_vm1, %v695_v44 }
 0x29f   : > { %2342 = vmatpush3.bf16.msra.mxu1 %v1041_v52  ;;  %2343 = vmatprep.mubr.msk.bf16.mxu1 %vm2572_vm0, %v2571_v0 }
 0x2a0   : > { %2353 = vmatprep.subr.bf16.mxu1 %v2571_v0 }
 0x2bc   : > { %v670_v53 = vpop.xlane.xlu1 %669 }
 0x2bd   : > { %2511 = vrcp.f32 %v670_v53 }
 0x2c0   : > { %v673_v50 = vpop.xlane.xlu0 %672  ;;  %v1146_v54 = vpop.permute.xlu1 %1145 }
 0x2c1   : > { %2513 = vrcp.f32 %v673_v50  ;;  %v1151_v6 = vsel %vm198_vm1, %v1146_v54, 0 }
 0x2c4   : > { %v1096_v55 = vpop.permute.xlu0 %1095  ;;  %v1144_v57 = vpop.permute.xlu1 %1143 }
 0x2c5   : > { %v1101_v61 = vsel %vm198_vm1, %v1096_v55, 0 }
 0x2c8   : > { %v1094_v56 = vpop.permute.xlu0 %1093  ;;  %v1246_v1 = vpop.permute.xlu1 %1245 }
 0x2c9   : > { %v1251_v17 = vsel %vm198_vm1, %v1246_v1, 0 }
 0x2ca   : > { %v2512_v58 = vpop.eup %2511 }
 0x2cb   : > { %v688_v59 = vmul.f32 %v2512_v58, %v2753_v10 }
 0x2cc   : > { %v1196_v60 = vpop.permute.xlu0 %1195  ;;  %v1244_v10 = vpop.permute.xlu1 %1243 }
 0x2cd   : > { %v696_v62 = vpack.c.bf16 %v688_v59, %v688_v59  ;;  %v1201_v13 = vsel %vm198_vm1, %v1196_v60, 0  ;;  %v2166_v60 = vld [vmem:[%s3045_s1 + $0x8] sm:$0xff] }
 0x2ce   : > { %v2514_v63 = vpop.eup %2513 }
 0x2cf   : > { %2338 = vmatmul.mubr.msk.bf16.vlgmr.msra.gmra.mxu0 %vm198_vm1, %v696_v62  ;;  %v689_v2 = vmul.f32 %v2514_v63, %v2757_v14 }
 0x2d0   : > { %2348 = vmatpush3.bf16.xpose.msra.mxu0 %v1101_v61  ;;  %2349 = vmatprep.mubr.msk.bf16.mxu0 %vm2572_vm0, %v2571_v0  ;;  %v1194_v3 = vpop.permute.xlu0 %1193  ;;  %v1346_v18 = vpop.permute.xlu1 %1345 }
 0x2d1   : > { %v697_v9 = vpack.c.bf16 %v689_v2, %v689_v2  ;;  %2359 = vmatprep.subr.bf16.mxu0 %v2571_v0  ;;  %v1351_v22 = vsel %vm198_vm1, %v1346_v18, 0 }
 0x2d3   : > { %2344 = vmatmul.mubr.msk.bf16.vlgmr.msra.gmra.mxu1 %vm198_vm1, %v697_v9 }
 0x2d4   : > { %2354 = vmatpush3.bf16.xpose.msra.mxu1 %v1151_v6  ;;  %2355 = vmatprep.mubr.msk.bf16.mxu1 %vm2572_vm0, %v2571_v0  ;;  %v1296_v14 = vpop.permute.xlu0 %1295  ;;  %v1344_v21 = vpop.permute.xlu1 %1343 }
 0x2d5   : > { %2365 = vmatprep.subr.bf16.mxu1 %v2571_v0  ;;  %v1301_v20 = vsel %vm198_vm1, %v1296_v14, 0 }
 0x2d7   : > { %2350 = vmatmul.mubr.msk.bf16.vlgmr.msra.gmra.mxu0 %vm198_vm1, %v1094_v56 }
 0x2d8   : > { %2360 = vmatpush3.bf16.xpose.msra.mxu0 %v1201_v13  ;;  %2361 = vmatprep.mubr.msk.bf16.mxu0 %vm2572_vm0, %v2571_v0  ;;  %v1294_v19 = vpop.permute.xlu0 %1293  ;;  %v1446_v25 = vpop.permute.xlu1 %1445 }
 0x2d9   : > { %2371 = vmatprep.subr.bf16.mxu0 %v2571_v0  ;;  %v1451_v26 = vsel %vm198_vm1, %v1446_v25, 0 }
 0x2db   : > { %2356 = vmatmul.mubr.msk.bf16.vlgmr.msra.gmra.mxu1 %vm198_vm1, %v1144_v57 }
 0x2dc   : > { %2366 = vmatpush3.bf16.xpose.msra.mxu1 %v1251_v17  ;;  %2367 = vmatprep.mubr.msk.bf16.mxu1 %vm2572_vm0, %v2571_v0  ;;  %v1396_v23 = vpop.permute.xlu0 %1395  ;;  %v1444_v4 = vpop.permute.xlu1 %1443 }
 0x2dd   : > { %2377 = vmatprep.subr.bf16.mxu1 %v2571_v0  ;;  %v1401_v24 = vsel %vm198_vm1, %v1396_v23, 0 }
 0x2df   : > { %2362 = vmatmul.mubr.msk.bf16.vlgmr.msra.gmra.mxu0 %vm198_vm1, %v1194_v3 }
 0x2e0   : > { %2372 = vmatpush3.bf16.xpose.msra.mxu0 %v1301_v20  ;;  %2373 = vmatprep.mubr.msk.bf16.mxu0 %vm2572_vm0, %v2571_v0  ;;  %v1394_v27 = vpop.permute.xlu0 %1393  ;;  %v1590_v32 = vpop.permute.xlu1 %1589 }
 0x2e1   : > { %2383 = vmatprep.subr.bf16.mxu0 %v2571_v0  ;;  %v1595_v45 = vsel %vm703_vm2, %v1590_v32, 0 }
 0x2e3   : > { %2368 = vmatmul.mubr.msk.bf16.vlgmr.msra.gmra.mxu1 %vm198_vm1, %v1244_v10 }
 0x2e4   : > { %2378 = vmatpush3.bf16.xpose.msra.mxu1 %v1351_v22  ;;  %2379 = vmatprep.mubr.msk.bf16.mxu1 %vm2572_vm0, %v2571_v0 }
 0x2e5   : > { %2389 = vmatprep.subr.bf16.mxu1 %v2571_v0 }
 0x2e7   : > { %2374 = vmatmul.mubr.msk.bf16.vlgmr.msra.gmra.mxu0 %vm198_vm1, %v1294_v19 }
 0x2e8   : > { %2384 = vmatpush3.bf16.xpose.msra.mxu0 %v1401_v24  ;;  %2385 = vmatprep.mubr.msk.bf16.mxu0 %vm2572_vm0, %v2571_v0 }
 0x2e9   : > { %2395 = vmatprep.subr.bf16.mxu0 %v2571_v0 }
 0x2eb   : > { %2380 = vmatmul.mubr.msk.bf16.vlgmr.msra.gmra.mxu1 %vm198_vm1, %v1344_v21 }
 0x2ec   : > { %2390 = vmatpush3.bf16.xpose.msra.mxu1 %v1451_v26  ;;  %2391 = vmatprep.mubr.msk.bf16.mxu1 %vm2572_vm0, %v2571_v0 }
 0x2ed   : > { %2401 = vmatprep.subr.bf16.mxu1 %v2571_v0 }
 0x2ef   : > { %2386 = vmatmul.mubr.msk.bf16.vlgmr.msra.gmra.mxu0 %vm198_vm1, %v1394_v27 }
 0x2f0   : > { %2397 = vmatprep.mubr.msk.bf16.mxu0 %vm2572_vm0, %v2571_v0  ;;  %2396 = vmatpush3.bf16.msra.mxu0 %v1595_v45 }
 0x2f1   : > { %2407 = vmatprep.subr.bf16.mxu0 %v2571_v0 }
 0x2f3   : > { %2392 = vmatmul.mubr.msk.bf16.vlgmr.msra.gmra.mxu1 %vm198_vm1, %v1444_v4 }
 0x2f4   : > { %2403 = vmatprep.mubr.msk.bf16.mxu1 %vm2572_vm0, %v2571_v0 }
 0x34a   : > { %v2865_v28 = vpop.f32.mrf.mxu0 }
 0x34c   : > { %v2303_v29 = vpop.f32.mrf.mxu0 }
 0x34e   : > { %v744_v30 = vpop.f32.mrf.mxu0  ;;  %v2867_v33 = vpop.f32.mrf.mxu1 }
 0x350   : > { %v2304_v34 = vpop.f32.mrf.mxu0  ;;  %v2309_v35 = vpop.f32.mrf.mxu1 }
 0x352   : > { %v792_v36 = vpop.f32.mrf.mxu1  ;;  %v2869_v31 = vpop.f32.mrf.mxu0 }
 0x354   : > { %v2310_v37 = vpop.f32.mrf.mxu1  ;;  %v2315_v38 = vpop.f32.mrf.mxu0 }
 0x356   : > { %v840_v40 = vpop.f32.mrf.mxu0  ;;  %v2871_v41 = vpop.f32.mrf.mxu1 }
 0x358   : > { %v2316_v42 = vpop.f32.mrf.mxu0  ;;  %v2321_v43 = vpop.f32.mrf.mxu1 }
 0x35a   : > { %v888_v46 = vpop.f32.mrf.mxu1  ;;  %v2874_v47 = vpop.f32.mrf.mxu0 }
 0x35c   : > { %v2322_v48 = vpop.f32.mrf.mxu1  ;;  %v2327_v49 = vpop.f32.mrf.mxu0 }
 0x35e   : > { %v936_v51 = vpop.f32.mrf.mxu0  ;;  %v2877_v39 = vpop.f32.mrf.mxu1 }
 0x360   : > { %v2328_v44 = vpop.f32.mrf.mxu0  ;;  %v2333_v52 = vpop.f32.mrf.mxu1 }
 0x362   : > { %v984_v53 = vpop.f32.mrf.mxu1 }
 0x364   : > { %v2334_v50 = vpop.f32.mrf.mxu1 }
 0x38f   : > { %v2879_v54 = vpop.f32.mrf.mxu0 }
 0x391   : > { %v2339_v55 = vpop.f32.mrf.mxu0 }
 0x393   : > { %v1032_v56 = vpop.f32.mrf.mxu0  ;;  %v2881_v57 = vpop.f32.mrf.mxu1 }
 0x395   : > { %v2340_v58 = vpop.f32.mrf.mxu0  ;;  %v2345_v59 = vpop.f32.mrf.mxu1 }
 0x397   : > { %v1080_v61 = vpop.f32.mrf.mxu1  ;;  %v1137_v62 = vpop.f32.mrf.mxu0 }
 0x398   : > { %v1138_v63 = vadd.f32 %v2166_v60, %v1137_v62 }
 0x399   : > { %v2346_v1 = vpop.f32.mrf.mxu1  ;;  %v2351_v2 = vpop.f32.mrf.mxu0 }
 0x39a   : > { %v1493_v3 = vsel %vm198_vm1, %v1138_v63, -inf }
 0x39b   : > { %v1187_v6 = vpop.f32.mrf.mxu1  ;;  %1494 = vmax.xlane.f32.xlu0 %v1493_v3  ;;  %v1140_v9 = vpop.f32.mrf.mxu0 }
 0x39c   : > { %v1188_v10 = vadd.f32 %v2166_v60, %v1187_v6 }
 0x39d   : > { %v2352_v13 = vpop.f32.mrf.mxu0  ;;  %v2357_v14 = vpop.f32.mrf.mxu1 }
 0x39e   : > { %v1496_v17 = vsel %vm198_vm1, %v1188_v10, -inf }
 0x39f   : > { %1497 = vmax.xlane.f32.xlu1 %v1496_v17  ;;  %v1190_v18 = vpop.f32.mrf.mxu1  ;;  %v1237_v19 = vpop.f32.mrf.mxu0 }
 0x3a0   : > { %v1238_v20 = vadd.f32 %v2166_v60, %v1237_v19 }
 0x3a1   : > { %v2358_v21 = vpop.f32.mrf.mxu1  ;;  %v2363_v22 = vpop.f32.mrf.mxu0 }
 0x3a2   : > { %v1499_v23 = vsel %vm198_vm1, %v1238_v20, -inf }
 0x3a3   : > { %v1287_v24 = vpop.f32.mrf.mxu1  ;;  %1500 = vmax.xlane.f32.xlu0 %v1499_v23  ;;  %v1240_v25 = vpop.f32.mrf.mxu0 }
 0x3a4   : > { %v1288_v26 = vadd.f32 %v2166_v60, %v1287_v24 }
 0x3a5   : > { %v2364_v27 = vpop.f32.mrf.mxu0  ;;  %v2369_v4 = vpop.f32.mrf.mxu1 }
 0x3a6   : > { %v1502_v29 = vsel %vm198_vm1, %v1288_v26, -inf }
 0x3a7   : > { %v1290_v30 = vpop.f32.mrf.mxu1  ;;  %1503 = vmax.xlane.f32.xlu0 %v1502_v29  ;;  %v1337_v34 = vpop.f32.mrf.mxu0 }
 0x3a8   : > { %v2890_v35 = vadd.f32 %v2166_v60, %v1337_v34 }
 0x3a9   : > { %v2370_v36 = vpop.f32.mrf.mxu1  ;;  %v2375_v37 = vpop.f32.mrf.mxu0 }
 0x3aa   : > { %v1505_v38 = vsel %vm198_vm1, %v2890_v35, -inf }
 0x3ab   : > { %v1387_v40 = vpop.f32.mrf.mxu1  ;;  %1506 = vmax.xlane.f32.xlu1 %v1505_v38  ;;  %v1340_v32 = vpop.f32.mrf.mxu0 }
 0x3ac   : > { %v2894_v42 = vadd.f32 %v2166_v60, %v1387_v40 }
 0x3ad   : > { %v2376_v43 = vpop.f32.mrf.mxu0  ;;  %v2381_v45 = vpop.f32.mrf.mxu1 }
 0x3ae   : > { %v1508_v46 = vsel %vm198_vm1, %v2894_v42, -inf }
 0x3af   : > { %v1390_v48 = vpop.f32.mrf.mxu1  ;;  %1509 = vmax.xlane.f32.xlu0 %v1508_v46  ;;  %v1437_v49 = vpop.f32.mrf.mxu0 }
 0x3b0   : > { %v1438_v51 = vadd.f32 %v2166_v60, %v1437_v49 }
 0x3b1   : > { %v2382_v44 = vpop.f32.mrf.mxu1  ;;  %v2387_v52 = vpop.f32.mrf.mxu0 }
 0x3b2   : > { %v1511_v53 = vsel %vm198_vm1, %v1438_v51, -inf }
 0x3b3   : > { %v1487_v50 = vpop.f32.mrf.mxu1  ;;  %1512 = vmax.xlane.f32.xlu1 %v1511_v53  ;;  %v1440_v55 = vpop.f32.mrf.mxu0 }
 0x3b4   : > { %v1488_v56 = vadd.f32 %v2166_v60, %v1487_v50 }
 0x3b5   : > { %v2393_v58 = vpop.f32.mrf.mxu1  ;;  %v2388_v59 = vpop.f32.mrf.mxu0 }
 0x3b6   : > { %v1514_v61 = vsel %vm198_vm1, %v1488_v56, -inf }
 0x3b7   : > { %1515 = vmax.xlane.f32.xlu0 %v1514_v61  ;;  %v1490_v62 = vpop.f32.mrf.mxu1 }
 0x3b9   : > { %v2394_v1 = vpop.f32.mrf.mxu1 }
 0x3c4   : > { %1685 = vrot.lane.b32.xlu1 %v2628_v5, %s2577_s23 }
 0x3c8   : > { %1733 = vrot.lane.b32.xlu1 %v2634_v8, %s2577_s23 }
 0x3cd   : > { %1637 = vrot.lane.b32.xlu0 %v2631_v7, %s2577_s23 }
 0x424   : > { %v1495_v2 = vpop.xlane.xlu0 %1494 }
 0x425   : > { %v1517_v3 = vsub.f32 %v1138_v63, %v1495_v2 }
 0x427   : > { %v1525_v6 = vmul.f32 1.442695, %v1517_v3 }
 0x428   : > { %v1498_v60 = vpop.xlane.xlu1 %1497 }
 0x429   : > { %2515 = vpow2.f32 %v1525_v6  ;;  %v1518_v9 = vsub.f32 %v1188_v10, %v1498_v60 }
 0x42b   : > { %v1527_v13 = vmul.f32 1.442695, %v1518_v9 }
 0x42c   : > { %v1501_v14 = vpop.xlane.xlu0 %1500 }
 0x42d   : > { %2517 = vpow2.f32 %v1527_v13  ;;  %v1519_v17 = vsub.f32 %v1238_v20, %v1501_v14 }
 0x42f   : > { %v1529_v18 = vmul.f32 1.442695, %v1519_v17 }
 0x430   : > { %v1504_v19 = vpop.xlane.xlu0 %1503 }
 0x431   : > { %2519 = vpow2.f32 %v1529_v18  ;;  %v1520_v5 = vsub.f32 %v1288_v26, %v1504_v19 }
 0x433   : > { %v1531_v21 = vmul.f32 1.442695, %v1520_v5 }
 0x434   : > { %v1507_v29 = vpop.xlane.xlu1 %1506 }
 0x435   : > { %2521 = vpow2.f32 %v1531_v21  ;;  %v1521_v30 = vsub.f32 %v2890_v35, %v1507_v29 }
 0x436   : > { %v2516_v8 = vpop.eup %2515 }
 0x437   : > { %v1541_v22 = vsel %vm198_vm1, %v2516_v8, 0.0  ;;  %v1533_v37 = vmul.f32 1.442695, %v1521_v30 }
 0x438   : > { %1542 = vadd.xlane.f32.xlu1 %v1541_v22  ;;  %v1510_v23 = vpop.xlane.xlu0 %1509 }
 0x439   : > { %v1522_v36 = vsub.f32 %v2894_v42, %v1510_v23  ;;  %2523 = vpow2.f32 %v1533_v37 }
 0x43a   : > { %v2518_v7 = vpop.eup %2517 }
 0x43b   : > { %v1544_v63 = vsel %vm198_vm1, %v2518_v7, 0.0  ;;  %v1535_v40 = vmul.f32 1.442695, %v1522_v36 }
 0x43c   : > { %1545 = vadd.xlane.f32.xlu0 %v1544_v63  ;;  %v1513_v34 = vpop.xlane.xlu1 %1512 }
 0x43d   : > { %v1523_v38 = vsub.f32 %v1438_v51, %v1513_v34  ;;  %2525 = vpow2.f32 %v1535_v40 }
 0x43e   : > { %v2908_v10 = vpop.eup %2519 }
 0x43f   : > { %v1547_v20 = vsel %vm198_vm1, %v2908_v10, 0.0  ;;  %v1537_v32 = vmul.f32 1.442695, %v1523_v38 }
 0x440   : > { %1548 = vadd.xlane.f32.xlu1 %v1547_v20  ;;  %v1516_v24 = vpop.xlane.xlu0 %1515  ;;  %v1686_v44 = vpop.permute.xlu1 %1685 }
 0x441   : > { %v1524_v43 = vsub.f32 %v1488_v56, %v1516_v24  ;;  %2527 = vpow2.f32 %v1537_v32  ;;  %v1691_v1 = vsel %vm703_vm2, %v1686_v44, 0 }
 0x442   : > { %v2912_v25 = vpop.eup %2521 }
 0x443   : > { %v1550_v26 = vsel %vm198_vm1, %v2912_v25, 0.0  ;;  %v1539_v45 = vmul.f32 1.442695, %v1524_v43 }
 0x444   : > { %1551 = vadd.xlane.f32.xlu0 %v1550_v26  ;;  %v1638_v27 = vpop.permute.xlu0 %1637  ;;  %v1734_v52 = vpop.permute.xlu1 %1733 }
 0x445   : > { %v1643_v4 = vsel %vm703_vm2, %v1638_v27, 0  ;;  %2529 = vpow2.f32 %v1539_v45  ;;  %v1739_v3 = vsel %vm703_vm2, %v1734_v52, 0 }
 0x446   : > { %2402 = vmatpush3.bf16.msra.mxu1 %v1643_v4 }
 0x447   : > { %2413 = vmatprep.subr.bf16.mxu1 %v2571_v0 }
 0x451   : > { %1829 = vrot.lane.b32.xlu1 %v2640_v12, %s2577_s23  ;;  %v2924_v12 = vpop.eup %2523 }
 0x452   : > { %v2926_v46 = vpop.eup %2525 }
 0x453   : > { %v2930_v35 = vpop.eup %2527  ;;  %v1556_v48 = vsel %vm198_vm1, %v2926_v46, 0.0 }
 0x454   : > { %v1559_v42 = vsel %vm198_vm1, %v2930_v35, 0.0  ;;  %v2936_v49 = vpop.eup %2529 }
 0x455   : > { %v1562_v51 = vsel %vm198_vm1, %v2936_v49, 0.0 }
 0x45a   : > { %1781 = vrot.lane.b32.xlu0 %v2638_v11, %s2577_s23  ;;  %v1553_v11 = vsel %vm198_vm1, %v2924_v12, 0.0 }
 0x475   : > { %1554 = vadd.xlane.f32.xlu1 %v1553_v11 }
 0x479   : > { %1560 = vadd.xlane.f32.xlu1 %v1559_v42  ;;  %1557 = vadd.xlane.f32.xlu0 %v1556_v48 }
 0x47d   : > { %1563 = vadd.xlane.f32.xlu0 %v1562_v51 }
 0x48a   : > { %1925 = vrot.lane.b32.xlu1 %v2646_v16, %s2577_s23 }
 0x493   : > { %1877 = vrot.lane.b32.xlu0 %v2644_v15, %s2577_s23 }
 0x4c1   : > { %v1543_v53 = vpop.xlane.xlu1 %1542 }
 0x4c2   : > { %2531 = vrcp.f32 %v1543_v53 }
 0x4c5   : > { %v1546_v50 = vpop.xlane.xlu0 %1545 }
 0x4c6   : > { %2533 = vrcp.f32 %v1546_v50 }
 0x4c9   : > { %v1549_v55 = vpop.xlane.xlu1 %1548 }
 0x4ca   : > { %2535 = vrcp.f32 %v1549_v55 }
 0x4cd   : > { %v1552_v56 = vpop.xlane.xlu0 %1551  ;;  %v1830_v18 = vpop.permute.xlu1 %1829 }
 0x4ce   : > { %2537 = vrcp.f32 %v1552_v56  ;;  %v1835_v5 = vsel %vm703_vm2, %v1830_v18, 0 }
 0x4cf   : > { %v2532_v58 = vpop.eup %2531 }
 0x4d0   : > { %v1573_v59 = vmul.f32 %v2532_v58, %v2516_v8 }
 0x4d1   : > { %v1782_v60 = vpop.permute.xlu0 %1781 }
 0x4d2   : > { %v1581_v61 = vpack.c.bf16 %v1573_v59, %v1573_v59  ;;  %v1787_v14 = vsel %vm703_vm2, %v1782_v60, 0 }
 0x4d3   : > { %v2534_v62 = vpop.eup %2533 }
 0x4d4   : > { %2398 = vmatmul.mubr.msk.bf16.vlgmr.msra.gmra.mxu0 %vm198_vm1, %v1581_v61  ;;  %v1574_v16 = vmul.f32 %v2534_v62, %v2518_v7 }
 0x4d5   : > { %2408 = vmatpush3.bf16.msra.mxu0 %v1691_v1  ;;  %2409 = vmatprep.mubr.msk.bf16.mxu0 %vm2572_vm0, %v2571_v0 }
 0x4d6   : > { %v1582_v15 = vpack.c.bf16 %v1574_v16, %v1574_v16  ;;  %2419 = vmatprep.subr.bf16.mxu0 %v2571_v0 }
 0x4d7   : > { %v2536_v2 = vpop.eup %2535 }
 0x4d8   : > { %2404 = vmatmul.mubr.msk.bf16.vlgmr.msra.gmra.mxu1 %vm198_vm1, %v1582_v15  ;;  %v1575_v6 = vmul.f32 %v2536_v2, %v2908_v10 }
 0x4d9   : > { %2414 = vmatpush3.bf16.msra.mxu1 %v1739_v3  ;;  %2415 = vmatprep.mubr.msk.bf16.mxu1 %vm2572_vm0, %v2571_v0 }
 0x4da   : > { %v1583_v9 = vpack.c.bf16 %v1575_v6, %v1575_v6  ;;  %2425 = vmatprep.subr.bf16.mxu1 %v2571_v0 }
 0x4db   : > { %v2538_v13 = vpop.eup %2537 }
 0x4dc   : > { %2410 = vmatmul.mubr.msk.bf16.vlgmr.msra.gmra.mxu0 %vm198_vm1, %v1583_v9  ;;  %v1576_v17 = vmul.f32 %v2538_v13, %v2912_v25 }
 0x4dd   : > { %2420 = vmatpush3.bf16.msra.mxu0 %v1787_v14  ;;  %2421 = vmatprep.mubr.msk.bf16.mxu0 %vm2572_vm0, %v2571_v0 }
 0x4de   : > { %v1584_v19 = vpack.c.bf16 %v1576_v17, %v1576_v17  ;;  %2431 = vmatprep.subr.bf16.mxu0 %v2571_v0 }
 0x4e0   : > { %2416 = vmatmul.mubr.msk.bf16.vlgmr.msra.gmra.mxu1 %vm198_vm1, %v1584_v19 }
 0x4e1   : > { %2426 = vmatpush3.bf16.msra.mxu1 %v1835_v5  ;;  %2427 = vmatprep.mubr.msk.bf16.mxu1 %vm2572_vm0, %v2571_v0 }
 0x4e2   : > { %2437 = vmatprep.subr.bf16.mxu1 %v2571_v0 }
 0x4fe   : > { %v1555_v21 = vpop.xlane.xlu1 %1554 }
 0x4ff   : > { %2539 = vrcp.f32 %v1555_v21 }
 0x502   : > { %v1561_v8 = vpop.xlane.xlu1 %1560  ;;  %v1558_v22 = vpop.xlane.xlu0 %1557 }
 0x503   : > { %2541 = vrcp.f32 %v1561_v8 }
 0x504   : > { %2543 = vrcp.f32 %v1558_v22 }
 0x506   : > { %v1564_v7 = vpop.xlane.xlu0 %1563  ;;  %v1926_v27 = vpop.permute.xlu1 %1925 }
 0x507   : > { %2545 = vrcp.f32 %v1564_v7  ;;  %v1931_v30 = vsel %vm703_vm2, %v1926_v27, 0 }
 0x50a   : > { %v1878_v23 = vpop.permute.xlu0 %1877 }
 0x50b   : > { %v1883_v24 = vsel %vm703_vm2, %v1878_v23, 0 }
 0x50c   : > { %v2540_v63 = vpop.eup %2539 }
 0x50d   : > { %v1577_v10 = vmul.f32 %v2540_v63, %v2924_v12  ;;  %v1083_v63 = vpack.c.bf16 %v2865_v28, %v2865_v28  ;;  %v1084_v28 = vpack.c.bf16 %v2867_v33, %v2867_v33 }
 0x50f   : > { %v1585_v20 = vpack.c.bf16 %v1577_v10, %v1577_v10 }
 0x510   : > { %v2542_v25 = vpop.eup %2541 }
 0x511   : > { %v2544_v26 = vpop.eup %2543  ;;  %2422 = vmatmul.mubr.msk.bf16.vlgmr.msra.gmra.mxu0 %vm198_vm1, %v1585_v20  ;;  %v1579_v29 = vmul.f32 %v2542_v25, %v2930_v35  ;;  %v1085_v25 = vpack.c.bf16 %v2869_v31, %v2869_v31 }
 0x512   : > { %v1578_v4 = vmul.f32 %v2544_v26, %v2926_v46  ;;  %2432 = vmatpush3.bf16.msra.mxu0 %v1883_v24  ;;  %2433 = vmatprep.mubr.msk.bf16.mxu0 %vm2572_vm0, %v2571_v0 }
 0x513   : > { %v1587_v37 = vpack.c.bf16 %v1579_v29, %v1579_v29 }
 0x514   : > { %v1586_v34 = vpack.c.bf16 %v1578_v4, %v1578_v4  ;;  %v2546_v36 = vpop.eup %2545  ;;  %v1086_v4 = vpack.c.bf16 %v2871_v41, %v2871_v41 }
 0x515   : > { %v1580_v38 = vmul.f32 %v2546_v36, %v2936_v49  ;;  %v1088_v36 = vpack.c.bf16 %v2877_v39, %v2877_v39 }
 0x516   : > { %2428 = vmatmul.mubr.msk.bf16.vlgmr.msra.gmra.mxu1 %vm198_vm1, %v1586_v34 }
 0x517   : > { %2438 = vmatpush3.bf16.msra.mxu1 %v1931_v30  ;;  %2439 = vmatprep.mubr.msk.bf16.mxu1 %vm2572_vm0, %v2571_v0  ;;  %v1588_v40 = vpack.c.bf16 %v1580_v38, %v1580_v38  ;;  %v1087_v30 = vpack.c.bf16 %v2874_v47, %v2874_v47  ;;  %v1089_v38 = vpack.c.bf16 %v2879_v54, %v2879_v54 }
 0x518   : > { %v1090_v47 = vpack.c.bf16 %v2881_v57, %v2881_v57 }
 0x519   : > { %2434 = vmatmul.mubr.msk.bf16.vlgmr.msra.gmra.mxu0 %vm198_vm1, %v1587_v37 }
 0x51e   : > { %2440 = vmatmul.mubr.msk.bf16.vlgmr.msra.gmra.mxu1 %vm198_vm1, %v1588_v40 }
 0x594   : > { %v1631_v32 = vpop.f32.mrf.mxu0 }
 0x595   : > { %v1973_v43 = vpack.c.bf16 %v1631_v32, %v1631_v32 }
 0x596   : > { %v2399_v45 = vpop.f32.mrf.mxu0 }
 0x597   : > { %1989 = vrot.lane.b32.xlu0 %v1973_v43, %s2578_s26 }
 0x598   : > { %v1634_v12 = vpop.f32.mrf.mxu0  ;;  %v1679_v46 = vpop.f32.mrf.mxu1 }
 0x599   : > { %v1974_v11 = vpack.c.bf16 %v1679_v46, %v1679_v46 }
 0x59a   : > { %v2400_v35 = vpop.f32.mrf.mxu0  ;;  %v2405_v42 = vpop.f32.mrf.mxu1 }
 0x59b   : > { %1991 = vrot.lane.b32.xlu1 %v1974_v11, %s2578_s26 }
 0x59c   : > { %v1682_v0 = vpop.f32.mrf.mxu1  ;;  %v1727_v48 = vpop.f32.mrf.mxu0 }
 0x59d   : > { %v1975_v49 = vpack.c.bf16 %v1727_v48, %v1727_v48 }
 0x59e   : > { %v2406_v51 = vpop.f32.mrf.mxu1  ;;  %v2411_v44 = vpop.f32.mrf.mxu0 }
 0x59f   : > { %1993 = vrot.lane.b32.xlu0 %v1975_v49, %s2578_s26 }
 0x5a0   : > { %v1730_v52 = vpop.f32.mrf.mxu0  ;;  %v1775_v53 = vpop.f32.mrf.mxu1 }
 0x5a1   : > { %v1976_v50 = vpack.c.bf16 %v1775_v53, %v1775_v53 }
 0x5a2   : > { %v2412_v55 = vpop.f32.mrf.mxu0  ;;  %v2417_v56 = vpop.f32.mrf.mxu1 }
 0x5a3   : > { %1995 = vrot.lane.b32.xlu1 %v1976_v50, %s2578_s26 }
 0x5a4   : > { %v1778_v58 = vpop.f32.mrf.mxu1 }
 0x5a6   : > { %v2418_v59 = vpop.f32.mrf.mxu1 }
 0x5d1   : > { %v1823_v61 = vpop.f32.mrf.mxu0 }
 0x5d2   : > { %v1977_v62 = vpack.c.bf16 %v1823_v61, %v1823_v61 }
 0x5d3   : > { %v2423_v1 = vpop.f32.mrf.mxu0 }
 0x5d4   : > { %1997 = vrot.lane.b32.xlu0 %v1977_v62, %s2578_s26 }
 0x5d5   : > { %v1826_v16 = vpop.f32.mrf.mxu0 }
 0x5d6   : > { %v1871_v15 = vpop.f32.mrf.mxu1 }
 0x5d7   : > { %v1978_v2 = vpack.c.bf16 %v1871_v15, %v1871_v15  ;;  %v2424_v3 = vpop.f32.mrf.mxu0 }
 0x5d8   : > { %v2429_v6 = vpop.f32.mrf.mxu1 }
 0x5d9   : > { %1999 = vrot.lane.b32.xlu1 %v1978_v2, %s2578_s26  ;;  %v1919_v60 = vpop.f32.mrf.mxu0 }
 0x5da   : > { %v1874_v9 = vpop.f32.mrf.mxu1  ;;  %v1979_v13 = vpack.c.bf16 %v1919_v60, %v1919_v60 }
 0x5db   : > { %v2435_v14 = vpop.f32.mrf.mxu0 }
 0x5dc   : > { %v2430_v17 = vpop.f32.mrf.mxu1  ;;  %2001 = vrot.lane.b32.xlu0 %v1979_v13, %s2578_s26 }
 0x5dd   : > { %v1922_v18 = vpop.f32.mrf.mxu0 }
 0x5de   : > { %v1967_v19 = vpop.f32.mrf.mxu1 }
 0x5df   : > { %v1980_v5 = vpack.c.bf16 %v1967_v19, %v1967_v19  ;;  %v2436_v21 = vpop.f32.mrf.mxu0 }
 0x5e0   : > { %v2441_v8 = vpop.f32.mrf.mxu1 }
 0x5e1   : > { %2003 = vrot.lane.b32.xlu1 %v1980_v5, %s2578_s26 }
 0x5e2   : > { %v1970_v22 = vpop.f32.mrf.mxu1 }
 0x5e4   : > { %v2442_v7 = vpop.f32.mrf.mxu1 }
 0x609   : > { %v1990_v23 = vpop.permute.xlu0 %1989 }
 0x60a   : > { %v2007_v10 = vsel %vm198_vm1, %v1083_v63, %v1990_v23 }
 0x60b   : > { %2038 = vst.msk [vmem:[%s2995_s29] sm:$0xf] %vm2037_vm3, %v2007_v10 }
 0x60d   : > { %v1992_v20 = vpop.permute.xlu1 %1991 }
 0x60e   : > { %v2011_v24 = vsel %vm198_vm1, %v1084_v28, %v1992_v20 }
 0x60f   : > { %2039 = vst.msk [vmem:[%s2995_s29 + $0x4] sm:$0xf] %vm2037_vm3, %v2011_v24 }
 0x611   : > { %v1994_v26 = vpop.permute.xlu0 %1993 }
 0x612   : > { %v2015_v27 = vsel %vm198_vm1, %v1085_v25, %v1994_v26 }
 0x613   : > { %2040 = vst.msk [vmem:[%s2995_s29 + $0x8] sm:$0xf] %vm2037_vm3, %v2015_v27 }
 0x615   : > { %v1996_v29 = vpop.permute.xlu1 %1995 }
 0x616   : > { %v2019_v33 = vsel %vm198_vm1, %v1086_v4, %v1996_v29 }
 0x617   : > { %2041 = vst.msk [vmem:[%s2995_s29 + $0xc] sm:$0xf] %vm2037_vm3, %v2019_v33 }
 0x646   : > { %v1998_v31 = vpop.permute.xlu0 %1997 }
 0x647   : > { %v2023_v34 = vsel %vm198_vm1, %v1087_v30, %v1998_v31 }
 0x648   : > { %2042 = vst.msk [vmem:[%s2995_s29 + $0x10] sm:$0xf] %vm2037_vm3, %v2023_v34 }
 0x64b   : > { %v2000_v37 = vpop.permute.xlu1 %1999 }
 0x64c   : > { %v2027_v41 = vsel %vm198_vm1, %v1088_v36, %v2000_v37 }
 0x64d   : > { %2043 = vst.msk [vmem:[%s2995_s29 + $0x14] sm:$0xf] %vm2037_vm3, %v2027_v41 }
 0x64e   : > { %v2002_v40 = vpop.permute.xlu0 %2001 }
 0x64f   : > { %v2031_v32 = vsel %vm198_vm1, %v1089_v38, %v2002_v40 }
 0x650   : > { %2044 = vst.msk [vmem:[%s2995_s29 + $0x18] sm:$0xf] %vm2037_vm3, %v2031_v32 }
 0x653   : > { %v2004_v43 = vpop.permute.xlu1 %2003 }
 0x654   : > { %v2035_v45 = vsel %vm198_vm1, %v1090_v47, %v2004_v43 }
 0x655   : > { %2045 = vst.msk [vmem:[%s2995_s29 + $0x1c] sm:$0xf] %vm2037_vm3, %v2035_v45 }
 0x656 PF: > { %s12_s11 = sadd.s32 1, %s2569_s11   ;;  %s3047_s9 = smov %s2565_s10 }
 0x657   : > { %p9_p5 = scmp.ge.s32.totalorder %s12_s11, 4   ;;  %s3048_s10 = smov %s3050_s12 }
 0x659   :  { %11 = sbr.rel (!%p9_p5) target bundleno = 2 (0x2), region = 59 }

// kernel: swin3d_forward.28
= control target key start
LH: loop header
LB: loop body
LE: loop exit
PB: predicated region body
PF: predicated region fallthrough
CT: control target
= control target key end

     0   :  { %s1081_s18 = smov 0   ;;  %s1083_s19 = smov 0   ;;  %s1354_s0 = inlined_call_operand.vmem [shape: bf16[128,16], index: 0, kind: input, shape index: {}]   ;;  %s1355_s1 = inlined_call_operand.vmem [shape: bf16[16,64], index: 1, kind: input, shape index: {}]   ;;  %s1356_s2 = inlined_call_operand.vmem [shape: f32[1,64], index: 2, kind: input, shape index: {}]   ;;  %s1357_s3 = inlined_call_operand.vmem [shape: f32[1,16], index: 3, kind: input, shape index: {}]   ;;  %s1358_s4 = inlined_call_operand.vmem [shape: f32[1,16], index: 4, kind: input, shape index: {}]   ;;  %s1359_s5 = inlined_call_operand.vmem [shape: bf16[128,64], index: 5, kind: output, shape index: {}]  }
   0x1   :  { %s1085_s20 = smov 0  }
   0x2 LB: > { %s27_s21 = sadd.s32 1, %s1044_s19  ;;  %p885_p0 = scmp.ge.s32.totalorder %s1048_s20, 1  ;;  %s1048_s20 = sphi %s1085_s20, %s15_s20   ;;  %s1044_s19 = sphi %s1083_s19, %s1361_s19   ;;  %s1040_s18 = sphi %s1081_s18, %s1360_s18  }
   0x3   : > { %p29_p1 = scmp.ge.s32.totalorder %s27_s21, 2  ;;  %p219_p2 = scmp.lt.s32.totalorder %s1048_s20, 3 }
   0x5   : > { %s1363_s21 = smov (%p29_p1, %s27_s21), 0  ;;  %p220_p3 = pnand %p885_p0, %p219_p2 }
   0x6   : > { %s886_s22 = sshll.u32 (!%p220_p3), %s1040_s18, 3 }
   0x7   : > { %223 = sbr.rel (%p220_p3) target bundleno = 606 (0x25e), region = 40  ;;  %p258_p4 = scmp.lt.s32.totalorder (!%p220_p3), %s886_s22, 15 }
   0xc   : > { %s1365_s22 = smov (!%p258_p4, %s886_s22), 15  ;;  %vm296_vm0 = vcmask 130048   ;;  %v977_v60 = vld [vmem:[%s1355_s1] sm:$0xff]   ;;  %vm768_vm5 = vcmask 519168  }
   0xd   : > { %s887_s23 = sshll.u32 %s1365_s22, 2  ;;  %940 = vmatprep.subr.bf16.mxu0 %v977_v60  ;;  %950 = vmatprep.subr.bf16.mxu1 %v977_v60 }
   0xe   : > { %s261_s26 = scalar_lea.vmem %s1354_s0, %s887_s23  ;;  %941 = vmatpush3.bf16.msra.mxu0 %v977_v60  ;;  %951 = vmatpush3.bf16.msra.mxu1 %v977_v60  ;;  %s1301_s12 = scalar_lea.vmem %s1359_s5, %s887_s23 }
   0xf   : > { %v917_v0 = vld [vmem:[%s261_s26] sm:$0xff]   ;;  %v933_v1 = vld [vmem:[%s261_s26 + $0x10] sm:$0xff]   ;;  %v932_v6 = vld [vmem:[%s261_s26 + $0x8] sm:$0xff]  }
  0x10   : > { %v918_v2 = vunpack.c.l.bf16 %v917_v0  ;;  %v926_v3 = vunpack.c.l.bf16 %v933_v1  ;;  %v919_v4 = vunpack.c.h.bf16 %v917_v0  ;;  %v927_v5 = vunpack.c.h.bf16 %v933_v1  ;;  %v934_v13 = vld [vmem:[%s261_s26 + $0x18] sm:$0xff]  }
  0x11   : > { %v922_v11 = vunpack.c.l.bf16 %v932_v6  ;;  %v923_v12 = vunpack.c.h.bf16 %v932_v6  ;;  %v930_v16 = vunpack.c.l.bf16 %v934_v13  ;;  %v931_v17 = vunpack.c.h.bf16 %v934_v13 }
  0x12   : > { %v297_v7 = vsel %vm296_vm0, %v918_v2, 0.0  ;;  %v309_v8 = vsel %vm296_vm0, %v926_v3, 0.0  ;;  %v300_v9 = vsel %vm296_vm0, %v919_v4, 0.0  ;;  %v312_v10 = vsel %vm296_vm0, %v927_v5, 0.0 }
  0x13   : > { %298 = vadd.xlane.f32.xlu0 %v297_v7  ;;  %310 = vadd.xlane.f32.xlu1 %v309_v8  ;;  %v303_v14 = vsel %vm296_vm0, %v922_v11, 0.0  ;;  %v306_v15 = vsel %vm296_vm0, %v923_v12, 0.0  ;;  %v315_v18 = vsel %vm296_vm0, %v930_v16, 0.0  ;;  %v318_v19 = vsel %vm296_vm0, %v931_v17, 0.0 }
  0x17   : > { %301 = vadd.xlane.f32.xlu0 %v300_v9  ;;  %313 = vadd.xlane.f32.xlu1 %v312_v10 }
  0x1b   : > { %304 = vadd.xlane.f32.xlu0 %v303_v14  ;;  %307 = vadd.xlane.f32.xlu1 %v306_v15 }
  0x1f   : > { %316 = vadd.xlane.f32.xlu0 %v315_v18  ;;  %319 = vadd.xlane.f32.xlu1 %v318_v19 }
  0x9c   : > { %v299_v20 = vpop.xlane.xlu0 %298  ;;  %v311_v21 = vpop.xlane.xlu1 %310 }
  0x9d   : > { %v322_v22 = vmul.f32 0.0625, %v299_v20  ;;  %v326_v23 = vmul.f32 0.0625, %v311_v21 }
  0x9f   : > { %v1115_v24 = vsub.f32 %v918_v2, %v322_v22  ;;  %v1117_v25 = vsub.f32 %v926_v3, %v326_v23  ;;  %v890_v23 = vld [vmem:[%s1357_s3] ss:$0 sm:$0xff] }
  0xa0   : > { %v302_v26 = vpop.xlane.xlu0 %301  ;;  %v314_v27 = vpop.xlane.xlu1 %313 }
  0xa1   : > { %v323_v28 = vmul.f32 0.0625, %v302_v26  ;;  %v327_v29 = vmul.f32 0.0625, %v314_v27  ;;  %v338_v30 = vmul.f32 %v1115_v24, %v1115_v24  ;;  %v342_v31 = vmul.f32 %v1117_v25, %v1117_v25 }
  0xa3   : > { %v1123_v32 = vsub.f32 %v919_v4, %v323_v28  ;;  %v1125_v33 = vsub.f32 %v927_v5, %v327_v29  ;;  %v346_v34 = vsel %vm296_vm0, %v338_v30, 0.0  ;;  %v358_v37 = vsel %vm296_vm0, %v342_v31, 0.0  ;;  %v891_v30 = vld [vmem:[%s1358_s4] ss:$0 sm:$0xff] }
  0xa4   : > { %347 = vadd.xlane.f32.xlu0 %v346_v34  ;;  %v305_v35 = vpop.xlane.xlu0 %304  ;;  %v308_v36 = vpop.xlane.xlu1 %307 }
  0xa5   : > { %v324_v38 = vmul.f32 0.0625, %v305_v35  ;;  %v325_v39 = vmul.f32 0.0625, %v308_v36  ;;  %v339_v40 = vmul.f32 %v1123_v32, %v1123_v32  ;;  %v343_v41 = vmul.f32 %v1125_v33, %v1125_v33 }
  0xa7   : > { %v1133_v42 = vsub.f32 %v922_v11, %v324_v38  ;;  %v1135_v43 = vsub.f32 %v923_v12, %v325_v39  ;;  %v349_v44 = vsel %vm296_vm0, %v339_v40, 0.0  ;;  %v361_v47 = vsel %vm296_vm0, %v343_v41, 0.0 }
  0xa8   : > { %359 = vadd.xlane.f32.xlu0 %v358_v37  ;;  %350 = vadd.xlane.f32.xlu1 %v349_v44  ;;  %v317_v45 = vpop.xlane.xlu0 %316  ;;  %v320_v46 = vpop.xlane.xlu1 %319 }
  0xa9   : > { %v328_v48 = vmul.f32 0.0625, %v317_v45  ;;  %v329_v49 = vmul.f32 0.0625, %v320_v46  ;;  %v340_v50 = vmul.f32 %v1133_v42, %v1133_v42  ;;  %v341_v51 = vmul.f32 %v1135_v43, %v1135_v43 }
  0xab   : > { %v1143_v52 = vsub.f32 %v930_v16, %v328_v48  ;;  %v1145_v53 = vsub.f32 %v931_v17, %v329_v49  ;;  %v352_v54 = vsel %vm296_vm0, %v340_v50, 0.0  ;;  %v355_v55 = vsel %vm296_vm0, %v341_v51, 0.0 }
  0xac   : > { %362 = vadd.xlane.f32.xlu1 %v361_v47  ;;  %353 = vadd.xlane.f32.xlu0 %v352_v54 }
  0xad   : > { %v344_v56 = vmul.f32 %v1143_v52, %v1143_v52  ;;  %v345_v57 = vmul.f32 %v1145_v53, %v1145_v53 }
  0xaf   : > { %v364_v58 = vsel %vm296_vm0, %v344_v56, 0.0  ;;  %v367_v59 = vsel %vm296_vm0, %v345_v57, 0.0 }
  0xb0   : > { %356 = vadd.xlane.f32.xlu1 %v355_v55  ;;  %365 = vadd.xlane.f32.xlu0 %v364_v58 }
  0xb4   : > { %368 = vadd.xlane.f32.xlu1 %v367_v59 }
 0x12d   : > { %v348_v61 = vpop.xlane.xlu0 %347 }
 0x12e   : > { %v370_v62 = vmul.f32 0.0625, %v348_v61 }
 0x130   : > { %v378_v63 = vadd.f32 1e-05, %v370_v62 }
 0x131   : > { %v351_v0 = vpop.xlane.xlu1 %350  ;;  %v360_v1 = vpop.xlane.xlu0 %359 }
 0x132   : > { %978 = vrsqrt.f32 %v378_v63  ;;  %v371_v2 = vmul.f32 0.0625, %v351_v0  ;;  %v374_v3 = vmul.f32 0.0625, %v360_v1 }
 0x134   : > { %v379_v4 = vadd.f32 1e-05, %v371_v2  ;;  %v382_v5 = vadd.f32 1e-05, %v374_v3 }
 0x135   : > { %v363_v6 = vpop.xlane.xlu1 %362  ;;  %v354_v7 = vpop.xlane.xlu0 %353 }
 0x136   : > { %980 = vrsqrt.f32 %v379_v4  ;;  %v375_v8 = vmul.f32 0.0625, %v363_v6  ;;  %v372_v9 = vmul.f32 0.0625, %v354_v7 }
 0x137   : > { %982 = vrsqrt.f32 %v382_v5 }
 0x138   : > { %v383_v10 = vadd.f32 1e-05, %v375_v8  ;;  %v380_v11 = vadd.f32 1e-05, %v372_v9 }
 0x139   : > { %v357_v12 = vpop.xlane.xlu1 %356  ;;  %v366_v13 = vpop.xlane.xlu0 %365 }
 0x13a   : > { %984 = vrsqrt.f32 %v383_v10  ;;  %v373_v14 = vmul.f32 0.0625, %v357_v12  ;;  %v376_v15 = vmul.f32 0.0625, %v366_v13 }
 0x13b   : > { %986 = vrsqrt.f32 %v380_v11 }
 0x13c   : > { %v381_v16 = vadd.f32 1e-05, %v373_v14  ;;  %v384_v17 = vadd.f32 1e-05, %v376_v15 }
 0x13d   : > { %v369_v18 = vpop.xlane.xlu1 %368 }
 0x13e   : > { %988 = vrsqrt.f32 %v381_v16  ;;  %v377_v19 = vmul.f32 0.0625, %v369_v18 }
 0x13f   : > { %v979_v20 = vpop.eup %978  ;;  %990 = vrsqrt.f32 %v384_v17 }
 0x140   : > { %v385_v21 = vadd.f32 1e-05, %v377_v19  ;;  %v394_v22 = vmul.f32 %v979_v20, %v1115_v24 }
 0x142   : > { %992 = vrsqrt.f32 %v385_v21  ;;  %v409_v29 = vmul.f32 %v890_v23, %v394_v22 }
 0x143   : > { %v981_v26 = vpop.eup %980 }
 0x144   : > { %v983_v27 = vpop.eup %982  ;;  %v395_v28 = vmul.f32 %v981_v26, %v1123_v32  ;;  %v424_v24 = vadd.f32 %v891_v30, %v409_v29 }
 0x145   : > { %v398_v31 = vmul.f32 %v983_v27, %v1117_v25 }
 0x146   : > { %v410_v34 = vmul.f32 %v890_v23, %v395_v28 }
 0x147   : > { %v985_v35 = vpop.eup %984  ;;  %v413_v39 = vmul.f32 %v890_v23, %v398_v31 }
 0x148   : > { %v987_v36 = vpop.eup %986  ;;  %v425_v37 = vadd.f32 %v891_v30, %v410_v34  ;;  %v399_v38 = vmul.f32 %v985_v35, %v1125_v33 }
 0x149   : > { %v396_v40 = vmul.f32 %v987_v36, %v1133_v42  ;;  %v428_v46 = vadd.f32 %v891_v30, %v413_v39 }
 0x14a   : > { %v432_v41 = vpack.c.bf16 %v425_v37, %v424_v24  ;;  %v414_v44 = vmul.f32 %v890_v23, %v399_v38 }
 0x14b   : > { %v989_v32 = vpop.eup %988  ;;  %v411_v48 = vmul.f32 %v890_v23, %v396_v40 }
 0x14c   : > { %v991_v45 = vpop.eup %990  ;;  %942 = vmatprep.mubr.msk.bf16.mxu0 %vm296_vm0, %v432_v41  ;;  %v429_v47 = vadd.f32 %v891_v30, %v414_v44  ;;  %v397_v25 = vmul.f32 %v989_v32, %v1135_v43 }
 0x14d   : > { %v400_v49 = vmul.f32 %v991_v45, %v1143_v52  ;;  %v426_v33 = vadd.f32 %v891_v30, %v411_v48  ;;  %v892_v52 = vld [vmem:[%s1356_s2] ss:$0 sm:$0xff] }
 0x14e   : > { %v434_v50 = vpack.c.bf16 %v429_v47, %v428_v46  ;;  %v412_v51 = vmul.f32 %v890_v23, %v397_v25 }
 0x14f   : > { %v993_v54 = vpop.eup %992  ;;  %v415_v56 = vmul.f32 %v890_v23, %v400_v49 }
 0x150   : > { %946 = vmatprep.mubr.msk.bf16.mxu1 %vm296_vm0, %v434_v50  ;;  %v427_v42 = vadd.f32 %v891_v30, %v412_v51  ;;  %v401_v55 = vmul.f32 %v993_v54, %v1145_v53 }
 0x151   : > { %v430_v59 = vadd.f32 %v891_v30, %v415_v56  ;;  %v1050_v56 = vmov -1.0  }
 0x152   : > { %v433_v57 = vpack.c.bf16 %v427_v42, %v426_v33  ;;  %v416_v58 = vmul.f32 %v890_v23, %v401_v55 }
 0x154   : > { %943 = vmatmul.mubr.msk.bf16.vlgmr.msra.gmra.mxu0 %vm296_vm0, %v433_v57  ;;  %v431_v60 = vadd.f32 %v891_v30, %v416_v58 }
 0x156   : > { %v435_v43 = vpack.c.bf16 %v431_v60, %v430_v59 }
 0x158   : > { %947 = vmatmul.mubr.msk.bf16.vlgmr.msra.gmra.mxu1 %vm296_vm0, %v435_v43 }
 0x214   : > { %v944_v61 = vpop.f32.mrf.mxu0 }
 0x215   : > { %v506_v62 = vadd.f32 %v944_v61, %v892_v52 }
 0x216   : > { %v497_v63 = vpop.f32.mrf.mxu0 }
 0x217   : > { %v1179_v0 = vmul.f32 0.70710677, %v506_v62  ;;  %v498_v53 = vadd.f32 %v892_v52, %v497_v63  ;;  %v1211_v39 = vmul.f32 0.5, %v506_v62 }
 0x218   : > { %v945_v1 = vpop.f32.mrf.mxu0  ;;  %v948_v2 = vpop.f32.mrf.mxu1 }
 0x219   : > { %v554_v3 = vand.u32 2147483647, %v1179_v0  ;;  %v528_v4 = vmul.f32 0.70710677, %v498_v53  ;;  %v1182_v5 = vadd.f32 %v945_v1, %v892_v52  ;;  %v1184_v6 = vadd.f32 %v948_v2, %v892_v52 }
 0x21a   : > { %v513_v13 = vpop.f32.mrf.mxu1  ;;  %v500_v18 = vpop.f32.mrf.mxu0  ;;  %vm538_vm1 = vcmp.ge.f32.partialorder %v1179_v0, 0.0  ;;  %v1217_v47 = vmul.f32 0.5, %v498_v53 }
 0x21b   : > { %v562_v7 = vmul.f32 0.3275911, %v554_v3  ;;  %v552_v8 = vand.u32 2147483647, %v528_v4  ;;  %v1187_v9 = vmul.f32 0.70710677, %v1182_v5  ;;  %v1194_v26 = vadd.f32 %v892_v52, %v500_v18 }
 0x21c   : > { %v1190_v10 = vmul.f32 0.70710677, %v1184_v6  ;;  %v949_v20 = vpop.f32.mrf.mxu1  ;;  %v658_v22 = vsub.f32 0.0, %v554_v3  ;;  %v1196_v27 = vadd.f32 %v892_v52, %v513_v13  ;;  %vm536_vm2 = vcmp.ge.f32.partialorder %v528_v4, 0.0 }
 0x21d   : > { %v570_v11 = vadd.f32 1.0, %v562_v7  ;;  %v560_v12 = vmul.f32 0.3275911, %v552_v8  ;;  %v555_v14 = vand.u32 2147483647, %v1187_v9  ;;  %v1198_v28 = vadd.f32 %v949_v20, %v892_v52 }
 0x21e   : > { %v558_v15 = vand.u32 2147483647, %v1190_v10  ;;  %v1201_v29 = vmul.f32 0.70710677, %v1194_v26  ;;  %v1204_v30 = vmul.f32 0.70710677, %v1196_v27  ;;  %v666_v34 = vmul.f32 %v658_v22, %v554_v3  ;;  %v516_v36 = vpop.f32.mrf.mxu1 }
 0x21f   : > { %994 = vrcp.f32 %v570_v11  ;;  %v568_v16 = vadd.f32 1.0, %v560_v12  ;;  %v563_v17 = vmul.f32 0.3275911, %v555_v14  ;;  %v1207_v31 = vmul.f32 0.70710677, %v1198_v28 }
 0x220   : > { %v566_v19 = vmul.f32 0.3275911, %v558_v15  ;;  %v553_v35 = vand.u32 2147483647, %v1201_v29  ;;  %v656_v24 = vsub.f32 0.0, %v552_v8  ;;  %v659_v37 = vsub.f32 0.0, %v555_v14 }
 0x221   : > { %996 = vrcp.f32 %v568_v16  ;;  %v571_v21 = vadd.f32 1.0, %v563_v17  ;;  %v556_v38 = vand.u32 2147483647, %v1204_v30  ;;  %v662_v40 = vsub.f32 0.0, %v558_v15 }
 0x222   : > { %v574_v23 = vadd.f32 1.0, %v566_v19  ;;  %v561_v41 = vmul.f32 0.3275911, %v553_v35  ;;  %v559_v32 = vand.u32 2147483647, %v1207_v31  ;;  %v1215_v45 = vadd.f32 %v892_v52, %v516_v36 }
 0x223   : > { %998 = vrcp.f32 %v571_v21  ;;  %v564_v44 = vmul.f32 0.3275911, %v556_v38  ;;  %v676_v46 = vmul.f32 1.442695, %v666_v34  ;;  %v664_v49 = vmul.f32 %v656_v24, %v552_v8 }
 0x224   : > { %1000 = vrcp.f32 %v574_v23  ;;  %v569_v25 = vadd.f32 1.0, %v561_v41  ;;  %v667_v50 = vmul.f32 %v659_v37, %v555_v14  ;;  %v567_v54 = vmul.f32 0.3275911, %v559_v32 }
 0x225   : > { %v572_v51 = vadd.f32 1.0, %v564_v44  ;;  %v670_v42 = vmul.f32 %v662_v40, %v558_v15  ;;  %v1223_v55 = vmul.f32 0.70710677, %v1215_v45  ;;  %v1228_v57 = vsel %vm538_vm1, 1.0, %v1050_v56 }
 0x226   : > { %1002 = vrcp.f32 %v569_v25  ;;  %v1231_v58 = vsel %vm536_vm2, 1.0, %v1050_v56  ;;  %v575_v59 = vadd.f32 1.0, %v567_v54  ;;  %vm539_vm3 = vcmp.ge.f32.partialorder %v1187_v9, 0.0 }
 0x227   : > { %1004 = vrcp.f32 %v572_v51  ;;  %v657_v52 = vsub.f32 0.0, %v553_v35  ;;  %v557_v61 = vand.u32 2147483647, %v1223_v55  ;;  %v672_v63 = vmul.f32 1.442695, %v664_v49 }
 0x228   : > { %1006 = vpow2.f32 %v676_v46  ;;  %v678_v0 = vmul.f32 1.442695, %v667_v50  ;;  %v684_v2 = vmul.f32 1.442695, %v670_v42  ;;  %vm542_vm4 = vcmp.ge.f32.partialorder %v1190_v10, 0.0 }
 0x229   : > { %1008 = vrcp.f32 %v575_v59  ;;  %v565_v3 = vmul.f32 0.3275911, %v557_v61  ;;  %v660_v11 = vsub.f32 0.0, %v556_v38  ;;  %v665_v14 = vmul.f32 %v657_v52, %v553_v35 }
 0x22a   : > { %1010 = vpow2.f32 %v672_v63  ;;  %v663_v18 = vsub.f32 0.0, %v559_v32  ;;  %v661_v21 = vsub.f32 0.0, %v557_v61  ;;  %v1252_v41 = vmul.f32 0.5, %v1182_v5 }
 0x22b   : > { %v573_v15 = vadd.f32 1.0, %v565_v3  ;;  %v668_v34 = vmul.f32 %v660_v11, %v556_v38  ;;  %v674_v35 = vmul.f32 1.442695, %v665_v14  ;;  %v1258_v25 = vsel %vm539_vm3, 1.0, %v1050_v56 }
 0x22c   : > { %v1219_v48 = vpop.eup %994  ;;  %v671_v44 = vmul.f32 %v663_v18, %v559_v32  ;;  %v669_v49 = vmul.f32 %v661_v21, %v557_v61  ;;  %v1266_v5 = vsel %vm542_vm4, 1.0, %v1050_v56  ;;  %vm537_vm6 = vcmp.ge.f32.partialorder %v1201_v29, 0.0 }
 0x22d   : > { %v586_v33 = vmul.f32 1.0614054, %v1219_v48  ;;  %1012 = vrcp.f32 %v573_v15  ;;  %v680_v32 = vmul.f32 1.442695, %v668_v34  ;;  %vm540_vm7 = vcmp.ge.f32.partialorder %v1204_v30, 0.0 }
 0x22e   : > { %v1233_v60 = vpop.eup %996  ;;  %1014 = vpow2.f32 %v678_v0  ;;  %vm543_vm8 = vcmp.ge.f32.partialorder %v1207_v31, 0.0  ;;  %vm541_vm9 = vcmp.ge.f32.partialorder %v1223_v55, 0.0  ;;  %v717_v55 = vmul.f32 0.5, %v1215_v45 }
 0x22f   : > { %v594_v43 = vadd.f32 -1.4531521, %v586_v33  ;;  %v584_v62 = vmul.f32 1.0614054, %v1233_v60  ;;  %1016 = vpow2.f32 %v684_v2  ;;  %v682_v2 = vmul.f32 1.442695, %v669_v49 }
 0x230   : > { %v1238_v53 = vpop.eup %998  ;;  %1018 = vpow2.f32 %v674_v35 }
 0x231   : > { %v602_v1 = vmul.f32 %v1219_v48, %v594_v43  ;;  %v1241_v4 = vpop.eup %1000  ;;  %v592_v7 = vadd.f32 -1.4531521, %v584_v62  ;;  %v587_v8 = vmul.f32 1.0614054, %v1238_v53  ;;  %v686_v62 = vmul.f32 1.442695, %v671_v44 }
 0x232   : > { %v590_v13 = vmul.f32 1.0614054, %v1241_v4  ;;  %1020 = vpow2.f32 %v680_v32 }
 0x233   : > { %v610_v12 = vadd.f32 1.4214138, %v602_v1  ;;  %v600_v16 = vmul.f32 %v1233_v60, %v592_v7  ;;  %v595_v17 = vadd.f32 -1.4531521, %v587_v8  ;;  %v1260_v50 = vpop.eup %1002  ;;  %1022 = vpow2.f32 %v686_v62 }
 0x234   : > { %v598_v20 = vadd.f32 -1.4531521, %v590_v13  ;;  %v1268_v33 = vpop.eup %1004  ;;  %v585_v59 = vmul.f32 1.0614054, %v1260_v50  ;;  %1024 = vpow2.f32 %v682_v2 }
 0x235   : > { %v618_v19 = vmul.f32 %v1219_v48, %v610_v12  ;;  %v608_v22 = vadd.f32 1.4214138, %v600_v16  ;;  %v603_v23 = vmul.f32 %v1238_v53, %v595_v17  ;;  %v588_v61 = vmul.f32 1.0614054, %v1268_v33  ;;  %v1007_v63 = vpop.eup %1006 }
 0x236   : > { %v606_v24 = vmul.f32 %v1241_v4, %v598_v20  ;;  %v593_v1 = vadd.f32 -1.4531521, %v585_v59  ;;  %v1275_v3 = vpop.eup %1008 }
 0x237   : > { %v626_v36 = vadd.f32 -0.28449672, %v618_v19  ;;  %v616_v37 = vmul.f32 %v1233_v60, %v608_v22  ;;  %v611_v40 = vadd.f32 1.4214138, %v603_v23  ;;  %v596_v11 = vadd.f32 -1.4531521, %v588_v61  ;;  %v1011_v18 = vpop.eup %1010 }
 0x238   : > { %v614_v38 = vadd.f32 1.4214138, %v606_v24  ;;  %v601_v14 = vmul.f32 %v1260_v50, %v593_v1  ;;  %v591_v15 = vmul.f32 1.0614054, %v1275_v3 }
 0x239   : > { %v634_v46 = vmul.f32 %v1219_v48, %v626_v36  ;;  %v624_v51 = vadd.f32 -0.28449672, %v616_v37  ;;  %v619_v54 = vmul.f32 %v1238_v53, %v611_v40  ;;  %v604_v17 = vmul.f32 %v1268_v33, %v596_v11 }
 0x23a   : > { %v622_v9 = vmul.f32 %v1241_v4, %v614_v38  ;;  %v609_v21 = vadd.f32 1.4214138, %v601_v14  ;;  %v1283_v22 = vpop.eup %1012  ;;  %v599_v24 = vadd.f32 -1.4531521, %v591_v15 }
 0x23b   : > { %v642_v42 = vadd.f32 0.2548296, %v634_v46  ;;  %v632_v43 = vmul.f32 %v1233_v60, %v624_v51  ;;  %v627_v52 = vadd.f32 -0.28449672, %v619_v54  ;;  %v612_v36 = vadd.f32 1.4214138, %v604_v17  ;;  %v1015_v35 = vpop.eup %1014 }
 0x23c   : > { %v630_v0 = vadd.f32 -0.28449672, %v622_v9  ;;  %v617_v40 = vmul.f32 %v1260_v50, %v609_v21  ;;  %v589_v44 = vmul.f32 1.0614054, %v1283_v22  ;;  %v1017_v46 = vpop.eup %1016  ;;  %v607_v54 = vmul.f32 %v1275_v3, %v599_v24 }
 0x23d   : > { %v650_v10 = vmul.f32 %v1219_v48, %v642_v42  ;;  %v640_v7 = vadd.f32 0.2548296, %v632_v43  ;;  %v635_v8 = vmul.f32 %v1238_v53, %v627_v52  ;;  %v620_v51 = vmul.f32 %v1268_v33, %v612_v36 }
 0x23e   : > { %v638_v13 = vmul.f32 %v1241_v4, %v630_v0  ;;  %v625_v42 = vadd.f32 -0.28449672, %v617_v40  ;;  %v597_v9 = vadd.f32 -1.4531521, %v589_v44  ;;  %v615_v43 = vadd.f32 1.4214138, %v607_v54 }
 0x23f   : > { %v690_v12 = vmul.f32 %v1007_v63, %v650_v10  ;;  %v648_v48 = vmul.f32 %v1233_v60, %v640_v7  ;;  %v643_v16 = vadd.f32 0.2548296, %v635_v8  ;;  %v1019_v10 = vpop.eup %1018 }
 0x240   : > { %v646_v20 = vadd.f32 0.2548296, %v638_v13  ;;  %v633_v62 = vmul.f32 %v1260_v50, %v625_v42  ;;  %v605_v63 = vmul.f32 %v1283_v22, %v597_v9 }
 0x241   : > { %v698_v19 = vsub.f32 1.0, %v690_v12  ;;  %v688_v23 = vmul.f32 %v1011_v18, %v648_v48  ;;  %v651_v34 = vmul.f32 %v1238_v53, %v643_v16  ;;  %v1021_v48 = vpop.eup %1020 }
 0x242   : > { %v654_v60 = vmul.f32 %v1241_v4, %v646_v20  ;;  %v628_v4 = vadd.f32 -0.28449672, %v620_v51  ;;  %v641_v8 = vadd.f32 0.2548296, %v633_v62  ;;  %v613_v11 = vadd.f32 1.4214138, %v605_v63  ;;  %v1023_v21 = vpop.eup %1022 }
 0x243   : > { %v706_v37 = vmul.f32 %v698_v19, %v1228_v57  ;;  %v696_v38 = vsub.f32 1.0, %v688_v23  ;;  %v691_v49 = vmul.f32 %v1015_v35, %v651_v34  ;;  %v1025_v36 = vpop.eup %1024  ;;  %v713_v51 = vmul.f32 0.5, %v1194_v26 }
 0x244   : > { %v694_v32 = vmul.f32 %v1017_v46, %v654_v60  ;;  %v636_v1 = vmul.f32 %v1268_v33, %v628_v4  ;;  %v649_v17 = vmul.f32 %v1260_v50, %v641_v8  ;;  %v621_v18 = vmul.f32 %v1283_v22, %v613_v11 }
 0x245   : > { %v722_v53 = vadd.f32 1.0, %v706_v37  ;;  %v704_v57 = vmul.f32 %v696_v38, %v1231_v58  ;;  %v699_v59 = vsub.f32 1.0, %v691_v49  ;;  %v545_v60 = vsel %vm537_vm6, 1.0, %v1050_v56 }
 0x246   : > { %v702_v61 = vsub.f32 1.0, %v694_v32  ;;  %v644_v14 = vadd.f32 0.2548296, %v636_v1  ;;  %v689_v34 = vmul.f32 %v1019_v10, %v649_v17  ;;  %v548_v46 = vsel %vm540_vm7, 1.0, %v1050_v56 }
 0x247   : > { %v730_v52 = vmul.f32 %v722_v53, %v1211_v39  ;;  %v720_v0 = vadd.f32 1.0, %v704_v57  ;;  %v707_v58 = vmul.f32 %v699_v59, %v1258_v25  ;;  %v623_v39 = vmul.f32 %v1275_v3, %v615_v43 }
 0x248   : > { %v710_v7 = vmul.f32 %v702_v61, %v1266_v5  ;;  %v718_v25 = vmul.f32 0.5, %v1184_v6  ;;  %v652_v20 = vmul.f32 %v1268_v33, %v644_v14  ;;  %v629_v6 = vadd.f32 -0.28449672, %v621_v18 }
 0x249   : > { %v910_v2 = vpack.c.bf16 %v730_v52, %v730_v52  ;;  %v728_v12 = vmul.f32 %v720_v0, %v1217_v47  ;;  %v723_v13 = vadd.f32 1.0, %v707_v58  ;;  %v631_v15 = vadd.f32 -0.28449672, %v623_v39 }
 0x24a   : > { %v726_v16 = vadd.f32 1.0, %v710_v7  ;;  %v692_v24 = vmul.f32 %v1021_v48, %v652_v20  ;;  %v697_v33 = vsub.f32 1.0, %v689_v34  ;;  %v637_v37 = vmul.f32 %v1283_v22, %v629_v6 }
 0x24b   : > { %771 = vst.msk [vmem:[%s1301_s12 + $0x8] sm:$0xf] %vm768_vm5, %v910_v2  ;;  %v908_v19 = vpack.c.bf16 %v728_v12, %v728_v12  ;;  %v731_v5 = vmul.f32 %v723_v13, %v1252_v41  ;;  %v639_v47 = vmul.f32 %v1275_v3, %v631_v15  ;;  %v716_v32 = vmul.f32 0.5, %v1196_v27 }
 0x24c   : > { %v734_v23 = vmul.f32 %v726_v16, %v718_v25  ;;  %v700_v29 = vsub.f32 1.0, %v692_v24  ;;  %v705_v44 = vmul.f32 %v697_v33, %v545_v60  ;;  %v645_v38 = vadd.f32 0.2548296, %v637_v37 }
 0x24d   : > { %769 = vst.msk [vmem:[%s1301_s12] sm:$0xf] %vm768_vm5, %v908_v19  ;;  %v911_v50 = vpack.c.bf16 %v731_v5, %v731_v5  ;;  %v647_v41 = vadd.f32 0.2548296, %v639_v47  ;;  %v551_v57 = vsel %vm543_vm8, 1.0, %v1050_v56  ;;  %v549_v27 = vsel %vm541_vm9, 1.0, %v1050_v56 }
 0x24e   : > { %v914_v35 = vpack.c.bf16 %v734_v23, %v734_v23  ;;  %v708_v30 = vmul.f32 %v700_v29, %v548_v46  ;;  %v721_v54 = vadd.f32 1.0, %v705_v44  ;;  %v653_v53 = vmul.f32 %v1283_v22, %v645_v38 }
 0x24f   : > { %772 = vst.msk [vmem:[%s1301_s12 + $0xc] sm:$0xf] %vm768_vm5, %v911_v50  ;;  %v655_v40 = vmul.f32 %v1275_v3, %v647_v41  ;;  %v719_v22 = vmul.f32 0.5, %v1198_v28 }
 0x250   : > { %775 = vst.msk [vmem:[%s1301_s12 + $0x18] sm:$0xf] %vm768_vm5, %v914_v35  ;;  %v724_v42 = vadd.f32 1.0, %v708_v30  ;;  %v729_v9 = vmul.f32 %v721_v54, %v713_v51  ;;  %v693_v59 = vmul.f32 %v1025_v36, %v653_v53 }
 0x251   : > { %v695_v49 = vmul.f32 %v1023_v21, %v655_v40 }
 0x252   : > { %v732_v4 = vmul.f32 %v724_v42, %v716_v32  ;;  %v909_v43 = vpack.c.bf16 %v729_v9, %v729_v9  ;;  %v701_v26 = vsub.f32 1.0, %v693_v59 }
 0x253   : > { %v703_v3 = vsub.f32 1.0, %v695_v49 }
 0x254   : > { %v912_v52 = vpack.c.bf16 %v732_v4, %v732_v4  ;;  %770 = vst.msk [vmem:[%s1301_s12 + $0x4] sm:$0xf] %vm768_vm5, %v909_v43  ;;  %v709_v62 = vmul.f32 %v701_v26, %v549_v27 }
 0x255   : > { %v711_v31 = vmul.f32 %v703_v3, %v551_v57 }
 0x256   : > { %773 = vst.msk [vmem:[%s1301_s12 + $0x10] sm:$0xf] %vm768_vm5, %v912_v52  ;;  %v725_v10 = vadd.f32 1.0, %v709_v62 }
 0x257   : > { %v727_v61 = vadd.f32 1.0, %v711_v31 }
 0x258   : > { %v733_v58 = vmul.f32 %v725_v10, %v717_v55 }
 0x259   : > { %v735_v63 = vmul.f32 %v727_v61, %v719_v22 }
 0x25a   : > { %v913_v1 = vpack.c.bf16 %v733_v58, %v733_v58 }
 0x25b   : > { %v915_v0 = vpack.c.bf16 %v735_v63, %v735_v63 }
 0x25c   : > { %774 = vst.msk [vmem:[%s1301_s12 + $0x14] sm:$0xf] %vm768_vm5, %v913_v1 }
 0x25d   : > { %776 = vst.msk [vmem:[%s1301_s12 + $0x1c] sm:$0xf] %vm768_vm5, %v915_v0 }
 0x25e PF: > { %s15_s20 = sadd.s32 1, %s1048_s20   ;;  %s1360_s18 = smov %s1044_s19 }
 0x25f   : > { %p12_p5 = scmp.ge.s32.totalorder %s15_s20, 4   ;;  %s1361_s19 = smov %s1363_s21 }
 0x261   :  { %14 = sbr.rel (!%p12_p5) target bundleno = 2 (0x2), region = 76 }

// kernel: swin3d_forward.29
= control target key start
LH: loop header
LB: loop body
LE: loop exit
PB: predicated region body
PF: predicated region fallthrough
CT: control target
= control target key end

     0   :  { %s789_s15 = smov 0   ;;  %s791_s16 = smov 0   ;;  %s867_s0 = inlined_call_operand.vmem [shape: bf16[128,64], index: 0, kind: input, shape index: {}]   ;;  %s868_s1 = inlined_call_operand.vmem [shape: bf16[64,16], index: 1, kind: input, shape index: {}]   ;;  %s869_s2 = inlined_call_operand.vmem [shape: f32[1,16], index: 2, kind: input, shape index: {}]   ;;  %s870_s3 = inlined_call_operand.vmem [shape: bf16[128,16], index: 3, kind: input, shape index: {}]   ;;  %s871_s4 = inlined_call_operand.vmem [shape: bf16[128,16], index: 4, kind: output, shape index: {}]  }
   0x1   :  { %s793_s17 = smov 0  }
   0x2 LB: > { %s26_s18 = sadd.s32 1, %s758_s16  ;;  %p619_p0 = scmp.ge.s32.totalorder %s762_s17, 1  ;;  %s762_s17 = sphi %s793_s17, %s14_s17   ;;  %s758_s16 = sphi %s791_s16, %s873_s16   ;;  %s754_s15 = sphi %s789_s15, %s872_s15  }
   0x3   : > { %p28_p1 = scmp.ge.s32.totalorder %s26_s18, 2  ;;  %p210_p2 = scmp.lt.s32.totalorder %s762_s17, 3 }
   0x5   : > { %s875_s18 = smov (%p28_p1, %s26_s18), 0  ;;  %p211_p3 = pnand %p619_p0, %p210_p2 }
   0x6   : > { %s620_s21 = sshll.u32 (!%p211_p3), %s754_s15, 3 }
   0x7   : > { %214 = sbr.rel (%p211_p3) target bundleno = 236 (0xec), region = 36  ;;  %p255_p4 = scmp.lt.s32.totalorder (!%p211_p3), %s620_s21, 15 }
   0xc   : > { %v732_v0 = vld [vmem:[%s868_s1 + $0x18] sm:$0xff]   ;;  %v733_v1 = vld [vmem:[%s868_s1 + $0x10] sm:$0xff]   ;;  %s877_s21 = smov (!%p255_p4, %s620_s21), 15  ;;  %v734_v2 = vld [vmem:[%s868_s1 + $0x8] sm:$0xff]   ;;  %vm353_vm0 = vcmask 523264   ;;  %vm487_vm1 = vcmask 125952  }
   0xd   : > { %684 = vmatprep.subr.bf16.mxu0 %v732_v0  ;;  %700 = vmatprep.subr.bf16.mxu1 %v732_v0  ;;  %s816_s26 = sshll.u32 %s877_s21, 2  ;;  %v735_v3 = vld [vmem:[%s868_s1] sm:$0xff]  }
   0xe   : > { %685 = vmatpush3.bf16.msra.mxu0 %v732_v0  ;;  %704 = vmatpush3.bf16.msra.mxu1 %v732_v0  ;;  %s258_s5 = scalar_lea.vmem %s867_s0, %s816_s26  ;;  %s274_s8 = scalar_lea.vmem %s870_s3, %s816_s26  ;;  %v626_v10 = vld [vmem:[%s869_s2] ss:$0 sm:$0xff] }
   0xf   : > { %686 = vmatprep.subr.bf16.mxu0 %v733_v1  ;;  %701 = vmatprep.subr.bf16.mxu1 %v733_v1  ;;  %v736_v4 = vld [vmem:[%s258_s5] sm:$0xff]   ;;  %v737_v5 = vld [vmem:[%s258_s5 + $0x10] sm:$0xff]   ;;  %v738_v6 = vld [vmem:[%s258_s5 + $0x8] sm:$0xff]   ;;  %s840_s13 = scalar_lea.vmem %s871_s4, %s816_s26 }
  0x10   : > { %692 = vmatprep.mubr.msk.bf16.mxu0 %vm353_vm0, %v736_v4  ;;  %696 = vmatprep.mubr.msk.bf16.mxu1 %vm353_vm0, %v737_v5  ;;  %v739_v7 = vld [vmem:[%s258_s5 + $0x18] sm:$0xff]   ;;  %v673_v8 = vld [vmem:[%s274_s8 + $0x8] sm:$0xff]   ;;  %v658_v11 = vld [vmem:[%s274_s8] sm:$0xff]  }
  0x11   : > { %v675_v9 = vld [vmem:[%s274_s8 + $0x18] sm:$0xff]   ;;  %v674_v12 = vld [vmem:[%s274_s8 + $0x10] sm:$0xff]   ;;  %v663_v13 = vunpack.c.l.bf16 %v673_v8  ;;  %v659_v19 = vunpack.c.l.bf16 %v658_v11  ;;  %v664_v28 = vunpack.c.h.bf16 %v673_v8  ;;  %v660_v31 = vunpack.c.h.bf16 %v658_v11 }
  0x12   : > { %687 = vmatpush3.bf16.msra.mxu0 %v733_v1  ;;  %705 = vmatpush3.bf16.msra.mxu1 %v733_v1  ;;  %v671_v14 = vunpack.c.l.bf16 %v675_v9  ;;  %v667_v20 = vunpack.c.l.bf16 %v674_v12  ;;  %v672_v30 = vunpack.c.h.bf16 %v675_v9  ;;  %v668_v32 = vunpack.c.h.bf16 %v674_v12 }
  0x13   : > { %688 = vmatprep.subr.bf16.mxu0 %v734_v2  ;;  %702 = vmatprep.subr.bf16.mxu1 %v734_v2 }
  0x16   : > { %689 = vmatpush3.bf16.msra.mxu0 %v734_v2  ;;  %706 = vmatpush3.bf16.msra.mxu1 %v734_v2 }
  0x17   : > { %690 = vmatprep.subr.bf16.mxu0 %v735_v3  ;;  %703 = vmatprep.subr.bf16.mxu1 %v735_v3 }
  0x1a   : > { %691 = vmatpush3.bf16.msra.mxu0 %v735_v3  ;;  %707 = vmatpush3.bf16.msra.mxu1 %v735_v3 }
  0x1d   : > { %693 = vmatmul.mubr.msk.bf16.vlgmr.msra.gmra.mxu0 %vm353_vm0, %v738_v6  ;;  %697 = vmatmul.mubr.msk.bf16.vlgmr.msra.gmra.mxu1 %vm353_vm0, %v739_v7 }
  0xdd   : > { %v694_v15 = vpop.f32.mrf.mxu0  ;;  %v698_v16 = vpop.f32.mrf.mxu1 }
  0xde   : > { %v409_v17 = vadd.f32 %v694_v15, %v626_v10  ;;  %v425_v18 = vadd.f32 %v698_v16, %v626_v10 }
  0xdf   : > { %v400_v21 = vpop.f32.mrf.mxu0  ;;  %v416_v22 = vpop.f32.mrf.mxu1 }
  0xe0   : > { %v449_v23 = vadd.f32 %v663_v13, %v409_v17  ;;  %v453_v24 = vadd.f32 %v671_v14, %v425_v18  ;;  %v401_v25 = vadd.f32 %v626_v10, %v400_v21  ;;  %v417_v26 = vadd.f32 %v626_v10, %v416_v22 }
  0xe1   : > { %v695_v27 = vpop.f32.mrf.mxu0  ;;  %v699_v29 = vpop.f32.mrf.mxu1 }
  0xe2   : > { %v651_v33 = vpack.c.bf16 %v449_v23, %v449_v23  ;;  %v655_v34 = vpack.c.bf16 %v453_v24, %v453_v24  ;;  %v447_v35 = vadd.f32 %v659_v19, %v401_v25  ;;  %v451_v36 = vadd.f32 %v667_v20, %v417_v26 }
  0xe3   : > { %v412_v37 = vadd.f32 %v695_v27, %v626_v10  ;;  %v428_v38 = vadd.f32 %v699_v29, %v626_v10  ;;  %v403_v39 = vpop.f32.mrf.mxu0  ;;  %v419_v40 = vpop.f32.mrf.mxu1 }
  0xe4   : > { %490 = vst.msk [vmem:[%s840_s13 + $0x8] sm:$0xf] %vm487_vm1, %v651_v33  ;;  %494 = vst.msk [vmem:[%s840_s13 + $0x18] sm:$0xf] %vm487_vm1, %v655_v34  ;;  %v649_v41 = vpack.c.bf16 %v447_v35, %v447_v35  ;;  %v653_v42 = vpack.c.bf16 %v451_v36, %v451_v36  ;;  %v404_v43 = vadd.f32 %v626_v10, %v403_v39 }
  0xe5   : > { %v420_v44 = vadd.f32 %v626_v10, %v419_v40  ;;  %v450_v45 = vadd.f32 %v664_v28, %v412_v37  ;;  %v454_v46 = vadd.f32 %v672_v30, %v428_v38 }
  0xe6   : > { %488 = vst.msk [vmem:[%s840_s13] sm:$0xf] %vm487_vm1, %v649_v41  ;;  %492 = vst.msk [vmem:[%s840_s13 + $0x10] sm:$0xf] %vm487_vm1, %v653_v42  ;;  %v448_v47 = vadd.f32 %v660_v31, %v404_v43 }
  0xe7   : > { %v452_v48 = vadd.f32 %v668_v32, %v420_v44  ;;  %v652_v49 = vpack.c.bf16 %v450_v45, %v450_v45  ;;  %v656_v50 = vpack.c.bf16 %v454_v46, %v454_v46 }
  0xe8   : > { %v650_v51 = vpack.c.bf16 %v448_v47, %v448_v47 }
  0xe9   : > { %v654_v52 = vpack.c.bf16 %v452_v48, %v452_v48  ;;  %491 = vst.msk [vmem:[%s840_s13 + $0xc] sm:$0xf] %vm487_vm1, %v652_v49  ;;  %495 = vst.msk [vmem:[%s840_s13 + $0x1c] sm:$0xf] %vm487_vm1, %v656_v50 }
  0xea   : > { %489 = vst.msk [vmem:[%s840_s13 + $0x4] sm:$0xf] %vm487_vm1, %v650_v51 }
  0xeb   : > { %493 = vst.msk [vmem:[%s840_s13 + $0x14] sm:$0xf] %vm487_vm1, %v654_v52 }
  0xec PF: > { %s14_s17 = sadd.s32 1, %s762_s17   ;;  %s872_s15 = smov %s758_s16 }
  0xed   : > { %p11_p5 = scmp.ge.s32.totalorder %s14_s17, 4   ;;  %s873_s16 = smov %s875_s18 }
  0xef   :  { %13 = sbr.rel (!%p11_p5) target bundleno = 2 (0x2), region = 75 }

// kernel: swin3d_forward.31
= control target key start
LH: loop header
LB: loop body
LE: loop exit
PB: predicated region body
PF: predicated region fallthrough
CT: control target
= control target key end

     0   :  { %s2688_s12 = smov 0   ;;  %s2690_s13 = smov 0   ;;  %s3220_s0 = inlined_call_operand.vmem [shape: bf16[2,8,8,48], index: 0, kind: input, shape index: {}]   ;;  %s3221_s1 = inlined_call_operand.vmem [shape: f32[2,8,8], index: 1, kind: input, shape index: {}]   ;;  %s3222_s2 = inlined_call_operand.vmem [shape: f32[8,8,8], index: 2, kind: input, shape index: {}]   ;;  %s3223_s3 = inlined_call_operand.vmem [shape: bf16[2,8,8,16], index: 3, kind: output, shape index: {}]  }
   0x1   :  { %s2692_s14 = smov 0  }
   0x2 LB: > { %s25_s15 = sadd.s32 1, %s2654_s13  ;;  %p2226_p0 = scmp.ge.s32.totalorder %s2658_s14, 1  ;;  %s2658_s14 = sphi %s2692_s14, %s13_s14   ;;  %s2654_s13 = sphi %s2690_s13, %s3225_s13   ;;  %s2650_s12 = sphi %s2688_s12, %s3224_s12  }
   0x3   : > { %p27_p1 = scmp.ge.s32.totalorder %s25_s15, 2  ;;  %p169_p2 = scmp.lt.s32.totalorder %s2658_s14, 3 }
   0x5   : > { %s3227_s15 = smov (%p27_p1, %s25_s15), 0  ;;  %p170_p3 = pnand %p2226_p0, %p169_p2 }
   0x6   : > { %p207_p4 = scmp.lt.s32.totalorder (!%p170_p3), %s2650_s12, 1  ;;  %s2662_s20 = smov (!%p170_p3), 112  }
   0x7   : > { %173 = sbr.rel (%p170_p3) target bundleno = 1626 (0x65a), region = 32  ;;  %s2663_s21 = smov (!%p170_p3), 96  }
   0x8   : > { %s2664_s18 = smov (!%p170_p3), 104   ;;  %s2667_s23 = smov (!%p170_p3), 8  }
   0xc   : > { %v2660_v0 = vmov 0.0   ;;  %s3229_s12 = smov (!%p207_p4, %s2650_s12), 1  ;;  %vm2661_vm0 = vmmov 0   ;;  %vm255_vm1 = vcmask 64512   ;;  %vm768_vm2 = vcmask 1043456   ;;  %v2799_v37 = vld [vmem:[%s3221_s1] sm:$0xff] }
   0xd   : > { %2340 = vmatprep.subr.bf16.mxu0 %v2660_v0  ;;  %2346 = vmatprep.subr.bf16.mxu1 %v2660_v0  ;;  %s2274_s16 = sshll.u32 %s3229_s12, 5  ;;  %v2804_v39 = vld [vmem:[%s3222_s2] sm:$0xff]  ;;  %v2813_v45 = vld [vmem:[%s3222_s2 + $0x8] sm:$0xff]  ;;  %v2824_v53 = vld [vmem:[%s3222_s2 + $0x10] sm:$0xff]  ;;  %vm2110_vm3 = vcmask 125952  }
   0xe   : > { %2342 = vmatprep.mubr.msk.bf16.mxu0 %vm2661_vm0, %v2660_v0  ;;  %2348 = vmatprep.mubr.msk.bf16.mxu1 %vm2661_vm0, %v2660_v0  ;;  %s214_s19 = scalar_lea.vmem %s3220_s0, %s2274_s16  ;;  %v2835_v61 = vld [vmem:[%s3222_s2 + $0x18] sm:$0xff]  ;;  %s3171_s26 = scalar_lea.vmem %s3223_s3, %s2274_s16 }
   0xf   : > { %v233_v1 = vld [vmem:[%s214_s19] sm:$0xf]  ;;  %v234_v2 = vld [vmem:[%s214_s19 + $0x4] sm:$0xf]  ;;  %v235_v3 = vld [vmem:[%s214_s19 + $0x8] sm:$0xf] }
  0x10   : > { %v2720_v4 = vcombine.low %v233_v1, %v233_v1  ;;  %v2722_v5 = vcombine.low %v235_v3, %v235_v3  ;;  %v236_v6 = vld [vmem:[%s214_s19 + $0xc] sm:$0xf]  ;;  %v2725_v7 = vcombine.low %v234_v2, %v234_v2  ;;  %v237_v9 = vld [vmem:[%s214_s19 + $0x10] sm:$0xf]  ;;  %v238_v10 = vld [vmem:[%s214_s19 + $0x14] sm:$0xf] }
  0x11   : > { %v2728_v8 = vcombine.low %v236_v6, %v236_v6  ;;  %v2732_v11 = vcombine.low %v237_v9, %v237_v9  ;;  %v2734_v12 = vcombine.low %v238_v10, %v238_v10  ;;  %v239_v13 = vld [vmem:[%s214_s19 + $0x18] sm:$0xf]  ;;  %v240_v14 = vld [vmem:[%s214_s19 + $0x1c] sm:$0xf]  ;;  %s2665_s19 = smov 120  }
  0x12   : > { %253 = vrot.lane.b32.xlu0 %v2720_v4, %s2662_s20  ;;  %356 = vrot.lane.b32.xlu1 %v2722_v5, %s2662_s20  ;;  %v2738_v15 = vcombine.low %v239_v13, %v239_v13  ;;  %v2740_v16 = vcombine.low %v240_v14, %v240_v14 }
  0x16   : > { %305 = vrot.lane.b32.xlu0 %v2725_v7, %s2662_s20  ;;  %407 = vrot.lane.b32.xlu1 %v2728_v8, %s2662_s20 }
  0x1a   : > { %458 = vrot.lane.b32.xlu0 %v2732_v11, %s2662_s20  ;;  %509 = vrot.lane.b32.xlu1 %v2734_v12, %s2662_s20 }
  0x1e   : > { %560 = vrot.lane.b32.xlu0 %v2738_v15, %s2662_s20  ;;  %611 = vrot.lane.b32.xlu1 %v2740_v16, %s2662_s20  ;;  %s2666_s20 = smov 88  }
  0x22   : > { %763 = vrot.lane.b32.xlu1 %v2720_v4, %s2663_s21  ;;  %812 = vrot.lane.b32.xlu0 %v2725_v7, %s2663_s21 }
  0x26   : > { %860 = vrot.lane.b32.xlu1 %v2722_v5, %s2663_s21 }
  0x2a   : > { %908 = vrot.lane.b32.xlu1 %v2728_v8, %s2663_s21 }
  0x84   : > { %v254_v17 = vpop.permute.xlu0 %253  ;;  %v357_v19 = vpop.permute.xlu1 %356 }
  0x85   : > { %v260_v18 = vsel %vm255_vm1, %v254_v17, 0  ;;  %v362_v22 = vsel %vm255_vm1, %v357_v19, 0 }
  0x86   : > { %2341 = vmatpush3.bf16.xpose.msra.mxu0 %v260_v18 }
  0x87   : > { %2352 = vmatprep.subr.bf16.mxu0 %v2660_v0 }
  0x88   : > { %v306_v20 = vpop.permute.xlu0 %305  ;;  %v408_v23 = vpop.permute.xlu1 %407 }
  0x89   : > { %v311_v21 = vsel %vm255_vm1, %v306_v20, 0  ;;  %v413_v24 = vsel %vm255_vm1, %v408_v23, 0 }
  0x8a   : > { %2347 = vmatpush3.bf16.xpose.msra.mxu1 %v311_v21 }
  0x8b   : > { %2358 = vmatprep.subr.bf16.mxu1 %v2660_v0 }
  0x8c   : > { %v459_v25 = vpop.permute.xlu0 %458  ;;  %v510_v27 = vpop.permute.xlu1 %509 }
  0x8d   : > { %2343 = vmatmul.mubr.msk.bf16.vlgmr.msra.gmra.mxu0 %vm255_vm1, %v233_v1  ;;  %v464_v26 = vsel %vm255_vm1, %v459_v25, 0  ;;  %v515_v28 = vsel %vm255_vm1, %v510_v27, 0 }
  0x8e   : > { %2353 = vmatpush3.bf16.xpose.msra.mxu0 %v362_v22  ;;  %2354 = vmatprep.mubr.msk.bf16.mxu0 %vm2661_vm0, %v2660_v0  ;;  %v2852_v22 = vld [vmem:[%s3222_s2 + $0x28] sm:$0xff] }
  0x8f   : > { %2364 = vmatprep.subr.bf16.mxu0 %v2660_v0 }
  0x90   : > { %v561_v29 = vpop.permute.xlu0 %560  ;;  %v612_v31 = vpop.permute.xlu1 %611 }
  0x91   : > { %2349 = vmatmul.mubr.msk.bf16.vlgmr.msra.gmra.mxu1 %vm255_vm1, %v234_v2  ;;  %v566_v30 = vsel %vm255_vm1, %v561_v29, 0  ;;  %v617_v32 = vsel %vm255_vm1, %v612_v31, 0 }
  0x92   : > { %2359 = vmatpush3.bf16.xpose.msra.mxu1 %v413_v24  ;;  %2360 = vmatprep.mubr.msk.bf16.mxu1 %vm2661_vm0, %v2660_v0 }
  0x93   : > { %2370 = vmatprep.subr.bf16.mxu1 %v2660_v0 }
  0x94   : > { %v764_v33 = vpop.permute.xlu1 %763  ;;  %v813_v34 = vpop.permute.xlu0 %812 }
  0x95   : > { %2355 = vmatmul.mubr.msk.bf16.vlgmr.msra.gmra.mxu0 %vm255_vm1, %v235_v3  ;;  %v770_v35 = vsel %vm768_vm2, %v764_v33, 0  ;;  %v818_v36 = vsel %vm768_vm2, %v813_v34, 0 }
  0x96   : > { %2365 = vmatpush3.bf16.xpose.msra.mxu0 %v464_v26  ;;  %2366 = vmatprep.mubr.msk.bf16.mxu0 %vm2661_vm0, %v2660_v0 }
  0x97   : > { %2376 = vmatprep.subr.bf16.mxu0 %v2660_v0 }
  0x99   : > { %2361 = vmatmul.mubr.msk.bf16.vlgmr.msra.gmra.mxu1 %vm255_vm1, %v236_v6 }
  0x9a   : > { %2371 = vmatpush3.bf16.xpose.msra.mxu1 %v515_v28  ;;  %2372 = vmatprep.mubr.msk.bf16.mxu1 %vm2661_vm0, %v2660_v0 }
  0x9b   : > { %2382 = vmatprep.subr.bf16.mxu1 %v2660_v0 }
  0x9d   : > { %2367 = vmatmul.mubr.msk.bf16.vlgmr.msra.gmra.mxu0 %vm255_vm1, %v237_v9 }
  0x9e   : > { %2377 = vmatpush3.bf16.xpose.msra.mxu0 %v566_v30  ;;  %2378 = vmatprep.mubr.msk.bf16.mxu0 %vm2661_vm0, %v2660_v0  ;;  %v2860_v30 = vld [vmem:[%s3222_s2 + $0x30] sm:$0xff] }
  0x9f   : > { %2388 = vmatprep.subr.bf16.mxu0 %v2660_v0 }
  0xa1   : > { %2373 = vmatmul.mubr.msk.bf16.vlgmr.msra.gmra.mxu1 %vm255_vm1, %v238_v10  ;;  %v2844_v10 = vld [vmem:[%s3222_s2 + $0x20] sm:$0xff] }
  0xa2   : > { %2383 = vmatpush3.bf16.xpose.msra.mxu1 %v617_v32  ;;  %2384 = vmatprep.mubr.msk.bf16.mxu1 %vm2661_vm0, %v2660_v0 }
  0xa3   : > { %2394 = vmatprep.subr.bf16.mxu1 %v2660_v0 }
  0xa5   : > { %2379 = vmatmul.mubr.msk.bf16.vlgmr.msra.gmra.mxu0 %vm255_vm1, %v239_v13 }
  0xa6   : > { %2390 = vmatprep.mubr.msk.bf16.mxu0 %vm2661_vm0, %v2660_v0  ;;  %2389 = vmatpush3.bf16.msra.mxu0 %v770_v35 }
  0xa7   : > { %2400 = vmatprep.subr.bf16.mxu0 %v2660_v0 }
  0xa9   : > { %2385 = vmatmul.mubr.msk.bf16.vlgmr.msra.gmra.mxu1 %vm255_vm1, %v240_v14 }
  0xaa   : > { %2396 = vmatprep.mubr.msk.bf16.mxu1 %vm2661_vm0, %v2660_v0  ;;  %2395 = vmatpush3.bf16.msra.mxu1 %v818_v36 }
  0xab   : > { %2406 = vmatprep.subr.bf16.mxu1 %v2660_v0 }
 0x14d   : > { %v296_v38 = vpop.f32.mrf.mxu0 }
 0x14e   : > { %v297_v40 = vadd.f32 %v296_v38, %v2799_v37  ;;  %v2870_v38 = vld [vmem:[%s3222_s2 + $0x38] sm:$0xff] }
 0x14f   : > { %v2344_v41 = vpop.f32.mrf.mxu0 }
 0x150   : > { %v2808_v42 = vadd.f32 %v297_v40, %v2804_v39 }
 0x151   : > { %v299_v43 = vpop.f32.mrf.mxu0  ;;  %v347_v44 = vpop.f32.mrf.mxu1 }
 0x152   : > { %v348_v46 = vadd.f32 %v347_v44, %v2799_v37  ;;  %v667_v47 = vsel %vm255_vm1, %v2808_v42, -inf }
 0x153   : > { %668 = vmax.xlane.f32.xlu0 %v667_v47  ;;  %v2345_v48 = vpop.f32.mrf.mxu0  ;;  %v2350_v49 = vpop.f32.mrf.mxu1 }
 0x154   : > { %v2819_v50 = vadd.f32 %v348_v46, %v2813_v45 }
 0x155   : > { %v350_v51 = vpop.f32.mrf.mxu1  ;;  %v398_v52 = vpop.f32.mrf.mxu0 }
 0x156   : > { %v399_v54 = vadd.f32 %v398_v52, %v2799_v37  ;;  %v670_v55 = vsel %vm255_vm1, %v2819_v50, -inf }
 0x157   : > { %v2356_v56 = vpop.f32.mrf.mxu0  ;;  %671 = vmax.xlane.f32.xlu1 %v670_v55  ;;  %v2351_v57 = vpop.f32.mrf.mxu1 }
 0x158   : > { %v2830_v58 = vadd.f32 %v399_v54, %v2824_v53 }
 0x159   : > { %v401_v59 = vpop.f32.mrf.mxu0  ;;  %v449_v60 = vpop.f32.mrf.mxu1 }
 0x15a   : > { %v450_v62 = vadd.f32 %v449_v60, %v2799_v37  ;;  %v673_v63 = vsel %vm255_vm1, %v2830_v58, -inf }
 0x15b   : > { %674 = vmax.xlane.f32.xlu0 %v673_v63  ;;  %v2357_v1 = vpop.f32.mrf.mxu0  ;;  %v2362_v2 = vpop.f32.mrf.mxu1 }
 0x15c   : > { %v662_v3 = vadd.f32 %v450_v62, %v2835_v61 }
 0x15d   : > { %v452_v6 = vpop.f32.mrf.mxu1  ;;  %v500_v9 = vpop.f32.mrf.mxu0 }
 0x15e   : > { %v501_v13 = vadd.f32 %v500_v9, %v2799_v37  ;;  %v676_v14 = vsel %vm255_vm1, %v662_v3, -inf }
 0x15f   : > { %677 = vmax.xlane.f32.xlu0 %v676_v14  ;;  %v2363_v17 = vpop.f32.mrf.mxu1  ;;  %v2368_v18 = vpop.f32.mrf.mxu0 }
 0x160   : > { %v663_v19 = vadd.f32 %v501_v13, %v2844_v10 }
 0x161   : > { %v503_v20 = vpop.f32.mrf.mxu0  ;;  %v551_v21 = vpop.f32.mrf.mxu1 }
 0x162   : > { %v552_v23 = vadd.f32 %v551_v21, %v2799_v37  ;;  %v679_v24 = vsel %vm255_vm1, %v663_v19, -inf }
 0x163   : > { %v2374_v25 = vpop.f32.mrf.mxu1  ;;  %680 = vmax.xlane.f32.xlu1 %v679_v24  ;;  %v2369_v26 = vpop.f32.mrf.mxu0 }
 0x164   : > { %v664_v27 = vadd.f32 %v552_v23, %v2852_v22 }
 0x165   : > { %v554_v28 = vpop.f32.mrf.mxu1  ;;  %v602_v29 = vpop.f32.mrf.mxu0 }
 0x166   : > { %v603_v31 = vadd.f32 %v602_v29, %v2799_v37  ;;  %v682_v32 = vsel %vm255_vm1, %v664_v27, -inf }
 0x167   : > { %683 = vmax.xlane.f32.xlu0 %v682_v32  ;;  %v2375_v33 = vpop.f32.mrf.mxu1  ;;  %v2380_v34 = vpop.f32.mrf.mxu0 }
 0x168   : > { %v2865_v35 = vadd.f32 %v603_v31, %v2860_v30 }
 0x169   : > { %v653_v36 = vpop.f32.mrf.mxu1  ;;  %v605_v40 = vpop.f32.mrf.mxu0 }
 0x16a   : > { %v654_v41 = vadd.f32 %v653_v36, %v2799_v37  ;;  %v685_v43 = vsel %vm255_vm1, %v2865_v35, -inf  ;;  %v2881_v37 = vpop.permute.xlu1 %860 }
 0x16b   : > { %686 = vmax.xlane.f32.xlu1 %v685_v43  ;;  %v2381_v44 = vpop.f32.mrf.mxu0  ;;  %v2386_v46 = vpop.f32.mrf.mxu1 }
 0x16c   : > { %v666_v47 = vadd.f32 %v654_v41, %v2870_v38 }
 0x16d   : > { %v656_v48 = vpop.f32.mrf.mxu1 }
 0x16e   : > { %v688_v49 = vsel %vm255_vm1, %v666_v47, -inf  ;;  %v2883_v52 = vpop.permute.xlu1 %908 }
 0x16f   : > { %689 = vmax.xlane.f32.xlu0 %v688_v49  ;;  %v2387_v51 = vpop.f32.mrf.mxu1 }
 0x17c   : > { %1004 = vrot.lane.b32.xlu1 %v2734_v12, %s2663_s21 }
 0x185   : > { %956 = vrot.lane.b32.xlu0 %v2732_v11, %s2663_s21 }
 0x1dc   : > { %v669_v54 = vpop.xlane.xlu0 %668 }
 0x1dd   : > { %v691_v55 = vsub.f32 %v2808_v42, %v669_v54 }
 0x1df   : > { %v699_v56 = vmul.f32 1.442695, %v691_v55 }
 0x1e0   : > { %v672_v57 = vpop.xlane.xlu1 %671 }
 0x1e1   : > { %2572 = vpow2.f32 %v699_v56  ;;  %v692_v59 = vsub.f32 %v2819_v50, %v672_v57 }
 0x1e3   : > { %v701_v60 = vmul.f32 1.442695, %v692_v59 }
 0x1e4   : > { %v675_v62 = vpop.xlane.xlu0 %674 }
 0x1e5   : > { %2574 = vpow2.f32 %v701_v60  ;;  %v693_v63 = vsub.f32 %v2830_v58, %v675_v62  ;;  %v866_v62 = vsel %vm768_vm2, %v2881_v37, 0 }
 0x1e7   : > { %v703_v1 = vmul.f32 1.442695, %v693_v63 }
 0x1e8   : > { %v678_v2 = vpop.xlane.xlu0 %677 }
 0x1e9   : > { %2576 = vpow2.f32 %v703_v1  ;;  %v694_v6 = vsub.f32 %v662_v3, %v678_v2 }
 0x1eb   : > { %v705_v9 = vmul.f32 1.442695, %v694_v6 }
 0x1ec   : > { %v681_v13 = vpop.xlane.xlu1 %680 }
 0x1ed   : > { %2578 = vpow2.f32 %v705_v9  ;;  %v695_v14 = vsub.f32 %v663_v19, %v681_v13  ;;  %v914_v9 = vsel %vm768_vm2, %v2883_v52, 0 }
 0x1ee   : > { %v2888_v17 = vpop.eup %2572 }
 0x1ef   : > { %v707_v42 = vmul.f32 1.442695, %v695_v14  ;;  %v715_v18 = vsel %vm255_vm1, %v2888_v17, 0.0 }
 0x1f0   : > { %716 = vadd.xlane.f32.xlu1 %v715_v18  ;;  %v684_v50 = vpop.xlane.xlu0 %683 }
 0x1f1   : > { %2580 = vpow2.f32 %v707_v42  ;;  %v696_v20 = vsub.f32 %v664_v27, %v684_v50 }
 0x1f2   : > { %v2892_v21 = vpop.eup %2574 }
 0x1f3   : > { %v709_v58 = vmul.f32 1.442695, %v696_v20  ;;  %v718_v3 = vsel %vm255_vm1, %v2892_v21, 0.0 }
 0x1f4   : > { %719 = vadd.xlane.f32.xlu0 %v718_v3  ;;  %v687_v31 = vpop.xlane.xlu1 %686 }
 0x1f5   : > { %2582 = vpow2.f32 %v709_v58  ;;  %v697_v32 = vsub.f32 %v2865_v35, %v687_v31 }
 0x1f6   : > { %v2896_v23 = vpop.eup %2576 }
 0x1f7   : > { %v721_v19 = vsel %vm255_vm1, %v2896_v23, 0.0  ;;  %v711_v34 = vmul.f32 1.442695, %v697_v32 }
 0x1f8   : > { %722 = vadd.xlane.f32.xlu1 %v721_v19  ;;  %v690_v33 = vpop.xlane.xlu0 %689  ;;  %v1005_v35 = vpop.permute.xlu1 %1004 }
 0x1f9   : > { %v698_v36 = vsub.f32 %v666_v47, %v690_v33  ;;  %2584 = vpow2.f32 %v711_v34  ;;  %v1010_v50 = vsel %vm768_vm2, %v1005_v35, 0 }
 0x1fa   : > { %v2900_v24 = vpop.eup %2578 }
 0x1fb   : > { %v724_v25 = vsel %vm255_vm1, %v2900_v24, 0.0  ;;  %v713_v40 = vmul.f32 1.442695, %v698_v36 }
 0x1fc   : > { %725 = vadd.xlane.f32.xlu0 %v724_v25  ;;  %v957_v47 = vpop.permute.xlu0 %956 }
 0x1fd   : > { %2586 = vpow2.f32 %v713_v40 }
 0x1fe   : > { %v2904_v26 = vpop.eup %2580 }
 0x1ff   : > { %v727_v27 = vsel %vm255_vm1, %v2904_v26, 0.0 }
 0x200   : > { %728 = vadd.xlane.f32.xlu1 %v727_v27 }
 0x202   : > { %v2908_v28 = vpop.eup %2582 }
 0x203   : > { %v730_v29 = vsel %vm255_vm1, %v2908_v28, 0.0 }
 0x204   : > { %731 = vadd.xlane.f32.xlu0 %v730_v29 }
 0x206   : > { %v2917_v41 = vpop.eup %2584 }
 0x207   : > { %v733_v43 = vsel %vm255_vm1, %v2917_v41, 0.0 }
 0x20a   : > { %v2921_v44 = vpop.eup %2586 }
 0x20b   : > { %v736_v46 = vsel %vm255_vm1, %v2921_v44, 0.0 }
 0x211   : > { %1100 = vrot.lane.b32.xlu1 %v2740_v16, %s2663_s21 }
 0x21a   : > { %1052 = vrot.lane.b32.xlu0 %v2738_v15, %s2663_s21 }
 0x235   : > { %734 = vadd.xlane.f32.xlu1 %v733_v43 }
 0x239   : > { %737 = vadd.xlane.f32.xlu0 %v736_v46 }
 0x246   : > { %1210 = vrot.lane.b32.xlu1 %v2725_v7, %s2664_s18 }
 0x24a   : > { %1208 = vrot.lane.b32.xlu1 %v2725_v7, %s2665_s19 }
 0x24e   : > { %1310 = vrot.lane.b32.xlu1 %v2728_v8, %s2664_s18 }
 0x24f   : > { %1160 = vrot.lane.b32.xlu0 %v2720_v4, %s2664_s18 }
 0x252   : > { %1308 = vrot.lane.b32.xlu1 %v2728_v8, %s2665_s19 }
 0x253   : > { %1158 = vrot.lane.b32.xlu0 %v2720_v4, %s2665_s19 }
 0x256   : > { %1410 = vrot.lane.b32.xlu1 %v2734_v12, %s2664_s18 }
 0x257   : > { %1260 = vrot.lane.b32.xlu0 %v2722_v5, %s2664_s18 }
 0x25a   : > { %1408 = vrot.lane.b32.xlu1 %v2734_v12, %s2665_s19 }
 0x25b   : > { %1258 = vrot.lane.b32.xlu0 %v2722_v5, %s2665_s19 }
 0x25e   : > { %1510 = vrot.lane.b32.xlu1 %v2740_v16, %s2664_s18 }
 0x25f   : > { %1360 = vrot.lane.b32.xlu0 %v2732_v11, %s2664_s18 }
 0x262   : > { %1508 = vrot.lane.b32.xlu1 %v2740_v16, %s2665_s19 }
 0x263   : > { %1358 = vrot.lane.b32.xlu0 %v2732_v11, %s2665_s19 }
 0x266   : > { %1662 = vrot.lane.b32.xlu1 %v2720_v4, %s2666_s20 }
 0x267   : > { %1460 = vrot.lane.b32.xlu0 %v2738_v15, %s2664_s18 }
 0x26b   : > { %1458 = vrot.lane.b32.xlu0 %v2738_v15, %s2665_s19 }
 0x279   : > { %v717_v48 = vpop.xlane.xlu1 %716 }
 0x27a   : > { %2588 = vrcp.f32 %v717_v48 }
 0x27d   : > { %v720_v49 = vpop.xlane.xlu0 %719 }
 0x27e   : > { %2590 = vrcp.f32 %v720_v49 }
 0x281   : > { %v723_v51 = vpop.xlane.xlu1 %722 }
 0x282   : > { %2592 = vrcp.f32 %v723_v51 }
 0x285   : > { %v726_v54 = vpop.xlane.xlu0 %725 }
 0x286   : > { %2594 = vrcp.f32 %v726_v54 }
 0x287   : > { %v2589_v55 = vpop.eup %2588 }
 0x288   : > { %v747_v56 = vmul.f32 %v2589_v55, %v2888_v17  ;;  %v962_v17 = vsel %vm768_vm2, %v957_v47, 0 }
 0x289   : > { %v729_v57 = vpop.xlane.xlu1 %728 }
 0x28a   : > { %2596 = vrcp.f32 %v729_v57  ;;  %v755_v59 = vpack.c.bf16 %v747_v56, %v747_v56 }
 0x28b   : > { %v2591_v60 = vpop.eup %2590 }
 0x28c   : > { %2391 = vmatmul.mubr.msk.bf16.vlgmr.msra.gmra.mxu0 %vm255_vm1, %v755_v59  ;;  %v748_v63 = vmul.f32 %v2591_v60, %v2892_v21 }
 0x28d   : > { %2401 = vmatpush3.bf16.msra.mxu0 %v866_v62  ;;  %v732_v1 = vpop.xlane.xlu0 %731  ;;  %2402 = vmatprep.mubr.msk.bf16.mxu0 %vm2661_vm0, %v2660_v0 }
 0x28e   : > { %2598 = vrcp.f32 %v732_v1  ;;  %v756_v2 = vpack.c.bf16 %v748_v63, %v748_v63  ;;  %2412 = vmatprep.subr.bf16.mxu0 %v2660_v0 }
 0x28f   : > { %v2593_v6 = vpop.eup %2592 }
 0x290   : > { %2397 = vmatmul.mubr.msk.bf16.vlgmr.msra.gmra.mxu1 %vm255_vm1, %v756_v2  ;;  %v749_v37 = vmul.f32 %v2593_v6, %v2896_v23 }
 0x291   : > { %2407 = vmatpush3.bf16.msra.mxu1 %v914_v9  ;;  %2408 = vmatprep.mubr.msk.bf16.mxu1 %vm2661_vm0, %v2660_v0  ;;  %v1053_v21 = vpop.permute.xlu0 %1052 }
 0x292   : > { %v757_v13 = vpack.c.bf16 %v749_v37, %v749_v37  ;;  %2418 = vmatprep.subr.bf16.mxu1 %v2660_v0  ;;  %v1058_v23 = vsel %vm768_vm2, %v1053_v21, 0 }
 0x293   : > { %v2595_v14 = vpop.eup %2594 }
 0x294   : > { %2403 = vmatmul.mubr.msk.bf16.vlgmr.msra.gmra.mxu0 %vm255_vm1, %v757_v13  ;;  %v750_v42 = vmul.f32 %v2595_v14, %v2900_v24  ;;  %v1101_v24 = vpop.permute.xlu1 %1100 }
 0x295   : > { %2413 = vmatpush3.bf16.msra.mxu0 %v962_v17  ;;  %2414 = vmatprep.mubr.msk.bf16.mxu0 %vm2661_vm0, %v2660_v0 }
 0x296   : > { %v758_v52 = vpack.c.bf16 %v750_v42, %v750_v42  ;;  %2424 = vmatprep.subr.bf16.mxu0 %v2660_v0 }
 0x297   : > { %v2597_v18 = vpop.eup %2596 }
 0x298   : > { %2409 = vmatmul.mubr.msk.bf16.vlgmr.msra.gmra.mxu1 %vm255_vm1, %v758_v52  ;;  %v751_v20 = vmul.f32 %v2597_v18, %v2904_v26  ;;  %v1106_v26 = vsel %vm768_vm2, %v1101_v24, 0 }
 0x299   : > { %2419 = vmatpush3.bf16.msra.mxu1 %v1010_v50  ;;  %2420 = vmatprep.mubr.msk.bf16.mxu1 %vm2661_vm0, %v2660_v0 }
 0x29a   : > { %v759_v58 = vpack.c.bf16 %v751_v20, %v751_v20  ;;  %2430 = vmatprep.subr.bf16.mxu1 %v2660_v0 }
 0x29b   : > { %v2599_v3 = vpop.eup %2598 }
 0x29c   : > { %2415 = vmatmul.mubr.msk.bf16.vlgmr.msra.gmra.mxu0 %vm255_vm1, %v759_v58  ;;  %v752_v19 = vmul.f32 %v2599_v3, %v2908_v28 }
 0x29d   : > { %2425 = vmatpush3.bf16.msra.mxu0 %v1058_v23  ;;  %2426 = vmatprep.mubr.msk.bf16.mxu0 %vm2661_vm0, %v2660_v0 }
 0x29e   : > { %v760_v25 = vpack.c.bf16 %v752_v19, %v752_v19  ;;  %2436 = vmatprep.subr.bf16.mxu0 %v2660_v0 }
 0x2a0   : > { %2421 = vmatmul.mubr.msk.bf16.vlgmr.msra.gmra.mxu1 %vm255_vm1, %v760_v25 }
 0x2a1   : > { %2431 = vmatpush3.bf16.msra.mxu1 %v1106_v26  ;;  %2432 = vmatprep.mubr.msk.bf16.mxu1 %vm2661_vm0, %v2660_v0 }
 0x2a2   : > { %2442 = vmatprep.subr.bf16.mxu1 %v2660_v0 }
 0x2be   : > { %v735_v27 = vpop.xlane.xlu1 %734 }
 0x2bf   : > { %2600 = vrcp.f32 %v735_v27 }
 0x2c2   : > { %v738_v28 = vpop.xlane.xlu0 %737  ;;  %v1211_v29 = vpop.permute.xlu1 %1210 }
 0x2c3   : > { %2602 = vrcp.f32 %v738_v28  ;;  %v1216_v51 = vsel %vm255_vm1, %v1211_v29, 0 }
 0x2c6   : > { %v1161_v31 = vpop.permute.xlu0 %1160  ;;  %v1209_v33 = vpop.permute.xlu1 %1208 }
 0x2c7   : > { %v1166_v43 = vsel %vm255_vm1, %v1161_v31, 0 }
 0x2ca   : > { %v1159_v32 = vpop.permute.xlu0 %1158  ;;  %v1311_v47 = vpop.permute.xlu1 %1310 }
 0x2cb   : > { %v1316_v56 = vsel %vm255_vm1, %v1311_v47, 0 }
 0x2cc   : > { %v2601_v34 = vpop.eup %2600 }
 0x2cd   : > { %v753_v36 = vmul.f32 %v2601_v34, %v2917_v41 }
 0x2ce   : > { %v1261_v40 = vpop.permute.xlu0 %1260  ;;  %v1309_v41 = vpop.permute.xlu1 %1308 }
 0x2cf   : > { %v761_v46 = vpack.c.bf16 %v753_v36, %v753_v36  ;;  %v1266_v55 = vsel %vm255_vm1, %v1261_v40, 0 }
 0x2d0   : > { %v2603_v35 = vpop.eup %2602 }
 0x2d1   : > { %2427 = vmatmul.mubr.msk.bf16.vlgmr.msra.gmra.mxu0 %vm255_vm1, %v761_v46  ;;  %v754_v48 = vmul.f32 %v2603_v35, %v2921_v44 }
 0x2d2   : > { %2437 = vmatpush3.bf16.xpose.msra.mxu0 %v1166_v43  ;;  %2438 = vmatprep.mubr.msk.bf16.mxu0 %vm2661_vm0, %v2660_v0  ;;  %v1259_v49 = vpop.permute.xlu0 %1258  ;;  %v1411_v57 = vpop.permute.xlu1 %1410 }
 0x2d3   : > { %v762_v54 = vpack.c.bf16 %v754_v48, %v754_v48  ;;  %2448 = vmatprep.subr.bf16.mxu0 %v2660_v0  ;;  %v1416_v63 = vsel %vm255_vm1, %v1411_v57, 0 }
 0x2d5   : > { %2433 = vmatmul.mubr.msk.bf16.vlgmr.msra.gmra.mxu1 %vm255_vm1, %v762_v54  ;;  %v2255_v54 = vld [vmem:[%s3221_s1 + $0x8] sm:$0xff] }
 0x2d6   : > { %2443 = vmatpush3.bf16.xpose.msra.mxu1 %v1216_v51  ;;  %2444 = vmatprep.mubr.msk.bf16.mxu1 %vm2661_vm0, %v2660_v0  ;;  %v1361_v44 = vpop.permute.xlu0 %1360  ;;  %v1409_v62 = vpop.permute.xlu1 %1408 }
 0x2d7   : > { %2454 = vmatprep.subr.bf16.mxu1 %v2660_v0  ;;  %v1366_v60 = vsel %vm255_vm1, %v1361_v44, 0 }
 0x2d9   : > { %2439 = vmatmul.mubr.msk.bf16.vlgmr.msra.gmra.mxu0 %vm255_vm1, %v1159_v32 }
 0x2da   : > { %2449 = vmatpush3.bf16.xpose.msra.mxu0 %v1266_v55  ;;  %2450 = vmatprep.mubr.msk.bf16.mxu0 %vm2661_vm0, %v2660_v0  ;;  %v1359_v59 = vpop.permute.xlu0 %1358  ;;  %v1511_v6 = vpop.permute.xlu1 %1510 }
 0x2db   : > { %2460 = vmatprep.subr.bf16.mxu0 %v2660_v0  ;;  %v1516_v9 = vsel %vm255_vm1, %v1511_v6, 0 }
 0x2dd   : > { %2445 = vmatmul.mubr.msk.bf16.vlgmr.msra.gmra.mxu1 %vm255_vm1, %v1209_v33 }
 0x2de   : > { %2455 = vmatpush3.bf16.xpose.msra.mxu1 %v1316_v56  ;;  %2456 = vmatprep.mubr.msk.bf16.mxu1 %vm2661_vm0, %v2660_v0  ;;  %v1461_v1 = vpop.permute.xlu0 %1460  ;;  %v1509_v4 = vpop.permute.xlu1 %1508 }
 0x2df   : > { %2466 = vmatprep.subr.bf16.mxu1 %v2660_v0  ;;  %v1466_v2 = vsel %vm255_vm1, %v1461_v1, 0 }
 0x2e1   : > { %2451 = vmatmul.mubr.msk.bf16.vlgmr.msra.gmra.mxu0 %vm255_vm1, %v1259_v49 }
 0x2e2   : > { %2461 = vmatpush3.bf16.xpose.msra.mxu0 %v1366_v60  ;;  %2462 = vmatprep.mubr.msk.bf16.mxu0 %vm2661_vm0, %v2660_v0  ;;  %v1459_v37 = vpop.permute.xlu0 %1458  ;;  %v1663_v19 = vpop.permute.xlu1 %1662 }
 0x2e3   : > { %2472 = vmatprep.subr.bf16.mxu0 %v2660_v0  ;;  %v1668_v26 = vsel %vm768_vm2, %v1663_v19, 0 }
 0x2e5   : > { %2457 = vmatmul.mubr.msk.bf16.vlgmr.msra.gmra.mxu1 %vm255_vm1, %v1309_v41 }
 0x2e6   : > { %2467 = vmatpush3.bf16.xpose.msra.mxu1 %v1416_v63  ;;  %2468 = vmatprep.mubr.msk.bf16.mxu1 %vm2661_vm0, %v2660_v0 }
 0x2e7   : > { %2478 = vmatprep.subr.bf16.mxu1 %v2660_v0 }
 0x2e9   : > { %2463 = vmatmul.mubr.msk.bf16.vlgmr.msra.gmra.mxu0 %vm255_vm1, %v1359_v59 }
 0x2ea   : > { %2473 = vmatpush3.bf16.xpose.msra.mxu0 %v1466_v2  ;;  %2474 = vmatprep.mubr.msk.bf16.mxu0 %vm2661_vm0, %v2660_v0 }
 0x2eb   : > { %2484 = vmatprep.subr.bf16.mxu0 %v2660_v0 }
 0x2ed   : > { %2469 = vmatmul.mubr.msk.bf16.vlgmr.msra.gmra.mxu1 %vm255_vm1, %v1409_v62 }
 0x2ee   : > { %2479 = vmatpush3.bf16.xpose.msra.mxu1 %v1516_v9  ;;  %2480 = vmatprep.mubr.msk.bf16.mxu1 %vm2661_vm0, %v2660_v0 }
 0x2ef   : > { %2490 = vmatprep.subr.bf16.mxu1 %v2660_v0 }
 0x2f1   : > { %2475 = vmatmul.mubr.msk.bf16.vlgmr.msra.gmra.mxu0 %vm255_vm1, %v1459_v37 }
 0x2f2   : > { %2486 = vmatprep.mubr.msk.bf16.mxu0 %vm2661_vm0, %v2660_v0  ;;  %2485 = vmatpush3.bf16.msra.mxu0 %v1668_v26 }
 0x2f3   : > { %2496 = vmatprep.subr.bf16.mxu0 %v2660_v0 }
 0x2f5   : > { %2481 = vmatmul.mubr.msk.bf16.vlgmr.msra.gmra.mxu1 %vm255_vm1, %v1509_v4 }
 0x2f6   : > { %2492 = vmatprep.mubr.msk.bf16.mxu1 %vm2661_vm0, %v2660_v0 }
 0x34c   : > { %v3029_v13 = vpop.f32.mrf.mxu0 }
 0x34e   : > { %v2392_v14 = vpop.f32.mrf.mxu0 }
 0x350   : > { %v809_v17 = vpop.f32.mrf.mxu0  ;;  %v3031_v42 = vpop.f32.mrf.mxu1 }
 0x352   : > { %v2393_v52 = vpop.f32.mrf.mxu0  ;;  %v2398_v18 = vpop.f32.mrf.mxu1 }
 0x354   : > { %v857_v50 = vpop.f32.mrf.mxu1  ;;  %v3033_v20 = vpop.f32.mrf.mxu0 }
 0x356   : > { %v2399_v21 = vpop.f32.mrf.mxu1  ;;  %v2404_v58 = vpop.f32.mrf.mxu0 }
 0x358   : > { %v905_v3 = vpop.f32.mrf.mxu0  ;;  %v3035_v23 = vpop.f32.mrf.mxu1 }
 0x35a   : > { %v2405_v24 = vpop.f32.mrf.mxu0  ;;  %v2410_v25 = vpop.f32.mrf.mxu1 }
 0x35c   : > { %v953_v27 = vpop.f32.mrf.mxu1  ;;  %v3038_v28 = vpop.f32.mrf.mxu0 }
 0x35e   : > { %v2411_v29 = vpop.f32.mrf.mxu1  ;;  %v2416_v31 = vpop.f32.mrf.mxu0 }
 0x360   : > { %v1001_v32 = vpop.f32.mrf.mxu0  ;;  %v3041_v33 = vpop.f32.mrf.mxu1 }
 0x362   : > { %v2417_v34 = vpop.f32.mrf.mxu0  ;;  %v2422_v36 = vpop.f32.mrf.mxu1 }
 0x364   : > { %v1049_v40 = vpop.f32.mrf.mxu1 }
 0x366   : > { %v2423_v43 = vpop.f32.mrf.mxu1 }
 0x391   : > { %v3043_v46 = vpop.f32.mrf.mxu0 }
 0x393   : > { %v2428_v35 = vpop.f32.mrf.mxu0 }
 0x395   : > { %v1097_v47 = vpop.f32.mrf.mxu0  ;;  %v3045_v48 = vpop.f32.mrf.mxu1 }
 0x397   : > { %v2429_v49 = vpop.f32.mrf.mxu0  ;;  %v2434_v51 = vpop.f32.mrf.mxu1 }
 0x399   : > { %v1145_v41 = vpop.f32.mrf.mxu1  ;;  %v1202_v55 = vpop.f32.mrf.mxu0 }
 0x39a   : > { %v1203_v44 = vadd.f32 %v2255_v54, %v1202_v55 }
 0x39b   : > { %v2435_v56 = vpop.f32.mrf.mxu1  ;;  %v2440_v57 = vpop.f32.mrf.mxu0 }
 0x39c   : > { %v3051_v59 = vadd.f32 %v1203_v44, %v2804_v39 }
 0x39d   : > { %v1205_v60 = vpop.f32.mrf.mxu0  ;;  %v1252_v62 = vpop.f32.mrf.mxu1 }
 0x39e   : > { %v1253_v63 = vadd.f32 %v2255_v54, %v1252_v62  ;;  %v1566_v1 = vsel %vm255_vm1, %v3051_v59, -inf }
 0x39f   : > { %v2446_v2 = vpop.f32.mrf.mxu1  ;;  %1567 = vmax.xlane.f32.xlu0 %v1566_v1  ;;  %v2441_v6 = vpop.f32.mrf.mxu0 }
 0x3a0   : > { %v1559_v9 = vadd.f32 %v1253_v63, %v2813_v45 }
 0x3a1   : > { %v1255_v37 = vpop.f32.mrf.mxu1  ;;  %v1302_v4 = vpop.f32.mrf.mxu0 }
 0x3a2   : > { %v1303_v14 = vadd.f32 %v2255_v54, %v1302_v4  ;;  %v1569_v17 = vsel %vm255_vm1, %v1559_v9, -inf }
 0x3a3   : > { %1570 = vmax.xlane.f32.xlu1 %v1569_v17  ;;  %v2447_v52 = vpop.f32.mrf.mxu1  ;;  %v2452_v39 = vpop.f32.mrf.mxu0 }
 0x3a4   : > { %v1560_v18 = vadd.f32 %v1303_v14, %v2824_v53 }
 0x3a5   : > { %v1305_v50 = vpop.f32.mrf.mxu0  ;;  %v1352_v21 = vpop.f32.mrf.mxu1 }
 0x3a6   : > { %v1353_v58 = vadd.f32 %v2255_v54, %v1352_v21  ;;  %v1572_v3 = vsel %vm255_vm1, %v1560_v18, -inf }
 0x3a7   : > { %v2458_v19 = vpop.f32.mrf.mxu1  ;;  %1573 = vmax.xlane.f32.xlu0 %v1572_v3  ;;  %v2453_v24 = vpop.f32.mrf.mxu0 }
 0x3a8   : > { %v1561_v45 = vadd.f32 %v1353_v58, %v2835_v61 }
 0x3a9   : > { %v1355_v25 = vpop.f32.mrf.mxu1  ;;  %v1402_v26 = vpop.f32.mrf.mxu0 }
 0x3aa   : > { %v1403_v27 = vadd.f32 %v2255_v54, %v1402_v26  ;;  %v1575_v29 = vsel %vm255_vm1, %v1561_v45, -inf }
 0x3ab   : > { %v2459_v31 = vpop.f32.mrf.mxu1  ;;  %1576 = vmax.xlane.f32.xlu0 %v1575_v29  ;;  %v2464_v32 = vpop.f32.mrf.mxu0 }
 0x3ac   : > { %v3062_v53 = vadd.f32 %v1403_v27, %v2844_v10 }
 0x3ad   : > { %v1405_v34 = vpop.f32.mrf.mxu0  ;;  %v1452_v36 = vpop.f32.mrf.mxu1 }
 0x3ae   : > { %v1453_v40 = vadd.f32 %v2255_v54, %v1452_v36  ;;  %v1578_v43 = vsel %vm255_vm1, %v3062_v53, -inf }
 0x3af   : > { %v2470_v35 = vpop.f32.mrf.mxu1  ;;  %1579 = vmax.xlane.f32.xlu1 %v1578_v43  ;;  %v2465_v61 = vpop.f32.mrf.mxu0 }
 0x3b0   : > { %v3067_v47 = vadd.f32 %v1453_v40, %v2852_v22 }
 0x3b1   : > { %v1455_v49 = vpop.f32.mrf.mxu1  ;;  %v1502_v51 = vpop.f32.mrf.mxu0 }
 0x3b2   : > { %v1503_v41 = vadd.f32 %v2255_v54, %v1502_v51  ;;  %v1581_v55 = vsel %vm255_vm1, %v3067_v47, -inf }
 0x3b3   : > { %v2471_v10 = vpop.f32.mrf.mxu1  ;;  %1582 = vmax.xlane.f32.xlu0 %v1581_v55  ;;  %v2476_v44 = vpop.f32.mrf.mxu0 }
 0x3b4   : > { %v1564_v56 = vadd.f32 %v1503_v41, %v2860_v30 }
 0x3b5   : > { %v1552_v57 = vpop.f32.mrf.mxu1  ;;  %v1505_v60 = vpop.f32.mrf.mxu0 }
 0x3b6   : > { %v1553_v62 = vadd.f32 %v2255_v54, %v1552_v57  ;;  %v1584_v63 = vsel %vm255_vm1, %v1564_v56, -inf }
 0x3b7   : > { %1585 = vmax.xlane.f32.xlu1 %v1584_v63  ;;  %v2482_v1 = vpop.f32.mrf.mxu1  ;;  %v2477_v22 = vpop.f32.mrf.mxu0 }
 0x3b8   : > { %v1565_v2 = vadd.f32 %v1553_v62, %v2870_v38 }
 0x3b9   : > { %v1555_v6 = vpop.f32.mrf.mxu1 }
 0x3ba   : > { %v1587_v37 = vsel %vm255_vm1, %v1565_v2, -inf }
 0x3bb   : > { %1588 = vmax.xlane.f32.xlu0 %v1587_v37  ;;  %v2483_v4 = vpop.f32.mrf.mxu1 }
 0x3c8   : > { %1758 = vrot.lane.b32.xlu1 %v2722_v5, %s2666_s20 }
 0x3cc   : > { %1806 = vrot.lane.b32.xlu1 %v2728_v8, %s2666_s20 }
 0x3d1   : > { %1710 = vrot.lane.b32.xlu0 %v2725_v7, %s2666_s20 }
 0x428   : > { %v1568_v30 = vpop.xlane.xlu0 %1567 }
 0x429   : > { %v1590_v54 = vsub.f32 %v3051_v59, %v1568_v30 }
 0x42b   : > { %v1598_v14 = vmul.f32 1.442695, %v1590_v54 }
 0x42c   : > { %v1571_v17 = vpop.xlane.xlu1 %1570 }
 0x42d   : > { %2604 = vpow2.f32 %v1598_v14  ;;  %v1591_v38 = vsub.f32 %v1559_v9, %v1571_v17 }
 0x42f   : > { %v1600_v52 = vmul.f32 1.442695, %v1591_v38 }
 0x430   : > { %v1574_v39 = vpop.xlane.xlu0 %1573 }
 0x431   : > { %2606 = vpow2.f32 %v1600_v52  ;;  %v1592_v50 = vsub.f32 %v1560_v18, %v1574_v39 }
 0x433   : > { %v1602_v21 = vmul.f32 1.442695, %v1592_v50 }
 0x434   : > { %v1577_v58 = vpop.xlane.xlu0 %1576 }
 0x435   : > { %2608 = vpow2.f32 %v1602_v21  ;;  %v1593_v5 = vsub.f32 %v1561_v45, %v1577_v58 }
 0x437   : > { %v1604_v3 = vmul.f32 1.442695, %v1593_v5 }
 0x438   : > { %v1580_v31 = vpop.xlane.xlu1 %1579 }
 0x439   : > { %2610 = vpow2.f32 %v1604_v3  ;;  %v1594_v32 = vsub.f32 %v3062_v53, %v1580_v31 }
 0x43a   : > { %v2605_v8 = vpop.eup %2604 }
 0x43b   : > { %v1614_v7 = vsel %vm255_vm1, %v2605_v8, 0.0  ;;  %v1606_v40 = vmul.f32 1.442695, %v1594_v32 }
 0x43c   : > { %1615 = vadd.xlane.f32.xlu1 %v1614_v7  ;;  %v1583_v24 = vpop.xlane.xlu0 %1582 }
 0x43d   : > { %v1595_v36 = vsub.f32 %v3067_v47, %v1583_v24  ;;  %2612 = vpow2.f32 %v1606_v40 }
 0x43e   : > { %v2607_v19 = vpop.eup %2606 }
 0x43f   : > { %v1617_v59 = vsel %vm255_vm1, %v2607_v19, 0.0  ;;  %v1608_v35 = vmul.f32 1.442695, %v1595_v36 }
 0x440   : > { %1618 = vadd.xlane.f32.xlu0 %v1617_v59  ;;  %v1586_v34 = vpop.xlane.xlu1 %1585 }
 0x441   : > { %v1596_v43 = vsub.f32 %v1564_v56, %v1586_v34  ;;  %2614 = vpow2.f32 %v1608_v35 }
 0x442   : > { %v3084_v9 = vpop.eup %2608 }
 0x443   : > { %v1620_v18 = vsel %vm255_vm1, %v3084_v9, 0.0  ;;  %v1610_v61 = vmul.f32 1.442695, %v1596_v43 }
 0x444   : > { %1621 = vadd.xlane.f32.xlu1 %v1620_v18  ;;  %v1589_v25 = vpop.xlane.xlu0 %1588  ;;  %v1759_v56 = vpop.permute.xlu1 %1758 }
 0x445   : > { %v1597_v49 = vsub.f32 %v1565_v2, %v1589_v25  ;;  %2616 = vpow2.f32 %v1610_v61  ;;  %v1764_v4 = vsel %vm768_vm2, %v1759_v56, 0 }
 0x446   : > { %v3088_v26 = vpop.eup %2610 }
 0x447   : > { %v1623_v45 = vsel %vm255_vm1, %v3088_v26, 0.0  ;;  %v1612_v51 = vmul.f32 1.442695, %v1597_v49 }
 0x448   : > { %1624 = vadd.xlane.f32.xlu0 %v1623_v45  ;;  %v1711_v27 = vpop.permute.xlu0 %1710  ;;  %v1807_v57 = vpop.permute.xlu1 %1806 }
 0x449   : > { %v1716_v29 = vsel %vm768_vm2, %v1711_v27, 0  ;;  %2618 = vpow2.f32 %v1612_v51  ;;  %v1812_v54 = vsel %vm768_vm2, %v1807_v57, 0 }
 0x44a   : > { %2491 = vmatpush3.bf16.msra.mxu1 %v1716_v29 }
 0x44b   : > { %2502 = vmatprep.subr.bf16.mxu1 %v2660_v0 }
 0x455   : > { %1902 = vrot.lane.b32.xlu1 %v2734_v12, %s2666_s20  ;;  %v3100_v12 = vpop.eup %2612 }
 0x456   : > { %v3102_v41 = vpop.eup %2614 }
 0x457   : > { %v3106_v53 = vpop.eup %2616  ;;  %v1629_v55 = vsel %vm255_vm1, %v3102_v41, 0.0 }
 0x458   : > { %v1632_v47 = vsel %vm255_vm1, %v3106_v53, 0.0  ;;  %v3112_v10 = vpop.eup %2618 }
 0x459   : > { %v1635_v44 = vsel %vm255_vm1, %v3112_v10, 0.0 }
 0x45e   : > { %1854 = vrot.lane.b32.xlu0 %v2732_v11, %s2666_s20  ;;  %v1626_v11 = vsel %vm255_vm1, %v3100_v12, 0.0 }
 0x479   : > { %1627 = vadd.xlane.f32.xlu1 %v1626_v11 }
 0x47d   : > { %1633 = vadd.xlane.f32.xlu1 %v1632_v47  ;;  %1630 = vadd.xlane.f32.xlu0 %v1629_v55 }
 0x481   : > { %1636 = vadd.xlane.f32.xlu0 %v1635_v44 }
 0x48e   : > { %1998 = vrot.lane.b32.xlu1 %v2740_v16, %s2666_s20 }
 0x497   : > { %1950 = vrot.lane.b32.xlu0 %v2738_v15, %s2666_s20 }
 0x4c5   : > { %v1616_v60 = vpop.xlane.xlu1 %1615 }
 0x4c6   : > { %2620 = vrcp.f32 %v1616_v60 }
 0x4c9   : > { %v1619_v62 = vpop.xlane.xlu0 %1618 }
 0x4ca   : > { %2622 = vrcp.f32 %v1619_v62 }
 0x4cd   : > { %v1622_v63 = vpop.xlane.xlu1 %1621 }
 0x4ce   : > { %2624 = vrcp.f32 %v1622_v63 }
 0x4d1   : > { %v1625_v1 = vpop.xlane.xlu0 %1624  ;;  %v1903_v21 = vpop.permute.xlu1 %1902 }
 0x4d2   : > { %2626 = vrcp.f32 %v1625_v1  ;;  %v1908_v5 = vsel %vm768_vm2, %v1903_v21, 0 }
 0x4d3   : > { %v2621_v22 = vpop.eup %2620 }
 0x4d4   : > { %v1646_v2 = vmul.f32 %v2621_v22, %v2605_v8 }
 0x4d5   : > { %v1855_v17 = vpop.permute.xlu0 %1854 }
 0x4d6   : > { %v1654_v6 = vpack.c.bf16 %v1646_v2, %v1646_v2  ;;  %v1860_v39 = vsel %vm768_vm2, %v1855_v17, 0 }
 0x4d7   : > { %v2623_v37 = vpop.eup %2622 }
 0x4d8   : > { %2487 = vmatmul.mubr.msk.bf16.vlgmr.msra.gmra.mxu0 %vm255_vm1, %v1654_v6  ;;  %v1647_v16 = vmul.f32 %v2623_v37, %v2607_v19 }
 0x4d9   : > { %2497 = vmatpush3.bf16.msra.mxu0 %v1764_v4  ;;  %2498 = vmatprep.mubr.msk.bf16.mxu0 %vm2661_vm0, %v2660_v0 }
 0x4da   : > { %v1655_v15 = vpack.c.bf16 %v1647_v16, %v1647_v16  ;;  %2508 = vmatprep.subr.bf16.mxu0 %v2660_v0 }
 0x4db   : > { %v2625_v30 = vpop.eup %2624 }
 0x4dc   : > { %2493 = vmatmul.mubr.msk.bf16.vlgmr.msra.gmra.mxu1 %vm255_vm1, %v1655_v15  ;;  %v1648_v14 = vmul.f32 %v2625_v30, %v3084_v9 }
 0x4dd   : > { %2503 = vmatpush3.bf16.msra.mxu1 %v1812_v54  ;;  %2504 = vmatprep.mubr.msk.bf16.mxu1 %vm2661_vm0, %v2660_v0 }
 0x4de   : > { %v1656_v38 = vpack.c.bf16 %v1648_v14, %v1648_v14  ;;  %2514 = vmatprep.subr.bf16.mxu1 %v2660_v0 }
 0x4df   : > { %v2627_v52 = vpop.eup %2626 }
 0x4e0   : > { %2499 = vmatmul.mubr.msk.bf16.vlgmr.msra.gmra.mxu0 %vm255_vm1, %v1656_v38  ;;  %v1649_v50 = vmul.f32 %v2627_v52, %v3088_v26 }
 0x4e1   : > { %2509 = vmatpush3.bf16.msra.mxu0 %v1860_v39  ;;  %2510 = vmatprep.mubr.msk.bf16.mxu0 %vm2661_vm0, %v2660_v0 }
 0x4e2   : > { %v1657_v58 = vpack.c.bf16 %v1649_v50, %v1649_v50  ;;  %2520 = vmatprep.subr.bf16.mxu0 %v2660_v0 }
 0x4e4   : > { %2505 = vmatmul.mubr.msk.bf16.vlgmr.msra.gmra.mxu1 %vm255_vm1, %v1657_v58 }
 0x4e5   : > { %2515 = vmatpush3.bf16.msra.mxu1 %v1908_v5  ;;  %2516 = vmatprep.mubr.msk.bf16.mxu1 %vm2661_vm0, %v2660_v0 }
 0x4e6   : > { %2526 = vmatprep.subr.bf16.mxu1 %v2660_v0 }
 0x502   : > { %v1628_v3 = vpop.xlane.xlu1 %1627 }
 0x503   : > { %2628 = vrcp.f32 %v1628_v3 }
 0x506   : > { %v1634_v8 = vpop.xlane.xlu1 %1633  ;;  %v1631_v7 = vpop.xlane.xlu0 %1630 }
 0x507   : > { %2630 = vrcp.f32 %v1634_v8 }
 0x508   : > { %2632 = vrcp.f32 %v1631_v7 }
 0x50a   : > { %v1637_v19 = vpop.xlane.xlu0 %1636  ;;  %v1999_v27 = vpop.permute.xlu1 %1998 }
 0x50b   : > { %2634 = vrcp.f32 %v1637_v19  ;;  %v2004_v32 = vsel %vm768_vm2, %v1999_v27, 0 }
 0x50e   : > { %v1951_v24 = vpop.permute.xlu0 %1950 }
 0x50f   : > { %v1956_v25 = vsel %vm768_vm2, %v1951_v24, 0 }
 0x510   : > { %v2629_v59 = vpop.eup %2628 }
 0x511   : > { %v1650_v9 = vmul.f32 %v2629_v59, %v3100_v12  ;;  %v1148_v59 = vpack.c.bf16 %v3029_v13, %v3029_v13  ;;  %v1149_v13 = vpack.c.bf16 %v3031_v42, %v3031_v42 }
 0x513   : > { %v1658_v18 = vpack.c.bf16 %v1650_v9, %v1650_v9 }
 0x514   : > { %v2631_v26 = vpop.eup %2630 }
 0x515   : > { %v2633_v45 = vpop.eup %2632  ;;  %2511 = vmatmul.mubr.msk.bf16.vlgmr.msra.gmra.mxu0 %vm255_vm1, %v1658_v18  ;;  %v1652_v31 = vmul.f32 %v2631_v26, %v3106_v53  ;;  %v1150_v26 = vpack.c.bf16 %v3033_v20, %v3033_v20 }
 0x516   : > { %v1651_v29 = vmul.f32 %v2633_v45, %v3102_v41  ;;  %2521 = vmatpush3.bf16.msra.mxu0 %v1956_v25  ;;  %2522 = vmatprep.mubr.msk.bf16.mxu0 %vm2661_vm0, %v2660_v0 }
 0x517   : > { %v1660_v40 = vpack.c.bf16 %v1652_v31, %v1652_v31 }
 0x518   : > { %v1659_v34 = vpack.c.bf16 %v1651_v29, %v1651_v29  ;;  %v2635_v36 = vpop.eup %2634  ;;  %v1151_v29 = vpack.c.bf16 %v3035_v23, %v3035_v23 }
 0x519   : > { %v1653_v43 = vmul.f32 %v2635_v36, %v3112_v10  ;;  %v1153_v36 = vpack.c.bf16 %v3041_v33, %v3041_v33 }
 0x51a   : > { %2517 = vmatmul.mubr.msk.bf16.vlgmr.msra.gmra.mxu1 %vm255_vm1, %v1659_v34 }
 0x51b   : > { %2527 = vmatpush3.bf16.msra.mxu1 %v2004_v32  ;;  %2528 = vmatprep.mubr.msk.bf16.mxu1 %vm2661_vm0, %v2660_v0  ;;  %v1661_v35 = vpack.c.bf16 %v1653_v43, %v1653_v43  ;;  %v1152_v32 = vpack.c.bf16 %v3038_v28, %v3038_v28  ;;  %v1154_v43 = vpack.c.bf16 %v3043_v46, %v3043_v46 }
 0x51c   : > { %v1155_v28 = vpack.c.bf16 %v3045_v48, %v3045_v48 }
 0x51d   : > { %2523 = vmatmul.mubr.msk.bf16.vlgmr.msra.gmra.mxu0 %vm255_vm1, %v1660_v40 }
 0x522   : > { %2529 = vmatmul.mubr.msk.bf16.vlgmr.msra.gmra.mxu1 %vm255_vm1, %v1661_v35 }
 0x598   : > { %v1704_v61 = vpop.f32.mrf.mxu0 }
 0x599   : > { %v2046_v49 = vpack.c.bf16 %v1704_v61, %v1704_v61 }
 0x59a   : > { %v2488_v51 = vpop.f32.mrf.mxu0 }
 0x59b   : > { %2062 = vrot.lane.b32.xlu0 %v2046_v49, %s2667_s23 }
 0x59c   : > { %v1707_v12 = vpop.f32.mrf.mxu0  ;;  %v1752_v41 = vpop.f32.mrf.mxu1 }
 0x59d   : > { %v2047_v11 = vpack.c.bf16 %v1752_v41, %v1752_v41 }
 0x59e   : > { %v2489_v53 = vpop.f32.mrf.mxu0  ;;  %v2494_v47 = vpop.f32.mrf.mxu1 }
 0x59f   : > { %2064 = vrot.lane.b32.xlu1 %v2047_v11, %s2667_s23 }
 0x5a0   : > { %v1755_v0 = vpop.f32.mrf.mxu1  ;;  %v1800_v55 = vpop.f32.mrf.mxu0 }
 0x5a1   : > { %v2048_v10 = vpack.c.bf16 %v1800_v55, %v1800_v55 }
 0x5a2   : > { %v2495_v44 = vpop.f32.mrf.mxu1  ;;  %v2500_v56 = vpop.f32.mrf.mxu0 }
 0x5a3   : > { %2066 = vrot.lane.b32.xlu0 %v2048_v10, %s2667_s23 }
 0x5a4   : > { %v1803_v57 = vpop.f32.mrf.mxu0  ;;  %v1848_v60 = vpop.f32.mrf.mxu1 }
 0x5a5   : > { %v2049_v62 = vpack.c.bf16 %v1848_v60, %v1848_v60 }
 0x5a6   : > { %v2501_v63 = vpop.f32.mrf.mxu0  ;;  %v2506_v1 = vpop.f32.mrf.mxu1 }
 0x5a7   : > { %2068 = vrot.lane.b32.xlu1 %v2049_v62, %s2667_s23 }
 0x5a8   : > { %v1851_v22 = vpop.f32.mrf.mxu1 }
 0x5aa   : > { %v2507_v2 = vpop.f32.mrf.mxu1 }
 0x5d5   : > { %v1896_v6 = vpop.f32.mrf.mxu0 }
 0x5d6   : > { %v2050_v37 = vpack.c.bf16 %v1896_v6, %v1896_v6 }
 0x5d7   : > { %v2512_v4 = vpop.f32.mrf.mxu0 }
 0x5d8   : > { %2070 = vrot.lane.b32.xlu0 %v2050_v37, %s2667_s23 }
 0x5d9   : > { %v1899_v16 = vpop.f32.mrf.mxu0 }
 0x5da   : > { %v1944_v15 = vpop.f32.mrf.mxu1 }
 0x5db   : > { %v2051_v30 = vpack.c.bf16 %v1944_v15, %v1944_v15  ;;  %v2513_v54 = vpop.f32.mrf.mxu0 }
 0x5dc   : > { %v2518_v14 = vpop.f32.mrf.mxu1 }
 0x5dd   : > { %2072 = vrot.lane.b32.xlu1 %v2051_v30, %s2667_s23  ;;  %v1992_v17 = vpop.f32.mrf.mxu0 }
 0x5de   : > { %v1947_v38 = vpop.f32.mrf.mxu1  ;;  %v2052_v52 = vpack.c.bf16 %v1992_v17, %v1992_v17 }
 0x5df   : > { %v2524_v39 = vpop.f32.mrf.mxu0 }
 0x5e0   : > { %v2519_v50 = vpop.f32.mrf.mxu1  ;;  %2074 = vrot.lane.b32.xlu0 %v2052_v52, %s2667_s23 }
 0x5e1   : > { %v1995_v21 = vpop.f32.mrf.mxu0 }
 0x5e2   : > { %v2040_v58 = vpop.f32.mrf.mxu1 }
 0x5e3   : > { %v2053_v5 = vpack.c.bf16 %v2040_v58, %v2040_v58  ;;  %v2525_v3 = vpop.f32.mrf.mxu0 }
 0x5e4   : > { %v2530_v8 = vpop.f32.mrf.mxu1 }
 0x5e5   : > { %2076 = vrot.lane.b32.xlu1 %v2053_v5, %s2667_s23 }
 0x5e6   : > { %v2043_v7 = vpop.f32.mrf.mxu1 }
 0x5e8   : > { %v2531_v19 = vpop.f32.mrf.mxu1 }
 0x60d   : > { %v2063_v24 = vpop.permute.xlu0 %2062 }
 0x60e   : > { %v2080_v9 = vsel %vm255_vm1, %v1148_v59, %v2063_v24 }
 0x60f   : > { %2111 = vst.msk [vmem:[%s3171_s26] sm:$0xf] %vm2110_vm3, %v2080_v9 }
 0x611   : > { %v2065_v18 = vpop.permute.xlu1 %2064 }
 0x612   : > { %v2084_v25 = vsel %vm255_vm1, %v1149_v13, %v2065_v18 }
 0x613   : > { %2112 = vst.msk [vmem:[%s3171_s26 + $0x4] sm:$0xf] %vm2110_vm3, %v2084_v25 }
 0x615   : > { %v2067_v45 = vpop.permute.xlu0 %2066 }
 0x616   : > { %v2088_v27 = vsel %vm255_vm1, %v1150_v26, %v2067_v45 }
 0x617   : > { %2113 = vst.msk [vmem:[%s3171_s26 + $0x8] sm:$0xf] %vm2110_vm3, %v2088_v27 }
 0x619   : > { %v2069_v31 = vpop.permute.xlu1 %2068 }
 0x61a   : > { %v2092_v42 = vsel %vm255_vm1, %v1151_v29, %v2069_v31 }
 0x61b   : > { %2114 = vst.msk [vmem:[%s3171_s26 + $0xc] sm:$0xf] %vm2110_vm3, %v2092_v42 }
 0x64a   : > { %v2071_v20 = vpop.permute.xlu0 %2070 }
 0x64b   : > { %v2096_v34 = vsel %vm255_vm1, %v1152_v32, %v2071_v20 }
 0x64c   : > { %2115 = vst.msk [vmem:[%s3171_s26 + $0x10] sm:$0xf] %vm2110_vm3, %v2096_v34 }
 0x64f   : > { %v2073_v40 = vpop.permute.xlu1 %2072 }
 0x650   : > { %v2100_v23 = vsel %vm255_vm1, %v1153_v36, %v2073_v40 }
 0x651   : > { %2116 = vst.msk [vmem:[%s3171_s26 + $0x14] sm:$0xf] %vm2110_vm3, %v2100_v23 }
 0x652   : > { %v2075_v35 = vpop.permute.xlu0 %2074 }
 0x653   : > { %v2104_v61 = vsel %vm255_vm1, %v1154_v43, %v2075_v35 }
 0x654   : > { %2117 = vst.msk [vmem:[%s3171_s26 + $0x18] sm:$0xf] %vm2110_vm3, %v2104_v61 }
 0x657   : > { %v2077_v49 = vpop.permute.xlu1 %2076 }
 0x658   : > { %v2108_v51 = vsel %vm255_vm1, %v1155_v28, %v2077_v49 }
 0x659   : > { %2118 = vst.msk [vmem:[%s3171_s26 + $0x1c] sm:$0xf] %vm2110_vm3, %v2108_v51 }
 0x65a PF: > { %s13_s14 = sadd.s32 1, %s2658_s14   ;;  %s3224_s12 = smov %s2654_s13 }
 0x65b   : > { %p10_p5 = scmp.ge.s32.totalorder %s13_s14, 4   ;;  %s3225_s13 = smov %s3227_s15 }
 0x65d   :  { %12 = sbr.rel (!%p10_p5) target bundleno = 2 (0x2), region = 66 }

// kernel: swin3d_forward.36
= control target key start
LH: loop header
LB: loop body
LE: loop exit
PB: predicated region body
PF: predicated region fallthrough
CT: control target
= control target key end

     0   :  { %s637_s18 = smov 0   ;;  %s639_s19 = smov 0   ;;  %s697_s0 = inlined_call_operand.vmem [shape: bf16[32,32], index: 0, kind: input, shape index: {}]   ;;  %s698_s1 = inlined_call_operand.vmem [shape: bf16[32,96], index: 1, kind: input, shape index: {}]   ;;  %s699_s2 = inlined_call_operand.vmem [shape: f32[1,96], index: 2, kind: input, shape index: {}]   ;;  %s700_s3 = inlined_call_operand.vmem [shape: f32[1,32], index: 3, kind: input, shape index: {}]   ;;  %s701_s4 = inlined_call_operand.vmem [shape: f32[1,32], index: 4, kind: input, shape index: {}]   ;;  %s702_s5 = inlined_call_operand.vmem [shape: bf16[32,96], index: 5, kind: output, shape index: {}]  }
   0x1   :  { %s641_s20 = smov 0  }
   0x2 LB: > { %s27_s21 = sadd.s32 1, %s599_s19  ;;  %p517_p0 = scmp.ge.s32.totalorder %s603_s20, 1  ;;  %s603_s20 = sphi %s641_s20, %s15_s20   ;;  %s599_s19 = sphi %s639_s19, %s704_s19   ;;  %s595_s18 = sphi %s637_s18, %s703_s18  }
   0x3   : > { %p29_p1 = scmp.ge.s32.totalorder %s27_s21, 2  ;;  %p219_p2 = scmp.lt.s32.totalorder %s603_s20, 3 }
   0x5   : > { %s706_s21 = smov (%p29_p1, %s27_s21), 0  ;;  %p220_p3 = pnand %p517_p0, %p219_p2 }
   0x6   : > { %s518_s22 = sshll.u32 (!%p220_p3), %s595_s18, 1 }
   0x7   : > { %223 = sbr.rel (%p220_p3) target bundleno = 534 (0x216), region = 40  ;;  %p258_p4 = scmp.lt.s32.totalorder (!%p220_p3), %s518_s22, 3 }
   0xc   : > { %s708_s22 = smov (!%p258_p4, %s518_s22), 3  ;;  %vm284_vm0 = vcmask 261120   ;;  %v575_v15 = vld [vmem:[%s698_s1 + $0x8] sm:$0xff]   ;;  %v605_v16 = vmov 0.0   ;;  %vm606_vm1 = vmmov 0   ;;  %v576_v17 = vld [vmem:[%s698_s1] sm:$0xff]  }
   0xd   : > { %s519_s23 = sshll.u32 %s708_s22, 2  ;;  %541 = vmatprep.subr.bf16.mxu0 %v605_v16  ;;  %545 = vmatprep.mubr.msk.bf16.mxu0 %vm606_vm1, %v605_v16  ;;  %v522_v26 = vld [vmem:[%s700_s3] ss:$0 sm:$0xff]  ;;  %vm406_vm2 = vcmask 781312  }
   0xe   : > { %s261_s26 = scalar_lea.vmem %s697_s0, %s519_s23  ;;  %542 = vmatpush3.bf16.msra.mxu0 %v575_v15  ;;  %v523_v30 = vld [vmem:[%s701_s4] ss:$0 sm:$0xff]  ;;  %s277_s14 = scalar_lea.vmem %s702_s5, %s519_s23 }
   0xf   : > { %v535_v0 = vld [vmem:[%s261_s26] sm:$0xff]   ;;  %543 = vmatprep.subr.bf16.mxu0 %v605_v16 }
  0x10   : > { %v536_v1 = vunpack.c.l.bf16 %v535_v0  ;;  %v537_v2 = vunpack.c.h.bf16 %v535_v0  ;;  %v524_v35 = vld [vmem:[%s699_s2] ss:$0 sm:$0xff] }
  0x12   : > { %v285_v3 = vsel %vm284_vm0, %v536_v1, 0.0  ;;  %v288_v4 = vsel %vm284_vm0, %v537_v2, 0.0  ;;  %544 = vmatpush3.bf16.msra.mxu0 %v576_v17 }
  0x13   : > { %286 = vadd.xlane.f32.xlu0 %v285_v3 }
  0x17   : > { %289 = vadd.xlane.f32.xlu0 %v288_v4 }
  0x9c   : > { %v287_v5 = vpop.xlane.xlu0 %286 }
  0x9d   : > { %v292_v6 = vmul.f32 0.03125, %v287_v5 }
  0x9f   : > { %v294_v7 = vsub.f32 %v536_v1, %v292_v6 }
  0xa0   : > { %v290_v8 = vpop.xlane.xlu0 %289 }
  0xa1   : > { %v293_v9 = vmul.f32 0.03125, %v290_v8  ;;  %v296_v10 = vmul.f32 %v294_v7, %v294_v7 }
  0xa3   : > { %v295_v11 = vsub.f32 %v537_v2, %v293_v9  ;;  %v298_v12 = vsel %vm284_vm0, %v296_v10, 0.0 }
  0xa4   : > { %299 = vadd.xlane.f32.xlu1 %v298_v12 }
  0xa5   : > { %v297_v13 = vmul.f32 %v295_v11, %v295_v11 }
  0xa7   : > { %v301_v14 = vsel %vm284_vm0, %v297_v13, 0.0 }
  0xa8   : > { %302 = vadd.xlane.f32.xlu1 %v301_v14 }
 0x12d   : > { %v300_v18 = vpop.xlane.xlu1 %299 }
 0x12e   : > { %v304_v19 = vmul.f32 0.03125, %v300_v18 }
 0x130   : > { %v306_v20 = vadd.f32 1e-05, %v304_v19 }
 0x131   : > { %v303_v21 = vpop.xlane.xlu1 %302 }
 0x132   : > { %577 = vrsqrt.f32 %v306_v20  ;;  %v305_v22 = vmul.f32 0.03125, %v303_v21 }
 0x134   : > { %v307_v23 = vadd.f32 1e-05, %v305_v22 }
 0x136   : > { %579 = vrsqrt.f32 %v307_v23 }
 0x13f   : > { %v578_v24 = vpop.eup %577 }
 0x140   : > { %v310_v25 = vmul.f32 %v578_v24, %v294_v7 }
 0x142   : > { %v319_v29 = vmul.f32 %v522_v26, %v310_v25 }
 0x143   : > { %v580_v27 = vpop.eup %579 }
 0x144   : > { %v311_v28 = vmul.f32 %v580_v27, %v295_v11  ;;  %v328_v32 = vadd.f32 %v523_v30, %v319_v29 }
 0x146   : > { %v320_v31 = vmul.f32 %v522_v26, %v311_v28 }
 0x148   : > { %v329_v33 = vadd.f32 %v523_v30, %v320_v31 }
 0x14a   : > { %v330_v34 = vpack.c.bf16 %v329_v33, %v328_v32 }
 0x14c   : > { %546 = vmatmul.mubr.msk.bf16.vlgmr.msra.gmra.mxu0 %vm284_vm0, %v330_v34 }
 0x20c   : > { %v391_v36 = vpop.f32.mrf.mxu0 }
 0x20d   : > { %v392_v37 = vadd.f32 %v524_v35, %v391_v36 }
 0x20e   : > { %v547_v38 = vpop.f32.mrf.mxu0 }
 0x20f   : > { %v532_v39 = vpack.c.bf16 %v392_v37, %v392_v37 }
 0x210   : > { %v394_v40 = vpop.f32.mrf.mxu0 }
 0x211   : > { %407 = vst.msk [vmem:[%s277_s14] sm:$0xf] %vm406_vm2, %v532_v39  ;;  %v395_v41 = vadd.f32 %v524_v35, %v394_v40 }
 0x212   : > { %v548_v42 = vpop.f32.mrf.mxu0 }
 0x213   : > { %v533_v43 = vpack.c.bf16 %v395_v41, %v395_v41 }
 0x215   : > { %408 = vst.msk [vmem:[%s277_s14 + $0x4] sm:$0xf] %vm406_vm2, %v533_v43 }
 0x216 PF: > { %s15_s20 = sadd.s32 1, %s603_s20   ;;  %s703_s18 = smov %s599_s19 }
 0x217   : > { %p12_p5 = scmp.ge.s32.totalorder %s15_s20, 4   ;;  %s704_s19 = smov %s706_s21 }
 0x219   :  { %14 = sbr.rel (!%p12_p5) target bundleno = 2 (0x2), region = 76 }

// kernel: swin3d_forward.35
= control target key start
LH: loop header
LB: loop body
LE: loop exit
PB: predicated region body
PF: predicated region fallthrough
CT: control target
= control target key end

     0   :  { %s663_s18 = smov 0   ;;  %s665_s19 = smov 0   ;;  %s729_s0 = inlined_call_operand.vmem [shape: bf16[32,64], index: 0, kind: input, shape index: {}]   ;;  %s730_s1 = inlined_call_operand.vmem [shape: bf16[64,32], index: 1, kind: input, shape index: {}]   ;;  %s731_s2 = inlined_call_operand.vmem [shape: f32[1,32], index: 2, kind: input, shape index: {}]   ;;  %s732_s3 = inlined_call_operand.vmem [shape: f32[1,64], index: 3, kind: input, shape index: {}]   ;;  %s733_s4 = inlined_call_operand.vmem [shape: f32[1,64], index: 4, kind: input, shape index: {}]   ;;  %s734_s5 = inlined_call_operand.vmem [shape: bf16[32,32], index: 5, kind: output, shape index: {}]  }
   0x1   :  { %s667_s20 = smov 0  }
   0x2 LB: > { %s27_s21 = sadd.s32 1, %s625_s19  ;;  %p533_p0 = scmp.ge.s32.totalorder %s629_s20, 1  ;;  %s629_s20 = sphi %s667_s20, %s15_s20   ;;  %s625_s19 = sphi %s665_s19, %s736_s19   ;;  %s621_s18 = sphi %s663_s18, %s735_s18  }
   0x3   : > { %p29_p1 = scmp.ge.s32.totalorder %s27_s21, 2  ;;  %p219_p2 = scmp.lt.s32.totalorder %s629_s20, 3 }
   0x5   : > { %s738_s21 = smov (%p29_p1, %s27_s21), 0  ;;  %p220_p3 = pnand %p533_p0, %p219_p2 }
   0x6   : > { %s534_s22 = sshll.u32 (!%p220_p3), %s621_s18, 1 }
   0x7   : > { %223 = sbr.rel (%p220_p3) target bundleno = 534 (0x216), region = 40  ;;  %p258_p4 = scmp.lt.s32.totalorder (!%p220_p3), %s534_s22, 3 }
   0xc   : > { %s740_s22 = smov (!%p258_p4, %s534_s22), 3  ;;  %vm284_vm0 = vcmask 523264   ;;  %v599_v15 = vld [vmem:[%s730_s1 + $0x18] sm:$0xff]   ;;  %v631_v16 = vmov 0.0   ;;  %vm632_vm1 = vmmov 0   ;;  %v600_v17 = vld [vmem:[%s730_s1 + $0x10] sm:$0xff]  }
   0xd   : > { %s535_s23 = sshll.u32 %s740_s22, 2  ;;  %561 = vmatprep.subr.bf16.mxu0 %v631_v16  ;;  %569 = vmatprep.mubr.msk.bf16.mxu0 %vm632_vm1, %v631_v16  ;;  %v601_v18 = vld [vmem:[%s730_s1 + $0x8] sm:$0xff]   ;;  %v602_v19 = vld [vmem:[%s730_s1] sm:$0xff]   ;;  %vm422_vm2 = vcmask 257024  }
   0xe   : > { %s261_s26 = scalar_lea.vmem %s729_s0, %s535_s23  ;;  %562 = vmatpush3.bf16.msra.mxu0 %v599_v15  ;;  %v538_v28 = vld [vmem:[%s732_s3] ss:$0 sm:$0xff]  ;;  %s277_s18 = scalar_lea.vmem %s734_s5, %s535_s23 }
   0xf   : > { %v553_v0 = vld [vmem:[%s261_s26] sm:$0xff]   ;;  %563 = vmatprep.subr.bf16.mxu0 %v631_v16 }
  0x10   : > { %v554_v1 = vunpack.c.l.bf16 %v553_v0  ;;  %v555_v2 = vunpack.c.h.bf16 %v553_v0  ;;  %v539_v32 = vld [vmem:[%s733_s4] ss:$0 sm:$0xff] }
  0x11   : > { %v540_v37 = vld [vmem:[%s731_s2] ss:$0 sm:$0xff] }
  0x12   : > { %v285_v3 = vsel %vm284_vm0, %v554_v1, 0.0  ;;  %v288_v4 = vsel %vm284_vm0, %v555_v2, 0.0  ;;  %564 = vmatpush3.bf16.msra.mxu0 %v600_v17 }
  0x13   : > { %286 = vadd.xlane.f32.xlu0 %v285_v3  ;;  %565 = vmatprep.subr.bf16.mxu0 %v631_v16 }
  0x16   : > { %566 = vmatpush3.bf16.msra.mxu0 %v601_v18 }
  0x17   : > { %289 = vadd.xlane.f32.xlu0 %v288_v4  ;;  %567 = vmatprep.subr.bf16.mxu0 %v631_v16 }
  0x1a   : > { %568 = vmatpush3.bf16.msra.mxu0 %v602_v19 }
  0x9c   : > { %v287_v5 = vpop.xlane.xlu0 %286 }
  0x9d   : > { %v292_v6 = vmul.f32 0.015625, %v287_v5 }
  0x9f   : > { %v294_v7 = vsub.f32 %v554_v1, %v292_v6 }
  0xa0   : > { %v290_v8 = vpop.xlane.xlu0 %289 }
  0xa1   : > { %v293_v9 = vmul.f32 0.015625, %v290_v8  ;;  %v296_v10 = vmul.f32 %v294_v7, %v294_v7 }
  0xa3   : > { %v295_v11 = vsub.f32 %v555_v2, %v293_v9  ;;  %v298_v12 = vsel %vm284_vm0, %v296_v10, 0.0 }
  0xa4   : > { %299 = vadd.xlane.f32.xlu1 %v298_v12 }
  0xa5   : > { %v297_v13 = vmul.f32 %v295_v11, %v295_v11 }
  0xa7   : > { %v301_v14 = vsel %vm284_vm0, %v297_v13, 0.0 }
  0xa8   : > { %302 = vadd.xlane.f32.xlu1 %v301_v14 }
 0x12d   : > { %v300_v20 = vpop.xlane.xlu1 %299 }
 0x12e   : > { %v304_v21 = vmul.f32 0.015625, %v300_v20 }
 0x130   : > { %v306_v22 = vadd.f32 1e-05, %v304_v21 }
 0x131   : > { %v303_v23 = vpop.xlane.xlu1 %302 }
 0x132   : > { %603 = vrsqrt.f32 %v306_v22  ;;  %v305_v24 = vmul.f32 0.015625, %v303_v23 }
 0x134   : > { %v307_v25 = vadd.f32 1e-05, %v305_v24 }
 0x136   : > { %605 = vrsqrt.f32 %v307_v25 }
 0x13f   : > { %v604_v26 = vpop.eup %603 }
 0x140   : > { %v310_v27 = vmul.f32 %v604_v26, %v294_v7 }
 0x142   : > { %v319_v31 = vmul.f32 %v538_v28, %v310_v27 }
 0x143   : > { %v606_v29 = vpop.eup %605 }
 0x144   : > { %v311_v30 = vmul.f32 %v606_v29, %v295_v11  ;;  %v328_v34 = vadd.f32 %v539_v32, %v319_v31 }
 0x146   : > { %v320_v33 = vmul.f32 %v538_v28, %v311_v30 }
 0x148   : > { %v329_v35 = vadd.f32 %v539_v32, %v320_v33 }
 0x14a   : > { %v330_v36 = vpack.c.bf16 %v329_v35, %v328_v34 }
 0x14c   : > { %570 = vmatmul.mubr.msk.bf16.vlgmr.msra.gmra.mxu0 %vm284_vm0, %v330_v36 }
 0x20c   : > { %v407_v38 = vpop.f32.mrf.mxu0 }
 0x20d   : > { %v408_v39 = vadd.f32 %v540_v37, %v407_v38 }
 0x20e   : > { %v571_v40 = vpop.f32.mrf.mxu0 }
 0x20f   : > { %v550_v41 = vpack.c.bf16 %v408_v39, %v408_v39 }
 0x210   : > { %v410_v42 = vpop.f32.mrf.mxu0 }
 0x211   : > { %423 = vst.msk [vmem:[%s277_s18] sm:$0xf] %vm422_vm2, %v550_v41  ;;  %v411_v43 = vadd.f32 %v540_v37, %v410_v42 }
 0x212   : > { %v572_v44 = vpop.f32.mrf.mxu0 }
 0x213   : > { %v551_v45 = vpack.c.bf16 %v411_v43, %v411_v43 }
 0x215   : > { %424 = vst.msk [vmem:[%s277_s18 + $0x4] sm:$0xf] %vm422_vm2, %v551_v45 }
 0x216 PF: > { %s15_s20 = sadd.s32 1, %s629_s20   ;;  %s735_s18 = smov %s625_s19 }
 0x217   : > { %p12_p5 = scmp.ge.s32.totalorder %s15_s20, 4   ;;  %s736_s19 = smov %s738_s21 }
 0x219   :  { %14 = sbr.rel (!%p12_p5) target bundleno = 2 (0x2), region = 76 }

// kernel: swin3d_forward.38
= control target key start
LH: loop header
LB: loop body
LE: loop exit
PB: predicated region body
PF: predicated region fallthrough
CT: control target
= control target key end

     0   :  { %s614_s15 = smov 0   ;;  %s616_s16 = smov 0   ;;  %s659_s0 = inlined_call_operand.vmem [shape: bf16[32,32], index: 0, kind: input, shape index: {}]   ;;  %s660_s1 = inlined_call_operand.vmem [shape: bf16[32,32], index: 1, kind: input, shape index: {}]   ;;  %s661_s2 = inlined_call_operand.vmem [shape: f32[1,32], index: 2, kind: input, shape index: {}]   ;;  %s662_s3 = inlined_call_operand.vmem [shape: bf16[32,32], index: 3, kind: input, shape index: {}]   ;;  %s663_s4 = inlined_call_operand.vmem [shape: bf16[32,32], index: 4, kind: output, shape index: {}]  }
   0x1   :  { %s618_s17 = smov 0  }
   0x2 LB: > { %s26_s18 = sadd.s32 1, %s581_s16  ;;  %p501_p0 = scmp.ge.s32.totalorder %s585_s17, 1  ;;  %s585_s17 = sphi %s618_s17, %s14_s17   ;;  %s581_s16 = sphi %s616_s16, %s665_s16   ;;  %s577_s15 = sphi %s614_s15, %s664_s15  }
   0x3   : > { %p28_p1 = scmp.ge.s32.totalorder %s26_s18, 2  ;;  %p210_p2 = scmp.lt.s32.totalorder %s585_s17, 3 }
   0x5   : > { %s667_s18 = smov (%p28_p1, %s26_s18), 0  ;;  %p211_p3 = pnand %p501_p0, %p210_p2 }
   0x6   : > { %s502_s23 = sshll.u32 (!%p211_p3), %s577_s15, 1 }
   0x7   : > { %214 = sbr.rel (%p211_p3) target bundleno = 225 (0xe1), region = 36  ;;  %p255_p4 = scmp.lt.s32.totalorder (!%p211_p3), %s502_s23, 3 }
   0xc   : > { %v560_v0 = vld [vmem:[%s660_s1 + $0x8] sm:$0xff]   ;;  %v587_v1 = vmov 0.0   ;;  %v561_v2 = vld [vmem:[%s660_s1] sm:$0xff]   ;;  %vm588_vm0 = vmmov 0   ;;  %s669_s23 = smov (!%p255_p4, %s502_s23), 3  ;;  %vm316_vm1 = vcmask 261120  }
   0xd   : > { %526 = vmatprep.subr.bf16.mxu0 %v587_v1  ;;  %530 = vmatprep.mubr.msk.bf16.mxu0 %vm588_vm0, %v587_v1  ;;  %s503_s24 = sshll.u32 %s669_s23, 2  ;;  %v508_v5 = vld [vmem:[%s661_s2] ss:$0 sm:$0xff]  ;;  %vm375_vm2 = vcmask 257024  }
   0xe   : > { %527 = vmatpush3.bf16.msra.mxu0 %v560_v0  ;;  %s258_s27 = scalar_lea.vmem %s659_s0, %s503_s24  ;;  %s274_s30 = scalar_lea.vmem %s662_s3, %s503_s24 }
   0xf   : > { %528 = vmatprep.subr.bf16.mxu0 %v587_v1  ;;  %v562_v3 = vld [vmem:[%s258_s27] sm:$0xff]   ;;  %s283_s9 = scalar_lea.vmem %s663_s4, %s503_s24 }
  0x10   : > { %v520_v4 = vld [vmem:[%s274_s30] sm:$0xff]  }
  0x11   : > { %v521_v6 = vunpack.c.l.bf16 %v520_v4  ;;  %v522_v11 = vunpack.c.h.bf16 %v520_v4 }
  0x12   : > { %529 = vmatpush3.bf16.msra.mxu0 %v561_v2 }
  0x15   : > { %531 = vmatmul.mubr.msk.bf16.vlgmr.msra.gmra.mxu0 %vm316_vm1, %v562_v3 }
  0xd5   : > { %v354_v7 = vpop.f32.mrf.mxu0 }
  0xd6   : > { %v355_v8 = vadd.f32 %v508_v5, %v354_v7 }
  0xd7   : > { %v532_v9 = vpop.f32.mrf.mxu0 }
  0xd8   : > { %v365_v10 = vadd.f32 %v521_v6, %v355_v8 }
  0xd9   : > { %v357_v12 = vpop.f32.mrf.mxu0 }
  0xda   : > { %v517_v13 = vpack.c.bf16 %v365_v10, %v365_v10  ;;  %v358_v14 = vadd.f32 %v508_v5, %v357_v12 }
  0xdb   : > { %v533_v15 = vpop.f32.mrf.mxu0 }
  0xdc   : > { %376 = vst.msk [vmem:[%s283_s9] sm:$0xf] %vm375_vm2, %v517_v13  ;;  %v366_v16 = vadd.f32 %v522_v11, %v358_v14 }
  0xde   : > { %v518_v17 = vpack.c.bf16 %v366_v16, %v366_v16 }
  0xe0   : > { %377 = vst.msk [vmem:[%s283_s9 + $0x4] sm:$0xf] %vm375_vm2, %v518_v17 }
  0xe1 PF: > { %s14_s17 = sadd.s32 1, %s585_s17   ;;  %s664_s15 = smov %s581_s16 }
  0xe2   : > { %p11_p5 = scmp.ge.s32.totalorder %s14_s17, 4   ;;  %s665_s16 = smov %s667_s18 }
  0xe4   :  { %13 = sbr.rel (!%p11_p5) target bundleno = 2 (0x2), region = 75 }

// kernel: swin3d_forward.39
= control target key start
LH: loop header
LB: loop body
LE: loop exit
PB: predicated region body
PF: predicated region fallthrough
CT: control target
= control target key end

     0   :  { %s703_s18 = smov 0   ;;  %s705_s19 = smov 0   ;;  %s763_s0 = inlined_call_operand.vmem [shape: bf16[32,32], index: 0, kind: input, shape index: {}]   ;;  %s764_s1 = inlined_call_operand.vmem [shape: bf16[32,128], index: 1, kind: input, shape index: {}]   ;;  %s765_s2 = inlined_call_operand.vmem [shape: f32[1,128], index: 2, kind: input, shape index: {}]   ;;  %s766_s3 = inlined_call_operand.vmem [shape: f32[1,32], index: 3, kind: input, shape index: {}]   ;;  %s767_s4 = inlined_call_operand.vmem [shape: f32[1,32], index: 4, kind: input, shape index: {}]   ;;  %s768_s5 = inlined_call_operand.vmem [shape: bf16[32,128], index: 5, kind: output, shape index: {}]  }
   0x1   :  { %s707_s20 = smov 0  }
   0x2 LB: > { %s27_s21 = sadd.s32 1, %s664_s19  ;;  %p568_p0 = scmp.ge.s32.totalorder %s668_s20, 1  ;;  %s668_s20 = sphi %s707_s20, %s15_s20   ;;  %s664_s19 = sphi %s705_s19, %s770_s19   ;;  %s660_s18 = sphi %s703_s18, %s769_s18  }
   0x3   : > { %p29_p1 = scmp.ge.s32.totalorder %s27_s21, 2  ;;  %p219_p2 = scmp.lt.s32.totalorder %s668_s20, 3 }
   0x5   : > { %s772_s21 = smov (%p29_p1, %s27_s21), 0  ;;  %p220_p3 = pnand %p568_p0, %p219_p2 }
   0x6   : > { %s569_s22 = sshll.u32 (!%p220_p3), %s660_s18, 1 }
   0x7   : > { %223 = sbr.rel (%p220_p3) target bundleno = 584 (0x248), region = 40  ;;  %p258_p4 = scmp.lt.s32.totalorder (!%p220_p3), %s569_s22, 3 }
   0xc   : > { %s774_s22 = smov (!%p258_p4, %s569_s22), 3  ;;  %vm284_vm0 = vcmask 261120   ;;  %v632_v15 = vld [vmem:[%s764_s1 + $0x8] sm:$0xff]   ;;  %v670_v16 = vmov 0.0   ;;  %vm671_vm1 = vmmov 0   ;;  %v633_v17 = vld [vmem:[%s764_s1] sm:$0xff]  }
   0xd   : > { %s570_s23 = sshll.u32 %s774_s22, 2  ;;  %597 = vmatprep.subr.bf16.mxu0 %v670_v16  ;;  %601 = vmatprep.mubr.msk.bf16.mxu0 %vm671_vm1, %v670_v16  ;;  %v573_v26 = vld [vmem:[%s766_s3] ss:$0 sm:$0xff] }
   0xe   : > { %s261_s26 = scalar_lea.vmem %s763_s0, %s570_s23  ;;  %598 = vmatpush3.bf16.msra.mxu0 %v632_v15  ;;  %v574_v30 = vld [vmem:[%s767_s4] ss:$0 sm:$0xff]  ;;  %s277_s14 = scalar_lea.vmem %s768_s5, %s570_s23 }
   0xf   : > { %v586_v0 = vld [vmem:[%s261_s26] sm:$0xff]   ;;  %599 = vmatprep.subr.bf16.mxu0 %v670_v16  ;;  %v672_v16 = vmov -1.0  }
  0x10   : > { %v587_v1 = vunpack.c.l.bf16 %v586_v0  ;;  %v588_v2 = vunpack.c.h.bf16 %v586_v0  ;;  %v575_v35 = vld [vmem:[%s765_s2] ss:$0 sm:$0xff] }
  0x12   : > { %v285_v3 = vsel %vm284_vm0, %v587_v1, 0.0  ;;  %v288_v4 = vsel %vm284_vm0, %v588_v2, 0.0  ;;  %600 = vmatpush3.bf16.msra.mxu0 %v633_v17 }
  0x13   : > { %286 = vadd.xlane.f32.xlu0 %v285_v3 }
  0x17   : > { %289 = vadd.xlane.f32.xlu0 %v288_v4 }
  0x9c   : > { %v287_v5 = vpop.xlane.xlu0 %286 }
  0x9d   : > { %v292_v6 = vmul.f32 0.03125, %v287_v5 }
  0x9f   : > { %v294_v7 = vsub.f32 %v587_v1, %v292_v6 }
  0xa0   : > { %v290_v8 = vpop.xlane.xlu0 %289 }
  0xa1   : > { %v293_v9 = vmul.f32 0.03125, %v290_v8  ;;  %v296_v10 = vmul.f32 %v294_v7, %v294_v7 }
  0xa3   : > { %v295_v11 = vsub.f32 %v588_v2, %v293_v9  ;;  %v298_v12 = vsel %vm284_vm0, %v296_v10, 0.0 }
  0xa4   : > { %299 = vadd.xlane.f32.xlu1 %v298_v12 }
  0xa5   : > { %v297_v13 = vmul.f32 %v295_v11, %v295_v11 }
  0xa7   : > { %v301_v14 = vsel %vm284_vm0, %v297_v13, 0.0 }
  0xa8   : > { %302 = vadd.xlane.f32.xlu1 %v301_v14 }
 0x12d   : > { %v300_v18 = vpop.xlane.xlu1 %299 }
 0x12e   : > { %v304_v19 = vmul.f32 0.03125, %v300_v18 }
 0x130   : > { %v306_v20 = vadd.f32 1e-05, %v304_v19 }
 0x131   : > { %v303_v21 = vpop.xlane.xlu1 %302 }
 0x132   : > { %634 = vrsqrt.f32 %v306_v20  ;;  %v305_v22 = vmul.f32 0.03125, %v303_v21 }
 0x134   : > { %v307_v23 = vadd.f32 1e-05, %v305_v22 }
 0x136   : > { %636 = vrsqrt.f32 %v307_v23 }
 0x13f   : > { %v635_v24 = vpop.eup %634 }
 0x140   : > { %v310_v25 = vmul.f32 %v635_v24, %v294_v7 }
 0x142   : > { %v319_v29 = vmul.f32 %v573_v26, %v310_v25 }
 0x143   : > { %v637_v27 = vpop.eup %636 }
 0x144   : > { %v311_v28 = vmul.f32 %v637_v27, %v295_v11  ;;  %v328_v32 = vadd.f32 %v574_v30, %v319_v29 }
 0x146   : > { %v320_v31 = vmul.f32 %v573_v26, %v311_v28 }
 0x148   : > { %v329_v33 = vadd.f32 %v574_v30, %v320_v31 }
 0x14a   : > { %v330_v34 = vpack.c.bf16 %v329_v33, %v328_v32 }
 0x14c   : > { %602 = vmatmul.mubr.msk.bf16.vlgmr.msra.gmra.mxu0 %vm284_vm0, %v330_v34 }
 0x20c   : > { %v391_v36 = vpop.f32.mrf.mxu0 }
 0x20d   : > { %v392_v37 = vadd.f32 %v575_v35, %v391_v36 }
 0x20e   : > { %v603_v38 = vpop.f32.mrf.mxu0 }
 0x20f   : > { %v398_v39 = vmul.f32 0.70710677, %v392_v37  ;;  %v444_v24 = vmul.f32 0.5, %v392_v37 }
 0x210   : > { %v394_v40 = vpop.f32.mrf.mxu0 }
 0x211   : > { %v404_v41 = vand.u32 2147483647, %v398_v39  ;;  %v395_v42 = vadd.f32 %v575_v35, %v394_v40  ;;  %vm400_vm2 = vcmp.ge.f32.partialorder %v398_v39, 0.0 }
 0x212   : > { %v604_v43 = vpop.f32.mrf.mxu0  ;;  %v402_v17 = vsel %vm400_vm2, 1.0, %v672_v16 }
 0x213   : > { %v406_v44 = vmul.f32 0.3275911, %v404_v41  ;;  %v399_v45 = vmul.f32 0.70710677, %v395_v42  ;;  %v430_v50 = vsub.f32 0.0, %v404_v41  ;;  %v445_v25 = vmul.f32 0.5, %v395_v42 }
 0x215   : > { %v408_v46 = vadd.f32 1.0, %v406_v44  ;;  %v405_v47 = vand.u32 2147483647, %v399_v45  ;;  %v432_v51 = vmul.f32 %v430_v50, %v404_v41  ;;  %vm401_vm3 = vcmp.ge.f32.partialorder %v399_v45, 0.0 }
 0x216   : > { %v403_v21 = vsel %vm401_vm3, 1.0, %v672_v16 }
 0x217   : > { %638 = vrcp.f32 %v408_v46  ;;  %v407_v48 = vmul.f32 0.3275911, %v405_v47  ;;  %v431_v52 = vsub.f32 0.0, %v405_v47  ;;  %v434_v55 = vmul.f32 1.442695, %v432_v51 }
 0x219   : > { %v409_v49 = vadd.f32 1.0, %v407_v48  ;;  %v433_v56 = vmul.f32 %v431_v52, %v405_v47 }
 0x21b   : > { %640 = vrcp.f32 %v409_v49  ;;  %v436_v61 = vmul.f32 1.442695, %v433_v56 }
 0x21c   : > { %642 = vpow2.f32 %v434_v55 }
 0x21d   : > { %644 = vpow2.f32 %v436_v61 }
 0x224   : > { %v639_v53 = vpop.eup %638 }
 0x225   : > { %v412_v54 = vmul.f32 1.0614054, %v639_v53 }
 0x227   : > { %v414_v57 = vadd.f32 -1.4531521, %v412_v54 }
 0x228   : > { %v641_v58 = vpop.eup %640 }
 0x229   : > { %v416_v59 = vmul.f32 %v639_v53, %v414_v57  ;;  %v413_v60 = vmul.f32 1.0614054, %v641_v58  ;;  %v643_v10 = vpop.eup %642 }
 0x22a   : > { %v645_v15 = vpop.eup %644 }
 0x22b   : > { %v418_v62 = vadd.f32 1.4214138, %v416_v59  ;;  %v415_v63 = vadd.f32 -1.4531521, %v413_v60 }
 0x22d   : > { %v420_v0 = vmul.f32 %v639_v53, %v418_v62  ;;  %v417_v1 = vmul.f32 %v641_v58, %v415_v63 }
 0x22f   : > { %v422_v2 = vadd.f32 -0.28449672, %v420_v0  ;;  %v419_v3 = vadd.f32 1.4214138, %v417_v1 }
 0x231   : > { %v424_v4 = vmul.f32 %v639_v53, %v422_v2  ;;  %v421_v5 = vmul.f32 %v641_v58, %v419_v3 }
 0x233   : > { %v426_v6 = vadd.f32 0.2548296, %v424_v4  ;;  %v423_v7 = vadd.f32 -0.28449672, %v421_v5 }
 0x235   : > { %v428_v8 = vmul.f32 %v639_v53, %v426_v6  ;;  %v425_v9 = vmul.f32 %v641_v58, %v423_v7 }
 0x237   : > { %v438_v11 = vmul.f32 %v643_v10, %v428_v8  ;;  %v427_v12 = vadd.f32 0.2548296, %v425_v9 }
 0x239   : > { %v440_v13 = vsub.f32 1.0, %v438_v11  ;;  %v429_v14 = vmul.f32 %v641_v58, %v427_v12 }
 0x23b   : > { %v442_v18 = vmul.f32 %v440_v13, %v402_v17  ;;  %v439_v19 = vmul.f32 %v645_v15, %v429_v14 }
 0x23d   : > { %v441_v20 = vsub.f32 1.0, %v439_v19  ;;  %v446_v22 = vadd.f32 1.0, %v442_v18 }
 0x23f   : > { %v443_v23 = vmul.f32 %v441_v20, %v403_v21  ;;  %v448_v27 = vmul.f32 %v446_v22, %v444_v24 }
 0x241   : > { %v447_v26 = vadd.f32 1.0, %v443_v23 }
 0x243   : > { %v449_v28 = vmul.f32 %v447_v26, %v445_v25 }
 0x245   : > { %v592_v29 = vpack.c.bf16 %v449_v28, %v448_v27 }
 0x247   : > { %593 = vst [vmem:[%s277_s14] sm:$0xff] %v592_v29  }
 0x248 PF: > { %s15_s20 = sadd.s32 1, %s668_s20   ;;  %s769_s18 = smov %s664_s19 }
 0x249   : > { %p12_p5 = scmp.ge.s32.totalorder %s15_s20, 4   ;;  %s770_s19 = smov %s772_s21 }
 0x24b   :  { %14 = sbr.rel (!%p12_p5) target bundleno = 2 (0x2), region = 76 }

// kernel: swin3d_forward.37
= control target key start
LH: loop header
LB: loop body
LE: loop exit
PB: predicated region body
PF: predicated region fallthrough
CT: control target
= control target key end

     0   :  { %s1502_s9 = smov 0   ;;  %s1504_s10 = smov 0   ;;  %s1694_s0 = inlined_call_operand.vmem [shape: bf16[2,2,8,96], index: 0, kind: input, shape index: {}]   ;;  %s1695_s1 = inlined_call_operand.vmem [shape: f32[4,8,8], index: 1, kind: input, shape index: {}]   ;;  %s1696_s2 = inlined_call_operand.vmem [shape: bf16[2,2,8,32], index: 2, kind: output, shape index: {}]  }
   0x1   :  { %s1506_s11 = smov 0  }
   0x2 LB: > { %s24_s12 = sadd.s32 1, %s1465_s10  ;;  %p1215_p0 = scmp.ge.s32.totalorder %s1469_s11, 1  ;;  %s1469_s11 = sphi %s1506_s11, %s12_s11   ;;  %s1465_s10 = sphi %s1504_s10, %s1698_s10   ;;  %s1461_s9 = sphi %s1502_s9, %s1697_s9  }
   0x3   : > { %p26_p1 = scmp.ge.s32.totalorder %s24_s12, 2  ;;  %p133_p2 = scmp.lt.s32.totalorder %s1469_s11, 3 }
   0x5   : > { %s1700_s12 = smov (%p26_p1, %s24_s12), 0  ;;  %p134_p3 = pnand %p1215_p0, %p133_p2 }
   0x6   : > { %p164_p4 = scmp.lt.s32.totalorder (!%p134_p3), %s1461_s9, 1  ;;  %s1473_s17 = smov (!%p134_p3), 96  }
   0x7   : > { %137 = sbr.rel (%p134_p3) target bundleno = 2517 (0x9d5), region = 28  ;;  %s1474_s20 = smov (!%p134_p3), 64  }
   0x8   : > { %s1475_s21 = smov (!%p134_p3), 88   ;;  %s1476_s22 = smov (!%p134_p3), 120  }
   0x9   : > { %s1477_s25 = smov (!%p134_p3), 56   ;;  %s1478_s26 = smov (!%p134_p3), 80  }
   0xa   : > { %s1479_s27 = smov (!%p134_p3), 112   ;;  %s1480_s30 = smov (!%p134_p3), 48  }
   0xb   : > { %s1481_s3 = smov (!%p134_p3), 72   ;;  %s1482_s4 = smov (!%p134_p3), 104  }
   0xc   : > { %v1471_v0 = vmov 0.0   ;;  %s1702_s9 = smov (!%p164_p4, %s1461_s9), 1  ;;  %vm1472_vm0 = vmmov 0   ;;  %vm192_vm1 = vcmask 64512   ;;  %v186_v9 = vld [vmem:[%s1695_s1] sm:$0xff]  ;;  %vm319_vm2 = vcmask 1043456  }
   0xd   : > { %1277 = vmatprep.subr.bf16.mxu0 %v1471_v0  ;;  %1283 = vmatprep.subr.bf16.mxu1 %v1471_v0  ;;  %s1243_s13 = sshll.u32 %s1702_s9, 3  ;;  %v1226_v56 = vld [vmem:[%s1695_s1 + $0x8] sm:$0xff]  ;;  %s1483_s7 = smov 40   ;;  %vm1114_vm3 = vcmask 195584   ;;  %vm1109_vm4 = vcmask 130048   ;;  %vm1121_vm5 = vcmask 257024  }
   0xe   : > { %1279 = vmatprep.mubr.msk.bf16.mxu0 %vm1472_vm0, %v1471_v0  ;;  %1285 = vmatprep.mubr.msk.bf16.mxu1 %vm1472_vm0, %v1471_v0  ;;  %s171_s16 = scalar_lea.vmem %s1694_s0, %s1243_s13  ;;  %s1484_s8 = smov 8  }
   0xf   : > { %v184_v1 = vld [vmem:[%s171_s16] sm:$0xf]  ;;  %v185_v2 = vld [vmem:[%s171_s16 + $0x4] sm:$0xf]  ;;  %s1485_s14 = smov 16   ;;  %s1486_s15 = smov 24  }
  0x10   : > { %v1534_v3 = vcombine.low %v184_v1, %v184_v1  ;;  %v1537_v4 = vcombine.low %v185_v2, %v185_v2  ;;  %s181_s18 = scalar_lea.vmem %s1696_s2, %s1243_s13 }
  0x12   : > { %190 = vrot.lane.b32.xlu0 %v1534_v3, %s1473_s17 }
  0x16   : > { %242 = vrot.lane.b32.xlu0 %v1537_v4, %s1473_s17 }
  0x84   : > { %v191_v5 = vpop.permute.xlu0 %190 }
  0x85   : > { %v197_v6 = vsel %vm192_vm1, %v191_v5, 0 }
  0x86   : > { %1278 = vmatpush3.bf16.xpose.msra.mxu0 %v197_v6 }
  0x87   : > { %1289 = vmatprep.subr.bf16.mxu0 %v1471_v0 }
  0x88   : > { %v243_v7 = vpop.permute.xlu0 %242 }
  0x89   : > { %v248_v8 = vsel %vm192_vm1, %v243_v7, 0 }
  0x8a   : > { %1284 = vmatpush3.bf16.xpose.msra.mxu1 %v248_v8 }
  0x8b   : > { %1295 = vmatprep.subr.bf16.mxu1 %v1471_v0 }
  0x8d   : > { %1280 = vmatmul.mubr.msk.bf16.vlgmr.msra.gmra.mxu0 %vm192_vm1, %v184_v1 }
  0x8e   : > { %1291 = vmatprep.mubr.msk.bf16.mxu0 %vm1472_vm0, %v1471_v0 }
  0x91   : > { %1286 = vmatmul.mubr.msk.bf16.vlgmr.msra.gmra.mxu1 %vm192_vm1, %v185_v2 }
  0x92   : > { %1297 = vmatprep.mubr.msk.bf16.mxu1 %vm1472_vm0, %v1471_v0 }
 0x14d   : > { %v233_v10 = vpop.f32.mrf.mxu0 }
 0x14e   : > { %v234_v11 = vadd.f32 %v233_v10, %v186_v9 }
 0x14f   : > { %v1281_v12 = vpop.f32.mrf.mxu0 }
 0x150   : > { %v290_v13 = vsel %vm192_vm1, %v234_v11, -inf }
 0x151   : > { %291 = vmax.xlane.f32.xlu1 %v290_v13  ;;  %v236_v14 = vpop.f32.mrf.mxu0  ;;  %v284_v15 = vpop.f32.mrf.mxu1 }
 0x152   : > { %v285_v16 = vadd.f32 %v284_v15, %v186_v9 }
 0x153   : > { %v1282_v17 = vpop.f32.mrf.mxu0  ;;  %v1287_v18 = vpop.f32.mrf.mxu1 }
 0x154   : > { %v293_v19 = vsel %vm192_vm1, %v285_v16, -inf }
 0x155   : > { %294 = vmax.xlane.f32.xlu1 %v293_v19  ;;  %v287_v20 = vpop.f32.mrf.mxu1 }
 0x157   : > { %v1288_v21 = vpop.f32.mrf.mxu1 }
 0x166   : > { %314 = vrot.lane.b32.xlu1 %v1534_v3, %s1474_s20 }
 0x16a   : > { %363 = vrot.lane.b32.xlu1 %v1537_v4, %s1474_s20 }
 0x16e   : > { %417 = vrot.lane.b32.xlu1 %v1534_v3, %s1475_s21 }
 0x1da   : > { %v292_v22 = vpop.xlane.xlu1 %291 }
 0x1db   : > { %v296_v23 = vsub.f32 %v234_v11, %v292_v22 }
 0x1dd   : > { %v298_v24 = vmul.f32 1.442695, %v296_v23 }
 0x1de   : > { %v295_v25 = vpop.xlane.xlu1 %294 }
 0x1df   : > { %1415 = vpow2.f32 %v298_v24  ;;  %v297_v26 = vsub.f32 %v285_v16, %v295_v25 }
 0x1e1   : > { %v300_v27 = vmul.f32 1.442695, %v297_v26 }
 0x1e2   : > { %v315_v28 = vpop.permute.xlu1 %314 }
 0x1e3   : > { %1417 = vpow2.f32 %v300_v27  ;;  %v321_v29 = vsel %vm319_vm2, %v315_v28, 0 }
 0x1e4   : > { %1290 = vmatpush3.bf16.msra.mxu0 %v321_v29 }
 0x1e5   : > { %1301 = vmatprep.subr.bf16.mxu0 %v1471_v0 }
 0x1e6   : > { %v364_v30 = vpop.permute.xlu1 %363 }
 0x1e7   : > { %v369_v31 = vsel %vm319_vm2, %v364_v30, 0 }
 0x1e8   : > { %1296 = vmatpush3.bf16.msra.mxu1 %v369_v31 }
 0x1e9   : > { %1307 = vmatprep.subr.bf16.mxu1 %v1471_v0 }
 0x1ea   : > { %v418_v36 = vpop.permute.xlu1 %417 }
 0x1eb   : > { %v423_v44 = vsel %vm192_vm1, %v418_v36, 0 }
 0x1ec   : > { %v1416_v32 = vpop.eup %1415 }
 0x1ed   : > { %v302_v33 = vsel %vm192_vm1, %v1416_v32, 0.0 }
 0x1ee   : > { %303 = vadd.xlane.f32.xlu0 %v302_v33 }
 0x1f0   : > { %v1418_v34 = vpop.eup %1417 }
 0x1f1   : > { %v305_v35 = vsel %vm192_vm1, %v1418_v34, 0.0 }
 0x1f2   : > { %306 = vadd.xlane.f32.xlu1 %v305_v35 }
 0x203   : > { %467 = vrot.lane.b32.xlu1 %v1537_v4, %s1475_s21 }
 0x204   : > { %415 = vrot.lane.b32.xlu0 %v1534_v3, %s1476_s22 }
 0x207   : > { %465 = vrot.lane.b32.xlu1 %v1537_v4, %s1476_s22 }
 0x277   : > { %v304_v37 = vpop.xlane.xlu0 %303 }
 0x278   : > { %1419 = vrcp.f32 %v304_v37 }
 0x27b   : > { %v307_v38 = vpop.xlane.xlu1 %306  ;;  %v416_v48 = vpop.permute.xlu0 %415 }
 0x27c   : > { %1421 = vrcp.f32 %v307_v38 }
 0x27f   : > { %v468_v43 = vpop.permute.xlu1 %467 }
 0x280   : > { %v473_v46 = vsel %vm192_vm1, %v468_v43, 0 }
 0x283   : > { %v466_v49 = vpop.permute.xlu1 %465 }
 0x285   : > { %v1420_v39 = vpop.eup %1419 }
 0x286   : > { %v310_v40 = vmul.f32 %v1420_v39, %v1416_v32 }
 0x288   : > { %v312_v41 = vpack.c.bf16 %v310_v40, %v310_v40 }
 0x289   : > { %v1422_v42 = vpop.eup %1421 }
 0x28a   : > { %1292 = vmatmul.mubr.msk.bf16.vlgmr.msra.gmra.mxu0 %vm192_vm1, %v312_v41  ;;  %v311_v45 = vmul.f32 %v1422_v42, %v1418_v34 }
 0x28b   : > { %1302 = vmatpush3.bf16.xpose.msra.mxu0 %v423_v44  ;;  %1303 = vmatprep.mubr.msk.bf16.mxu0 %vm1472_vm0, %v1471_v0  ;;  %v1231_v44 = vld [vmem:[%s1695_s1 + $0x10] sm:$0xff] }
 0x28c   : > { %v313_v47 = vpack.c.bf16 %v311_v45, %v311_v45  ;;  %1313 = vmatprep.subr.bf16.mxu0 %v1471_v0 }
 0x28e   : > { %1298 = vmatmul.mubr.msk.bf16.vlgmr.msra.gmra.mxu1 %vm192_vm1, %v313_v47 }
 0x28f   : > { %1308 = vmatpush3.bf16.xpose.msra.mxu1 %v473_v46  ;;  %1309 = vmatprep.mubr.msk.bf16.mxu1 %vm1472_vm0, %v1471_v0 }
 0x290   : > { %1319 = vmatprep.subr.bf16.mxu1 %v1471_v0 }
 0x292   : > { %1304 = vmatmul.mubr.msk.bf16.vlgmr.msra.gmra.mxu0 %vm192_vm1, %v416_v48 }
 0x293   : > { %1315 = vmatprep.mubr.msk.bf16.mxu0 %vm1472_vm0, %v1471_v0 }
 0x296   : > { %1310 = vmatmul.mubr.msk.bf16.vlgmr.msra.gmra.mxu1 %vm192_vm1, %v466_v49 }
 0x297   : > { %1321 = vmatprep.mubr.msk.bf16.mxu1 %vm1472_vm0, %v1471_v0 }
 0x34a   : > { %v1583_v50 = vpop.f32.mrf.mxu0 }
 0x34c   : > { %v1293_v51 = vpop.f32.mrf.mxu0 }
 0x34e   : > { %v360_v52 = vpop.f32.mrf.mxu0  ;;  %v1585_v53 = vpop.f32.mrf.mxu1 }
 0x350   : > { %v1294_v54 = vpop.f32.mrf.mxu0  ;;  %v1299_v55 = vpop.f32.mrf.mxu1 }
 0x352   : > { %v408_v57 = vpop.f32.mrf.mxu1  ;;  %v459_v58 = vpop.f32.mrf.mxu0 }
 0x353   : > { %v460_v59 = vadd.f32 %v1226_v56, %v459_v58 }
 0x354   : > { %v1300_v60 = vpop.f32.mrf.mxu1  ;;  %v1305_v61 = vpop.f32.mrf.mxu0 }
 0x355   : > { %v515_v62 = vsel %vm192_vm1, %v460_v59, -inf }
 0x356   : > { %v509_v63 = vpop.f32.mrf.mxu1  ;;  %516 = vmax.xlane.f32.xlu1 %v515_v62  ;;  %v462_v1 = vpop.f32.mrf.mxu0 }
 0x357   : > { %v510_v2 = vadd.f32 %v1226_v56, %v509_v63 }
 0x358   : > { %v1306_v5 = vpop.f32.mrf.mxu0  ;;  %v1311_v6 = vpop.f32.mrf.mxu1 }
 0x359   : > { %v518_v7 = vsel %vm192_vm1, %v510_v2, -inf }
 0x35a   : > { %519 = vmax.xlane.f32.xlu0 %v518_v7  ;;  %v512_v8 = vpop.f32.mrf.mxu1 }
 0x35c   : > { %v1312_v9 = vpop.f32.mrf.mxu1 }
 0x367   : > { %539 = vrot.lane.b32.xlu1 %v1534_v3, %s1477_s25 }
 0x36b   : > { %641 = vrot.lane.b32.xlu1 %v1534_v3, %s1478_s26 }
 0x370   : > { %587 = vrot.lane.b32.xlu0 %v1537_v4, %s1477_s25 }
 0x374   : > { %639 = vrot.lane.b32.xlu0 %v1534_v3, %s1479_s27 }
 0x3df   : > { %v517_v10 = vpop.xlane.xlu1 %516 }
 0x3e0   : > { %v521_v11 = vsub.f32 %v460_v59, %v517_v10 }
 0x3e2   : > { %v523_v12 = vmul.f32 1.442695, %v521_v11 }
 0x3e3   : > { %v520_v13 = vpop.xlane.xlu0 %519  ;;  %v540_v14 = vpop.permute.xlu1 %539 }
 0x3e4   : > { %1423 = vpow2.f32 %v523_v12  ;;  %v522_v15 = vsub.f32 %v510_v2, %v520_v13  ;;  %v545_v16 = vsel %vm319_vm2, %v540_v14, 0 }
 0x3e5   : > { %1314 = vmatpush3.bf16.msra.mxu0 %v545_v16 }
 0x3e6   : > { %v525_v17 = vmul.f32 1.442695, %v522_v15  ;;  %1325 = vmatprep.subr.bf16.mxu0 %v1471_v0 }
 0x3e7   : > { %v588_v22 = vpop.permute.xlu0 %587  ;;  %v642_v24 = vpop.permute.xlu1 %641 }
 0x3e8   : > { %1425 = vpow2.f32 %v525_v17  ;;  %v593_v23 = vsel %vm319_vm2, %v588_v22, 0  ;;  %v647_v32 = vsel %vm192_vm1, %v642_v24, 0 }
 0x3e9   : > { %1320 = vmatpush3.bf16.msra.mxu1 %v593_v23 }
 0x3ea   : > { %1331 = vmatprep.subr.bf16.mxu1 %v1471_v0 }
 0x3eb   : > { %v640_v36 = vpop.permute.xlu0 %639 }
 0x3f1   : > { %v1424_v18 = vpop.eup %1423 }
 0x3f2   : > { %v527_v19 = vsel %vm192_vm1, %v1424_v18, 0.0 }
 0x3f3   : > { %528 = vadd.xlane.f32.xlu1 %v527_v19 }
 0x3f5   : > { %v1426_v20 = vpop.eup %1425 }
 0x3f6   : > { %v530_v21 = vsel %vm192_vm1, %v1426_v20, 0.0 }
 0x3f7   : > { %531 = vadd.xlane.f32.xlu1 %v530_v21 }
 0x408   : > { %691 = vrot.lane.b32.xlu1 %v1537_v4, %s1478_s26 }
 0x40c   : > { %689 = vrot.lane.b32.xlu1 %v1537_v4, %s1479_s27 }
 0x47c   : > { %v529_v25 = vpop.xlane.xlu1 %528 }
 0x47d   : > { %1427 = vrcp.f32 %v529_v25 }
 0x480   : > { %v532_v26 = vpop.xlane.xlu1 %531 }
 0x481   : > { %1429 = vrcp.f32 %v532_v26 }
 0x484   : > { %v692_v31 = vpop.permute.xlu1 %691 }
 0x485   : > { %v697_v34 = vsel %vm192_vm1, %v692_v31, 0 }
 0x488   : > { %v690_v37 = vpop.permute.xlu1 %689 }
 0x48a   : > { %v1428_v27 = vpop.eup %1427 }
 0x48b   : > { %v535_v28 = vmul.f32 %v1428_v27, %v1424_v18 }
 0x48d   : > { %v537_v29 = vpack.c.bf16 %v535_v28, %v535_v28 }
 0x48e   : > { %v1430_v30 = vpop.eup %1429 }
 0x48f   : > { %1316 = vmatmul.mubr.msk.bf16.vlgmr.msra.gmra.mxu0 %vm192_vm1, %v537_v29  ;;  %v536_v33 = vmul.f32 %v1430_v30, %v1426_v20 }
 0x490   : > { %1326 = vmatpush3.bf16.xpose.msra.mxu0 %v647_v32  ;;  %1327 = vmatprep.mubr.msk.bf16.mxu0 %vm1472_vm0, %v1471_v0 }
 0x491   : > { %v538_v35 = vpack.c.bf16 %v536_v33, %v536_v33  ;;  %1337 = vmatprep.subr.bf16.mxu0 %v1471_v0 }
 0x493   : > { %1322 = vmatmul.mubr.msk.bf16.vlgmr.msra.gmra.mxu1 %vm192_vm1, %v538_v35 }
 0x494   : > { %1332 = vmatpush3.bf16.xpose.msra.mxu1 %v697_v34  ;;  %1333 = vmatprep.mubr.msk.bf16.mxu1 %vm1472_vm0, %v1471_v0  ;;  %v1236_v34 = vld [vmem:[%s1695_s1 + $0x18] sm:$0xff] }
 0x495   : > { %1343 = vmatprep.subr.bf16.mxu1 %v1471_v0 }
 0x497   : > { %1328 = vmatmul.mubr.msk.bf16.vlgmr.msra.gmra.mxu0 %vm192_vm1, %v640_v36 }
 0x498   : > { %1339 = vmatprep.mubr.msk.bf16.mxu0 %vm1472_vm0, %v1471_v0 }
 0x49b   : > { %1334 = vmatmul.mubr.msk.bf16.vlgmr.msra.gmra.mxu1 %vm192_vm1, %v690_v37 }
 0x49c   : > { %1345 = vmatprep.mubr.msk.bf16.mxu1 %vm1472_vm0, %v1471_v0 }
 0x54f   : > { %v1620_v38 = vpop.f32.mrf.mxu0 }
 0x551   : > { %v1317_v39 = vpop.f32.mrf.mxu0 }
 0x553   : > { %v584_v40 = vpop.f32.mrf.mxu0  ;;  %v1622_v41 = vpop.f32.mrf.mxu1 }
 0x555   : > { %v1318_v42 = vpop.f32.mrf.mxu0  ;;  %v1323_v43 = vpop.f32.mrf.mxu1 }
 0x557   : > { %v632_v45 = vpop.f32.mrf.mxu1  ;;  %v683_v46 = vpop.f32.mrf.mxu0 }
 0x558   : > { %v684_v47 = vadd.f32 %v1231_v44, %v683_v46 }
 0x559   : > { %v1324_v48 = vpop.f32.mrf.mxu1  ;;  %v1329_v49 = vpop.f32.mrf.mxu0 }
 0x55a   : > { %v739_v51 = vsel %vm192_vm1, %v684_v47, -inf }
 0x55b   : > { %v733_v52 = vpop.f32.mrf.mxu1  ;;  %740 = vmax.xlane.f32.xlu0 %v739_v51  ;;  %v686_v54 = vpop.f32.mrf.mxu0  ;;  %v635_v51 = vpack.c.bf16 %v1620_v38, %v1620_v38 }
 0x55c   : > { %v734_v55 = vadd.f32 %v1231_v44, %v733_v52  ;;  %v636_v52 = vpack.c.bf16 %v1622_v41, %v1622_v41 }
 0x55d   : > { %v1330_v56 = vpop.f32.mrf.mxu0  ;;  %v1335_v57 = vpop.f32.mrf.mxu1 }
 0x55e   : > { %v742_v58 = vsel %vm192_vm1, %v734_v55, -inf }
 0x55f   : > { %743 = vmax.xlane.f32.xlu1 %v742_v58  ;;  %v736_v59 = vpop.f32.mrf.mxu1 }
 0x561   : > { %v1336_v60 = vpop.f32.mrf.mxu1 }
 0x570   : > { %763 = vrot.lane.b32.xlu1 %v1534_v3, %s1480_s30 }
 0x574   : > { %865 = vrot.lane.b32.xlu1 %v1534_v3, %s1481_s3 }
 0x578   : > { %915 = vrot.lane.b32.xlu1 %v1537_v4, %s1481_s3 }
 0x57c   : > { %913 = vrot.lane.b32.xlu1 %v1537_v4, %s1482_s4 }
 0x5e4   : > { %v741_v61 = vpop.xlane.xlu0 %740 }
 0x5e5   : > { %v745_v62 = vsub.f32 %v684_v47, %v741_v61 }
 0x5e7   : > { %v747_v63 = vmul.f32 1.442695, %v745_v62 }
 0x5e8   : > { %v744_v1 = vpop.xlane.xlu1 %743 }
 0x5e9   : > { %1431 = vpow2.f32 %v747_v63  ;;  %v746_v2 = vsub.f32 %v734_v55, %v744_v1 }
 0x5eb   : > { %v749_v5 = vmul.f32 1.442695, %v746_v2 }
 0x5ec   : > { %v764_v10 = vpop.permute.xlu1 %763 }
 0x5ed   : > { %1433 = vpow2.f32 %v749_v5  ;;  %v769_v11 = vsel %vm319_vm2, %v764_v10, 0 }
 0x5ee   : > { %1338 = vmatpush3.bf16.msra.mxu0 %v769_v11 }
 0x5ef   : > { %1349 = vmatprep.subr.bf16.mxu0 %v1471_v0 }
 0x5f0   : > { %v866_v16 = vpop.permute.xlu1 %865 }
 0x5f1   : > { %v871_v19 = vsel %vm192_vm1, %v866_v16, 0 }
 0x5f4   : > { %v916_v22 = vpop.permute.xlu1 %915 }
 0x5f5   : > { %v921_v24 = vsel %vm192_vm1, %v916_v22, 0 }
 0x5f6   : > { %v1432_v6 = vpop.eup %1431 }
 0x5f7   : > { %v751_v7 = vsel %vm192_vm1, %v1432_v6, 0.0 }
 0x5f8   : > { %752 = vadd.xlane.f32.xlu0 %v751_v7  ;;  %v914_v27 = vpop.permute.xlu1 %913 }
 0x5fa   : > { %v1434_v8 = vpop.eup %1433 }
 0x5fb   : > { %v754_v9 = vsel %vm192_vm1, %v1434_v8, 0.0 }
 0x5fc   : > { %755 = vadd.xlane.f32.xlu0 %v754_v9 }
 0x612   : > { %811 = vrot.lane.b32.xlu0 %v1537_v4, %s1480_s30 }
 0x616   : > { %863 = vrot.lane.b32.xlu0 %v1534_v3, %s1482_s4 }
 0x681   : > { %v753_v12 = vpop.xlane.xlu0 %752 }
 0x682   : > { %1435 = vrcp.f32 %v753_v12 }
 0x685   : > { %v756_v13 = vpop.xlane.xlu0 %755 }
 0x686   : > { %1437 = vrcp.f32 %v756_v13 }
 0x689   : > { %v812_v14 = vpop.permute.xlu0 %811 }
 0x68a   : > { %v817_v15 = vsel %vm319_vm2, %v812_v14, 0 }
 0x68b   : > { %1344 = vmatpush3.bf16.msra.mxu1 %v817_v15 }
 0x68c   : > { %1355 = vmatprep.subr.bf16.mxu1 %v1471_v0 }
 0x68d   : > { %v864_v26 = vpop.permute.xlu0 %863 }
 0x68f   : > { %v1436_v17 = vpop.eup %1435 }
 0x690   : > { %v759_v18 = vmul.f32 %v1436_v17, %v1432_v6 }
 0x692   : > { %v761_v20 = vpack.c.bf16 %v759_v18, %v759_v18 }
 0x693   : > { %v1438_v21 = vpop.eup %1437 }
 0x694   : > { %1340 = vmatmul.mubr.msk.bf16.vlgmr.msra.gmra.mxu0 %vm192_vm1, %v761_v20  ;;  %v760_v23 = vmul.f32 %v1438_v21, %v1434_v8 }
 0x695   : > { %1350 = vmatpush3.bf16.xpose.msra.mxu0 %v871_v19  ;;  %1351 = vmatprep.mubr.msk.bf16.mxu0 %vm1472_vm0, %v1471_v0 }
 0x696   : > { %v762_v25 = vpack.c.bf16 %v760_v23, %v760_v23  ;;  %1361 = vmatprep.subr.bf16.mxu0 %v1471_v0 }
 0x698   : > { %1346 = vmatmul.mubr.msk.bf16.vlgmr.msra.gmra.mxu1 %vm192_vm1, %v762_v25 }
 0x699   : > { %1356 = vmatpush3.bf16.xpose.msra.mxu1 %v921_v24  ;;  %1357 = vmatprep.mubr.msk.bf16.mxu1 %vm1472_vm0, %v1471_v0 }
 0x69a   : > { %1367 = vmatprep.subr.bf16.mxu1 %v1471_v0 }
 0x69c   : > { %1352 = vmatmul.mubr.msk.bf16.vlgmr.msra.gmra.mxu0 %vm192_vm1, %v864_v26  ;;  %v411_v26 = vpack.c.bf16 %v1583_v50, %v1583_v50 }
 0x69d   : > { %1363 = vmatprep.mubr.msk.bf16.mxu0 %vm1472_vm0, %v1471_v0 }
 0x6a0   : > { %1358 = vmatmul.mubr.msk.bf16.vlgmr.msra.gmra.mxu1 %vm192_vm1, %v914_v27 }
 0x6a1   : > { %1369 = vmatprep.mubr.msk.bf16.mxu1 %vm1472_vm0, %v1471_v0 }
 0x754   : > { %v805_v28 = vpop.f32.mrf.mxu0 }
 0x755   : > { %v859_v1 = vpack.c.bf16 %v805_v28, %v805_v28 }
 0x756   : > { %v1341_v29 = vpop.f32.mrf.mxu0 }
 0x758   : > { %v808_v30 = vpop.f32.mrf.mxu0  ;;  %v853_v31 = vpop.f32.mrf.mxu1 }
 0x759   : > { %v860_v54 = vpack.c.bf16 %v853_v31, %v853_v31  ;;  %v412_v31 = vpack.c.bf16 %v1585_v53, %v1585_v53 }
 0x75a   : > { %v1342_v32 = vpop.f32.mrf.mxu0  ;;  %v1347_v33 = vpop.f32.mrf.mxu1 }
 0x75c   : > { %v856_v35 = vpop.f32.mrf.mxu1  ;;  %v907_v36 = vpop.f32.mrf.mxu0 }
 0x75d   : > { %v908_v37 = vadd.f32 %v1236_v34, %v907_v36 }
 0x75e   : > { %v1348_v39 = vpop.f32.mrf.mxu1  ;;  %v1353_v40 = vpop.f32.mrf.mxu0 }
 0x75f   : > { %v963_v42 = vsel %vm192_vm1, %v908_v37, -inf }
 0x760   : > { %v957_v43 = vpop.f32.mrf.mxu1  ;;  %964 = vmax.xlane.f32.xlu0 %v963_v42  ;;  %v910_v0 = vpop.f32.mrf.mxu0 }
 0x761   : > { %v958_v44 = vadd.f32 %v1236_v34, %v957_v43 }
 0x762   : > { %v1354_v45 = vpop.f32.mrf.mxu0  ;;  %v1359_v46 = vpop.f32.mrf.mxu1 }
 0x763   : > { %v966_v47 = vsel %vm192_vm1, %v958_v44, -inf }
 0x764   : > { %967 = vmax.xlane.f32.xlu1 %v966_v47  ;;  %v960_v48 = vpop.f32.mrf.mxu1 }
 0x766   : > { %v1360_v49 = vpop.f32.mrf.mxu1 }
 0x775   : > { %987 = vrot.lane.b32.xlu1 %v1534_v3, %s1483_s7 }
 0x779   : > { %1087 = vrot.lane.b32.xlu1 %v635_v51, %s1484_s8 }
 0x77d   : > { %1089 = vrot.lane.b32.xlu1 %v636_v52, %s1484_s8 }
 0x781   : > { %1095 = vrot.lane.b32.xlu1 %v860_v54, %s1485_s14 }
 0x7e9   : > { %v965_v55 = vpop.xlane.xlu0 %964 }
 0x7ea   : > { %v969_v56 = vsub.f32 %v908_v37, %v965_v55 }
 0x7ec   : > { %v971_v57 = vmul.f32 1.442695, %v969_v56 }
 0x7ed   : > { %v968_v58 = vpop.xlane.xlu1 %967 }
 0x7ee   : > { %1439 = vpow2.f32 %v971_v57  ;;  %v970_v59 = vsub.f32 %v958_v44, %v968_v58 }
 0x7f0   : > { %v973_v60 = vmul.f32 1.442695, %v970_v59 }
 0x7f1   : > { %v988_v3 = vpop.permute.xlu1 %987 }
 0x7f2   : > { %1441 = vpow2.f32 %v973_v60  ;;  %v993_v38 = vsel %vm319_vm2, %v988_v3, 0 }
 0x7f3   : > { %1362 = vmatpush3.bf16.msra.mxu0 %v993_v38 }
 0x7f5   : > { %v1088_v23 = vpop.permute.xlu1 %1087 }
 0x7f6   : > { %v1105_v27 = vsel %vm192_vm1, %v411_v26, %v1088_v23 }
 0x7f9   : > { %v1090_v24 = vpop.permute.xlu1 %1089 }
 0x7fa   : > { %v1108_v50 = vsel %vm192_vm1, %v412_v31, %v1090_v24 }
 0x7fb   : > { %v1440_v61 = vpop.eup %1439 }
 0x7fc   : > { %v975_v62 = vsel %vm192_vm1, %v1440_v61, 0.0 }
 0x7fd   : > { %976 = vadd.xlane.f32.xlu0 %v975_v62  ;;  %v1096_v28 = vpop.permute.xlu1 %1095 }
 0x7fe   : > { %v1113_v33 = vsel %vm1109_vm4, %v1108_v50, %v1096_v28 }
 0x7ff   : > { %v1442_v41 = vpop.eup %1441 }
 0x800   : > { %v978_v63 = vsel %vm192_vm1, %v1442_v41, 0.0 }
 0x801   : > { %979 = vadd.xlane.f32.xlu0 %v978_v63 }
 0x817   : > { %1035 = vrot.lane.b32.xlu0 %v1537_v4, %s1483_s7 }
 0x81b   : > { %1093 = vrot.lane.b32.xlu0 %v859_v1, %s1485_s14 }
 0x886   : > { %v977_v2 = vpop.xlane.xlu0 %976 }
 0x887   : > { %1443 = vrcp.f32 %v977_v2 }
 0x88a   : > { %v980_v5 = vpop.xlane.xlu0 %979 }
 0x88b   : > { %1445 = vrcp.f32 %v980_v5 }
 0x88e   : > { %v1036_v6 = vpop.permute.xlu0 %1035 }
 0x88f   : > { %v1041_v7 = vsel %vm319_vm2, %v1036_v6, 0 }
 0x890   : > { %1368 = vmatpush3.bf16.msra.mxu1 %v1041_v7 }
 0x892   : > { %v1094_v25 = vpop.permute.xlu0 %1093 }
 0x893   : > { %v1111_v29 = vsel %vm1109_vm4, %v1105_v27, %v1094_v25 }
 0x894   : > { %v1444_v8 = vpop.eup %1443 }
 0x895   : > { %v983_v9 = vmul.f32 %v1444_v8, %v1440_v61 }
 0x897   : > { %v985_v10 = vpack.c.bf16 %v983_v9, %v983_v9 }
 0x898   : > { %v1446_v11 = vpop.eup %1445 }
 0x899   : > { %1364 = vmatmul.mubr.msk.bf16.vlgmr.msra.gmra.mxu0 %vm192_vm1, %v985_v10  ;;  %v984_v12 = vmul.f32 %v1446_v11, %v1442_v41 }
 0x89b   : > { %v986_v13 = vpack.c.bf16 %v984_v12, %v984_v12 }
 0x89d   : > { %1370 = vmatmul.mubr.msk.bf16.vlgmr.msra.gmra.mxu1 %vm192_vm1, %v986_v13 }
 0x959   : > { %v1029_v4 = vpop.f32.mrf.mxu0 }
 0x95a   : > { %v1083_v14 = vpack.c.bf16 %v1029_v4, %v1029_v4 }
 0x95b   : > { %v1365_v15 = vpop.f32.mrf.mxu0 }
 0x95c   : > { %1099 = vrot.lane.b32.xlu0 %v1083_v14, %s1486_s15 }
 0x95d   : > { %v1032_v16 = vpop.f32.mrf.mxu0  ;;  %v1077_v17 = vpop.f32.mrf.mxu1 }
 0x95e   : > { %v1084_v18 = vpack.c.bf16 %v1077_v17, %v1077_v17 }
 0x95f   : > { %v1366_v19 = vpop.f32.mrf.mxu0  ;;  %v1371_v20 = vpop.f32.mrf.mxu1 }
 0x960   : > { %1101 = vrot.lane.b32.xlu1 %v1084_v18, %s1486_s15 }
 0x961   : > { %v1080_v21 = vpop.f32.mrf.mxu1 }
 0x963   : > { %v1372_v22 = vpop.f32.mrf.mxu1 }
 0x9ce   : > { %v1100_v30 = vpop.permute.xlu0 %1099 }
 0x9cf   : > { %v1116_v32 = vsel %vm1114_vm3, %v1111_v29, %v1100_v30 }
 0x9d0   : > { %1122 = vst.msk [vmem:[%s181_s18] sm:$0xf] %vm1121_vm5, %v1116_v32 }
 0x9d2   : > { %v1102_v34 = vpop.permute.xlu1 %1101 }
 0x9d3   : > { %v1119_v35 = vsel %vm1114_vm3, %v1113_v33, %v1102_v34 }
 0x9d4   : > { %1123 = vst.msk [vmem:[%s181_s18 + $0x4] sm:$0xf] %vm1121_vm5, %v1119_v35 }
 0x9d5 PF: > { %s12_s11 = sadd.s32 1, %s1469_s11   ;;  %s1697_s9 = smov %s1465_s10 }
 0x9d6   : > { %p9_p5 = scmp.ge.s32.totalorder %s12_s11, 4   ;;  %s1698_s10 = smov %s1700_s12 }
 0x9d8   :  { %11 = sbr.rel (!%p9_p5) target bundleno = 2 (0x2), region = 61 }

// kernel: swin3d_forward.40
= control target key start
LH: loop header
LB: loop body
LE: loop exit
PB: predicated region body
PF: predicated region fallthrough
CT: control target
= control target key end

     0   :  { %s688_s15 = smov 0   ;;  %s690_s16 = smov 0   ;;  %s756_s0 = inlined_call_operand.vmem [shape: bf16[32,128], index: 0, kind: input, shape index: {}]   ;;  %s757_s1 = inlined_call_operand.vmem [shape: bf16[128,32], index: 1, kind: input, shape index: {}]   ;;  %s758_s2 = inlined_call_operand.vmem [shape: f32[1,32], index: 2, kind: input, shape index: {}]   ;;  %s759_s3 = inlined_call_operand.vmem [shape: bf16[32,32], index: 3, kind: input, shape index: {}]   ;;  %s760_s4 = inlined_call_operand.vmem [shape: bf16[32,32], index: 4, kind: output, shape index: {}]  }
   0x1   :  { %s692_s17 = smov 0  }
   0x2 LB: > { %s26_s18 = sadd.s32 1, %s655_s16  ;;  %p546_p0 = scmp.ge.s32.totalorder %s659_s17, 1  ;;  %s659_s17 = sphi %s692_s17, %s14_s17   ;;  %s655_s16 = sphi %s690_s16, %s762_s16   ;;  %s651_s15 = sphi %s688_s15, %s761_s15  }
   0x3   : > { %p28_p1 = scmp.ge.s32.totalorder %s26_s18, 2  ;;  %p210_p2 = scmp.lt.s32.totalorder %s659_s17, 3 }
   0x5   : > { %s764_s18 = smov (%p28_p1, %s26_s18), 0  ;;  %p211_p3 = pnand %p546_p0, %p210_p2 }
   0x6   : > { %s547_s23 = sshll.u32 (!%p211_p3), %s651_s15, 1 }
   0x7   : > { %214 = sbr.rel (%p211_p3) target bundleno = 249 (0xf9), region = 36  ;;  %p255_p4 = scmp.lt.s32.totalorder (!%p211_p3), %s547_s23, 3 }
   0xc   : > { %v628_v0 = vld [vmem:[%s757_s1 + $0x38] sm:$0xff]   ;;  %v661_v1 = vmov 0.0   ;;  %v629_v2 = vld [vmem:[%s757_s1 + $0x30] sm:$0xff]   ;;  %vm662_vm0 = vmmov 0   ;;  %s766_s23 = smov (!%p255_p4, %s547_s23), 3  ;;  %v630_v3 = vld [vmem:[%s757_s1 + $0x28] sm:$0xff]  }
   0xd   : > { %582 = vmatprep.subr.bf16.mxu0 %v661_v1  ;;  %598 = vmatprep.mubr.msk.bf16.mxu0 %vm662_vm0, %v661_v1  ;;  %s715_s26 = sshll.u32 %s766_s23, 2  ;;  %v631_v4 = vld [vmem:[%s757_s1 + $0x20] sm:$0xff]   ;;  %v632_v5 = vld [vmem:[%s757_s1 + $0x18] sm:$0xff]   ;;  %v633_v6 = vld [vmem:[%s757_s1 + $0x10] sm:$0xff]   ;;  %vm420_vm1 = vcmask 257024  }
   0xe   : > { %583 = vmatpush3.bf16.msra.mxu0 %v628_v0  ;;  %s258_s29 = scalar_lea.vmem %s756_s0, %s715_s26  ;;  %v634_v7 = vld [vmem:[%s757_s1 + $0x8] sm:$0xff]   ;;  %v635_v8 = vld [vmem:[%s757_s1] sm:$0xff]   ;;  %s274_s19 = scalar_lea.vmem %s759_s3, %s715_s26 }
   0xf   : > { %584 = vmatprep.subr.bf16.mxu0 %v661_v1  ;;  %v636_v9 = vld [vmem:[%s258_s29] sm:$0xff]   ;;  %s283_s24 = scalar_lea.vmem %s760_s4, %s715_s26 }
  0x10   : > { %v570_v10 = vld [vmem:[%s274_s19] sm:$0xff]  }
  0x11   : > { %v553_v11 = vld [vmem:[%s758_s2] ss:$0 sm:$0xff]  ;;  %v571_v12 = vunpack.c.l.bf16 %v570_v10  ;;  %v572_v17 = vunpack.c.h.bf16 %v570_v10 }
  0x12   : > { %585 = vmatpush3.bf16.msra.mxu0 %v629_v2 }
  0x13   : > { %586 = vmatprep.subr.bf16.mxu0 %v661_v1 }
  0x16   : > { %587 = vmatpush3.bf16.msra.mxu0 %v630_v3 }
  0x17   : > { %588 = vmatprep.subr.bf16.mxu0 %v661_v1 }
  0x1a   : > { %589 = vmatpush3.bf16.msra.mxu0 %v631_v4 }
  0x1b   : > { %590 = vmatprep.subr.bf16.mxu0 %v661_v1 }
  0x1e   : > { %591 = vmatpush3.bf16.msra.mxu0 %v632_v5 }
  0x1f   : > { %592 = vmatprep.subr.bf16.mxu0 %v661_v1 }
  0x22   : > { %593 = vmatpush3.bf16.msra.mxu0 %v633_v6 }
  0x23   : > { %594 = vmatprep.subr.bf16.mxu0 %v661_v1 }
  0x26   : > { %595 = vmatpush3.bf16.msra.mxu0 %v634_v7 }
  0x27   : > { %596 = vmatprep.subr.bf16.mxu0 %v661_v1 }
  0x2a   : > { %597 = vmatpush3.bf16.msra.mxu0 %v635_v8 }
  0x2d   : > { %599 = vmatmul.mubr.bf16.vlgmr.msra.gmra.mxu0 %v636_v9 }
  0xed   : > { %v399_v13 = vpop.f32.mrf.mxu0 }
  0xee   : > { %v400_v14 = vadd.f32 %v553_v11, %v399_v13 }
  0xef   : > { %v600_v15 = vpop.f32.mrf.mxu0 }
  0xf0   : > { %v410_v16 = vadd.f32 %v571_v12, %v400_v14 }
  0xf1   : > { %v402_v18 = vpop.f32.mrf.mxu0 }
  0xf2   : > { %v567_v19 = vpack.c.bf16 %v410_v16, %v410_v16  ;;  %v403_v20 = vadd.f32 %v553_v11, %v402_v18 }
  0xf3   : > { %v601_v21 = vpop.f32.mrf.mxu0 }
  0xf4   : > { %421 = vst.msk [vmem:[%s283_s24] sm:$0xf] %vm420_vm1, %v567_v19  ;;  %v411_v22 = vadd.f32 %v572_v17, %v403_v20 }
  0xf6   : > { %v568_v23 = vpack.c.bf16 %v411_v22, %v411_v22 }
  0xf8   : > { %422 = vst.msk [vmem:[%s283_s24 + $0x4] sm:$0xf] %vm420_vm1, %v568_v23 }
  0xf9 PF: > { %s14_s17 = sadd.s32 1, %s659_s17   ;;  %s761_s15 = smov %s655_s16 }
  0xfa   : > { %p11_p5 = scmp.ge.s32.totalorder %s14_s17, 4   ;;  %s762_s16 = smov %s764_s18 }
  0xfc   :  { %13 = sbr.rel (!%p11_p5) target bundleno = 2 (0x2), region = 75 }

// kernel: swin3d_forward.46
= control target key start
LH: loop header
LB: loop body
LE: loop exit
PB: predicated region body
PF: predicated region fallthrough
CT: control target
= control target key end

     0   :  { %vm22_vm0 = vcmask 261120   ;;  %vm114_vm1 = vcmask 257024   ;;  %s206_s0 = inlined_call_operand.vmem [shape: bf16[32,32], index: 0, kind: input, shape index: {}]   ;;  %s207_s1 = inlined_call_operand.vmem [shape: f32[1,32], index: 1, kind: input, shape index: {}]   ;;  %s208_s2 = inlined_call_operand.vmem [shape: f32[1,32], index: 2, kind: input, shape index: {}]   ;;  %s209_s3 = inlined_call_operand.vmem [shape: bf16[32,32], index: 3, kind: output, shape index: {}]  }
   0x1   :  { %v134_v0 = vld [vmem:[%s206_s0] sm:$0xff]   ;;  %v141_v1 = vld [vmem:[%s206_s0 + $0x8] sm:$0xff]  }
   0x2   :  { %v135_v2 = vunpack.c.l.bf16 %v134_v0  ;;  %v139_v3 = vunpack.c.l.bf16 %v141_v1  ;;  %v136_v4 = vunpack.c.h.bf16 %v134_v0  ;;  %v140_v5 = vunpack.c.h.bf16 %v141_v1  ;;  %v123_v43 = vld [vmem:[%s207_s1] ss:$0 sm:$0xff] }
   0x3   :  { %v124_v45 = vld [vmem:[%s208_s2] ss:$0 sm:$0xff] }
   0x4   :  { %v23_v6 = vsel %vm22_vm0, %v135_v2, 0.0  ;;  %v29_v7 = vsel %vm22_vm0, %v139_v3, 0.0  ;;  %v26_v8 = vsel %vm22_vm0, %v136_v4, 0.0  ;;  %v32_v9 = vsel %vm22_vm0, %v140_v5, 0.0 }
   0x5   :  { %24 = vadd.xlane.f32.xlu0 %v23_v6  ;;  %30 = vadd.xlane.f32.xlu1 %v29_v7 }
   0x9   :  { %27 = vadd.xlane.f32.xlu0 %v26_v8  ;;  %33 = vadd.xlane.f32.xlu1 %v32_v9 }
  0x8e   :  { %v25_v10 = vpop.xlane.xlu0 %24  ;;  %v31_v11 = vpop.xlane.xlu1 %30 }
  0x8f   :  { %v36_v12 = vmul.f32 0.03125, %v25_v10  ;;  %v38_v13 = vmul.f32 0.03125, %v31_v11 }
  0x91   :  { %v40_v14 = vsub.f32 %v135_v2, %v36_v12  ;;  %v42_v15 = vsub.f32 %v139_v3, %v38_v13 }
  0x92   :  { %v28_v16 = vpop.xlane.xlu0 %27  ;;  %v34_v17 = vpop.xlane.xlu1 %33 }
  0x93   :  { %v37_v18 = vmul.f32 0.03125, %v28_v16  ;;  %v39_v19 = vmul.f32 0.03125, %v34_v17  ;;  %v44_v20 = vmul.f32 %v40_v14, %v40_v14  ;;  %v46_v21 = vmul.f32 %v42_v15, %v42_v15 }
  0x95   :  { %v41_v22 = vsub.f32 %v136_v4, %v37_v18  ;;  %v43_v23 = vsub.f32 %v140_v5, %v39_v19  ;;  %v48_v24 = vsel %vm22_vm0, %v44_v20, 0.0  ;;  %v54_v25 = vsel %vm22_vm0, %v46_v21, 0.0 }
  0x96   :  { %49 = vadd.xlane.f32.xlu0 %v48_v24 }
  0x97   :  { %v45_v26 = vmul.f32 %v41_v22, %v41_v22  ;;  %v47_v27 = vmul.f32 %v43_v23, %v43_v23 }
  0x99   :  { %v51_v28 = vsel %vm22_vm0, %v45_v26, 0.0  ;;  %v57_v29 = vsel %vm22_vm0, %v47_v27, 0.0 }
  0x9a   :  { %55 = vadd.xlane.f32.xlu0 %v54_v25  ;;  %52 = vadd.xlane.f32.xlu1 %v51_v28 }
  0x9e   :  { %58 = vadd.xlane.f32.xlu1 %v57_v29 }
 0x11f   :  { %v50_v30 = vpop.xlane.xlu0 %49 }
 0x120   :  { %v60_v31 = vmul.f32 0.03125, %v50_v30 }
 0x122   :  { %v64_v32 = vadd.f32 1e-05, %v60_v31 }
 0x123   :  { %v53_v33 = vpop.xlane.xlu1 %52  ;;  %v56_v34 = vpop.xlane.xlu0 %55 }
 0x124   :  { %142 = vrsqrt.f32 %v64_v32  ;;  %v61_v35 = vmul.f32 0.03125, %v53_v33  ;;  %v62_v36 = vmul.f32 0.03125, %v56_v34 }
 0x126   :  { %v65_v37 = vadd.f32 1e-05, %v61_v35  ;;  %v66_v38 = vadd.f32 1e-05, %v62_v36 }
 0x127   :  { %v59_v39 = vpop.xlane.xlu1 %58 }
 0x128   :  { %144 = vrsqrt.f32 %v65_v37  ;;  %v63_v40 = vmul.f32 0.03125, %v59_v39 }
 0x129   :  { %146 = vrsqrt.f32 %v66_v38 }
 0x12a   :  { %v67_v41 = vadd.f32 1e-05, %v63_v40 }
 0x12c   :  { %148 = vrsqrt.f32 %v67_v41 }
 0x131   :  { %v143_v42 = vpop.eup %142 }
 0x132   :  { %v72_v44 = vmul.f32 %v143_v42, %v40_v14 }
 0x134   :  { %v83_v46 = vmul.f32 %v123_v43, %v72_v44 }
 0x135   :  { %v145_v47 = vpop.eup %144 }
 0x136   :  { %v147_v48 = vpop.eup %146  ;;  %v94_v49 = vadd.f32 %v124_v45, %v83_v46  ;;  %v73_v50 = vmul.f32 %v145_v47, %v41_v22 }
 0x137   :  { %v74_v51 = vmul.f32 %v147_v48, %v42_v15 }
 0x138   :  { %v129_v52 = vpack.c.bf16 %v94_v49, %v94_v49  ;;  %v84_v53 = vmul.f32 %v123_v43, %v73_v50 }
 0x139   :  { %v149_v54 = vpop.eup %148  ;;  %v85_v55 = vmul.f32 %v123_v43, %v74_v51 }
 0x13a   :  { %115 = vst.msk [vmem:[%s209_s3] sm:$0xf] %vm114_vm1, %v129_v52  ;;  %v95_v56 = vadd.f32 %v124_v45, %v84_v53  ;;  %v75_v57 = vmul.f32 %v149_v54, %v43_v23 }
 0x13b   :  { %v96_v58 = vadd.f32 %v124_v45, %v85_v55 }
 0x13c   :  { %v130_v59 = vpack.c.bf16 %v95_v56, %v95_v56  ;;  %v86_v60 = vmul.f32 %v123_v43, %v75_v57 }
 0x13d   :  { %v131_v61 = vpack.c.bf16 %v96_v58, %v96_v58 }
 0x13e   :  { %116 = vst.msk [vmem:[%s209_s3 + $0x4] sm:$0xf] %vm114_vm1, %v130_v59  ;;  %v97_v62 = vadd.f32 %v124_v45, %v86_v60 }
 0x13f   :  { %117 = vst.msk [vmem:[%s209_s3 + $0x8] sm:$0xf] %vm114_vm1, %v131_v61 }
 0x140   :  { %v132_v63 = vpack.c.bf16 %v97_v62, %v97_v62 }
 0x142   :  { %118 = vst.msk [vmem:[%s209_s3 + $0xc] sm:$0xf] %vm114_vm1, %v132_v63 }

// kernel: swin3d_forward.42
= control target key start
LH: loop header
LB: loop body
LE: loop exit
PB: predicated region body
PF: predicated region fallthrough
CT: control target
= control target key end

     0   :  { %s1582_s12 = smov 0   ;;  %s1584_s13 = smov 0   ;;  %s1792_s0 = inlined_call_operand.vmem [shape: bf16[2,2,8,96], index: 0, kind: input, shape index: {}]   ;;  %s1793_s1 = inlined_call_operand.vmem [shape: f32[4,8,8], index: 1, kind: input, shape index: {}]   ;;  %s1794_s2 = inlined_call_operand.vmem [shape: f32[2,8,8], index: 2, kind: input, shape index: {}]   ;;  %s1795_s3 = inlined_call_operand.vmem [shape: bf16[2,2,8,32], index: 3, kind: output, shape index: {}]  }
   0x1   :  { %s1586_s14 = smov 0  }
   0x2 LB: > { %s25_s15 = sadd.s32 1, %s1540_s13  ;;  %p1290_p0 = scmp.ge.s32.totalorder %s1544_s14, 1  ;;  %s1544_s14 = sphi %s1586_s14, %s13_s14   ;;  %s1540_s13 = sphi %s1584_s13, %s1797_s13   ;;  %s1536_s12 = sphi %s1582_s12, %s1796_s12  }
   0x3   : > { %p27_p1 = scmp.ge.s32.totalorder %s25_s15, 2  ;;  %p169_p2 = scmp.lt.s32.totalorder %s1544_s14, 3 }
   0x5   : > { %s1799_s15 = smov (%p27_p1, %s25_s15), 0  ;;  %p170_p3 = pnand %p1290_p0, %p169_p2 }
   0x6   : > { %p207_p4 = scmp.lt.s32.totalorder (!%p170_p3), %s1536_s12, 1  ;;  %s1548_s20 = smov (!%p170_p3), 96  }
   0x7   : > { %173 = sbr.rel (%p170_p3) target bundleno = 2525 (0x9dd), region = 32  ;;  %s1549_s27 = smov (!%p170_p3), 64  }
   0x8   : > { %s1550_s28 = smov (!%p170_p3), 88   ;;  %s1551_s29 = smov (!%p170_p3), 120  }
   0x9   : > { %s1552_s5 = smov (!%p170_p3), 56   ;;  %s1553_s6 = smov (!%p170_p3), 80  }
   0xa   : > { %s1554_s7 = smov (!%p170_p3), 112   ;;  %s1555_s10 = smov (!%p170_p3), 48  }
   0xb   : > { %s1556_s11 = smov (!%p170_p3), 72   ;;  %s1557_s17 = smov (!%p170_p3), 104  }
   0xc   : > { %v1546_v0 = vmov 0.0   ;;  %s1801_s12 = smov (!%p207_p4, %s1536_s12), 1  ;;  %vm1547_vm0 = vmmov 0   ;;  %vm243_vm1 = vcmask 64512   ;;  %v237_v9 = vld [vmem:[%s1793_s1] sm:$0xff]  ;;  %v1642_v17 = vld [vmem:[%s1794_s2 + $0x8] sm:$0xff] }
   0xd   : > { %1352 = vmatprep.subr.bf16.mxu0 %v1546_v0  ;;  %1358 = vmatprep.subr.bf16.mxu1 %v1546_v0  ;;  %s1318_s16 = sshll.u32 %s1801_s12, 3  ;;  %v1636_v11 = vld [vmem:[%s1794_s2] sm:$0xff]  ;;  %vm372_vm2 = vcmask 1043456   ;;  %v1301_v60 = vld [vmem:[%s1793_s1 + $0x8] sm:$0xff]  ;;  %s1559_s21 = smov 8   ;;  %vm1173_vm3 = vcmask 195584  }
   0xe   : > { %1354 = vmatprep.mubr.msk.bf16.mxu0 %vm1547_vm0, %v1546_v0  ;;  %1360 = vmatprep.mubr.msk.bf16.mxu1 %vm1547_vm0, %v1546_v0  ;;  %s214_s19 = scalar_lea.vmem %s1792_s0, %s1318_s16  ;;  %s1560_s22 = smov 16   ;;  %vm1168_vm4 = vcmask 130048   ;;  %vm1180_vm5 = vcmask 257024  }
   0xf   : > { %v233_v1 = vld [vmem:[%s214_s19] sm:$0xf]  ;;  %v234_v2 = vld [vmem:[%s214_s19 + $0x4] sm:$0xf]  ;;  %s1561_s23 = smov 24   ;;  %s230_s26 = scalar_lea.vmem %s1795_s3, %s1318_s16 }
  0x10   : > { %v1614_v3 = vcombine.low %v233_v1, %v233_v1  ;;  %v1617_v4 = vcombine.low %v234_v2, %v234_v2 }
  0x12   : > { %241 = vrot.lane.b32.xlu0 %v1614_v3, %s1548_s20 }
  0x16   : > { %293 = vrot.lane.b32.xlu0 %v1617_v4, %s1548_s20  ;;  %s1558_s20 = smov 40  }
  0x84   : > { %v242_v5 = vpop.permute.xlu0 %241 }
  0x85   : > { %v248_v6 = vsel %vm243_vm1, %v242_v5, 0 }
  0x86   : > { %1353 = vmatpush3.bf16.xpose.msra.mxu0 %v248_v6 }
  0x87   : > { %1364 = vmatprep.subr.bf16.mxu0 %v1546_v0 }
  0x88   : > { %v294_v7 = vpop.permute.xlu0 %293 }
  0x89   : > { %v299_v8 = vsel %vm243_vm1, %v294_v7, 0 }
  0x8a   : > { %1359 = vmatpush3.bf16.xpose.msra.mxu1 %v299_v8 }
  0x8b   : > { %1370 = vmatprep.subr.bf16.mxu1 %v1546_v0 }
  0x8d   : > { %1355 = vmatmul.mubr.msk.bf16.vlgmr.msra.gmra.mxu0 %vm243_vm1, %v233_v1 }
  0x8e   : > { %1366 = vmatprep.mubr.msk.bf16.mxu0 %vm1547_vm0, %v1546_v0 }
  0x91   : > { %1361 = vmatmul.mubr.msk.bf16.vlgmr.msra.gmra.mxu1 %vm243_vm1, %v234_v2 }
  0x92   : > { %1372 = vmatprep.mubr.msk.bf16.mxu1 %vm1547_vm0, %v1546_v0 }
 0x14d   : > { %v284_v10 = vpop.f32.mrf.mxu0 }
 0x14e   : > { %v285_v12 = vadd.f32 %v284_v10, %v237_v9 }
 0x14f   : > { %v1356_v13 = vpop.f32.mrf.mxu0 }
 0x150   : > { %v341_v14 = vadd.f32 %v285_v12, %v1636_v11 }
 0x151   : > { %v287_v15 = vpop.f32.mrf.mxu0  ;;  %v335_v16 = vpop.f32.mrf.mxu1 }
 0x152   : > { %v336_v18 = vadd.f32 %v335_v16, %v237_v9  ;;  %v343_v19 = vsel %vm243_vm1, %v341_v14, -inf }
 0x153   : > { %344 = vmax.xlane.f32.xlu1 %v343_v19  ;;  %v1357_v20 = vpop.f32.mrf.mxu0  ;;  %v1362_v21 = vpop.f32.mrf.mxu1 }
 0x154   : > { %v342_v22 = vadd.f32 %v336_v18, %v1642_v17 }
 0x155   : > { %v338_v23 = vpop.f32.mrf.mxu1 }
 0x156   : > { %v346_v24 = vsel %vm243_vm1, %v342_v22, -inf }
 0x157   : > { %347 = vmax.xlane.f32.xlu1 %v346_v24  ;;  %v1363_v25 = vpop.f32.mrf.mxu1 }
 0x168   : > { %367 = vrot.lane.b32.xlu1 %v1614_v3, %s1549_s27 }
 0x16c   : > { %416 = vrot.lane.b32.xlu1 %v1617_v4, %s1549_s27 }
 0x170   : > { %470 = vrot.lane.b32.xlu1 %v1614_v3, %s1550_s28 }
 0x1dc   : > { %v345_v26 = vpop.xlane.xlu1 %344 }
 0x1dd   : > { %v349_v27 = vsub.f32 %v341_v14, %v345_v26 }
 0x1df   : > { %v351_v28 = vmul.f32 1.442695, %v349_v27 }
 0x1e0   : > { %v348_v29 = vpop.xlane.xlu1 %347 }
 0x1e1   : > { %1490 = vpow2.f32 %v351_v28  ;;  %v350_v30 = vsub.f32 %v342_v22, %v348_v29 }
 0x1e3   : > { %v353_v31 = vmul.f32 1.442695, %v350_v30 }
 0x1e4   : > { %v368_v32 = vpop.permute.xlu1 %367 }
 0x1e5   : > { %1492 = vpow2.f32 %v353_v31  ;;  %v374_v33 = vsel %vm372_vm2, %v368_v32, 0 }
 0x1e6   : > { %1365 = vmatpush3.bf16.msra.mxu0 %v374_v33 }
 0x1e7   : > { %1376 = vmatprep.subr.bf16.mxu0 %v1546_v0 }
 0x1e8   : > { %v417_v34 = vpop.permute.xlu1 %416 }
 0x1e9   : > { %v422_v35 = vsel %vm372_vm2, %v417_v34, 0 }
 0x1ea   : > { %1371 = vmatpush3.bf16.msra.mxu1 %v422_v35 }
 0x1eb   : > { %1382 = vmatprep.subr.bf16.mxu1 %v1546_v0 }
 0x1ec   : > { %v471_v40 = vpop.permute.xlu1 %470 }
 0x1ed   : > { %v476_v48 = vsel %vm243_vm1, %v471_v40, 0 }
 0x1ee   : > { %v1491_v36 = vpop.eup %1490 }
 0x1ef   : > { %v355_v37 = vsel %vm243_vm1, %v1491_v36, 0.0 }
 0x1f0   : > { %356 = vadd.xlane.f32.xlu0 %v355_v37 }
 0x1f2   : > { %v1493_v38 = vpop.eup %1492 }
 0x1f3   : > { %v358_v39 = vsel %vm243_vm1, %v1493_v38, 0.0 }
 0x1f4   : > { %359 = vadd.xlane.f32.xlu1 %v358_v39 }
 0x205   : > { %520 = vrot.lane.b32.xlu1 %v1617_v4, %s1550_s28 }
 0x206   : > { %468 = vrot.lane.b32.xlu0 %v1614_v3, %s1551_s29 }
 0x209   : > { %518 = vrot.lane.b32.xlu1 %v1617_v4, %s1551_s29 }
 0x279   : > { %v357_v41 = vpop.xlane.xlu0 %356 }
 0x27a   : > { %1494 = vrcp.f32 %v357_v41 }
 0x27d   : > { %v360_v42 = vpop.xlane.xlu1 %359  ;;  %v469_v52 = vpop.permute.xlu0 %468 }
 0x27e   : > { %1496 = vrcp.f32 %v360_v42 }
 0x281   : > { %v521_v47 = vpop.permute.xlu1 %520 }
 0x282   : > { %v526_v50 = vsel %vm243_vm1, %v521_v47, 0 }
 0x285   : > { %v519_v53 = vpop.permute.xlu1 %518 }
 0x287   : > { %v1495_v43 = vpop.eup %1494 }
 0x288   : > { %v363_v44 = vmul.f32 %v1495_v43, %v1491_v36 }
 0x28a   : > { %v365_v45 = vpack.c.bf16 %v363_v44, %v363_v44 }
 0x28b   : > { %v1497_v46 = vpop.eup %1496 }
 0x28c   : > { %1367 = vmatmul.mubr.msk.bf16.vlgmr.msra.gmra.mxu0 %vm243_vm1, %v365_v45  ;;  %v364_v49 = vmul.f32 %v1497_v46, %v1493_v38 }
 0x28d   : > { %1377 = vmatpush3.bf16.xpose.msra.mxu0 %v476_v48  ;;  %1378 = vmatprep.mubr.msk.bf16.mxu0 %vm1547_vm0, %v1546_v0 }
 0x28e   : > { %v366_v51 = vpack.c.bf16 %v364_v49, %v364_v49  ;;  %1388 = vmatprep.subr.bf16.mxu0 %v1546_v0 }
 0x290   : > { %1373 = vmatmul.mubr.msk.bf16.vlgmr.msra.gmra.mxu1 %vm243_vm1, %v366_v51 }
 0x291   : > { %1383 = vmatpush3.bf16.xpose.msra.mxu1 %v526_v50  ;;  %1384 = vmatprep.mubr.msk.bf16.mxu1 %vm1547_vm0, %v1546_v0 }
 0x292   : > { %1394 = vmatprep.subr.bf16.mxu1 %v1546_v0 }
 0x294   : > { %1379 = vmatmul.mubr.msk.bf16.vlgmr.msra.gmra.mxu0 %vm243_vm1, %v469_v52  ;;  %v1306_v52 = vld [vmem:[%s1793_s1 + $0x10] sm:$0xff] }
 0x295   : > { %1390 = vmatprep.mubr.msk.bf16.mxu0 %vm1547_vm0, %v1546_v0 }
 0x298   : > { %1385 = vmatmul.mubr.msk.bf16.vlgmr.msra.gmra.mxu1 %vm243_vm1, %v519_v53 }
 0x299   : > { %1396 = vmatprep.mubr.msk.bf16.mxu1 %vm1547_vm0, %v1546_v0 }
 0x34c   : > { %v1675_v54 = vpop.f32.mrf.mxu0 }
 0x34e   : > { %v1368_v55 = vpop.f32.mrf.mxu0 }
 0x350   : > { %v413_v56 = vpop.f32.mrf.mxu0  ;;  %v1677_v57 = vpop.f32.mrf.mxu1 }
 0x352   : > { %v1369_v58 = vpop.f32.mrf.mxu0  ;;  %v1374_v59 = vpop.f32.mrf.mxu1 }
 0x354   : > { %v461_v61 = vpop.f32.mrf.mxu1  ;;  %v512_v62 = vpop.f32.mrf.mxu0 }
 0x355   : > { %v513_v63 = vadd.f32 %v1301_v60, %v512_v62 }
 0x356   : > { %v1375_v1 = vpop.f32.mrf.mxu1  ;;  %v1380_v2 = vpop.f32.mrf.mxu0 }
 0x357   : > { %v568_v5 = vadd.f32 %v513_v63, %v1636_v11 }
 0x358   : > { %v515_v6 = vpop.f32.mrf.mxu0  ;;  %v562_v7 = vpop.f32.mrf.mxu1 }
 0x359   : > { %v563_v8 = vadd.f32 %v1301_v60, %v562_v7  ;;  %v570_v9 = vsel %vm243_vm1, %v568_v5, -inf }
 0x35a   : > { %v1386_v10 = vpop.f32.mrf.mxu1  ;;  %571 = vmax.xlane.f32.xlu1 %v570_v9  ;;  %v1381_v12 = vpop.f32.mrf.mxu0 }
 0x35b   : > { %v569_v13 = vadd.f32 %v563_v8, %v1642_v17 }
 0x35c   : > { %v565_v14 = vpop.f32.mrf.mxu1 }
 0x35d   : > { %v573_v15 = vsel %vm243_vm1, %v569_v13, -inf }
 0x35e   : > { %574 = vmax.xlane.f32.xlu0 %v573_v15  ;;  %v1387_v16 = vpop.f32.mrf.mxu1 }
 0x36b   : > { %594 = vrot.lane.b32.xlu1 %v1614_v3, %s1552_s5 }
 0x36f   : > { %696 = vrot.lane.b32.xlu1 %v1614_v3, %s1553_s6 }
 0x374   : > { %642 = vrot.lane.b32.xlu0 %v1617_v4, %s1552_s5 }
 0x378   : > { %694 = vrot.lane.b32.xlu0 %v1614_v3, %s1554_s7 }
 0x3e3   : > { %v572_v18 = vpop.xlane.xlu1 %571 }
 0x3e4   : > { %v576_v19 = vsub.f32 %v568_v5, %v572_v18 }
 0x3e6   : > { %v578_v20 = vmul.f32 1.442695, %v576_v19 }
 0x3e7   : > { %v575_v21 = vpop.xlane.xlu0 %574  ;;  %v595_v22 = vpop.permute.xlu1 %594 }
 0x3e8   : > { %1498 = vpow2.f32 %v578_v20  ;;  %v577_v23 = vsub.f32 %v569_v13, %v575_v21  ;;  %v600_v24 = vsel %vm372_vm2, %v595_v22, 0 }
 0x3e9   : > { %1389 = vmatpush3.bf16.msra.mxu0 %v600_v24 }
 0x3ea   : > { %v580_v25 = vmul.f32 1.442695, %v577_v23  ;;  %1400 = vmatprep.subr.bf16.mxu0 %v1546_v0 }
 0x3eb   : > { %v643_v30 = vpop.permute.xlu0 %642  ;;  %v697_v32 = vpop.permute.xlu1 %696 }
 0x3ec   : > { %1500 = vpow2.f32 %v580_v25  ;;  %v648_v31 = vsel %vm372_vm2, %v643_v30, 0  ;;  %v702_v40 = vsel %vm243_vm1, %v697_v32, 0 }
 0x3ed   : > { %1395 = vmatpush3.bf16.msra.mxu1 %v648_v31 }
 0x3ee   : > { %1406 = vmatprep.subr.bf16.mxu1 %v1546_v0 }
 0x3ef   : > { %v695_v44 = vpop.permute.xlu0 %694 }
 0x3f5   : > { %v1499_v26 = vpop.eup %1498 }
 0x3f6   : > { %v582_v27 = vsel %vm243_vm1, %v1499_v26, 0.0 }
 0x3f7   : > { %583 = vadd.xlane.f32.xlu1 %v582_v27 }
 0x3f9   : > { %v1501_v28 = vpop.eup %1500 }
 0x3fa   : > { %v585_v29 = vsel %vm243_vm1, %v1501_v28, 0.0 }
 0x3fb   : > { %586 = vadd.xlane.f32.xlu1 %v585_v29 }
 0x40c   : > { %746 = vrot.lane.b32.xlu1 %v1617_v4, %s1553_s6 }
 0x410   : > { %744 = vrot.lane.b32.xlu1 %v1617_v4, %s1554_s7 }
 0x480   : > { %v584_v33 = vpop.xlane.xlu1 %583 }
 0x481   : > { %1502 = vrcp.f32 %v584_v33 }
 0x484   : > { %v587_v34 = vpop.xlane.xlu1 %586 }
 0x485   : > { %1504 = vrcp.f32 %v587_v34 }
 0x488   : > { %v747_v39 = vpop.permute.xlu1 %746 }
 0x489   : > { %v752_v42 = vsel %vm243_vm1, %v747_v39, 0 }
 0x48c   : > { %v745_v45 = vpop.permute.xlu1 %744 }
 0x48e   : > { %v1503_v35 = vpop.eup %1502 }
 0x48f   : > { %v590_v36 = vmul.f32 %v1503_v35, %v1499_v26 }
 0x491   : > { %v592_v37 = vpack.c.bf16 %v590_v36, %v590_v36 }
 0x492   : > { %v1505_v38 = vpop.eup %1504 }
 0x493   : > { %1391 = vmatmul.mubr.msk.bf16.vlgmr.msra.gmra.mxu0 %vm243_vm1, %v592_v37  ;;  %v591_v41 = vmul.f32 %v1505_v38, %v1501_v28 }
 0x494   : > { %1401 = vmatpush3.bf16.xpose.msra.mxu0 %v702_v40  ;;  %1402 = vmatprep.mubr.msk.bf16.mxu0 %vm1547_vm0, %v1546_v0 }
 0x495   : > { %v593_v43 = vpack.c.bf16 %v591_v41, %v591_v41  ;;  %1412 = vmatprep.subr.bf16.mxu0 %v1546_v0 }
 0x497   : > { %1397 = vmatmul.mubr.msk.bf16.vlgmr.msra.gmra.mxu1 %vm243_vm1, %v593_v43 }
 0x498   : > { %1407 = vmatpush3.bf16.xpose.msra.mxu1 %v752_v42  ;;  %1408 = vmatprep.mubr.msk.bf16.mxu1 %vm1547_vm0, %v1546_v0 }
 0x499   : > { %1418 = vmatprep.subr.bf16.mxu1 %v1546_v0 }
 0x49b   : > { %1403 = vmatmul.mubr.msk.bf16.vlgmr.msra.gmra.mxu0 %vm243_vm1, %v695_v44 }
 0x49c   : > { %1414 = vmatprep.mubr.msk.bf16.mxu0 %vm1547_vm0, %v1546_v0 }
 0x49f   : > { %1409 = vmatmul.mubr.msk.bf16.vlgmr.msra.gmra.mxu1 %vm243_vm1, %v745_v45 }
 0x4a0   : > { %1420 = vmatprep.mubr.msk.bf16.mxu1 %vm1547_vm0, %v1546_v0 }
 0x553   : > { %v1714_v46 = vpop.f32.mrf.mxu0 }
 0x555   : > { %v1392_v47 = vpop.f32.mrf.mxu0 }
 0x556   : > { %v1311_v47 = vld [vmem:[%s1793_s1 + $0x18] sm:$0xff] }
 0x557   : > { %v639_v48 = vpop.f32.mrf.mxu0  ;;  %v1716_v49 = vpop.f32.mrf.mxu1 }
 0x559   : > { %v1393_v50 = vpop.f32.mrf.mxu0  ;;  %v1398_v51 = vpop.f32.mrf.mxu1 }
 0x55b   : > { %v687_v53 = vpop.f32.mrf.mxu1  ;;  %v738_v55 = vpop.f32.mrf.mxu0 }
 0x55c   : > { %v739_v56 = vadd.f32 %v1306_v52, %v738_v55 }
 0x55d   : > { %v1399_v58 = vpop.f32.mrf.mxu1  ;;  %v1404_v59 = vpop.f32.mrf.mxu0 }
 0x55e   : > { %v794_v60 = vadd.f32 %v739_v56, %v1636_v11 }
 0x55f   : > { %v741_v61 = vpop.f32.mrf.mxu0  ;;  %v788_v62 = vpop.f32.mrf.mxu1 }
 0x560   : > { %v789_v63 = vadd.f32 %v1306_v52, %v788_v62  ;;  %v796_v1 = vsel %vm243_vm1, %v794_v60, -inf }
 0x561   : > { %v1410_v2 = vpop.f32.mrf.mxu1  ;;  %797 = vmax.xlane.f32.xlu0 %v796_v1  ;;  %v1405_v5 = vpop.f32.mrf.mxu0 }
 0x562   : > { %v795_v6 = vadd.f32 %v789_v63, %v1642_v17  ;;  %v691_v5 = vpack.c.bf16 %v1716_v49, %v1716_v49 }
 0x563   : > { %v791_v7 = vpop.f32.mrf.mxu1 }
 0x564   : > { %v799_v8 = vsel %vm243_vm1, %v795_v6, -inf }
 0x565   : > { %800 = vmax.xlane.f32.xlu1 %v799_v8  ;;  %v1411_v9 = vpop.f32.mrf.mxu1 }
 0x576   : > { %820 = vrot.lane.b32.xlu1 %v1614_v3, %s1555_s10 }
 0x57a   : > { %922 = vrot.lane.b32.xlu1 %v1614_v3, %s1556_s11 }
 0x57e   : > { %972 = vrot.lane.b32.xlu1 %v1617_v4, %s1556_s11 }
 0x582   : > { %970 = vrot.lane.b32.xlu1 %v1617_v4, %s1557_s17 }
 0x5ea   : > { %v798_v10 = vpop.xlane.xlu0 %797 }
 0x5eb   : > { %v802_v12 = vsub.f32 %v794_v60, %v798_v10 }
 0x5ed   : > { %v804_v13 = vmul.f32 1.442695, %v802_v12 }
 0x5ee   : > { %v801_v14 = vpop.xlane.xlu1 %800 }
 0x5ef   : > { %1506 = vpow2.f32 %v804_v13  ;;  %v803_v15 = vsub.f32 %v795_v6, %v801_v14 }
 0x5f1   : > { %v806_v16 = vmul.f32 1.442695, %v803_v15 }
 0x5f2   : > { %v821_v22 = vpop.permute.xlu1 %820 }
 0x5f3   : > { %1508 = vpow2.f32 %v806_v16  ;;  %v826_v23 = vsel %vm372_vm2, %v821_v22, 0 }
 0x5f4   : > { %1413 = vmatpush3.bf16.msra.mxu0 %v826_v23 }
 0x5f5   : > { %1424 = vmatprep.subr.bf16.mxu0 %v1546_v0 }
 0x5f6   : > { %v923_v28 = vpop.permute.xlu1 %922 }
 0x5f7   : > { %v928_v31 = vsel %vm243_vm1, %v923_v28, 0 }
 0x5fa   : > { %v973_v34 = vpop.permute.xlu1 %972 }
 0x5fb   : > { %v978_v36 = vsel %vm243_vm1, %v973_v34, 0 }
 0x5fc   : > { %v1507_v18 = vpop.eup %1506 }
 0x5fd   : > { %v808_v19 = vsel %vm243_vm1, %v1507_v18, 0.0 }
 0x5fe   : > { %809 = vadd.xlane.f32.xlu0 %v808_v19  ;;  %v971_v39 = vpop.permute.xlu1 %970 }
 0x600   : > { %v1509_v20 = vpop.eup %1508 }
 0x601   : > { %v811_v21 = vsel %vm243_vm1, %v1509_v20, 0.0 }
 0x602   : > { %812 = vadd.xlane.f32.xlu0 %v811_v21 }
 0x618   : > { %868 = vrot.lane.b32.xlu0 %v1617_v4, %s1555_s10 }
 0x61c   : > { %920 = vrot.lane.b32.xlu0 %v1614_v3, %s1557_s17 }
 0x687   : > { %v810_v24 = vpop.xlane.xlu0 %809 }
 0x688   : > { %1510 = vrcp.f32 %v810_v24 }
 0x68b   : > { %v813_v25 = vpop.xlane.xlu0 %812 }
 0x68c   : > { %1512 = vrcp.f32 %v813_v25 }
 0x68f   : > { %v869_v26 = vpop.permute.xlu0 %868 }
 0x690   : > { %v874_v27 = vsel %vm372_vm2, %v869_v26, 0 }
 0x691   : > { %1419 = vmatpush3.bf16.msra.mxu1 %v874_v27 }
 0x692   : > { %1430 = vmatprep.subr.bf16.mxu1 %v1546_v0 }
 0x693   : > { %v921_v38 = vpop.permute.xlu0 %920 }
 0x695   : > { %v1511_v29 = vpop.eup %1510 }
 0x696   : > { %v816_v30 = vmul.f32 %v1511_v29, %v1507_v18 }
 0x698   : > { %v818_v32 = vpack.c.bf16 %v816_v30, %v816_v30 }
 0x699   : > { %v1513_v33 = vpop.eup %1512 }
 0x69a   : > { %1415 = vmatmul.mubr.msk.bf16.vlgmr.msra.gmra.mxu0 %vm243_vm1, %v818_v32  ;;  %v817_v35 = vmul.f32 %v1513_v33, %v1509_v20 }
 0x69b   : > { %1425 = vmatpush3.bf16.xpose.msra.mxu0 %v928_v31  ;;  %1426 = vmatprep.mubr.msk.bf16.mxu0 %vm1547_vm0, %v1546_v0 }
 0x69c   : > { %v819_v37 = vpack.c.bf16 %v817_v35, %v817_v35  ;;  %1436 = vmatprep.subr.bf16.mxu0 %v1546_v0 }
 0x69e   : > { %1421 = vmatmul.mubr.msk.bf16.vlgmr.msra.gmra.mxu1 %vm243_vm1, %v819_v37 }
 0x69f   : > { %1431 = vmatpush3.bf16.xpose.msra.mxu1 %v978_v36  ;;  %1432 = vmatprep.mubr.msk.bf16.mxu1 %vm1547_vm0, %v1546_v0 }
 0x6a0   : > { %1442 = vmatprep.subr.bf16.mxu1 %v1546_v0 }
 0x6a2   : > { %1427 = vmatmul.mubr.msk.bf16.vlgmr.msra.gmra.mxu0 %vm243_vm1, %v921_v38 }
 0x6a3   : > { %1438 = vmatprep.mubr.msk.bf16.mxu0 %vm1547_vm0, %v1546_v0 }
 0x6a6   : > { %1433 = vmatmul.mubr.msk.bf16.vlgmr.msra.gmra.mxu1 %vm243_vm1, %v971_v39 }
 0x6a7   : > { %1444 = vmatprep.mubr.msk.bf16.mxu1 %vm1547_vm0, %v1546_v0 }
 0x75a   : > { %v862_v40 = vpop.f32.mrf.mxu0 }
 0x75b   : > { %v916_v16 = vpack.c.bf16 %v862_v40, %v862_v40  ;;  %v464_v40 = vpack.c.bf16 %v1675_v54, %v1675_v54 }
 0x75c   : > { %v1416_v41 = vpop.f32.mrf.mxu0 }
 0x75e   : > { %v865_v42 = vpop.f32.mrf.mxu0  ;;  %v910_v43 = vpop.f32.mrf.mxu1 }
 0x75f   : > { %v917_v6 = vpack.c.bf16 %v910_v43, %v910_v43 }
 0x760   : > { %v1417_v44 = vpop.f32.mrf.mxu0  ;;  %v1422_v45 = vpop.f32.mrf.mxu1 }
 0x761   : > { %v465_v45 = vpack.c.bf16 %v1677_v57, %v1677_v57 }
 0x762   : > { %v913_v48 = vpop.f32.mrf.mxu1  ;;  %v964_v50 = vpop.f32.mrf.mxu0 }
 0x763   : > { %v965_v51 = vadd.f32 %v1311_v47, %v964_v50 }
 0x764   : > { %v1423_v52 = vpop.f32.mrf.mxu1  ;;  %v1428_v53 = vpop.f32.mrf.mxu0 }
 0x765   : > { %v1020_v55 = vadd.f32 %v965_v51, %v1636_v11  ;;  %v690_v11 = vpack.c.bf16 %v1714_v46, %v1714_v46 }
 0x766   : > { %v967_v56 = vpop.f32.mrf.mxu0  ;;  %v1014_v58 = vpop.f32.mrf.mxu1 }
 0x767   : > { %v1015_v0 = vadd.f32 %v1311_v47, %v1014_v58  ;;  %v1022_v59 = vsel %vm243_vm1, %v1020_v55, -inf }
 0x768   : > { %v1434_v60 = vpop.f32.mrf.mxu1  ;;  %1023 = vmax.xlane.f32.xlu0 %v1022_v59  ;;  %v1429_v61 = vpop.f32.mrf.mxu0 }
 0x769   : > { %v1021_v62 = vadd.f32 %v1015_v0, %v1642_v17 }
 0x76a   : > { %v1017_v63 = vpop.f32.mrf.mxu1 }
 0x76b   : > { %v1025_v1 = vsel %vm243_vm1, %v1021_v62, -inf }
 0x76c   : > { %1026 = vmax.xlane.f32.xlu1 %v1025_v1  ;;  %v1435_v2 = vpop.f32.mrf.mxu1 }
 0x77d   : > { %1046 = vrot.lane.b32.xlu1 %v1614_v3, %s1558_s20 }
 0x781   : > { %1146 = vrot.lane.b32.xlu1 %v690_v11, %s1559_s21 }
 0x785   : > { %1148 = vrot.lane.b32.xlu1 %v691_v5, %s1559_s21 }
 0x789   : > { %1154 = vrot.lane.b32.xlu1 %v917_v6, %s1560_s22 }
 0x7f1   : > { %v1024_v17 = vpop.xlane.xlu0 %1023 }
 0x7f2   : > { %v1028_v7 = vsub.f32 %v1020_v55, %v1024_v17 }
 0x7f4   : > { %v1030_v8 = vmul.f32 1.442695, %v1028_v7 }
 0x7f5   : > { %v1027_v9 = vpop.xlane.xlu1 %1026 }
 0x7f6   : > { %1514 = vpow2.f32 %v1030_v8  ;;  %v1029_v10 = vsub.f32 %v1021_v62, %v1027_v9 }
 0x7f8   : > { %v1032_v12 = vmul.f32 1.442695, %v1029_v10 }
 0x7f9   : > { %v1047_v3 = vpop.permute.xlu1 %1046 }
 0x7fa   : > { %1516 = vpow2.f32 %v1032_v12  ;;  %v1052_v46 = vsel %vm372_vm2, %v1047_v3, 0 }
 0x7fb   : > { %1437 = vmatpush3.bf16.msra.mxu0 %v1052_v46 }
 0x7fd   : > { %v1147_v37 = vpop.permute.xlu1 %1146 }
 0x7fe   : > { %v1164_v41 = vsel %vm243_vm1, %v464_v40, %v1147_v37 }
 0x801   : > { %v1149_v38 = vpop.permute.xlu1 %1148 }
 0x802   : > { %v1167_v54 = vsel %vm243_vm1, %v465_v45, %v1149_v38 }
 0x803   : > { %v1515_v13 = vpop.eup %1514 }
 0x804   : > { %v1034_v14 = vsel %vm243_vm1, %v1515_v13, 0.0 }
 0x805   : > { %1035 = vadd.xlane.f32.xlu0 %v1034_v14  ;;  %v1155_v42 = vpop.permute.xlu1 %1154 }
 0x806   : > { %v1172_v48 = vsel %vm1168_vm4, %v1167_v54, %v1155_v42 }
 0x807   : > { %v1517_v49 = vpop.eup %1516 }
 0x808   : > { %v1037_v15 = vsel %vm243_vm1, %v1517_v49, 0.0 }
 0x809   : > { %1038 = vadd.xlane.f32.xlu0 %v1037_v15 }
 0x81f   : > { %1094 = vrot.lane.b32.xlu0 %v1617_v4, %s1558_s20 }
 0x823   : > { %1152 = vrot.lane.b32.xlu0 %v916_v16, %s1560_s22 }
 0x88e   : > { %v1036_v18 = vpop.xlane.xlu0 %1035 }
 0x88f   : > { %1518 = vrcp.f32 %v1036_v18 }
 0x892   : > { %v1039_v19 = vpop.xlane.xlu0 %1038 }
 0x893   : > { %1520 = vrcp.f32 %v1039_v19 }
 0x896   : > { %v1095_v20 = vpop.permute.xlu0 %1094 }
 0x897   : > { %v1100_v21 = vsel %vm372_vm2, %v1095_v20, 0 }
 0x898   : > { %1443 = vmatpush3.bf16.msra.mxu1 %v1100_v21 }
 0x89a   : > { %v1153_v39 = vpop.permute.xlu0 %1152 }
 0x89b   : > { %v1170_v43 = vsel %vm1168_vm4, %v1164_v41, %v1153_v39 }
 0x89c   : > { %v1519_v22 = vpop.eup %1518 }
 0x89d   : > { %v1042_v23 = vmul.f32 %v1519_v22, %v1515_v13 }
 0x89f   : > { %v1044_v24 = vpack.c.bf16 %v1042_v23, %v1042_v23 }
 0x8a0   : > { %v1521_v25 = vpop.eup %1520 }
 0x8a1   : > { %1439 = vmatmul.mubr.msk.bf16.vlgmr.msra.gmra.mxu0 %vm243_vm1, %v1044_v24  ;;  %v1043_v26 = vmul.f32 %v1521_v25, %v1517_v49 }
 0x8a3   : > { %v1045_v27 = vpack.c.bf16 %v1043_v26, %v1043_v26 }
 0x8a5   : > { %1445 = vmatmul.mubr.msk.bf16.vlgmr.msra.gmra.mxu1 %vm243_vm1, %v1045_v27 }
 0x961   : > { %v1088_v4 = vpop.f32.mrf.mxu0 }
 0x962   : > { %v1142_v28 = vpack.c.bf16 %v1088_v4, %v1088_v4 }
 0x963   : > { %v1440_v29 = vpop.f32.mrf.mxu0 }
 0x964   : > { %1158 = vrot.lane.b32.xlu0 %v1142_v28, %s1561_s23 }
 0x965   : > { %v1091_v30 = vpop.f32.mrf.mxu0  ;;  %v1136_v31 = vpop.f32.mrf.mxu1 }
 0x966   : > { %v1143_v32 = vpack.c.bf16 %v1136_v31, %v1136_v31 }
 0x967   : > { %v1441_v33 = vpop.f32.mrf.mxu0  ;;  %v1446_v34 = vpop.f32.mrf.mxu1 }
 0x968   : > { %1160 = vrot.lane.b32.xlu1 %v1143_v32, %s1561_s23 }
 0x969   : > { %v1139_v35 = vpop.f32.mrf.mxu1 }
 0x96b   : > { %v1447_v36 = vpop.f32.mrf.mxu1 }
 0x9d6   : > { %v1159_v44 = vpop.permute.xlu0 %1158 }
 0x9d7   : > { %v1175_v47 = vsel %vm1173_vm3, %v1170_v43, %v1159_v44 }
 0x9d8   : > { %1181 = vst.msk [vmem:[%s230_s26] sm:$0xf] %vm1180_vm5, %v1175_v47 }
 0x9da   : > { %v1161_v50 = vpop.permute.xlu1 %1160 }
 0x9db   : > { %v1178_v51 = vsel %vm1173_vm3, %v1172_v48, %v1161_v50 }
 0x9dc   : > { %1182 = vst.msk [vmem:[%s230_s26 + $0x4] sm:$0xf] %vm1180_vm5, %v1178_v51 }
 0x9dd PF: > { %s13_s14 = sadd.s32 1, %s1544_s14   ;;  %s1796_s12 = smov %s1540_s13 }
 0x9de   : > { %p10_p5 = scmp.ge.s32.totalorder %s13_s14, 4   ;;  %s1797_s13 = smov %s1799_s15 }
 0x9e0   :  { %12 = sbr.rel (!%p10_p5) target bundleno = 2 (0x2), region = 68 }

// kernel: swin3d_forward.47
= control target key start
LH: loop header
LB: loop body
LE: loop exit
PB: predicated region body
PF: predicated region fallthrough
CT: control target
= control target key end

     0   :  { %v109_v0 = vmov 0.0   ;;  %vm110_vm0 = vmmov 0   ;;  %vm40_vm1 = vcmask 261120   ;;  %vm84_vm2 = vcmask 80896   ;;  %s146_s1 = inlined_call_operand.vmem [shape: bf16[32,10], index: 1, kind: input, shape index: {}]   ;;  %s147_s0 = inlined_call_operand.vmem [shape: f32[8,32], index: 0, kind: input, shape index: {}]   ;;  %s148_s2 = inlined_call_operand.vmem [shape: f32[1,10], index: 2, kind: input, shape index: {}]   ;;  %s149_s3 = inlined_call_operand.vmem [shape: f32[8,10], index: 3, kind: output, shape index: {}]  }
   0x1   :  { %97 = vmatprep.subr.bf16.mxu0 %v109_v0  ;;  %v107_v1 = vld [vmem:[%s146_s1 + $0x8] sm:$0xff]   ;;  %101 = vmatprep.mubr.msk.bf16.mxu0 %vm110_vm0, %v109_v0  ;;  %v108_v2 = vld [vmem:[%s146_s1] sm:$0xff]  }
   0x2   :  { %98 = vmatpush3.bf16.msra.mxu0 %v107_v1  ;;  %v15_v3 = vld [vmem:[%s147_s0] sm:$0xff] }
   0x3   :  { %99 = vmatprep.subr.bf16.mxu0 %v109_v0  ;;  %v16_v4 = vpack.c.bf16 %v15_v3, %v15_v3  ;;  %v90_v5 = vld [vmem:[%s148_s2] ss:$0 sm:$0xff] }
   0x6   :  { %100 = vmatpush3.bf16.msra.mxu0 %v108_v2 }
   0x9   :  { %102 = vmatmul.mubr.msk.bf16.vlgmr.msra.gmra.mxu0 %vm40_vm1, %v16_v4 }
  0xc9   :  { %v78_v6 = vpop.f32.mrf.mxu0 }
  0xca   :  { %v79_v7 = vadd.f32 %v90_v5, %v78_v6 }
  0xcb   :  { %v103_v8 = vpop.f32.mrf.mxu0 }
  0xcc   :  { %85 = vst.msk [vmem:[%s149_s3] sm:$0xff] %vm84_vm2, %v79_v7 }
  0xcd   :  { %v81_v9 = vpop.f32.mrf.mxu0 }
  0xcf   :  { %v104_v10 = vpop.f32.mrf.mxu0 }

</bundles_post_ra>
